<compile_context>
chip_gen: v5e
topology: v5e:2x2
jax: 0.10.0
libtpu: 0.0.40
codegen_flags: <defaults>
</compile_context>

<pallas_src>
import functools
import math

import jax
import jax.numpy as jnp
from jax.experimental import pallas as pl
from jax.experimental.pallas import tpu as pltpu


def _round_up(v, m):
    return ((v + m - 1) // m) * m


def _sublane_multiple(dtype):
    itemsize = jnp.dtype(dtype).itemsize
    return {4: 8, 2: 16, 1: 32}.get(itemsize, 8)


def _default_block_bytes():
    """Generation-aware block byte budget (v7x has only 64 MiB VMEM/TC)."""
    try:
        vmem = pltpu.get_tpu_info().vmem_capacity_bytes
        if vmem >= 100 * 1024 * 1024:      # v5e / v6e class: 128 MiB VMEM
            return 4 * 1024 * 1024
        return 1 * 1024 * 1024             # v7x class: 64 MiB VMEM
    except Exception:
        return 2 * 1024 * 1024


def _pick_group(C, rows):
    """Pack g rows per lane-row so L = g*C is a multiple of 128 when cheap."""
    if rows <= 1 or C % 128 == 0:
        return 1
    g = math.lcm(C, 128) // C
    if g * C <= 512:
        return g
    # L-multiple-of-128 too wide; best-effort lane fill instead.
    return max(1, 128 // C)


def _ln_matmul_kernel(x_ref, w_ref, b_ref, a_ref, o_ref):
    # x_ref: (tm, L) tile; each lane-row carries g original rows of C channels.
    # a_ref: (L, L) block-diagonal averaging matrix (1/C in each CxC block).
    # w_ref / b_ref: (1, L) f32 params, fully VMEM-resident.
    x = x_ref[...].astype(jnp.float32)
    a = a_ref[...]
    mu = jnp.dot(x, a, preferred_element_type=jnp.float32,
                 precision=jax.lax.Precision.HIGHEST)
    d = x - mu
    var = jnp.dot(d * d, a, preferred_element_type=jnp.float32,
                  precision=jax.lax.Precision.HIGHEST)
    inv = jax.lax.rsqrt(var + 1e-5)        # unbiased=False variance, eps under sqrt
    o_ref[...] = (d * inv * w_ref[...] + b_ref[...]).astype(o_ref.dtype)


def _ln_reduce_kernel(x_ref, w_ref, b_ref, o_ref):
    # g == 1 path: last dim already lane-dense (C multiple of 128) -> plain
    # cross-lane reduce.
    x = x_ref[...].astype(jnp.float32)
    mu = jnp.mean(x, axis=-1, keepdims=True)
    d = x - mu
    var = jnp.mean(d * d, axis=-1, keepdims=True)
    inv = jax.lax.rsqrt(var + 1e-5)
    o_ref[...] = (d * inv * w_ref[...] + b_ref[...]).astype(o_ref.dtype)


@functools.partial(jax.jit, static_argnames=("block_bytes",))
def _withbias_layernorm_impl(x, weight, bias, block_bytes):
    orig_shape = x.shape
    C = orig_shape[-1]
    rows = 1
    for dim in orig_shape[:-1]:
        rows *= dim

    g = _pick_group(C, rows)
    L = g * C

    # Pad only the row axis (at most g-1 rows) so the lane packing never
    # collapses to g=1; pad rows are sliced off after the pallas_call.
    rows_p = _round_up(rows, g)
    x2 = x.reshape(rows, C)
    if rows_p != rows:
        x2 = jnp.pad(x2, ((0, rows_p - rows), (0, 0)))
    R = rows_p // g
    x2 = x2.reshape(R, L)

    # weight / bias stay f32 end-to-end (no bf16 round trip), tiled g times.
    w2 = weight.astype(jnp.float32).reshape(1, C)
    b2 = bias.astype(jnp.float32).reshape(1, C)
    if g > 1:
        w2 = jnp.tile(w2, (1, g))
        b2 = jnp.tile(b2, (1, g))

    # Row tile from the VMEM byte budget; keep only a >= 2-step floor
    # (pipeline overlap / 2 TCs on v7x), dtype-aware sublane rounding, and
    # rely on Pallas' masked partial tail block instead of padding R.
    itemsize = jnp.dtype(x.dtype).itemsize
    sub = _sublane_multiple(x.dtype)
    row_bytes = L * itemsize
    if R < sub:
        tm = R                              # tiny input: block == full dim
    else:
        tm = max(sub, (block_bytes // max(1, row_bytes)) // sub * sub)
        if R > 2 * sub:
            tm = min(tm, max(sub, _round_up(pl.cdiv(R, 2), sub)))
        tm = min(tm, _round_up(R, sub))

    # Scoped VMEM limit sized from the actual working set (double-buffered
    # in/out blocks + averaging matrix + params + f32 temporaries + headroom),
    # clipped to stay well inside v7x's 64 MiB physical VMEM.
    blk_bytes = tm * L * itemsize
    f32_blk = tm * L * 4
    a_bytes = L * L * 4 if g > 1 else 0
    vmem_limit = 4 * blk_bytes + a_bytes + 2 * L * 4 + 6 * f32_blk + (4 << 20)
    vmem_limit = int(min(max(vmem_limit, 16 << 20), 56 << 20))

    x_spec = pl.BlockSpec((tm, L), lambda i: (i, 0))
    o_spec = pl.BlockSpec((tm, L), lambda i: (i, 0))
    vmem_spec = pl.BlockSpec(memory_space=pltpu.MemorySpace.VMEM)

    if g > 1:
        # Block-diagonal averaging matrix: 1/C inside each CxC group block.
        gid = jnp.arange(L, dtype=jnp.int32) // C
        avg = jnp.where(gid[:, None] == gid[None, :],
                        jnp.float32(1.0 / C), jnp.float32(0.0))
        kernel = _ln_matmul_kernel
        in_specs = [x_spec, vmem_spec, vmem_spec, vmem_spec]
        args = (x2, w2, b2, avg)
    else:
        kernel = _ln_reduce_kernel
        in_specs = [x_spec, vmem_spec, vmem_spec]
        args = (x2, w2, b2)

    out = pl.pallas_call(
        kernel,
        out_shape=jax.ShapeDtypeStruct((R, L), x.dtype),
        grid_spec=pltpu.PrefetchScalarGridSpec(
            num_scalar_prefetch=0,
            grid=(pl.cdiv(R, tm),),
            in_specs=in_specs,
            out_specs=o_spec,
        ),
        compiler_params=pltpu.CompilerParams(
            dimension_semantics=("parallel",),
            vmem_limit_bytes=vmem_limit,
        ),
    )(*args)

    out = out.reshape(rows_p, C)
    if rows_p != rows:
        out = out[:rows]
    return out.reshape(orig_shape)


def withbias_layernorm(x, weight, bias, block_bytes=None):
    """x: (..., C); weight, bias: (C,). Returns same shape/dtype as x."""
    if block_bytes is None:
        block_bytes = _default_block_bytes()
    return _withbias_layernorm_impl(x, weight, bias, int(block_bytes))


def _reference(x, weight, bias):
    xf = x.astype(jnp.float32)
    mu = jnp.mean(xf, axis=-1, keepdims=True)
    var = jnp.mean((xf - mu) ** 2, axis=-1, keepdims=True)
    y = (xf - mu) / jnp.sqrt(var + 1e-5) * weight.astype(jnp.float32) \
        + bias.astype(jnp.float32)
    return y.astype(x.dtype)


if __name__ == "__main__":
    key = jax.random.PRNGKey(0)
    k1, k2 = jax.random.split(key)

    # Config 1 (typical fusion_mamba tokens (B, H*W, C) normalized over C):
    # C=48 -> g=8, L=384 (multiple of 128), MXU averaging-matrix path;
    # 2*77 = 154 rows exercises the row-padding (to 160) and the masked
    # partial tail block.
    B, HW, C = 2, 77, 48
    x = jax.random.normal(k1, (B, HW, C), dtype=jnp.float32) * 2.0 + 0.5
    w = 1.0 + 0.05 * jnp.arange(C, dtype=jnp.float32)     # non-trivial affine
    b = 0.02 * jnp.arange(C, dtype=jnp.float32) - 0.3
    out = jax.block_until_ready(withbias_layernorm(x, w, b))
    ref = _reference(x, w, b)
    assert out.shape == x.shape and out.dtype == x.dtype
    err = float(jnp.max(jnp.abs(out - ref)))
    assert err < 2e-5, f"mismatch vs reference (g>1 MXU path): {err}"

    # Config 2: C=128 -> g=1 cross-lane-reduce path (lanes already dense).
    B2, HW2, C2 = 2, 64, 128
    xb = jax.random.normal(k2, (B2, HW2, C2), dtype=jnp.float32)
    wb = 0.5 + 0.1 * jnp.arange(C2, dtype=jnp.float32)
    bb = -0.01 * jnp.arange(C2, dtype=jnp.float32)
    out2 = jax.block_until_ready(withbias_layernorm(xb, wb, bb))
    ref2 = _reference(xb, wb, bb)
    assert out2.shape == xb.shape and out2.dtype == xb.dtype
    err2 = float(jnp.max(jnp.abs(out2 - ref2)))
    assert err2 < 2e-5, f"mismatch vs reference (g=1 path): {err2}"

    print("KERNEL_OK")
</pallas_src>

<mosaic_0001>
module attributes {stable_mosaic.version = 11 : i64} {
  func.func @_ln_matmul_kernel(%arg0: i32, %arg1: memref<16x384xf32, #tpu.memory_space<vmem>>, %arg2: memref<1x384xf32, #tpu.memory_space<vmem>>, %arg3: memref<1x384xf32, #tpu.memory_space<vmem>>, %arg4: memref<384x384xf32, #tpu.memory_space<vmem>>, %arg5: memref<16x384xf32, #tpu.memory_space<vmem>>) attributes {dimension_semantics = [#tpu.dimension_semantics<parallel>], iteration_bounds = array<i64: 2>, scalar_prefetch = 0 : i64, scratch_operands = 0 : i64, tpu.core_type = #tpu.core_type<tc>, window_params = [{transform_indices = @transform_0, window_bounds = array<i64: 16, 384>}, {pipeline_mode = #tpu.pipeline_mode<synchronous>, transform_indices = @transform_1, window_bounds = array<i64: 1, 384>}, {pipeline_mode = #tpu.pipeline_mode<synchronous>, transform_indices = @transform_2, window_bounds = array<i64: 1, 384>}, {pipeline_mode = #tpu.pipeline_mode<synchronous>, transform_indices = @transform_3, window_bounds = array<i64: 384, 384>}, {transform_indices = @transform_4, window_bounds = array<i64: 16, 384>}]} {
    %c0 = arith.constant 0 : index
    %c0_0 = arith.constant 0 : index
    %0 = vector.load %arg1[%c0, %c0_0] : memref<16x384xf32, #tpu.memory_space<vmem>>, vector<16x384xf32>
    %c0_1 = arith.constant 0 : index
    %c0_2 = arith.constant 0 : index
    %1 = vector.load %arg4[%c0_1, %c0_2] : memref<384x384xf32, #tpu.memory_space<vmem>>, vector<384x384xf32>
    %cst = arith.constant dense<0.000000e+00> : vector<16x384xf32>
    %2 = tpu.matmul %0, %1, %cst {dimension_numbers = #tpu.dot_dimension_numbers<[1], [0], [0], [1], [0, 0, 1, 1], [], []>, precision = #tpu.contract_precision<fp32>} : vector<16x384xf32>, vector<384x384xf32>, vector<16x384xf32> -> vector<16x384xf32>
    %3 = arith.subf %0, %2 : vector<16x384xf32>
    %4 = arith.mulf %3, %3 : vector<16x384xf32>
    %cst_3 = arith.constant dense<0.000000e+00> : vector<16x384xf32>
    %5 = tpu.matmul %4, %1, %cst_3 {dimension_numbers = #tpu.dot_dimension_numbers<[1], [0], [0], [1], [0, 0, 1, 1], [], []>, precision = #tpu.contract_precision<fp32>} : vector<16x384xf32>, vector<384x384xf32>, vector<16x384xf32> -> vector<16x384xf32>
    %cst_4 = arith.constant 9.99999974E-6 : f32
    %6 = vector.broadcast %cst_4 : f32 to vector<16x384xf32>
    %7 = arith.addf %5, %6 : vector<16x384xf32>
    %8 = math.rsqrt %7 : vector<16x384xf32>
    %9 = arith.mulf %3, %8 : vector<16x384xf32>
    %c0_5 = arith.constant 0 : index
    %c0_6 = arith.constant 0 : index
    %10 = vector.load %arg2[%c0_5, %c0_6] : memref<1x384xf32, #tpu.memory_space<vmem>>, vector<1x384xf32>
    %11 = vector.broadcast %10 : vector<1x384xf32> to vector<16x384xf32>
    %12 = arith.mulf %9, %11 : vector<16x384xf32>
    %c0_7 = arith.constant 0 : index
    %c0_8 = arith.constant 0 : index
    %13 = vector.load %arg3[%c0_7, %c0_8] : memref<1x384xf32, #tpu.memory_space<vmem>>, vector<1x384xf32>
    %14 = vector.broadcast %13 : vector<1x384xf32> to vector<16x384xf32>
    %15 = arith.addf %12, %14 : vector<16x384xf32>
    %c0_9 = arith.constant 0 : index
    %c0_10 = arith.constant 0 : index
    %16 = vector.load %arg5[%c0_9, %c0_10] : memref<16x384xf32, #tpu.memory_space<vmem>>, vector<16x384xf32>
    tpu.vector_store %arg5[%c0_9, %c0_10], %15 {strides = array<i32>} : memref<16x384xf32, #tpu.memory_space<vmem>>, vector<16x384xf32>,
    return
  }
  func.func @transform_0(%arg0: i32) -> (i32, i32) {
    %c0_i32 = arith.constant 0 : i32
    %c0_i32_0 = arith.constant 0 : i32
    return %arg0, %c0_i32 : i32, i32
  }
  func.func @transform_1(%arg0: i32) -> (i32, i32) {
    %c0_i32 = arith.constant 0 : i32
    %c0_i32_0 = arith.constant 0 : i32
    %c0_i32_1 = arith.constant 0 : i32
    return %c0_i32, %c0_i32_0 : i32, i32
  }
  func.func @transform_2(%arg0: i32) -> (i32, i32) {
    %c0_i32 = arith.constant 0 : i32
    %c0_i32_0 = arith.constant 0 : i32
    %c0_i32_1 = arith.constant 0 : i32
    return %c0_i32, %c0_i32_0 : i32, i32
  }
  func.func @transform_3(%arg0: i32) -> (i32, i32) {
    %c0_i32 = arith.constant 0 : i32
    %c0_i32_0 = arith.constant 0 : i32
    %c0_i32_1 = arith.constant 0 : i32
    return %c0_i32, %c0_i32_0 : i32, i32
  }
  func.func @transform_4(%arg0: i32) -> (i32, i32) {
    %c0_i32 = arith.constant 0 : i32
    %c0_i32_0 = arith.constant 0 : i32
    return %arg0, %c0_i32 : i32, i32
  }
}

</mosaic_0001>

<bundles_post_ra>
// kernel: _withbias_layernorm_impl.1
= control target key start
LH: loop header
LB: loop body
LE: loop exit
PB: predicated region body
PF: predicated region fallthrough
CT: control target
= control target key end

     0   :  { %s7598_s15 = smov 0   ;;  %s7600_s16 = smov 0   ;;  %s12183_s0 = inlined_call_operand.vmem [shape: f32[20,384], index: 0, kind: input, shape index: {}]   ;;  %s12184_s1 = inlined_call_operand.vmem [shape: f32[1,384], index: 1, kind: input, shape index: {}]   ;;  %s12185_s2 = inlined_call_operand.vmem [shape: f32[1,384], index: 2, kind: input, shape index: {}]   ;;  %s12186_s3 = inlined_call_operand.vmem [shape: f32[384,384], index: 3, kind: input, shape index: {}]   ;;  %s12187_s4 = inlined_call_operand.vmem [shape: f32[20,384], index: 4, kind: output, shape index: {}]  }
   0x1   :  { %s7602_s17 = smov 0  }
   0x2 LB: > { %s7611_s18 = sadd.s32 4294967295, %s7539_s17   ;;  %s7613_s19 = sadd.s32 1, %s7539_s17   ;;  %s7539_s17 = sphi %s7602_s17, %s14298_s17   ;;  %s7535_s16 = sphi %s7600_s16, %s14297_s16   ;;  %s7531_s15 = sphi %s7598_s15, %s14296_s15  }
   0x3   : > { %s107_s20 = ssub.s32 %s7539_s17, %s7613_s19  ;;  %s110_s21 = sadd.s32 1, %s7535_s16 }
   0x4   : > { %p108_p0 = scmp.eq.s32.totalorder %s107_s20, 0  ;;  %p120_p1 = scmp.ne.s32.totalorder %s7535_s16, %s7531_s15 }
   0x5   : > { %p121_p2 = scmp.eq.s32.totalorder %s7611_s18, 1  ;;  %p7359_p3 = scmp.ge.s32.totalorder %s7539_s17, 1 }
   0x6   : > { %s7621_s22 = scalar_select %p108_p0, %s7535_s16, %s110_s21  }
   0x7   : > { %p7623_p4 = por %p121_p2, %p120_p1  ;;  %p174_p5 = scmp.lt.s32.totalorder %s7539_s17, 3 }
   0x9   : > { %p175_p6 = pnand %p7359_p3, %p174_p5 }
   0xb   : > { %178 = sbr.rel (%p175_p6) target bundleno = 1392 (0x570), region = 36 }
  0x10   : > { %v279_v0 = vld [vmem:[%s12186_s3 + $0x168] sm:$0xff]  ;;  %v276_v1 = vld [vmem:[%s12186_s3 + $0x150] sm:$0xff]  ;;  %v273_v2 = vld [vmem:[%s12186_s3 + $0x138] sm:$0xff]  ;;  %s7888_s26 = sshll.u32 %s7611_s18, 1  ;;  %s202_s24 = sand.u32 1, %s7531_s15  }
  0x11   : > { %v7636_v3 = vand.u32 4294901760, %v279_v0  ;;  %v7638_v4 = vand.u32 4294901760, %v276_v1  ;;  %v7640_v5 = vand.u32 4294901760, %v273_v2  ;;  %v270_v6 = vld [vmem:[%s12186_s3 + $0x120] sm:$0xff]  ;;  %v267_v7 = vld [vmem:[%s12186_s3 + $0x108] sm:$0xff]  ;;  %v264_v8 = vld [vmem:[%s12186_s3 + $0xf0] sm:$0xff] }
  0x12   : > { %v7651_v9 = vand.u32 4294901760, %v270_v6  ;;  %v7653_v10 = vand.u32 4294901760, %v267_v7  ;;  %v7655_v11 = vand.u32 4294901760, %v264_v8  ;;  %v261_v12 = vld [vmem:[%s12186_s3 + $0xd8] sm:$0xff]  ;;  %v258_v13 = vld [vmem:[%s12186_s3 + $0xc0] sm:$0xff]  ;;  %v255_v18 = vld [vmem:[%s12186_s3 + $0xa8] sm:$0xff] }
  0x13   : > { %13005 = vst [vmem:[#allocation3_spill] sm:$0xff] %v7636_v3  ;;  %379 = vmatpush.msra.mxu0 %v7636_v3  ;;  %592 = vmatpush.msra.mxu3 %v7636_v3  ;;  %v7666_v14 = vsub.f32 %v279_v0, %v7636_v3  ;;  %v7669_v15 = vsub.f32 %v276_v1, %v7638_v4  ;;  %v7674_v17 = vand.u32 4294901760, %v261_v12  ;;  %v7685_v21 = vand.u32 4294901760, %v258_v13  ;;  %v252_v26 = vld [vmem:[%s12186_s3 + $0x90] sm:$0xff]  ;;  %v249_v36 = vld [vmem:[%s12186_s3 + $0x78] sm:$0xff]  ;;  %v246_v42 = vld [vmem:[%s12186_s3 + $0x60] sm:$0xff] }
  0x14   : > { %13006 = vst [vmem:[#allocation4_spill] sm:$0xff] %v7638_v4  ;;  %v7672_v16 = vsub.f32 %v273_v2, %v7640_v5  ;;  %v7680_v19 = vsub.f32 %v270_v6, %v7651_v9  ;;  %v7683_v20 = vsub.f32 %v267_v7, %v7653_v10  ;;  %v7699_v25 = vsub.f32 %v264_v8, %v7655_v11  ;;  %v243_v52 = vld [vmem:[%s12186_s3 + $0x48] sm:$0xff]  ;;  %v240_v54 = vld [vmem:[%s12186_s3 + $0x30] sm:$0xff]  ;;  %v237_v63 = vld [vmem:[%s12186_s3 + $0x18] sm:$0xff]  ;;  %p211_p7 = scmp.lt.s32.totalorder %s7888_s26, 2  ;;  %s7376_s15 = smul.u32 48, %s202_s24 }
  0x15   : > { %13007 = vst [vmem:[#allocation5_spill] sm:$0xff] %v7640_v5  ;;  %381 = vmatpush.msra.mxu0 %v7638_v4  ;;  %534 = vmatpush.msra.mxu2 %v7666_v14  ;;  %v7690_v22 = vand.u32 4294901760, %v7666_v14  ;;  %v7693_v23 = vand.u32 4294901760, %v7669_v15  ;;  %v7709_v28 = vsub.f32 %v261_v12, %v7674_v17  ;;  %v7711_v29 = vand.u32 4294901760, %v255_v18  ;;  %v327_v55 = vld [vmem:[%s12186_s3 + $0x2e8] sm:$0xff]  ;;  %v324_v59 = vld [vmem:[%s12186_s3 + $0x2d0] sm:$0xff] }
  0x16   : > { %13008 = vst [vmem:[#allocation6_spill] sm:$0xff] %v7651_v9  ;;  %v7696_v24 = vand.u32 4294901760, %v7672_v16  ;;  %594 = vmatpush.msra.mxu3 %v7638_v4  ;;  %v7706_v27 = vand.u32 4294901760, %v7680_v19  ;;  %v7722_v33 = vand.u32 4294901760, %v7683_v20  ;;  %v7726_v34 = vsub.f32 %v258_v13, %v7685_v21  ;;  %v321_v7 = vld [vmem:[%s12186_s3 + $0x2b8] sm:$0xff]  ;;  %v234_v12 = vld [vmem:[%s12186_s3] sm:$0xff] }
  0x17   : > { %13009 = vst [vmem:[#allocation7_spill] sm:$0xff] %v7653_v10  ;;  %383 = vmatpush.msra.mxu0 %v7640_v5  ;;  %537 = vmatpush.msra.mxu2 %v7669_v15  ;;  %v430_v30 = vsub.f32 %v7666_v14, %v7690_v22  ;;  %v436_v31 = vsub.f32 %v7669_v15, %v7693_v23  ;;  %v7728_v35 = vand.u32 4294901760, %v252_v26  ;;  %v7742_v40 = vand.u32 4294901760, %v7699_v25  ;;  %s7981_s9 = scalar_select %p211_p7, %s7888_s26, 2 }
  0x18   : > { %13010 = vst [vmem:[#allocation8_spill] sm:$0xff] %v7655_v11  ;;  %v442_v32 = vsub.f32 %v7672_v16, %v7696_v24  ;;  %596 = vmatpush.msra.mxu3 %v7640_v5  ;;  %v448_v39 = vsub.f32 %v7680_v19, %v7706_v27  ;;  %v7746_v41 = vsub.f32 %v255_v18, %v7711_v29  ;;  %v7757_v45 = vand.u32 4294901760, %v249_v36  ;;  %v318_v18 = vld [vmem:[%s12186_s3 + $0x2a0] sm:$0xff]  ;;  %s11822_s29 = scalar_lea.vmem [#allocation2], %s7376_s15   ;;  %s7194_s30 = ssub.s32 (%p7623_p4), 3, %s7888_s26 }
  0x19   : > { %13011 = vst [vmem:[#allocation9_spill] sm:$0xff] %v7666_v14  ;;  %385 = vmatpush.msra.mxu0 %v7651_v9  ;;  %540 = vmatpush.msra.mxu2 %v7672_v16  ;;  %v7735_v37 = vand.u32 4294901760, %v430_v30  ;;  %v7737_v38 = vand.u32 4294901760, %v436_v31  ;;  %v454_v44 = vsub.f32 %v7683_v20, %v7722_v33  ;;  %v7760_v46 = vand.u32 4294901760, %v7709_v28  ;;  %s7377_s14 = smul.u32 24, %s7981_s9  ;;  %p7195_p8 = scmp.lt.s32.totalorder (%p7623_p4), %s7194_s30, 2 }
  0x1a   : > { %13012 = vst [vmem:[#allocation10_spill] sm:$0xff] %v7669_v15  ;;  %598 = vmatpush.msra.mxu3 %v7651_v9  ;;  %v7753_v43 = vand.u32 4294901760, %v442_v32  ;;  %v7765_v47 = vsub.f32 %v252_v26, %v7728_v35  ;;  %v7768_v48 = vand.u32 4294901760, %v7726_v34  ;;  %v7772_v49 = vand.u32 4294901760, %v448_v39  ;;  %s7378_s5 = smul.u32 (%p7623_p4), 48, %s7611_s18 }
  0x1b   : > { %13013 = vst [vmem:[#allocation11_spill] sm:$0xff] %v7672_v16  ;;  %387 = vmatpush.msra.mxu0 %v7653_v10  ;;  %432 = vmatpush.msra.mxu1 %v7735_v37  ;;  %v460_v50 = vsub.f32 %v7699_v25, %v7742_v40  ;;  %v7776_v51 = vand.u32 4294901760, %v246_v42  ;;  %v7784_v53 = vand.u32 4294901760, %v7746_v41  ;;  %v7794_v56 = vand.u32 4294901760, %v454_v44  ;;  %s8072_s28 = scalar_lea.vmem %s12183_s0, %s7377_s14 }
  0x1c   : > { %13014 = vst [vmem:[#allocation12_spill] sm:$0xff] %v7674_v17  ;;  %543 = vmatpush.msra.mxu2 %v7680_v19  ;;  %600 = vmatpush.msra.mxu3 %v7653_v10  ;;  %v466_v57 = vsub.f32 %v7709_v28, %v7760_v46  ;;  %v7799_v58 = vsub.f32 %v249_v36, %v7757_v45  ;;  %v7808_v61 = vand.u32 4294901760, %v243_v52  ;;  %v7811_v62 = vand.u32 4294901760, %v7765_v47  ;;  %s12116_s8 = scalar_lea.vmem (%p7623_p4), %s12187_s4, %s7378_s5  }
  0x1d   : > { %13015 = vst [vmem:[#allocation13_spill] sm:$0xff] %v7680_v19  ;;  %389 = vmatpush.msra.mxu0 %v7655_v11  ;;  %438 = vmatpush.msra.mxu1 %v7737_v38  ;;  %v472_v60 = vsub.f32 %v7726_v34, %v7768_v48  ;;  %v7818_v0 = vand.u32 4294901760, %v460_v50  ;;  %v7821_v1 = vsub.f32 %v246_v42, %v7776_v51  ;;  %v7823_v2 = vand.u32 4294901760, %v240_v54  ;;  %v315_v50 = vld [vmem:[%s12186_s3 + $0x288] sm:$0xff] }
  0x1e   : > { %13016 = vst [vmem:[#allocation14_spill] sm:$0xff] %v7683_v20  ;;  %546 = vmatpush.msra.mxu2 %v7683_v20  ;;  %602 = vmatpush.msra.mxu3 %v7655_v11  ;;  %v7825_v6 = vand.u32 4294901760, %v327_v55  ;;  %v478_v8 = vsub.f32 %v7746_v41, %v7784_v53  ;;  %v7837_v13 = vand.u32 4294901760, %v324_v59  ;;  %v7844_v26 = vand.u32 4294901760, %v466_v57 }
  0x1f   : > { %13017 = vst [vmem:[#allocation15_spill] sm:$0xff] %v7685_v21  ;;  %391 = vmatpush.msra.mxu0 %v7674_v17  ;;  %444 = vmatpush.msra.mxu1 %v7753_v43  ;;  %v7846_v30 = vand.u32 4294901760, %v237_v63  ;;  %v7849_v31 = vand.u32 4294901760, %v7799_v58  ;;  %v7856_v36 = vand.u32 4294901760, %v472_v60  ;;  %v484_v39 = vsub.f32 %v7765_v47, %v7811_v62 }
  0x20   : > { %13018 = vst [vmem:[#allocation16_spill] sm:$0xff] %v7690_v22  ;;  %549 = vmatpush.msra.mxu2 %v7699_v25  ;;  %604 = vmatpush.msra.mxu3 %v7674_v17  ;;  %v7852_v32 = vsub.f32 %v327_v55, %v7825_v6  ;;  %v7861_v42 = vsub.f32 %v243_v52, %v7808_v61  ;;  %v7863_v44 = vand.u32 4294901760, %v321_v7  ;;  %v7873_v57 = vand.u32 4294901760, %v234_v12 }
  0x21   : > { %13019 = vst [vmem:[#allocation17_spill] sm:$0xff] %v7693_v23  ;;  %393 = vmatpush.msra.mxu0 %v7685_v21  ;;  %450 = vmatpush.msra.mxu1 %v7772_v49  ;;  %v7871_v55 = vsub.f32 %v240_v54, %v7823_v2  ;;  %v7876_v60 = vand.u32 4294901760, %v7821_v1  ;;  %v7878_v52 = vand.u32 4294901760, %v318_v18  ;;  %v490_v54 = vsub.f32 %v7799_v58, %v7849_v31 }
  0x22   : > { %13020 = vst [vmem:[#allocation18_spill] sm:$0xff] %v7696_v24  ;;  %552 = vmatpush.msra.mxu2 %v7709_v28  ;;  %606 = vmatpush.msra.mxu3 %v7685_v21  ;;  %v7907_v20 = vand.u32 4294901760, %v484_v39  ;;  %v7910_v19 = vand.u32 4294901760, %v7861_v42  ;;  %v7920_v15 = vsub.f32 %v234_v12, %v7873_v57 }
  0x23   : > { %13021 = vst [vmem:[#allocation19_spill] sm:$0xff] %v7699_v25  ;;  %395 = vmatpush.msra.mxu0 %v7711_v29  ;;  %456 = vmatpush.msra.mxu1 %v7794_v56  ;;  %v7895_v25 = vsub.f32 %v237_v63, %v7846_v30  ;;  %v7913_v63 = vsub.f32 %v321_v7, %v7863_v44  ;;  %v309_v7 = vld [vmem:[%s12186_s3 + $0x258] sm:$0xff] }
  0x24   : > { %13022 = vst [vmem:[#allocation20_spill] sm:$0xff] %v7706_v27  ;;  %555 = vmatpush.msra.mxu2 %v7726_v34  ;;  %608 = vmatpush.msra.mxu3 %v7711_v29  ;;  %v496_v16 = vsub.f32 %v7821_v1, %v7876_v60  ;;  %v7926_v39 = vsub.f32 %v318_v18, %v7878_v52  ;;  %v7941_v18 = vand.u32 4294901760, %v490_v54 }
  0x25   : > { %13023 = vst [vmem:[#allocation21_spill] sm:$0xff] %v7709_v28  ;;  %397 = vmatpush.msra.mxu0 %v7728_v35  ;;  %462 = vmatpush.msra.mxu1 %v7818_v0  ;;  %v7885_v28 = vsub.f32 %v324_v59, %v7837_v13  ;;  %v312_v59 = vld [vmem:[%s12186_s3 + $0x270] sm:$0xff]  ;;  %v502_v54 = vsub.f32 %v7861_v42, %v7910_v19 }
  0x26   : > { %13024 = vst [vmem:[#allocation22_spill] sm:$0xff] %v7711_v29  ;;  %558 = vmatpush.msra.mxu2 %v7746_v41  ;;  %610 = vmatpush.msra.mxu3 %v7728_v35  ;;  %v7937_v12 = vand.u32 4294901760, %v312_v59 }
  0x27   : > { %13025 = vst [vmem:[#allocation23_spill] sm:$0xff] %v7722_v33  ;;  %399 = vmatpush.msra.mxu0 %v7757_v45  ;;  %468 = vmatpush.msra.mxu1 %v7844_v26  ;;  %v7935_v14 = vand.u32 4294901760, %v7885_v28 }
  0x28   : > { %13026 = vst [vmem:[#allocation24_spill] sm:$0xff] %v7726_v34  ;;  %v7882_v34 = vand.u32 4294901760, %v478_v8  ;;  %v7900_v8 = vand.u32 4294901760, %v315_v50  ;;  %561 = vmatpush.msra.mxu2 %v7765_v47  ;;  %612 = vmatpush.msra.mxu3 %v7757_v45 }
  0x29   : > { %13027 = vst [vmem:[#allocation25_spill] sm:$0xff] %v7728_v35  ;;  %401 = vmatpush.msra.mxu0 %v7776_v51  ;;  %474 = vmatpush.msra.mxu1 %v7856_v36 }
  0x2a   : > { %13028 = vst [vmem:[#allocation26_spill] sm:$0xff] %v7735_v37  ;;  %564 = vmatpush.msra.mxu2 %v7799_v58  ;;  %614 = vmatpush.msra.mxu3 %v7776_v51 }
  0x2b   : > { %13029 = vst [vmem:[#allocation27_spill] sm:$0xff] %v7737_v38  ;;  %403 = vmatpush.msra.mxu0 %v7808_v61  ;;  %480 = vmatpush.msra.mxu1 %v7882_v34  ;;  %v303_v38 = vld [vmem:[%s12186_s3 + $0x228] sm:$0xff] }
  0x2c   : > { %13030 = vst [vmem:[#allocation28_spill] sm:$0xff] %v7742_v40  ;;  %567 = vmatpush.msra.mxu2 %v7821_v1  ;;  %616 = vmatpush.msra.mxu3 %v7808_v61 }
  0x2d   : > { %13031 = vst [vmem:[#allocation29_spill] sm:$0xff] %v7746_v41  ;;  %v7898_v41 = vand.u32 4294901760, %v7852_v32  ;;  %405 = vmatpush.msra.mxu0 %v7823_v2  ;;  %486 = vmatpush.msra.mxu1 %v7907_v20 }
  0x2e   : > { %13032 = vst [vmem:[#allocation30_spill] sm:$0xff] %v7753_v43  ;;  %v7973_v43 = vand.u32 4294901760, %v7920_v15  ;;  %570 = vmatpush.msra.mxu2 %v7861_v42  ;;  %618 = vmatpush.msra.mxu3 %v7823_v2 }
  0x2f   : > { %13033 = vst [vmem:[#allocation31_spill] sm:$0xff] %v7757_v45  ;;  %407 = vmatpush.msra.mxu0 %v7846_v30  ;;  %492 = vmatpush.msra.mxu1 %v7941_v18 }
  0x30   : > { %13034 = vst [vmem:[#allocation32_spill] sm:$0xff] %v7760_v46  ;;  %573 = vmatpush.msra.mxu2 %v7871_v55  ;;  %620 = vmatpush.msra.mxu3 %v7846_v30 }
  0x31   : > { %13035 = vst [vmem:[#allocation33_spill] sm:$0xff] %v7765_v47  ;;  %v7923_v47 = vand.u32 4294901760, %v7871_v55  ;;  %409 = vmatpush.msra.mxu0 %v7873_v57 }
  0x32   : > { %13036 = vst [vmem:[#allocation34_spill] sm:$0xff] %v7768_v48  ;;  %576 = vmatpush.msra.mxu2 %v7895_v25  ;;  %622 = vmatpush.msra.mxu3 %v7873_v57 }
  0x33   : > { %13037 = vst [vmem:[#allocation35_spill] sm:$0xff] %v7772_v49  ;;  %v508_v49 = vsub.f32 %v7871_v55, %v7923_v47  ;;  %639 = vmatpush.msrb.mxu0 %v7690_v22 }
  0x34   : > { %13038 = vst [vmem:[#allocation36_spill] sm:$0xff] %v7776_v51  ;;  %579 = vmatpush.msra.mxu2 %v7920_v15 }
  0x35   : > { %13039 = vst [vmem:[#allocation37_spill] sm:$0xff] %v7784_v53  ;;  %643 = vmatpush.msrb.mxu0 %v7693_v23 }
  0x36   : > { %13040 = vst [vmem:[#allocation38_spill] sm:$0xff] %v7794_v56  ;;  %v7961_v56 = vand.u32 4294901760, %v309_v7  ;;  %751 = vmatpush.msrb.mxu2 %v7825_v6 }
  0x37   : > { %13041 = vst [vmem:[#allocation39_spill] sm:$0xff] %v7799_v58  ;;  %v7946_v58 = vand.u32 4294901760, %v7895_v25  ;;  %647 = vmatpush.msrb.mxu0 %v7696_v24  ;;  %v228_v24 = vld [vmem:[%s8072_s28] sm:$0xff] }
  0x38   : > { %13042 = vst [vmem:[#allocation40_spill] sm:$0xff] %v7808_v61  ;;  %v8017_v61 = vand.u32 4294901760, %v508_v49  ;;  %753 = vmatpush.msrb.mxu2 %v7837_v13 }
  0x39   : > { %13043 = vst [vmem:[#allocation41_spill] sm:$0xff] %v7811_v62  ;;  %651 = vmatpush.msrb.mxu0 %v7706_v27  ;;  %v8122_v27 = vand.u32 4294901760, %v228_v24 }
  0x3a   : > { %13044 = vst [vmem:[#allocation42_spill] sm:$0xff] %v7818_v0  ;;  %v306_v0 = vld [vmem:[%s12186_s3 + $0x240] sm:$0xff]  ;;  %755 = vmatpush.msrb.mxu2 %v7863_v44 }
  0x3b   : > { %13045 = vst [vmem:[#allocation43_spill] sm:$0xff] %v7821_v1  ;;  %v7970_v1 = vand.u32 4294901760, %v7926_v39  ;;  %v7990_v37 = vand.u32 4294901760, %v306_v0  ;;  %655 = vmatpush.msrb.mxu0 %v7722_v33 }
  0x3c   : > { %13046 = vst [vmem:[#allocation44_spill] sm:$0xff] %v7823_v2  ;;  %757 = vmatpush.msrb.mxu2 %v7878_v52 }
  0x3d   : > { %13047 = vst [vmem:[#allocation45_spill] sm:$0xff] %v7825_v6  ;;  %659 = vmatpush.msrb.mxu0 %v7742_v40  ;;  %v8160_v40 = vsub.f32 %v228_v24, %v8122_v27 }
  0x3e   : > { %13048 = vst [vmem:[#allocation46_spill] sm:$0xff] %v7837_v13  ;;  %759 = vmatpush.msrb.mxu2 %v7900_v8 }
  0x3f   : > { %13049 = vst [vmem:[#allocation47_spill] sm:$0xff] %v7844_v26  ;;  %v7949_v26 = vsub.f32 %v315_v50, %v7900_v8  ;;  %v7965_v50 = vand.u32 4294901760, %v496_v16  ;;  %v808_v16 = vsub.f32 %v7885_v28, %v7935_v14  ;;  %663 = vmatpush.msrb.mxu0 %v7760_v46  ;;  %582 = vmatmul.f32.vlgmr.msra.gmra.mxu2 %v8160_v40 }
  0x40   : > { %13050 = vst [vmem:[#allocation48_spill] sm:$0xff] %v7846_v30  ;;  %761 = vmatpush.msrb.mxu2 %v7937_v12 }
  0x41   : > { %13051 = vst [vmem:[#allocation49_spill] sm:$0xff] %v7849_v31  ;;  %v7999_v2 = vand.u32 4294901760, %v7949_v26  ;;  %498 = vmatpush.msra.mxu1 %v7965_v50  ;;  %667 = vmatpush.msrb.mxu0 %v7768_v48 }
  0x42   : > { %13052 = vst [vmem:[#allocation50_spill] sm:$0xff] %v7852_v32  ;;  %763 = vmatpush.msrb.mxu2 %v7961_v56 }
  0x43   : > { %13053 = vst [vmem:[#allocation51_spill] sm:$0xff] %v7856_v36  ;;  %v802_v36 = vsub.f32 %v7852_v32, %v7898_v41  ;;  %671 = vmatpush.msrb.mxu0 %v7784_v53 }
  0x44   : > { %13054 = vst [vmem:[#allocation52_spill] sm:$0xff] %v7861_v42  ;;  %v514_v42 = vsub.f32 %v7895_v25, %v7946_v58  ;;  %765 = vmatpush.msrb.mxu2 %v7990_v37 }
  0x45   : > { %13055 = vst [vmem:[#allocation53_spill] sm:$0xff] %v7863_v44  ;;  %675 = vmatpush.msrb.mxu0 %v7811_v62 }
  0x46   : > { %13056 = vst [vmem:[#allocation54_spill] sm:$0xff] %v7871_v55  ;;  %v820_v55 = vsub.f32 %v7926_v39, %v7970_v1 }
  0x47   : > { %13057 = vst [vmem:[#allocation55_spill] sm:$0xff] %v7873_v57  ;;  %679 = vmatpush.msrb.mxu0 %v7849_v31 }
  0x48   : > { %13058 = vst [vmem:[#allocation56_spill] sm:$0xff] %v7876_v60  ;;  %v8062_v22 = vand.u32 4294901760, %v820_v55 }
  0x49   : > { %13059 = vst [vmem:[#allocation57_spill] sm:$0xff] %v7878_v52  ;;  %683 = vmatpush.msrb.mxu0 %v7876_v60 }
  0x4a   : > { %13060 = vst [vmem:[#allocation58_spill] sm:$0xff] %v7882_v34  ;;  %v7959_v34 = vand.u32 4294901760, %v7913_v63 }
  0x4b   : > { %13061 = vst [vmem:[#allocation59_spill] sm:$0xff] %v7885_v28  ;;  %v8013_v28 = vand.u32 4294901760, %v303_v38  ;;  %687 = vmatpush.msrb.mxu0 %v7910_v19 }
  0x4c   : > { %13062 = vst [vmem:[#allocation60_spill] sm:$0xff] %v7895_v25  ;;  %v826_v25 = vsub.f32 %v7949_v26, %v7999_v2 }
  0x4d   : > { %13063 = vst [vmem:[#allocation61_spill] sm:$0xff] %v7898_v41  ;;  %v7994_v41 = vand.u32 4294901760, %v802_v36  ;;  %v814_v36 = vsub.f32 %v7913_v63, %v7959_v34  ;;  %767 = vmatpush.msrb.mxu2 %v8013_v28  ;;  %691 = vmatpush.msrb.mxu0 %v7923_v47 }
  0x4e   : > { %13064 = vst [vmem:[#allocation62_spill] sm:$0xff] %v7900_v8  ;;  %v8088_v23 = vand.u32 4294901760, %v826_v25  ;;  %v288_v25 = vld [vmem:[%s12186_s3 + $0x1b0] sm:$0xff] }
  0x4f   : > { %13065 = vst [vmem:[#allocation63_spill] sm:$0xff] %v7907_v20  ;;  %v7988_v20 = vsub.f32 %v312_v59, %v7937_v12  ;;  %v300_v59 = vld [vmem:[%s12186_s3 + $0x210] sm:$0xff]  ;;  %804 = vmatpush.msrb.mxu3 %v7994_v41  ;;  %695 = vmatpush.msrb.mxu0 %v7946_v58 }
  0x50   : > { %13066 = vst [vmem:[#allocation64_spill] sm:$0xff] %v7910_v19 }
  0x51   : > { %13067 = vst [vmem:[#allocation65_spill] sm:$0xff] %v7913_v63  ;;  %v8032_v49 = vand.u32 4294901760, %v7988_v20  ;;  %699 = vmatpush.msrb.mxu0 %v7973_v43 }
  0x52   : > { %13068 = vst [vmem:[#allocation66_spill] sm:$0xff] %v7920_v15 }
  0x53   : > { %13069 = vst [vmem:[#allocation67_spill] sm:$0xff] %v7923_v47  ;;  %v13152_v47 = vld [vmem:[#allocation55_spill] sm:$0xff] }
  0x54   : > { %13070 = vst [vmem:[#allocation68_spill] sm:$0xff] %v7926_v39  ;;  %v8041_v39 = vand.u32 4294901760, %v514_v42 }
  0x55   : > { %13071 = vst [vmem:[#allocation69_spill] sm:$0xff] %v7935_v14  ;;  %v8006_v14 = vand.u32 4294901760, %v502_v54  ;;  %v520_v54 = vsub.f32 %v7920_v15, %v7973_v43 }
  0x56   : > { %13072 = vst [vmem:[#allocation70_spill] sm:$0xff] %v7937_v12 }
  0x57   : > { %13073 = vst [vmem:[#allocation71_spill] sm:$0xff] %v7941_v18  ;;  %v8011_v18 = vsub.f32 %v309_v7, %v7961_v56  ;;  %v8029_v7 = vand.u32 4294901760, %v808_v16  ;;  %v294_v16 = vld [vmem:[%s12186_s3 + $0x1e0] sm:$0xff]  ;;  %504 = vmatpush.msra.mxu1 %v8006_v14 }
  0x58   : > { %13074 = vst [vmem:[#allocation72_spill] sm:$0xff] %v7946_v58  ;;  %v8084_v15 = vand.u32 4294901760, %v294_v16 }
  0x59   : > { %13075 = vst [vmem:[#allocation73_spill] sm:$0xff] %v7949_v26  ;;  %v8053_v57 = vand.u32 4294901760, %v8011_v18  ;;  %810 = vmatpush.msrb.mxu3 %v8029_v7  ;;  %510 = vmatpush.msra.mxu1 %v8017_v61 }
  0x5a   : > { %13076 = vst [vmem:[#allocation74_spill] sm:$0xff] %v7959_v34  ;;  %v297_v34 = vld [vmem:[%s12186_s3 + $0x1f8] sm:$0xff] }
  0x5b   : > { %13077 = vst [vmem:[#allocation75_spill] sm:$0xff] %v7961_v56  ;;  %v8058_v42 = vand.u32 4294901760, %v297_v34  ;;  %516 = vmatpush.msra.mxu1 %v8041_v39 }
  0x5c   : > { %13078 = vst [vmem:[#allocation76_spill] sm:$0xff] %v7965_v50  ;;  %v8035_v50 = vsub.f32 %v306_v0, %v7990_v37  ;;  %v8050_v0 = vand.u32 4294901760, %v814_v36  ;;  %v291_v36 = vld [vmem:[%s12186_s3 + $0x1c8] sm:$0xff] }
  0x5d   : > { %13079 = vst [vmem:[#allocation77_spill] sm:$0xff] %v7970_v1  ;;  %v8037_v1 = vand.u32 4294901760, %v300_v59 }
  0x5e   : > { %13080 = vst [vmem:[#allocation78_spill] sm:$0xff] %v7973_v43  ;;  %v8079_v55 = vand.u32 4294901760, %v8035_v50  ;;  %816 = vmatpush.msrb.mxu3 %v8050_v0  ;;  %v13146_v43 = vld [vmem:[#allocation61_spill] sm:$0xff] }
  0x5f   : > { %13081 = vst [vmem:[#allocation79_spill] sm:$0xff] %v7988_v20  ;;  %769 = vmatpush.msrb.mxu2 %v8037_v1 }
  0x60   : > { %13082 = vst [vmem:[#allocation80_spill] sm:$0xff] %v7990_v37  ;;  %822 = vmatpush.msrb.mxu3 %v8062_v22 }
  0x61   : > { %13083 = vst [vmem:[#allocation81_spill] sm:$0xff] %v7994_v41  ;;  %v8056_v41 = vsub.f32 %v303_v38, %v8013_v28  ;;  %v832_v38 = vsub.f32 %v7988_v20, %v8032_v49  ;;  %771 = vmatpush.msrb.mxu2 %v8058_v42 }
  0x62   : > { %13084 = vst [vmem:[#allocation82_spill] sm:$0xff] %v7999_v2  ;;  %v8064_v2 = vand.u32 4294901760, %v520_v54  ;;  %v8082_v54 = vsub.f32 %v300_v59, %v8037_v1  ;;  %v8098_v59 = vsub.f32 %v297_v34, %v8058_v42  ;;  %v844_v34 = vsub.f32 %v8035_v50, %v8079_v55  ;;  %828 = vmatpush.msrb.mxu3 %v8088_v23 }
  0x63   : > { %13085 = vst [vmem:[#allocation83_spill] sm:$0xff] %v8006_v14  ;;  %v8100_v14 = vand.u32 4294901760, %v291_v36  ;;  %773 = vmatpush.msrb.mxu2 %v8084_v15 }
  0x64   : > { %13086 = vst [vmem:[#allocation84_spill] sm:$0xff] %v8011_v18  ;;  %522 = vmatpush.msra.mxu1 %v8064_v2  ;;  %v8136_v33 = vand.u32 4294901760, %v8098_v59 }
  0x65   : > { %13087 = vst [vmem:[#allocation85_spill] sm:$0xff] %v8013_v28  ;;  %775 = vmatpush.msrb.mxu2 %v8100_v14  ;;  %524 = vmatmul.f32.vlgmr.msra.gmra.mxu1 %v8122_v27 }
  0x66   : > { %13088 = vst [vmem:[#allocation86_spill] sm:$0xff] %v8017_v61  ;;  %v8095_v61 = vand.u32 4294901760, %v8056_v41  ;;  %710 = vmatpush.msrb.mxu1 %v7636_v3  ;;  %v8139_v3 = vsub.f32 %v291_v36, %v8100_v14 }
  0x67   : > { %13089 = vst [vmem:[#allocation87_spill] sm:$0xff] %v8029_v7  ;;  %v838_v7 = vsub.f32 %v8011_v18, %v8053_v57 }
  0x68   : > { %13090 = vst [vmem:[#allocation88_spill] sm:$0xff] %v8032_v49  ;;  %712 = vmatpush.msrb.mxu1 %v7638_v4  ;;  %v862_v4 = vsub.f32 %v8098_v59, %v8136_v33  ;;  %v8172_v46 = vand.u32 4294901760, %v8139_v3 }
  0x69   : > { %13091 = vst [vmem:[#allocation89_spill] sm:$0xff] %v8035_v50 }
  0x6a   : > { %13092 = vst [vmem:[#allocation90_spill] sm:$0xff] %v8037_v1  ;;  %714 = vmatpush.msrb.mxu1 %v7640_v5 }
  0x6b   : > { %13093 = vst [vmem:[#allocation91_spill] sm:$0xff] %v8041_v39  ;;  %v8115_v39 = vand.u32 4294901760, %v8082_v54 }
  0x6c   : > { %13094 = vst [vmem:[#allocation92_spill] sm:$0xff] %v8050_v0  ;;  %v8110_v0 = vand.u32 4294901760, %v832_v38  ;;  %v285_v38 = vld [vmem:[%s12186_s3 + $0x198] sm:$0xff]  ;;  %716 = vmatpush.msrb.mxu1 %v7651_v9  ;;  %v8194_v9 = vand.u32 4294901760, %v8160_v40 }
  0x6d   : > { %13095 = vst [vmem:[#allocation93_spill] sm:$0xff] %v8053_v57  ;;  %v8118_v57 = vsub.f32 %v294_v16, %v8084_v15  ;;  %v850_v16 = vsub.f32 %v8056_v41, %v8095_v61 }
  0x6e   : > { %13096 = vst [vmem:[#allocation94_spill] sm:$0xff] %v8056_v41  ;;  %834 = vmatpush.msrb.mxu3 %v8110_v0  ;;  %718 = vmatpush.msrb.mxu1 %v7653_v10 }
  0x6f   : > { %13097 = vst [vmem:[#allocation95_spill] sm:$0xff] %v8058_v42  ;;  %v8153_v36 = vand.u32 4294901760, %v8118_v57  ;;  %626 = vmatmul.f32.vlgmr.msra.gmra.mxu3 %v8194_v9 }
  0x70   : > { %13098 = vst [vmem:[#allocation96_spill] sm:$0xff] %v8062_v22  ;;  %v8124_v22 = vand.u32 4294901760, %v288_v25  ;;  %720 = vmatpush.msrb.mxu1 %v7655_v11 }
  0x71   : > { %13099 = vst [vmem:[#allocation97_spill] sm:$0xff] %v8064_v2  ;;  %v8131_v2 = vand.u32 4294901760, %v838_v7  ;;  %v8148_v7 = vand.u32 4294901760, %v844_v34  ;;  %v8167_v34 = vand.u32 4294901760, %v850_v16 }
  0x72   : > { %13100 = vst [vmem:[#allocation98_spill] sm:$0xff] %v8079_v55  ;;  %v282_v55 = vld [vmem:[%s12186_s3 + $0x180] sm:$0xff]  ;;  %722 = vmatpush.msrb.mxu1 %v7674_v17  ;;  %777 = vmatpush.msrb.mxu2 %v8124_v22 }
  0x73   : > { %13101 = vst [vmem:[#allocation99_spill] sm:$0xff] %v8082_v54  ;;  %840 = vmatpush.msrb.mxu3 %v8131_v2  ;;  %v8174_v5 = vand.u32 4294901760, %v282_v55 }
  0x74   : > { %13102 = vst [vmem:[#allocation100_spill] sm:$0xff] %v8084_v15  ;;  %724 = vmatpush.msrb.mxu1 %v7685_v21 }
  0x75   : > { %13103 = vst [vmem:[#allocation101_spill] sm:$0xff] %v8088_v23  ;;  %v856_v23 = vsub.f32 %v8082_v54, %v8115_v39  ;;  %846 = vmatpush.msrb.mxu3 %v8148_v7 }
  0x76   : > { %13104 = vst [vmem:[#allocation102_spill] sm:$0xff] %v8095_v61  ;;  %v8155_v61 = vand.u32 4294901760, %v285_v38  ;;  %726 = vmatpush.msrb.mxu1 %v7711_v29  ;;  %v333_v29 = vld [vmem:[%s12186_s3 + $0x318] sm:$0xff] }
  0x77   : > { %13105 = vst [vmem:[#allocation103_spill] sm:$0xff] %v8098_v59  ;;  %v8180_v24 = vand.u32 4294901760, %v856_v23  ;;  %852 = vmatpush.msrb.mxu3 %v8167_v34  ;;  %v8198_v23 = vand.u32 4294901760, %v862_v4 }
  0x78   : > { %13106 = vst [vmem:[#allocation104_spill] sm:$0xff] %v8100_v14  ;;  %v8185_v16 = vsub.f32 %v285_v38, %v8155_v61  ;;  %v874_v38 = vsub.f32 %v8139_v3, %v8172_v46  ;;  %728 = vmatpush.msrb.mxu1 %v7728_v35  ;;  %779 = vmatpush.msrb.mxu2 %v8155_v61 }
  0x79   : > { %13107 = vst [vmem:[#allocation105_spill] sm:$0xff] %v8110_v0  ;;  %v8163_v0 = vsub.f32 %v288_v25, %v8124_v22  ;;  %v868_v25 = vsub.f32 %v8118_v57, %v8153_v36  ;;  %858 = vmatpush.msrb.mxu3 %v8180_v24 }
  0x7a   : > { %13108 = vst [vmem:[#allocation106_spill] sm:$0xff] %v8115_v39  ;;  %v8214_v4 = vand.u32 4294901760, %v8185_v16  ;;  %730 = vmatpush.msrb.mxu1 %v7757_v45  ;;  %781 = vmatpush.msrb.mxu2 %v8174_v5 }
  0x7b   : > { %13109 = vst [vmem:[#allocation107_spill] sm:$0xff] %v8118_v57  ;;  %v8191_v48 = vand.u32 4294901760, %v8163_v0  ;;  %v8211_v10 = vand.u32 4294901760, %v868_v25  ;;  %864 = vmatpush.msrb.mxu3 %v8198_v23  ;;  %v8224_v25 = vand.u32 4294901760, %v874_v38 }
  0x7c   : > { %13110 = vst [vmem:[#allocation108_spill] sm:$0xff] %v8122_v27  ;;  %v886_v62 = vsub.f32 %v8185_v16, %v8214_v4  ;;  %732 = vmatpush.msrb.mxu1 %v7776_v51  ;;  %1011 = vmatpush.msra.mxu2 %v13146_v43  ;;  %v13149_v43 = vld [vmem:[#allocation68_spill] sm:$0xff] }
  0x7d   : > { %13111 = vst [vmem:[#allocation109_spill] sm:$0xff] %v8124_v22  ;;  %870 = vmatpush.msrb.mxu3 %v8211_v10 }
  0x7e   : > { %13112 = vst [vmem:[#allocation110_spill] sm:$0xff] %v8131_v2  ;;  %v231_v2 = vld [vmem:[%s8072_s28 + $0x18] sm:$0xff] }
  0x7f   : > { %13113 = vst [vmem:[#allocation111_spill] sm:$0xff] %v8136_v33  ;;  %v8207_v53 = vand.u32 4294901760, %v231_v2  ;;  %876 = vmatpush.msrb.mxu3 %v8224_v25 }
  0x80   : > { %13114 = vst [vmem:[#allocation112_spill] sm:$0xff] %v8139_v3 }
  0x81   : > { %13115 = vst [vmem:[#allocation113_spill] sm:$0xff] %v8148_v7  ;;  %v8203_v7 = vsub.f32 %v282_v55, %v8174_v5  ;;  %v880_v55 = vsub.f32 %v8163_v0, %v8191_v48  ;;  %v8232_v31 = vsub.f32 %v231_v2, %v8207_v53  ;;  %528 = vmatmul.f32.gmra.mxu1 %v8207_v53 }
  0x82   : > { %13116 = vst [vmem:[#allocation114_spill] sm:$0xff] %v8153_v36 }
  0x83   : > { %13117 = vst [vmem:[#allocation115_spill] sm:$0xff] %v8155_v61  ;;  %v8241_v38 = vand.u32 4294901760, %v880_v55  ;;  %587 = vmatmul.f32.gmra.mxu2 %v8232_v31 }
  0x84   : > { %13118 = vst [vmem:[#allocation116_spill] sm:$0xff] %v8160_v40 }
  0x85   : > { %13119 = vst [vmem:[#allocation117_spill] sm:$0xff] %v8163_v0  ;;  %882 = vmatpush.msrb.mxu3 %v8241_v38 }
  0x86   : > { %13120 = vst [vmem:[#allocation118_spill] sm:$0xff] %v8167_v34  ;;  %v413_v34 = vsub.f32 %v8160_v40, %v8194_v9 }
  0x87   : > { %13121 = vst [vmem:[#allocation119_spill] sm:$0xff] %v8172_v46 }
  0x88   : > { %13122 = vst [vmem:[#allocation120_spill] sm:$0xff] %v8174_v5  ;;  %v8243_v60 = vand.u32 4294901760, %v413_v34  ;;  %v8258_v34 = vand.u32 4294901760, %v886_v62 }
  0x89   : > { %13123 = vst [vmem:[#allocation121_spill] sm:$0xff] %v8180_v24  ;;  %v8227_v24 = vand.u32 4294901760, %v8203_v7 }
  0x8a   : > { %13124 = vst [vmem:[#allocation122_spill] sm:$0xff] %v8185_v16  ;;  %415 = vmatmul.f32.vlgmr.msra.gmra.mxu0 %v8243_v60  ;;  %888 = vmatpush.msrb.mxu3 %v8258_v34 }
  0x8b   : > { %13125 = vst [vmem:[#allocation123_spill] sm:$0xff] %v8191_v48  ;;  %v892_v2 = vsub.f32 %v8203_v7, %v8227_v24  ;;  %906 = vmatpush.msra.mxu0 %v7852_v32  ;;  %v13148_v32 = vld [vmem:[#allocation69_spill] sm:$0xff] }
  0x8c   : > { %13126 = vst [vmem:[#allocation124_spill] sm:$0xff] %v8194_v9  ;;  %1015 = vmatpush.msra.mxu2 %v13148_v32  ;;  %v13153_v32 = vld [vmem:[#allocation77_spill] sm:$0xff] }
  0x8d   : > { %13127 = vst [vmem:[#allocation125_spill] sm:$0xff] %v8198_v23  ;;  %v229_v23 = vld [vmem:[%s8072_s28 + $0x8] sm:$0xff]  ;;  %v8264_v55 = vand.u32 4294901760, %v892_v2 }
  0x8e   : > { %13128 = vst [vmem:[#allocation126_spill] sm:$0xff] %v8203_v7  ;;  %v8254_v19 = vand.u32 4294901760, %v229_v23 }
  0x8f   : > { %13129 = vst [vmem:[#allocation127_spill] sm:$0xff] %v8207_v53  ;;  %894 = vmatpush.msrb.mxu3 %v8264_v55 }
  0x90   : > { %13130 = vst [vmem:[#allocation128_spill] sm:$0xff] %v8211_v10  ;;  %v8252_v10 = vand.u32 4294901760, %v8232_v31  ;;  %v8271_v62 = vsub.f32 %v229_v23, %v8254_v19 }
  0x91   : > { %13131 = vst [vmem:[#allocation129_spill] sm:$0xff] %v8214_v4  ;;  %1082 = vmatpush.msra.mxu3 %v7825_v6 }
  0x92   : > { %13132 = vst [vmem:[#allocation130_spill] sm:$0xff] %v8224_v25  ;;  %v421_v25 = vsub.f32 %v8232_v31, %v8252_v10  ;;  %v8284_v23 = vand.u32 4294901760, %v8271_v62  ;;  %632 = vmatmul.f32.gmra.mxu3 %v8252_v10 }
  0x93   : > { %13133 = vst [vmem:[#allocation131_spill] sm:$0xff] %v8227_v24  ;;  %1084 = vmatpush.msra.mxu3 %v7837_v13 }
  0x94   : > { %13134 = vst [vmem:[#allocation132_spill] sm:$0xff] %v8232_v31  ;;  %v8281_v2 = vand.u32 4294901760, %v421_v25  ;;  %v785_v25 = vsub.f32 %v8271_v62, %v8284_v23 }
  0x95   : > { %13135 = vst [vmem:[#allocation133_spill] sm:$0xff] %v8241_v38  ;;  %v13145_v38 = vld [vmem:[#allocation59_spill] sm:$0xff]  ;;  %1086 = vmatpush.msra.mxu3 %v7863_v44 }
  0x96   : > { %13136 = vst [vmem:[#allocation134_spill] sm:$0xff] %v8243_v60  ;;  %909 = vmatpush.msra.mxu0 %v13145_v38  ;;  %v13150_v38 = vld [vmem:[#allocation74_spill] sm:$0xff]  ;;  %v8304_v58 = vand.u32 4294901760, %v785_v25 }
  0x97   : > { %13137 = vst [vmem:[#allocation135_spill] sm:$0xff] %v8252_v10  ;;  %423 = vmatmul.f32.gmra.mxu0 %v8281_v2  ;;  %1019 = vmatpush.msra.mxu2 %v13150_v38  ;;  %v13155_v25 = vld [vmem:[#allocation82_spill] sm:$0xff] }
  0x98   : > { %13138 = vst [vmem:[#allocation136_spill] sm:$0xff] %v8254_v19  ;;  %912 = vmatpush.msra.mxu0 %v7913_v63  ;;  %1088 = vmatpush.msra.mxu3 %v7878_v52 }
  0x99   : > { %13139 = vst [vmem:[#allocation137_spill] sm:$0xff] %v8258_v34  ;;  %v13144_v34 = vld [vmem:[#allocation40_spill] sm:$0xff]  ;;  %1023 = vmatpush.msra.mxu2 %v13153_v32 }
  0x9a   : > { %13140 = vst [vmem:[#allocation138_spill] sm:$0xff] %v8264_v55  ;;  %734 = vmatpush.msrb.mxu1 %v13144_v34  ;;  %v13147_v55 = vld [vmem:[#allocation44_spill] sm:$0xff]  ;;  %915 = vmatpush.msra.mxu0 %v13149_v43 }
  0x9b   : > { %13141 = vst [vmem:[#allocation139_spill] sm:$0xff] %v8271_v62  ;;  %1090 = vmatpush.msra.mxu3 %v7900_v8  ;;  %787 = vmatmul.f32.vlgmr.msrb.gmra.mxu2 %v8304_v58 }
  0x9c   : > { %13142 = vst [vmem:[#allocation140_spill] sm:$0xff] %v8281_v2  ;;  %736 = vmatpush.msrb.mxu1 %v13147_v55  ;;  %v232_v55 = vld [vmem:[%s8072_s28 + $0x20] sm:$0xff]  ;;  %918 = vmatpush.msra.mxu0 %v7949_v26 }
  0x9d   : > { %13143 = vst [vmem:[#allocation141_spill] sm:$0xff] %v8284_v23  ;;  %v8315_v38 = vand.u32 4294901760, %v232_v55  ;;  %1027 = vmatpush.msra.mxu2 %v13155_v25  ;;  %1092 = vmatpush.msra.mxu3 %v7937_v12  ;;  %v13157_v25 = vld [vmem:[#allocation93_spill] sm:$0xff] }
  0x9e   : > { %738 = vmatpush.msrb.mxu1 %v7846_v30  ;;  %13151 = vst [vmem:[#allocation142_spill] sm:$0xff] %v8304_v58  ;;  %921 = vmatpush.msra.mxu0 %v7988_v20 }
  0x9f   : > { %13154 = vst [vmem:[#allocation143_spill] sm:$0xff] %v8315_v38  ;;  %701 = vmatmul.f32.vlgmr.msrb.gmra.mxu0 %v8122_v27  ;;  %896 = vmatmul.f32.vlgmr.msrb.gmra.mxu3 %v8254_v19  ;;  %v8326_v32 = vsub.f32 %v232_v55, %v8315_v38  ;;  %v13159_v55 = vld [vmem:[#allocation98_spill] sm:$0xff] }
  0xa0   : > { %740 = vmatpush.msrb.mxu1 %v13152_v47  ;;  %924 = vmatpush.msra.mxu0 %v8011_v18 }
  0xa1   : > { %1031 = vmatpush.msra.mxu2 %v8032_v49  ;;  %13156 = vst [vmem:[#allocation144_spill] sm:$0xff] %v8326_v32  ;;  %1094 = vmatpush.msra.mxu3 %v7961_v56  ;;  %v8337_v49 = vand.u32 4294901760, %v8326_v32 }
  0xa2   : > { %964 = vmatpush.msra.mxu1 %v7825_v6  ;;  %927 = vmatpush.msra.mxu0 %v8035_v50  ;;  %v13160_v50 = vld [vmem:[#allocation102_spill] sm:$0xff] }
  0xa3   : > { %742 = vmatmul.f32.vlgmr.msrb.gmra.mxu1 %v8122_v27  ;;  %1035 = vmatpush.msra.mxu2 %v13157_v25  ;;  %13158 = vst [vmem:[#allocation145_spill] sm:$0xff] %v8337_v49  ;;  %v793_v25 = vsub.f32 %v8326_v32, %v8337_v49 }
  0xa4   : > { %966 = vmatpush.msra.mxu1 %v7837_v13  ;;  %1096 = vmatpush.msra.mxu3 %v7990_v37  ;;  %v277_v13 = vld [vmem:[%s12186_s3 + $0x158] sm:$0xff] }
  0xa5   : > { %930 = vmatpush.msra.mxu0 %v8056_v41  ;;  %1039 = vmatpush.msra.mxu2 %v13159_v55  ;;  %v8360_v55 = vand.u32 4294901760, %v793_v25 }
  0xa6   : > { %968 = vmatpush.msra.mxu1 %v7863_v44  ;;  %1098 = vmatpush.msra.mxu3 %v8013_v28 }
  0xa7   : > { %933 = vmatpush.msra.mxu0 %v8082_v54  ;;  %1043 = vmatpush.msra.mxu2 %v13160_v50  ;;  %v375_v50 = vld [vmem:[%s12186_s3 + $0x468] sm:$0xff]  ;;  %13161 = vst [vmem:[#allocation146_spill] sm:$0xff] %v8360_v55 }
  0xa8   : > { %970 = vmatpush.msra.mxu1 %v7878_v52  ;;  %1100 = vmatpush.msra.mxu3 %v8037_v1 }
  0xa9   : > { %936 = vmatpush.msra.mxu0 %v8098_v59  ;;  %1047 = vmatpush.msra.mxu2 %v8115_v39  ;;  %v372_v39 = vld [vmem:[%s12186_s3 + $0x450] sm:$0xff]  ;;  %v357_v59 = vld [vmem:[%s12186_s3 + $0x3d8] sm:$0xff] }
  0xaa   : > { %972 = vmatpush.msra.mxu1 %v7900_v8  ;;  %1102 = vmatpush.msra.mxu3 %v8058_v42  ;;  %v8376_v25 = vand.u32 4294901760, %v372_v39  ;;  %v8449_v41 = vand.u32 4294901760, %v357_v59  ;;  %v280_v8 = vld [vmem:[%s12186_s3 + $0x170] sm:$0xff] }
  0xab   : > { %939 = vmatpush.msra.mxu0 %v8118_v57  ;;  %1051 = vmatpush.msra.mxu2 %v8136_v33  ;;  %v8367_v57 = vand.u32 4294901760, %v375_v50  ;;  %v369_v33 = vld [vmem:[%s12186_s3 + $0x438] sm:$0xff]  ;;  %v8558_v47 = vand.u32 4294901760, %v280_v8 }
  0xac   : > { %974 = vmatpush.msra.mxu1 %v7937_v12  ;;  %1104 = vmatpush.msra.mxu3 %v8084_v15  ;;  %13163 = vst [vmem:[#allocation148_spill] sm:$0xff] %v8376_v25 }
  0xad   : > { %705 = vmatmul.f32.gmra.mxu0 %v8207_v53  ;;  %1055 = vmatpush.msra.mxu2 %v8153_v36  ;;  %13162 = vst [vmem:[#allocation147_spill] sm:$0xff] %v8367_v57  ;;  %v8383_v36 = vsub.f32 %v375_v50, %v8367_v57  ;;  %v363_v50 = vld [vmem:[%s12186_s3 + $0x408] sm:$0xff] }
  0xae   : > { %976 = vmatpush.msra.mxu1 %v7961_v56  ;;  %942 = vmatpush.msra.mxu0 %v8139_v3  ;;  %v8385_v3 = vand.u32 4294901760, %v369_v33  ;;  %13176 = vst [vmem:[#allocation161_spill] sm:$0xff] %v8449_v41 }
  0xaf   : > { %1106 = vmatpush.msra.mxu3 %v8100_v14  ;;  %1059 = vmatpush.msra.mxu2 %v8172_v46  ;;  %13164 = vst [vmem:[#allocation149_spill] sm:$0xff] %v8383_v36  ;;  %v8395_v46 = vsub.f32 %v372_v39, %v8376_v25  ;;  %v8410_v39 = vand.u32 4294901760, %v8383_v36 }
  0xb0   : > { %978 = vmatpush.msra.mxu1 %v7990_v37  ;;  %945 = vmatpush.msra.mxu0 %v8163_v0  ;;  %13165 = vst [vmem:[#allocation150_spill] sm:$0xff] %v8385_v3  ;;  %v366_v0 = vld [vmem:[%s12186_s3 + $0x420] sm:$0xff]  ;;  %v348_v37 = vld [vmem:[%s12186_s3 + $0x390] sm:$0xff] }
  0xb1   : > { %1108 = vmatpush.msra.mxu3 %v8124_v22  ;;  %795 = vmatmul.f32.gmra.mxu2 %v8360_v55  ;;  %13166 = vst [vmem:[#allocation151_spill] sm:$0xff] %v8395_v46  ;;  %v8501_v26 = vand.u32 4294901760, %v348_v37 }
  0xb2   : > { %980 = vmatpush.msra.mxu1 %v8013_v28  ;;  %948 = vmatpush.msra.mxu0 %v8185_v16  ;;  %v8402_v16 = vand.u32 4294901760, %v366_v0  ;;  %13169 = vst [vmem:[#allocation154_spill] sm:$0xff] %v8410_v39 }
  0xb3   : > { %1063 = vmatpush.msra.mxu2 %v8191_v48  ;;  %1110 = vmatpush.msra.mxu3 %v8155_v61  ;;  %v8407_v48 = vsub.f32 %v369_v33, %v8385_v3  ;;  %v8422_v33 = vand.u32 4294901760, %v8395_v46  ;;  %13186 = vst [vmem:[#allocation171_spill] sm:$0xff] %v8501_v26 }
  0xb4   : > { %982 = vmatpush.msra.mxu1 %v8037_v1  ;;  %900 = vmatmul.f32.gmra.mxu3 %v8315_v38  ;;  %13167 = vst [vmem:[#allocation152_spill] sm:$0xff] %v8402_v16 }
  0xb5   : > { %951 = vmatpush.msra.mxu0 %v8203_v7  ;;  %1067 = vmatpush.msra.mxu2 %v8214_v4  ;;  %13168 = vst [vmem:[#allocation153_spill] sm:$0xff] %v8407_v48  ;;  %v360_v7 = vld [vmem:[%s12186_s3 + $0x3f0] sm:$0xff]  ;;  %v8417_v4 = vand.u32 4294901760, %v363_v50  ;;  %v1180_v1 = vsub.f32 %v8395_v46, %v8422_v33 }
  0xb6   : > { %984 = vmatpush.msra.mxu1 %v8058_v42  ;;  %1112 = vmatpush.msra.mxu3 %v8174_v5  ;;  %13171 = vst [vmem:[#allocation156_spill] sm:$0xff] %v8422_v33  ;;  %v8432_v54 = vand.u32 4294901760, %v360_v7  ;;  %v1174_v42 = vsub.f32 %v8383_v36, %v8410_v39 }
  0xb7   : > { %746 = vmatmul.f32.gmra.mxu1 %v8207_v53  ;;  %954 = vmatmul.f32.vlgmr.msra.gmra.mxu0 %v8271_v62  ;;  %13170 = vst [vmem:[#allocation155_spill] sm:$0xff] %v8417_v4  ;;  %v8492_v56 = vand.u32 4294901760, %v1180_v1 }
  0xb8   : > { %986 = vmatpush.msra.mxu1 %v8084_v15  ;;  %1336 = vmatpush.msrb.mxu3 %v8367_v57  ;;  %v8430_v15 = vsub.f32 %v366_v0, %v8402_v16  ;;  %13173 = vst [vmem:[#allocation158_spill] sm:$0xff] %v8432_v54  ;;  %v8447_v0 = vsub.f32 %v363_v50, %v8417_v4 }
  0xb9   : > { %1123 = vmatpush.msrb.mxu0 %v8367_v57  ;;  %1071 = vmatpush.msra.mxu2 %v8227_v24  ;;  %v8442_v24 = vand.u32 4294901760, %v8407_v48  ;;  %v8463_v50 = vsub.f32 %v360_v7, %v8432_v54  ;;  %v8480_v7 = vsub.f32 %v357_v59, %v8449_v41  ;;  %13184 = vst [vmem:[#allocation169_spill] sm:$0xff] %v8492_v56 }
  0xba   : > { %988 = vmatpush.msra.mxu1 %v8100_v14  ;;  %1338 = vmatpush.msrb.mxu3 %v8376_v25  ;;  %13172 = vst [vmem:[#allocation157_spill] sm:$0xff] %v8430_v15  ;;  %v354_v14 = vld [vmem:[%s12186_s3 + $0x3c0] sm:$0xff]  ;;  %v8466_v28 = vand.u32 4294901760, %v8430_v15  ;;  %v8485_v20 = vand.u32 4294901760, %v8447_v0 }
  0xbb   : > { %1125 = vmatpush.msrb.mxu0 %v8376_v25  ;;  %1278 = vmatpush.msrb.mxu2 %v8383_v36  ;;  %13174 = vst [vmem:[#allocation159_spill] sm:$0xff] %v8442_v24  ;;  %v8455_v36 = vand.u32 4294901760, %v354_v14  ;;  %v1186_v18 = vsub.f32 %v8407_v48, %v8442_v24  ;;  %v8504_v12 = vand.u32 4294901760, %v8463_v50 }
  0xbc   : > { %990 = vmatpush.msra.mxu1 %v8124_v22  ;;  %1073 = vmatmul.f32.vlgmr.msra.gmra.mxu2 %v8254_v19  ;;  %13175 = vst [vmem:[#allocation160_spill] sm:$0xff] %v8447_v0  ;;  %v351_v22 = vld [vmem:[%s12186_s3 + $0x3a8] sm:$0xff]  ;;  %v1192_v59 = vsub.f32 %v8430_v15, %v8466_v28 }
  0xbd   : > { %1127 = vmatpush.msrb.mxu0 %v8385_v3  ;;  %1281 = vmatpush.msrb.mxu2 %v8395_v46  ;;  %13177 = vst [vmem:[#allocation162_spill] sm:$0xff] %v8455_v36  ;;  %v8470_v46 = vand.u32 4294901760, %v1174_v42  ;;  %v345_v42 = vld [vmem:[%s12186_s3 + $0x378] sm:$0xff]  ;;  %v8508_v1 = vand.u32 4294901760, %v1186_v18  ;;  %v230_v18 = vld [vmem:[%s8072_s28 + $0x10] sm:$0xff]  ;;  %v1204_v52 = vsub.f32 %v8463_v50, %v8504_v12 }
  0xbe   : > { %1340 = vmatpush.msrb.mxu3 %v8385_v3  ;;  %992 = vmatpush.msra.mxu1 %v8155_v61  ;;  %13178 = vst [vmem:[#allocation163_spill] sm:$0xff] %v8463_v50  ;;  %v8482_v61 = vand.u32 4294901760, %v351_v22 }
  0xbf   : > { %13179 = vst [vmem:[#allocation164_spill] sm:$0xff] %v8466_v28  ;;  %1114 = vmatmul.f32.vlgmr.msra.gmra.mxu3 %v8254_v19  ;;  %1129 = vmatpush.msrb.mxu0 %v8402_v16  ;;  %v8582_v51 = vand.u32 4294901760, %v1204_v52 }
  0xc0   : > { %13180 = vst [vmem:[#allocation165_spill] sm:$0xff] %v8470_v46  ;;  %1284 = vmatpush.msrb.mxu2 %v8407_v48  ;;  %1342 = vmatpush.msrb.mxu3 %v8402_v16  ;;  %v8495_v48 = vsub.f32 %v354_v14, %v8455_v36  ;;  %v8510_v14 = vand.u32 4294901760, %v345_v42  ;;  %v8520_v43 = vsub.f32 %v351_v22, %v8482_v61  ;;  %v339_v22 = vld [vmem:[%s12186_s3 + $0x348] sm:$0xff] }
  0xc1   : > { %13181 = vst [vmem:[#allocation166_spill] sm:$0xff] %v8480_v7  ;;  %994 = vmatpush.msra.mxu1 %v8174_v5  ;;  %1131 = vmatpush.msrb.mxu0 %v8417_v4  ;;  %v342_v5 = vld [vmem:[%s12186_s3 + $0x360] sm:$0xff]  ;;  %v8566_v34 = vand.u32 4294901760, %v339_v22 }
  0xc2   : > { %13182 = vst [vmem:[#allocation167_spill] sm:$0xff] %v8482_v61  ;;  %998 = vmatmul.f32.vlgmr.msra.gmra.mxu1 %v8284_v23  ;;  %1287 = vmatpush.msrb.mxu2 %v8430_v15  ;;  %v1198_v15 = vsub.f32 %v8447_v0, %v8485_v20  ;;  %v8532_v63 = vand.u32 4294901760, %v8495_v48  ;;  %v8546_v44 = vand.u32 4294901760, %v342_v5  ;;  %v8554_v6 = vsub.f32 %v345_v42, %v8510_v14 }
  0xc3   : > { %13183 = vst [vmem:[#allocation168_spill] sm:$0xff] %v8485_v20  ;;  %1176 = vmatpush.msrb.mxu1 %v8470_v46  ;;  %1344 = vmatpush.msrb.mxu3 %v8417_v4  ;;  %v8523_v46 = vand.u32 4294901760, %v8480_v7 }
  0xc4   : > { %13185 = vst [vmem:[#allocation170_spill] sm:$0xff] %v8495_v48  ;;  %1133 = vmatpush.msrb.mxu0 %v8432_v54  ;;  %1290 = vmatpush.msrb.mxu2 %v8447_v0  ;;  %v8539_v0 = vand.u32 4294901760, %v1192_v59  ;;  %v8556_v59 = vand.u32 4294901760, %v230_v18  ;;  %v1216_v42 = vsub.f32 %v8495_v48, %v8532_v63  ;;  %v8585_v45 = vsub.f32 %v342_v5, %v8546_v44 }
  0xc5   : > { %13187 = vst [vmem:[#allocation172_spill] sm:$0xff] %v8504_v12  ;;  %1182 = vmatpush.msrb.mxu1 %v8492_v56  ;;  %1346 = vmatpush.msrb.mxu3 %v8432_v54  ;;  %v8544_v56 = vsub.f32 %v348_v37, %v8501_v26  ;;  %v8562_v37 = vand.u32 4294901760, %v1198_v15  ;;  %v1210_v30 = vsub.f32 %v8480_v7, %v8523_v46  ;;  %v336_v15 = vld [vmem:[%s12186_s3 + $0x330] sm:$0xff] }
  0xc6   : > { %13188 = vst [vmem:[#allocation173_spill] sm:$0xff] %v8508_v1  ;;  %959 = vmatmul.f32.gmra.mxu0 %v8326_v32  ;;  %1077 = vmatmul.f32.gmra.mxu2 %v8315_v38  ;;  %v8599_v52 = vsub.f32 %v230_v18, %v8556_v59  ;;  %v8602_v5 = vsub.f32 %v280_v8, %v8558_v47  ;;  %v8613_v11 = vand.u32 4294901760, %v336_v15  ;;  %v8620_v8 = vand.u32 4294901760, %v1216_v42  ;;  %v330_v42 = vld [vmem:[%s12186_s3 + $0x300] sm:$0xff] }
  0xc7   : > { %13189 = vst [vmem:[#allocation174_spill] sm:$0xff] %v8510_v14  ;;  %1135 = vmatpush.msrb.mxu0 %v8449_v41  ;;  %1188 = vmatpush.msrb.mxu1 %v8508_v1  ;;  %v8569_v1 = vand.u32 4294901760, %v8520_v43  ;;  %v8588_v35 = vand.u32 4294901760, %v8544_v56  ;;  %v8609_v21 = vand.u32 4294901760, %v1210_v30  ;;  %v8616_v18 = vsub.f32 %v339_v22, %v8566_v34  ;;  %v271_v30 = vld [vmem:[%s12186_s3 + $0x128] sm:$0xff] }
  0xc8   : > { %13190 = vst [vmem:[#allocation175_spill] sm:$0xff] %v8520_v43  ;;  %1293 = vmatpush.msrb.mxu2 %v8463_v50  ;;  %1348 = vmatpush.msrb.mxu3 %v8449_v41  ;;  %v8578_v50 = vand.u32 4294901760, %v277_v13  ;;  %v8648_v32 = vand.u32 4294901760, %v8599_v52  ;;  %v8651_v55 = vand.u32 4294901760, %v8602_v5  ;;  %v8658_v23 = vsub.f32 %v336_v15, %v8613_v11 }
  0xc9   : > { %13191 = vst [vmem:[#allocation176_spill] sm:$0xff] %v8523_v46  ;;  %1118 = vmatmul.f32.gmra.mxu3 %v8315_v38  ;;  %1137 = vmatpush.msrb.mxu0 %v8455_v36  ;;  %v1222_v17 = vsub.f32 %v8520_v43, %v8569_v1  ;;  %v1228_v22 = vsub.f32 %v8544_v56, %v8588_v35  ;;  %v8663_v58 = vand.u32 4294901760, %v271_v30  ;;  %v8667_v62 = vand.u32 4294901760, %v330_v42 }
  0xca   : > { %13192 = vst [vmem:[#allocation177_spill] sm:$0xff] %v8532_v63  ;;  %1194 = vmatpush.msrb.mxu1 %v8539_v0  ;;  %1296 = vmatpush.msrb.mxu2 %v8480_v7  ;;  %v274_v7 = vld [vmem:[%s12186_s3 + $0x140] sm:$0xff]  ;;  %v8623_v38 = vsub.f32 %v277_v13, %v8578_v50  ;;  %v8638_v13 = vand.u32 4294901760, %v8585_v45 }
  0xcb   : > { %13193 = vst [vmem:[#allocation178_spill] sm:$0xff] %v8539_v0  ;;  %1350 = vmatpush.msrb.mxu3 %v8455_v36  ;;  %1004 = vmatmul.f32.gmra.mxu1 %v8337_v49  ;;  %v8596_v0 = vand.u32 4294901760, %v8554_v6  ;;  %v233_v49 = vld [vmem:[%s8072_s28 + $0x28] sm:$0xff]  ;;  %v8655_v19 = vand.u32 4294901760, %v1222_v17  ;;  %v268_v17 = vld [vmem:[%s12186_s3 + $0x110] sm:$0xff]  ;;  %v8679_v15 = vand.u32 4294901760, %v1228_v22  ;;  %v1546_v22 = vsub.f32 %v8602_v5, %v8651_v55 }
  0xcc   : > { %13194 = vst [vmem:[#allocation179_spill] sm:$0xff] %v8544_v56  ;;  %1139 = vmatpush.msrb.mxu0 %v8482_v61  ;;  %1200 = vmatpush.msrb.mxu1 %v8562_v37  ;;  %v8670_v10 = vand.u32 4294901760, %v8623_v38  ;;  %v8710_v53 = vand.u32 4294901760, %v268_v17  ;;  %v8715_v2 = vsub.f32 %v330_v42, %v8667_v62 }
  0xcd   : > { %13195 = vst [vmem:[#allocation180_spill] sm:$0xff] %v8546_v44  ;;  %1299 = vmatpush.msrb.mxu2 %v8495_v48  ;;  %1352 = vmatpush.msrb.mxu3 %v8482_v61  ;;  %v8640_v48 = vand.u32 4294901760, %v274_v7 }
  0xce   : > { %13196 = vst [vmem:[#allocation181_spill] sm:$0xff] %v8554_v6  ;;  %1141 = vmatpush.msrb.mxu0 %v8501_v26  ;;  %1206 = vmatpush.msrb.mxu1 %v8582_v51 }
  0xcf   : > { %13197 = vst [vmem:[#allocation182_spill] sm:$0xff] %v8556_v59  ;;  %1302 = vmatpush.msrb.mxu2 %v8520_v43  ;;  %1354 = vmatpush.msrb.mxu3 %v8501_v26  ;;  %v8661_v43 = vand.u32 4294901760, %v8616_v18  ;;  %v8687_v9 = vsub.f32 %v274_v7, %v8640_v48 }
  0xd0   : > { %13198 = vst [vmem:[#allocation183_spill] sm:$0xff] %v8558_v47  ;;  %1143 = vmatpush.msrb.mxu0 %v8510_v14  ;;  %1212 = vmatpush.msrb.mxu1 %v8609_v21 }
  0xd1   : > { %13199 = vst [vmem:[#allocation184_spill] sm:$0xff] %v8562_v37  ;;  %v8632_v37 = vand.u32 4294901760, %v333_v29  ;;  %1305 = vmatpush.msrb.mxu2 %v8544_v56  ;;  %1356 = vmatpush.msrb.mxu3 %v8510_v14  ;;  %v1240_v56 = vsub.f32 %v8585_v45, %v8638_v13  ;;  %v1246_v7 = vsub.f32 %v8616_v18, %v8661_v43  ;;  %v8730_v27 = vand.u32 4294901760, %v8687_v9 }
  0xd2   : > { %13200 = vst [vmem:[#allocation185_spill] sm:$0xff] %v8566_v34  ;;  %1145 = vmatpush.msrb.mxu0 %v8546_v44  ;;  %1218 = vmatpush.msrb.mxu1 %v8620_v8 }
  0xd3   : > { %13201 = vst [vmem:[#allocation186_spill] sm:$0xff] %v8569_v1  ;;  %v8684_v31 = vsub.f32 %v333_v29, %v8632_v37  ;;  %1308 = vmatpush.msrb.mxu2 %v8554_v6  ;;  %1358 = vmatpush.msrb.mxu3 %v8546_v44  ;;  %v265_v29 = vld [vmem:[%s12186_s3 + $0xf8] sm:$0xff] }
  0xd4   : > { %13202 = vst [vmem:[#allocation187_spill] sm:$0xff] %v8578_v50  ;;  %1147 = vmatpush.msrb.mxu0 %v8566_v34  ;;  %1224 = vmatpush.msrb.mxu1 %v8655_v19 }
  0xd5   : > { %13203 = vst [vmem:[#allocation188_spill] sm:$0xff] %v8582_v51  ;;  %v1234_v51 = vsub.f32 %v8554_v6, %v8596_v0  ;;  %v8708_v6 = vsub.f32 %v271_v30, %v8663_v58  ;;  %1311 = vmatpush.msrb.mxu2 %v8585_v45  ;;  %1360 = vmatpush.msrb.mxu3 %v8566_v34  ;;  %v262_v30 = vld [vmem:[%s12186_s3 + $0xe0] sm:$0xff]  ;;  %v8733_v42 = vand.u32 4294901760, %v8684_v31 }
  0xd6   : > { %13204 = vst [vmem:[#allocation189_spill] sm:$0xff] %v8585_v45  ;;  %1149 = vmatpush.msrb.mxu0 %v8613_v11  ;;  %1230 = vmatpush.msrb.mxu1 %v8679_v15  ;;  %v8727_v45 = vand.u32 4294901760, %v1240_v56  ;;  %v259_v56 = vld [vmem:[%s12186_s3 + $0xc8] sm:$0xff] }
  0xd7   : > { %13205 = vst [vmem:[#allocation190_spill] sm:$0xff] %v8588_v35  ;;  %v8691_v40 = vand.u32 4294901760, %v1234_v51  ;;  %v8705_v51 = vand.u32 4294901760, %v8658_v23  ;;  %1314 = vmatpush.msrb.mxu2 %v8616_v18  ;;  %1362 = vmatpush.msrb.mxu3 %v8613_v11 }
  0xd8   : > { %13206 = vst [vmem:[#allocation191_spill] sm:$0xff] %v8596_v0  ;;  %1151 = vmatpush.msrb.mxu0 %v8632_v37 }
  0xd9   : > { %13207 = vst [vmem:[#allocation192_spill] sm:$0xff] %v8599_v52  ;;  %1236 = vmatpush.msrb.mxu1 %v8691_v40  ;;  %1317 = vmatpush.msrb.mxu2 %v8658_v23 }
  0xda   : > { %13208 = vst [vmem:[#allocation193_spill] sm:$0xff] %v8602_v5  ;;  %1364 = vmatpush.msrb.mxu3 %v8632_v37  ;;  %1153 = vmatpush.msrb.mxu0 %v8667_v62 }
  0xdb   : > { %13209 = vst [vmem:[#allocation194_spill] sm:$0xff] %v8609_v21  ;;  %v8672_v21 = vand.u32 4294901760, %v233_v49  ;;  %1242 = vmatpush.msrb.mxu1 %v8727_v45  ;;  %1320 = vmatpush.msrb.mxu2 %v8684_v31 }
  0xdc   : > { %13210 = vst [vmem:[#allocation195_spill] sm:$0xff] %v8613_v11  ;;  %1366 = vmatpush.msrb.mxu3 %v8667_v62  ;;  %1383 = vmatpush.msra.mxu0 %v8410_v39 }
  0xdd   : > { %13211 = vst [vmem:[#allocation196_spill] sm:$0xff] %v8616_v18  ;;  %v8720_v60 = vsub.f32 %v233_v49, %v8672_v21  ;;  %v8754_v18 = vsub.f32 %v268_v17, %v8710_v53  ;;  %v1558_v17 = vsub.f32 %v8687_v9, %v8730_v27  ;;  %1323 = vmatpush.msrb.mxu2 %v8715_v2 }
  0xde   : > { %13212 = vst [vmem:[#allocation197_spill] sm:$0xff] %v8620_v8  ;;  %v1157_v8 = vsub.f32 %v8599_v52, %v8648_v32  ;;  %1387 = vmatpush.msra.mxu0 %v8422_v33  ;;  %1326 = vmatmul.f32.vlgmr.msrb.gmra.mxu2 %v8599_v52 }
  0xdf   : > { %13213 = vst [vmem:[#allocation198_spill] sm:$0xff] %v8623_v38  ;;  %v8768_v34 = vand.u32 4294901760, %v8720_v60  ;;  %1495 = vmatpush.msra.mxu2 %v8558_v47  ;;  %1370 = vmatmul.f32.vlgmr.msrb.gmra.mxu3 %v8648_v32 }
  0xe0   : > { %13214 = vst [vmem:[#allocation199_spill] sm:$0xff] %v8632_v37  ;;  %v8739_v49 = vand.u32 4294901760, %v1157_v8  ;;  %v8756_v8 = vand.u32 4294901760, %v262_v30  ;;  %v256_v37 = vld [vmem:[%s12186_s3 + $0xb0] sm:$0xff]  ;;  %1391 = vmatpush.msra.mxu0 %v8442_v24 }
  0xe1   : > { %13215 = vst [vmem:[#allocation200_spill] sm:$0xff] %v8638_v13  ;;  %1497 = vmatpush.msra.mxu2 %v8578_v50 }
  0xe2   : > { %13216 = vst [vmem:[#allocation201_spill] sm:$0xff] %v8640_v48  ;;  %1159 = vmatmul.f32.vlgmr.msrb.gmra.mxu0 %v8739_v49 }
  0xe3   : > { %13217 = vst [vmem:[#allocation202_spill] sm:$0xff] %v8648_v32  ;;  %1395 = vmatpush.msra.mxu0 %v8466_v28  ;;  %1499 = vmatpush.msra.mxu2 %v8640_v48  ;;  %v241_v32 = vld [vmem:[%s12186_s3 + $0x38] sm:$0xff] }
  0xe4   : > { %13218 = vst [vmem:[#allocation203_spill] sm:$0xff] %v8651_v55  ;;  %v8741_v55 = vand.u32 4294901760, %v1546_v22  ;;  %v8760_v22 = vand.u32 4294901760, %v1246_v7 }
  0xe5   : > { %13219 = vst [vmem:[#allocation204_spill] sm:$0xff] %v8655_v19  ;;  %v1552_v19 = vsub.f32 %v8623_v38, %v8670_v10  ;;  %v8751_v38 = vand.u32 4294901760, %v8708_v6  ;;  %1399 = vmatpush.msra.mxu0 %v8485_v20  ;;  %1501 = vmatpush.msra.mxu2 %v8663_v58  ;;  %v8904_v20 = vand.u32 4294901760, %v241_v32 }
  0xe6   : > { %13220 = vst [vmem:[#allocation205_spill] sm:$0xff] %v8658_v23  ;;  %1548 = vmatpush.msra.mxu3 %v8741_v55  ;;  %1248 = vmatpush.msrb.mxu1 %v8760_v22 }
  0xe7   : > { %13221 = vst [vmem:[#allocation206_spill] sm:$0xff] %v8661_v43  ;;  %v8762_v11 = vand.u32 4294901760, %v1552_v19  ;;  %v8779_v19 = vand.u32 4294901760, %v259_v56  ;;  %1403 = vmatpush.msra.mxu0 %v8504_v12  ;;  %1503 = vmatpush.msra.mxu2 %v8710_v53 }
  0xe8   : > { %13222 = vst [vmem:[#allocation207_spill] sm:$0xff] %v8663_v58  ;;  %1331 = vmatmul.f32.gmra.mxu2 %v8720_v60  ;;  %1376 = vmatmul.f32.gmra.mxu3 %v8768_v34 }
  0xe9   : > { %13223 = vst [vmem:[#allocation208_spill] sm:$0xff] %v8667_v62  ;;  %1554 = vmatpush.msra.mxu3 %v8762_v11  ;;  %v250_v62 = vld [vmem:[%s12186_s3 + $0x80] sm:$0xff]  ;;  %1407 = vmatpush.msra.mxu0 %v8523_v46 }
  0xea   : > { %13224 = vst [vmem:[#allocation209_spill] sm:$0xff] %v8670_v10  ;;  %v8735_v10 = vand.u32 4294901760, %v265_v29  ;;  %v8849_v52 = vand.u32 4294901760, %v250_v62 }
  0xeb   : > { %13225 = vst [vmem:[#allocation210_spill] sm:$0xff] %v8672_v21  ;;  %1411 = vmatpush.msra.mxu0 %v8532_v63 }
  0xec   : > { %13226 = vst [vmem:[#allocation211_spill] sm:$0xff] %v8679_v15  ;;  %v1252_v15 = vsub.f32 %v8658_v23, %v8705_v51  ;;  %v1258_v23 = vsub.f32 %v8684_v31, %v8733_v42  ;;  %v8777_v7 = vsub.f32 %v265_v29, %v8735_v10  ;;  %v1564_v29 = vsub.f32 %v8708_v6, %v8751_v38 }
  0xed   : > { %13227 = vst [vmem:[#allocation212_spill] sm:$0xff] %v8684_v31  ;;  %v253_v31 = vld [vmem:[%s12186_s3 + $0x98] sm:$0xff]  ;;  %v8883_v28 = vsub.f32 %v250_v62, %v8849_v52  ;;  %1505 = vmatpush.msra.mxu2 %v8735_v10  ;;  %1415 = vmatpush.msra.mxu0 %v8569_v1 }
  0xee   : > { %13228 = vst [vmem:[#allocation213_spill] sm:$0xff] %v8687_v9  ;;  %v8796_v9 = vsub.f32 %v262_v30, %v8756_v8  ;;  %v8811_v30 = vand.u32 4294901760, %v1558_v17  ;;  %v8816_v39 = vand.u32 4294901760, %v8777_v7 }
  0xef   : > { %13229 = vst [vmem:[#allocation214_spill] sm:$0xff] %v8691_v40  ;;  %v8765_v40 = vand.u32 4294901760, %v8715_v2  ;;  %1507 = vmatpush.msra.mxu2 %v8756_v8  ;;  %1419 = vmatpush.msra.mxu0 %v8588_v35 }
  0xf0   : > { %13230 = vst [vmem:[#allocation215_spill] sm:$0xff] %v8705_v51  ;;  %v8835_v17 = vand.u32 4294901760, %v8796_v9  ;;  %1560 = vmatpush.msra.mxu3 %v8811_v30 }
  0xf1   : > { %13231 = vst [vmem:[#allocation216_spill] sm:$0xff] %v8708_v6  ;;  %1509 = vmatpush.msra.mxu2 %v8779_v19  ;;  %1423 = vmatpush.msra.mxu0 %v8596_v0 }
  0xf2   : > { %13232 = vst [vmem:[#allocation217_spill] sm:$0xff] %v8710_v53 }
  0xf3   : > { %13233 = vst [vmem:[#allocation218_spill] sm:$0xff] %v8715_v2  ;;  %1427 = vmatpush.msra.mxu0 %v8638_v13 }
  0xf4   : > { %13234 = vst [vmem:[#allocation219_spill] sm:$0xff] %v8720_v60 }
  0xf5   : > { %13235 = vst [vmem:[#allocation220_spill] sm:$0xff] %v8727_v45  ;;  %v8788_v45 = vand.u32 4294901760, %v1252_v15  ;;  %v1264_v15 = vsub.f32 %v8715_v2, %v8765_v40  ;;  %v8826_v2 = vand.u32 4294901760, %v253_v31  ;;  %1431 = vmatpush.msra.mxu0 %v8661_v43  ;;  %v13354_v43 = vld [vmem:[#allocation140_spill] sm:$0xff] }
  0xf6   : > { %13236 = vst [vmem:[#allocation221_spill] sm:$0xff] %v8730_v27  ;;  %v8793_v27 = vand.u32 4294901760, %v8754_v18 }
  0xf7   : > { %13237 = vst [vmem:[#allocation222_spill] sm:$0xff] %v8733_v42  ;;  %1254 = vmatpush.msrb.mxu1 %v8788_v45  ;;  %v8842_v33 = vand.u32 4294901760, %v1264_v15  ;;  %1435 = vmatpush.msra.mxu0 %v8705_v51 }
  0xf8   : > { %13238 = vst [vmem:[#allocation223_spill] sm:$0xff] %v8735_v10 }
  0xf9   : > { %13239 = vst [vmem:[#allocation224_spill] sm:$0xff] %v8739_v49  ;;  %v8807_v49 = vand.u32 4294901760, %v256_v37  ;;  %1439 = vmatpush.msra.mxu0 %v8733_v42 }
  0xfa   : > { %13240 = vst [vmem:[#allocation225_spill] sm:$0xff] %v8741_v55  ;;  %v1165_v55 = vsub.f32 %v8720_v60, %v8768_v34 }
  0xfb   : > { %13241 = vst [vmem:[#allocation226_spill] sm:$0xff] %v8751_v38  ;;  %v8813_v38 = vand.u32 4294901760, %v1258_v23  ;;  %v8830_v23 = vand.u32 4294901760, %v1564_v29  ;;  %v8847_v29 = vsub.f32 %v256_v37, %v8807_v49  ;;  %v8864_v37 = vsub.f32 %v253_v31, %v8826_v2  ;;  %1511 = vmatpush.msra.mxu2 %v8807_v49  ;;  %1443 = vmatpush.msra.mxu0 %v8765_v40 }
  0xfc   : > { %13242 = vst [vmem:[#allocation227_spill] sm:$0xff] %v8754_v18 }
  0xfd   : > { %13243 = vst [vmem:[#allocation228_spill] sm:$0xff] %v8756_v8  ;;  %1260 = vmatpush.msrb.mxu1 %v8813_v38  ;;  %1566 = vmatpush.msra.mxu3 %v8830_v23  ;;  %v8880_v31 = vand.u32 4294901760, %v8847_v29  ;;  %v8899_v62 = vand.u32 4294901760, %v8864_v37 }
  0xfe   : > { %13244 = vst [vmem:[#allocation229_spill] sm:$0xff] %v8760_v22  ;;  %v8819_v22 = vsub.f32 %v259_v56, %v8779_v19  ;;  %v1570_v56 = vsub.f32 %v8754_v18, %v8793_v27  ;;  %1513 = vmatpush.msra.mxu2 %v8826_v2  ;;  %1650 = vmatpush.msrb.mxu0 %v8602_v5  ;;  %v13306_v5 = vld [vmem:[#allocation208_spill] sm:$0xff] }
  0xff   : > { %13245 = vst [vmem:[#allocation230_spill] sm:$0xff] %v8762_v11  ;;  %v247_v11 = vld [vmem:[%s12186_s3 + $0x68] sm:$0xff]  ;;  %1266 = vmatpush.msrb.mxu1 %v8842_v33 }
 0x100   : > { %13246 = vst [vmem:[#allocation231_spill] sm:$0xff] %v8765_v40  ;;  %v8856_v24 = vand.u32 4294901760, %v8819_v22  ;;  %v8866_v15 = vand.u32 4294901760, %v247_v11  ;;  %1268 = vmatmul.f32.vlgmr.msrb.gmra.mxu1 %v8556_v59  ;;  %1515 = vmatpush.msra.mxu2 %v8849_v52  ;;  %v298_v40 = vld [vmem:[%s12186_s3 + $0x200] sm:$0xff] }
 0x101   : > { %13247 = vst [vmem:[#allocation232_spill] sm:$0xff] %v8768_v34  ;;  %1454 = vmatpush.msra.mxu1 %v8367_v57  ;;  %v235_v57 = vld [vmem:[%s12186_s3 + $0x8] sm:$0xff]  ;;  %v9245_v42 = vand.u32 4294901760, %v298_v40 }
 0x102   : > { %13248 = vst [vmem:[#allocation233_spill] sm:$0xff] %v8777_v7  ;;  %1517 = vmatpush.msra.mxu2 %v8866_v15 }
 0x103   : > { %13249 = vst [vmem:[#allocation234_spill] sm:$0xff] %v8779_v19  ;;  %1456 = vmatpush.msra.mxu1 %v8376_v25  ;;  %v1600_v25 = vsub.f32 %v8864_v37, %v8899_v62 }
 0x104   : > { %13250 = vst [vmem:[#allocation235_spill] sm:$0xff] %v8788_v45  ;;  %v8844_v45 = vand.u32 4294901760, %v1165_v55  ;;  %v244_v55 = vld [vmem:[%s12186_s3 + $0x50] sm:$0xff] }
 0x105   : > { %13251 = vst [vmem:[#allocation236_spill] sm:$0xff] %v8793_v27  ;;  %v1576_v27 = vsub.f32 %v8777_v7, %v8816_v39  ;;  %1458 = vmatpush.msra.mxu1 %v8385_v3 }
 0x106   : > { %13252 = vst [vmem:[#allocation237_spill] sm:$0xff] %v8796_v9  ;;  %1167 = vmatmul.f32.gmra.mxu0 %v8844_v45 }
 0x107   : > { %13253 = vst [vmem:[#allocation238_spill] sm:$0xff] %v8807_v49  ;;  %1460 = vmatpush.msra.mxu1 %v8402_v16 }
 0x108   : > { %13254 = vst [vmem:[#allocation239_spill] sm:$0xff] %v8811_v30  ;;  %v8870_v30 = vand.u32 4294901760, %v1570_v56  ;;  %v8889_v56 = vand.u32 4294901760, %v1576_v27  ;;  %1272 = vmatmul.f32.gmra.mxu1 %v8672_v21 }
 0x109   : > { %13255 = vst [vmem:[#allocation240_spill] sm:$0xff] %v8813_v38  ;;  %v1582_v38 = vsub.f32 %v8796_v9, %v8835_v17  ;;  %1462 = vmatpush.msra.mxu1 %v8417_v4 }
 0x10a   : > { %13256 = vst [vmem:[#allocation241_spill] sm:$0xff] %v8816_v39  ;;  %1572 = vmatpush.msra.mxu3 %v8870_v30 }
 0x10b   : > { %13257 = vst [vmem:[#allocation242_spill] sm:$0xff] %v8819_v22  ;;  %v8908_v27 = vand.u32 4294901760, %v1582_v38  ;;  %1464 = vmatpush.msra.mxu1 %v8432_v54 }
 0x10c   : > { %13258 = vst [vmem:[#allocation243_spill] sm:$0xff] %v8826_v2  ;;  %1578 = vmatpush.msra.mxu3 %v8889_v56 }
 0x10d   : > { %13259 = vst [vmem:[#allocation244_spill] sm:$0xff] %v8830_v23  ;;  %v8885_v23 = vand.u32 4294901760, %v244_v55  ;;  %1466 = vmatpush.msra.mxu1 %v8449_v41  ;;  %v13380_v41 = vld [vmem:[#allocation116_spill] sm:$0xff] }
 0x10e   : > { %13260 = vst [vmem:[#allocation245_spill] sm:$0xff] %v8835_v17  ;;  %v1588_v17 = vsub.f32 %v8819_v22, %v8856_v24  ;;  %1584 = vmatpush.msra.mxu3 %v8908_v27  ;;  %1445 = vmatmul.f32.vlgmr.msra.gmra.mxu0 %v8556_v59 }
 0x10f   : > { %13261 = vst [vmem:[#allocation246_spill] sm:$0xff] %v8842_v33  ;;  %v238_v33 = vld [vmem:[%s12186_s3 + $0x20] sm:$0xff]  ;;  %1468 = vmatpush.msra.mxu1 %v8455_v36  ;;  %1519 = vmatpush.msra.mxu2 %v8885_v23 }
 0x110   : > { %13262 = vst [vmem:[#allocation247_spill] sm:$0xff] %v8844_v45  ;;  %v8902_v45 = vsub.f32 %v247_v11, %v8866_v15  ;;  %v1594_v11 = vsub.f32 %v8847_v29, %v8880_v31  ;;  %v8923_v12 = vand.u32 4294901760, %v238_v33  ;;  %v8927_v38 = vand.u32 4294901760, %v1588_v17 }
 0x111   : > { %13263 = vst [vmem:[#allocation248_spill] sm:$0xff] %v8847_v29  ;;  %v8939_v29 = vand.u32 4294901760, %v235_v57  ;;  %1470 = vmatpush.msra.mxu1 %v8482_v61  ;;  %1521 = vmatpush.msra.mxu2 %v8904_v20 }
 0x112   : > { %13264 = vst [vmem:[#allocation249_spill] sm:$0xff] %v8849_v52  ;;  %v8945_v17 = vand.u32 4294901760, %v1594_v11  ;;  %1590 = vmatpush.msra.mxu3 %v8927_v38 }
 0x113   : > { %13265 = vst [vmem:[#allocation250_spill] sm:$0xff] %v8856_v24  ;;  %v8918_v24 = vand.u32 4294901760, %v8883_v28  ;;  %v8967_v3 = vsub.f32 %v235_v57, %v8939_v29  ;;  %1472 = vmatpush.msra.mxu1 %v8501_v26  ;;  %1523 = vmatpush.msra.mxu2 %v8923_v12 }
 0x114   : > { %13266 = vst [vmem:[#allocation251_spill] sm:$0xff] %v8864_v37  ;;  %1596 = vmatpush.msra.mxu3 %v8945_v17 }
 0x115   : > { %13267 = vst [vmem:[#allocation252_spill] sm:$0xff] %v8866_v15  ;;  %1474 = vmatpush.msra.mxu1 %v8510_v14  ;;  %1525 = vmatpush.msra.mxu2 %v8939_v29 }
 0x116   : > { %13268 = vst [vmem:[#allocation253_spill] sm:$0xff] %v8870_v30  ;;  %v8921_v30 = vsub.f32 %v244_v55, %v8885_v23  ;;  %v8937_v55 = vsub.f32 %v241_v32, %v8904_v20  ;;  %v8953_v32 = vsub.f32 %v238_v33, %v8923_v12  ;;  %1449 = vmatmul.f32.gmra.mxu0 %v8672_v21 }
 0x117   : > { %13269 = vst [vmem:[#allocation254_spill] sm:$0xff] %v8880_v31  ;;  %v8934_v31 = vand.u32 4294901760, %v8902_v45  ;;  %1476 = vmatpush.msra.mxu1 %v8546_v44 }
 0x118   : > { %13270 = vst [vmem:[#allocation255_spill] sm:$0xff] %v8883_v28  ;;  %v8950_v46 = vand.u32 4294901760, %v8921_v30  ;;  %v8964_v63 = vand.u32 4294901760, %v8937_v55 }
 0x119   : > { %13271 = vst [vmem:[#allocation256_spill] sm:$0xff] %v8885_v23  ;;  %v1612_v11 = vsub.f32 %v8902_v45, %v8934_v31 }
 0x11a   : > { %13272 = vst [vmem:[#allocation257_spill] sm:$0xff] %v8889_v56  ;;  %v1606_v56 = vsub.f32 %v8883_v28, %v8918_v24 }
 0x11b   : > { %13273 = vst [vmem:[#allocation258_spill] sm:$0xff] %v8899_v62  ;;  %v8984_v57 = vand.u32 4294901760, %v1612_v11 }
 0x11c   : > { %13274 = vst [vmem:[#allocation259_spill] sm:$0xff] %v8902_v45  ;;  %v8973_v33 = vand.u32 4294901760, %v1606_v56  ;;  %v1624_v56 = vsub.f32 %v8937_v55, %v8964_v63 }
 0x11d   : > { %13275 = vst [vmem:[#allocation260_spill] sm:$0xff] %v8904_v20 }
 0x11e   : > { %13276 = vst [vmem:[#allocation261_spill] sm:$0xff] %v8908_v27  ;;  %v8959_v27 = vand.u32 4294901760, %v1600_v25  ;;  %v1618_v25 = vsub.f32 %v8921_v30, %v8950_v46 }
 0x11f   : > { %13277 = vst [vmem:[#allocation262_spill] sm:$0xff] %v8918_v24 }
 0x120   : > { %13278 = vst [vmem:[#allocation263_spill] sm:$0xff] %v8921_v30  ;;  %1602 = vmatpush.msra.mxu3 %v8959_v27  ;;  %v8995_v35 = vand.u32 4294901760, %v1618_v25 }
 0x121   : > { %13279 = vst [vmem:[#allocation264_spill] sm:$0xff] %v8923_v12 }
 0x122   : > { %13280 = vst [vmem:[#allocation265_spill] sm:$0xff] %v8927_v38  ;;  %v8978_v38 = vand.u32 4294901760, %v8953_v32  ;;  %1608 = vmatpush.msra.mxu3 %v8973_v33 }
 0x123   : > { %13281 = vst [vmem:[#allocation266_spill] sm:$0xff] %v8934_v31 }
 0x124   : > { %13282 = vst [vmem:[#allocation267_spill] sm:$0xff] %v8937_v55  ;;  %v1630_v11 = vsub.f32 %v8953_v32, %v8978_v38  ;;  %1614 = vmatpush.msra.mxu3 %v8984_v57 }
 0x125   : > { %13283 = vst [vmem:[#allocation268_spill] sm:$0xff] %v8939_v29 }
 0x126   : > { %13284 = vst [vmem:[#allocation269_spill] sm:$0xff] %v8945_v17  ;;  %v8989_v17 = vand.u32 4294901760, %v8967_v3  ;;  %1620 = vmatpush.msra.mxu3 %v8995_v35  ;;  %v9011_v25 = vand.u32 4294901760, %v1630_v11  ;;  %v13299_v11 = vld [vmem:[#allocation198_spill] sm:$0xff] }
 0x127   : > { %13285 = vst [vmem:[#allocation270_spill] sm:$0xff] %v8950_v46  ;;  %1653 = vmatpush.msrb.mxu0 %v13299_v11  ;;  %v304_v11 = vld [vmem:[%s12186_s3 + $0x230] sm:$0xff] }
 0x128   : > { %13286 = vst [vmem:[#allocation271_spill] sm:$0xff] %v8953_v32  ;;  %v1636_v0 = vsub.f32 %v8967_v3, %v8989_v17 }
 0x129   : > { %13287 = vst [vmem:[#allocation272_spill] sm:$0xff] %v8959_v27  ;;  %v9003_v27 = vand.u32 4294901760, %v1624_v56 }
 0x12a   : > { %13288 = vst [vmem:[#allocation273_spill] sm:$0xff] %v8964_v63  ;;  %v9017_v56 = vand.u32 4294901760, %v1636_v0  ;;  %v13298_v0 = vld [vmem:[#allocation185_spill] sm:$0xff] }
 0x12b   : > { %13289 = vst [vmem:[#allocation274_spill] sm:$0xff] %v8967_v3  ;;  %1626 = vmatpush.msra.mxu3 %v9003_v27  ;;  %1478 = vmatpush.msra.mxu1 %v13298_v0 }
 0x12c   : > { %13290 = vst [vmem:[#allocation275_spill] sm:$0xff] %v8973_v33  ;;  %v13305_v33 = vld [vmem:[#allocation221_spill] sm:$0xff] }
 0x12d   : > { %13291 = vst [vmem:[#allocation276_spill] sm:$0xff] %v8978_v38  ;;  %1632 = vmatpush.msra.mxu3 %v9011_v25 }
 0x12e   : > { %13292 = vst [vmem:[#allocation277_spill] sm:$0xff] %v8984_v57  ;;  %v13304_v57 = vld [vmem:[#allocation199_spill] sm:$0xff] }
 0x12f   : > { %13293 = vst [vmem:[#allocation278_spill] sm:$0xff] %v8989_v17  ;;  %1638 = vmatpush.msra.mxu3 %v9017_v56 }
 0x130   : > { %13294 = vst [vmem:[#allocation279_spill] sm:$0xff] %v8995_v35  ;;  %v13303_v35 = vld [vmem:[#allocation209_spill] sm:$0xff] }
 0x131   : > { %13295 = vst [vmem:[#allocation280_spill] sm:$0xff] %v9003_v27  ;;  %1826 = vmatpush.msrb.mxu3 %v8558_v47  ;;  %v13301_v27 = vld [vmem:[#allocation195_spill] sm:$0xff] }
 0x132   : > { %13296 = vst [vmem:[#allocation281_spill] sm:$0xff] %v9011_v25  ;;  %v13300_v25 = vld [vmem:[#allocation203_spill] sm:$0xff]  ;;  %1480 = vmatpush.msra.mxu1 %v13301_v27 }
 0x133   : > { %13297 = vst [vmem:[#allocation282_spill] sm:$0xff] %v9017_v56  ;;  %1828 = vmatpush.msrb.mxu3 %v8578_v50  ;;  %1755 = vmatpush.msrb.mxu2 %v13300_v25  ;;  %v13302_v56 = vld [vmem:[#allocation213_spill] sm:$0xff]  ;;  %v13307_v25 = vld [vmem:[#allocation226_spill] sm:$0xff] }
 0x134   : > { %1656 = vmatpush.msrb.mxu0 %v13302_v56  ;;  %1482 = vmatpush.msra.mxu1 %v13304_v57  ;;  %13345 = vst [vmem:[#allocation313_spill] sm:$0xff] %v9245_v42 }
 0x135   : > { %1830 = vmatpush.msrb.mxu3 %v8640_v48  ;;  %1759 = vmatpush.msrb.mxu2 %v13303_v35  ;;  %v13308_v35 = vld [vmem:[#allocation236_spill] sm:$0xff] }
 0x136   : > { %1659 = vmatpush.msrb.mxu0 %v8708_v6  ;;  %1484 = vmatpush.msra.mxu1 %v13306_v5  ;;  %v13329_v6 = vld [vmem:[#allocation134_spill] sm:$0xff] }
 0x137   : > { %1832 = vmatpush.msrb.mxu3 %v8663_v58  ;;  %1763 = vmatpush.msrb.mxu2 %v13305_v33 }
 0x138   : > { %1486 = vmatmul.f32.vlgmr.msra.gmra.mxu1 %v8556_v59  ;;  %1662 = vmatpush.msrb.mxu0 %v8754_v18  ;;  %v349_v59 = vld [vmem:[%s12186_s3 + $0x398] sm:$0xff] }
 0x139   : > { %1708 = vmatpush.msrb.mxu1 %v8558_v47  ;;  %1767 = vmatpush.msrb.mxu2 %v13307_v25  ;;  %v13309_v25 = vld [vmem:[#allocation245_spill] sm:$0xff] }
 0x13a   : > { %1834 = vmatpush.msrb.mxu3 %v8710_v53  ;;  %1665 = vmatpush.msrb.mxu0 %v8777_v7  ;;  %v307_v7 = vld [vmem:[%s12186_s3 + $0x248] sm:$0xff] }
 0x13b   : > { %1710 = vmatpush.msrb.mxu1 %v8578_v50  ;;  %1771 = vmatpush.msrb.mxu2 %v13308_v35  ;;  %v13310_v35 = vld [vmem:[#allocation248_spill] sm:$0xff] }
 0x13c   : > { %1836 = vmatpush.msrb.mxu3 %v8735_v10  ;;  %1668 = vmatpush.msrb.mxu0 %v8796_v9  ;;  %v13311_v9 = vld [vmem:[#allocation250_spill] sm:$0xff] }
 0x13d   : > { %1712 = vmatpush.msrb.mxu1 %v8640_v48  ;;  %1775 = vmatpush.msrb.mxu2 %v8816_v39  ;;  %v13312_v39 = vld [vmem:[#allocation254_spill] sm:$0xff] }
 0x13e   : > { %1838 = vmatpush.msrb.mxu3 %v8756_v8  ;;  %1671 = vmatpush.msrb.mxu0 %v8819_v22  ;;  %v13324_v22 = vld [vmem:[#allocation108_spill] sm:$0xff] }
 0x13f   : > { %1714 = vmatpush.msrb.mxu1 %v8663_v58  ;;  %1779 = vmatpush.msrb.mxu2 %v13309_v25  ;;  %v328_v25 = vld [vmem:[%s12186_s3 + $0x2f0] sm:$0xff] }
 0x140   : > { %1840 = vmatpush.msrb.mxu3 %v8779_v19  ;;  %1490 = vmatmul.f32.gmra.mxu1 %v8672_v21 }
 0x141   : > { %1674 = vmatpush.msrb.mxu0 %v13310_v35  ;;  %1716 = vmatpush.msrb.mxu1 %v8710_v53  ;;  %v289_v53 = vld [vmem:[%s12186_s3 + $0x1b8] sm:$0xff] }
 0x142   : > { %1783 = vmatpush.msrb.mxu2 %v13311_v9  ;;  %1842 = vmatpush.msrb.mxu3 %v8807_v49  ;;  %v325_v9 = vld [vmem:[%s12186_s3 + $0x2d8] sm:$0xff]  ;;  %v9326_v47 = vand.u32 4294901760, %v289_v53 }
 0x143   : > { %1677 = vmatpush.msrb.mxu0 %v8864_v37  ;;  %1718 = vmatpush.msrb.mxu1 %v8735_v10  ;;  %v9081_v37 = vand.u32 4294901760, %v328_v25 }
 0x144   : > { %1787 = vmatpush.msrb.mxu2 %v13312_v39  ;;  %1844 = vmatpush.msrb.mxu3 %v8826_v2  ;;  %v322_v39 = vld [vmem:[%s12186_s3 + $0x2c0] sm:$0xff]  ;;  %13364 = vst [vmem:[#allocation330_spill] sm:$0xff] %v9326_v47 }
 0x145   : > { %1680 = vmatpush.msrb.mxu0 %v8883_v28  ;;  %1720 = vmatpush.msrb.mxu1 %v8756_v8  ;;  %13313 = vst [vmem:[#allocation283_spill] sm:$0xff] %v9081_v37  ;;  %v9090_v28 = vand.u32 4294901760, %v325_v9  ;;  %v9281_v8 = vsub.f32 %v298_v40, %v9245_v42 }
 0x146   : > { %1791 = vmatpush.msrb.mxu2 %v8899_v62  ;;  %1846 = vmatpush.msrb.mxu3 %v8849_v52  ;;  %v319_v62 = vld [vmem:[%s12186_s3 + $0x2a8] sm:$0xff] }
 0x147   : > { %1683 = vmatpush.msrb.mxu0 %v8902_v45  ;;  %1722 = vmatpush.msrb.mxu1 %v8779_v19  ;;  %13314 = vst [vmem:[#allocation284_spill] sm:$0xff] %v9090_v28  ;;  %v9100_v45 = vsub.f32 %v328_v25, %v9081_v37  ;;  %v9111_v35 = vand.u32 4294901760, %v319_v62  ;;  %v316_v25 = vld [vmem:[%s12186_s3 + $0x290] sm:$0xff]  ;;  %v9319_v48 = vand.u32 4294901760, %v9281_v8 }
 0x148   : > { %1795 = vmatpush.msrb.mxu2 %v8918_v24  ;;  %1848 = vmatpush.msrb.mxu3 %v8866_v15  ;;  %v9102_v24 = vand.u32 4294901760, %v322_v39  ;;  %13352 = vst [vmem:[#allocation320_spill] sm:$0xff] %v9281_v8 }
 0x149   : > { %1686 = vmatpush.msrb.mxu0 %v8921_v30  ;;  %1724 = vmatpush.msrb.mxu1 %v8807_v49  ;;  %13315 = vst [vmem:[#allocation285_spill] sm:$0xff] %v9100_v45  ;;  %v9109_v30 = vsub.f32 %v325_v9, %v9090_v28  ;;  %v9124_v9 = vand.u32 4294901760, %v9100_v45 }
 0x14a   : > { %1799 = vmatpush.msrb.mxu2 %v8934_v31  ;;  %1850 = vmatpush.msrb.mxu3 %v8885_v23  ;;  %13316 = vst [vmem:[#allocation286_spill] sm:$0xff] %v9102_v24  ;;  %v313_v31 = vld [vmem:[%s12186_s3 + $0x278] sm:$0xff] }
 0x14b   : > { %1689 = vmatpush.msrb.mxu0 %v8937_v55  ;;  %1726 = vmatpush.msrb.mxu1 %v8826_v2  ;;  %13317 = vst [vmem:[#allocation287_spill] sm:$0xff] %v9109_v30  ;;  %v310_v55 = vld [vmem:[%s12186_s3 + $0x260] sm:$0xff]  ;;  %v9202_v2 = vand.u32 4294901760, %v304_v11 }
 0x14c   : > { %1803 = vmatpush.msrb.mxu2 %v8950_v46  ;;  %1852 = vmatpush.msrb.mxu3 %v8904_v20  ;;  %13318 = vst [vmem:[#allocation288_spill] sm:$0xff] %v9111_v35  ;;  %v9121_v46 = vsub.f32 %v322_v39, %v9102_v24  ;;  %v9136_v39 = vsub.f32 %v319_v62, %v9111_v35  ;;  %v9163_v18 = vand.u32 4294901760, %v310_v55 }
 0x14d   : > { %1692 = vmatpush.msrb.mxu0 %v8953_v32  ;;  %1728 = vmatpush.msrb.mxu1 %v8849_v52  ;;  %13320 = vst [vmem:[#allocation290_spill] sm:$0xff] %v9124_v9  ;;  %v9131_v32 = vand.u32 4294901760, %v316_v25  ;;  %v1918_v62 = vsub.f32 %v9100_v45, %v9124_v9 }
 0x14e   : > { %1807 = vmatpush.msrb.mxu2 %v8964_v63  ;;  %1854 = vmatpush.msrb.mxu3 %v8923_v12  ;;  %13319 = vst [vmem:[#allocation289_spill] sm:$0xff] %v9121_v46  ;;  %v9139_v63 = vand.u32 4294901760, %v9109_v30 }
 0x14f   : > { %1695 = vmatpush.msrb.mxu0 %v8967_v3  ;;  %1730 = vmatpush.msrb.mxu1 %v8866_v15  ;;  %13321 = vst [vmem:[#allocation291_spill] sm:$0xff] %v9131_v32  ;;  %v9146_v3 = vand.u32 4294901760, %v313_v31  ;;  %v9161_v33 = vsub.f32 %v316_v25, %v9131_v32  ;;  %v9177_v25 = vand.u32 4294901760, %v307_v7  ;;  %v9184_v15 = vand.u32 4294901760, %v1918_v62 }
 0x150   : > { %1811 = vmatpush.msrb.mxu2 %v8978_v38  ;;  %1856 = vmatpush.msrb.mxu3 %v8939_v29  ;;  %13322 = vst [vmem:[#allocation292_spill] sm:$0xff] %v9136_v39  ;;  %v9153_v38 = vand.u32 4294901760, %v9121_v46  ;;  %v1924_v56 = vsub.f32 %v9109_v30, %v9139_v63 }
 0x151   : > { %13323 = vst [vmem:[#allocation293_spill] sm:$0xff] %v9139_v63  ;;  %1640 = vmatmul.f32.vlgmr.msra.gmra.mxu3 %v13324_v22  ;;  %1867 = vmatpush.msra.mxu0 %v9081_v37 }
 0x152   : > { %13325 = vst [vmem:[#allocation294_spill] sm:$0xff] %v9146_v3  ;;  %2080 = vmatpush.msra.mxu3 %v9081_v37  ;;  %1732 = vmatpush.msrb.mxu1 %v8885_v23  ;;  %v9170_v23 = vand.u32 4294901760, %v9136_v39  ;;  %v9198_v52 = vand.u32 4294901760, %v1924_v56 }
 0x153   : > { %13326 = vst [vmem:[#allocation295_spill] sm:$0xff] %v9153_v38  ;;  %1815 = vmatpush.msrb.mxu2 %v8989_v17  ;;  %1869 = vmatpush.msra.mxu0 %v9090_v28  ;;  %v9175_v17 = vsub.f32 %v313_v31, %v9146_v3  ;;  %v9191_v31 = vsub.f32 %v310_v55, %v9163_v18 }
 0x154   : > { %13327 = vst [vmem:[#allocation296_spill] sm:$0xff] %v9161_v33  ;;  %1531 = vmatmul.f32.vlgmr.msra.gmra.mxu2 %v13329_v6  ;;  %2082 = vmatpush.msra.mxu3 %v9090_v28  ;;  %v1936_v62 = vsub.f32 %v9136_v39, %v9170_v23  ;;  %v9210_v55 = vsub.f32 %v307_v7, %v9177_v25  ;;  %v358_v6 = vld [vmem:[%s12186_s3 + $0x3e0] sm:$0xff] }
 0x155   : > { %13328 = vst [vmem:[#allocation297_spill] sm:$0xff] %v9163_v18  ;;  %2022 = vmatpush.msra.mxu2 %v9100_v45  ;;  %1734 = vmatpush.msrb.mxu1 %v8904_v20  ;;  %v1930_v45 = vsub.f32 %v9121_v46, %v9153_v38  ;;  %v9194_v20 = vand.u32 4294901760, %v9161_v33 }
 0x156   : > { %13330 = vst [vmem:[#allocation298_spill] sm:$0xff] %v9170_v23  ;;  %1871 = vmatpush.msra.mxu0 %v9102_v24  ;;  %2084 = vmatpush.msra.mxu3 %v9102_v24 }
 0x157   : > { %13331 = vst [vmem:[#allocation299_spill] sm:$0xff] %v9175_v17  ;;  %2025 = vmatpush.msra.mxu2 %v9109_v30  ;;  %1736 = vmatpush.msrb.mxu1 %v8923_v12  ;;  %v301_v30 = vld [vmem:[%s12186_s3 + $0x218] sm:$0xff]  ;;  %v9213_v12 = vand.u32 4294901760, %v9175_v17  ;;  %v9217_v56 = vand.u32 4294901760, %v1930_v45  ;;  %v1942_v7 = vsub.f32 %v9161_v33, %v9194_v20  ;;  %v9233_v45 = vand.u32 4294901760, %v1936_v62 }
 0x158   : > { %13332 = vst [vmem:[#allocation300_spill] sm:$0xff] %v9177_v25  ;;  %1873 = vmatpush.msra.mxu0 %v9111_v35  ;;  %2086 = vmatpush.msra.mxu3 %v9111_v35 }
 0x159   : > { %13333 = vst [vmem:[#allocation301_spill] sm:$0xff] %v9184_v15  ;;  %2028 = vmatpush.msra.mxu2 %v9121_v46  ;;  %1738 = vmatpush.msrb.mxu1 %v8939_v29  ;;  %v9226_v46 = vand.u32 4294901760, %v301_v30  ;;  %v9229_v29 = vand.u32 4294901760, %v9191_v31  ;;  %v1948_v49 = vsub.f32 %v9175_v17, %v9213_v12  ;;  %v9257_v62 = vand.u32 4294901760, %v1942_v7 }
 0x15a   : > { %13334 = vst [vmem:[#allocation302_spill] sm:$0xff] %v9191_v31  ;;  %1875 = vmatpush.msra.mxu0 %v9131_v32  ;;  %2088 = vmatpush.msra.mxu3 %v9131_v32 }
 0x15b   : > { %13335 = vst [vmem:[#allocation303_spill] sm:$0xff] %v9194_v20  ;;  %1920 = vmatpush.msra.mxu1 %v9184_v15  ;;  %2031 = vmatpush.msra.mxu2 %v9136_v39  ;;  %v9236_v15 = vsub.f32 %v304_v11, %v9202_v2  ;;  %v295_v39 = vld [vmem:[%s12186_s3 + $0x1e8] sm:$0xff]  ;;  %v376_v11 = vld [vmem:[%s12186_s3 + $0x470] sm:$0xff]  ;;  %v9262_v19 = vsub.f32 %v301_v30, %v9226_v46  ;;  %v9276_v7 = vand.u32 4294901760, %v1948_v49 }
 0x15c   : > { %13336 = vst [vmem:[#allocation304_spill] sm:$0xff] %v9198_v52  ;;  %1877 = vmatpush.msra.mxu0 %v9146_v3  ;;  %2090 = vmatpush.msra.mxu3 %v9146_v3  ;;  %v9264_v51 = vand.u32 4294901760, %v295_v39  ;;  %v9283_v10 = vand.u32 4294901760, %v376_v11 }
 0x15d   : > { %13337 = vst [vmem:[#allocation305_spill] sm:$0xff] %v9202_v2  ;;  %1926 = vmatpush.msra.mxu1 %v9198_v52  ;;  %2034 = vmatpush.msra.mxu2 %v9161_v33  ;;  %v9248_v52 = vand.u32 4294901760, %v9210_v55  ;;  %v1954_v33 = vsub.f32 %v9191_v31, %v9229_v29  ;;  %v9303_v58 = vand.u32 4294901760, %v9262_v19 }
 0x15e   : > { %13338 = vst [vmem:[#allocation306_spill] sm:$0xff] %v9210_v55  ;;  %1879 = vmatpush.msra.mxu0 %v9163_v18  ;;  %2092 = vmatpush.msra.mxu3 %v9163_v18  ;;  %v9297_v40 = vsub.f32 %v295_v39, %v9264_v51  ;;  %v13360_v39 = vld [vmem:[#allocation127_spill] sm:$0xff]  ;;  %v9322_v50 = vsub.f32 %v376_v11, %v9283_v10 }
 0x15f   : > { %13339 = vst [vmem:[#allocation307_spill] sm:$0xff] %v9213_v12  ;;  %1932 = vmatpush.msra.mxu1 %v9217_v56  ;;  %2037 = vmatpush.msra.mxu2 %v9175_v17  ;;  %v9272_v17 = vand.u32 4294901760, %v9236_v15  ;;  %v1960_v30 = vsub.f32 %v9210_v55, %v9248_v52  ;;  %v9294_v49 = vand.u32 4294901760, %v1954_v33  ;;  %v370_v33 = vld [vmem:[%s12186_s3 + $0x440] sm:$0xff]  ;;  %v1972_v11 = vsub.f32 %v9262_v19, %v9303_v58 }
 0x160   : > { %13340 = vst [vmem:[#allocation308_spill] sm:$0xff] %v9217_v56  ;;  %v292_v56 = vld [vmem:[%s12186_s3 + $0x1d0] sm:$0xff]  ;;  %1881 = vmatpush.msra.mxu0 %v9177_v25  ;;  %2094 = vmatpush.msra.mxu3 %v9177_v25  ;;  %v9363_v0 = vand.u32 4294901760, %v9322_v50 }
 0x161   : > { %13341 = vst [vmem:[#allocation309_spill] sm:$0xff] %v9226_v46  ;;  %1938 = vmatpush.msra.mxu1 %v9233_v45  ;;  %2040 = vmatpush.msra.mxu2 %v9191_v31  ;;  %v9290_v31 = vand.u32 4294901760, %v292_v56  ;;  %v9316_v13 = vand.u32 4294901760, %v1960_v30  ;;  %v286_v30 = vld [vmem:[%s12186_s3 + $0x1a0] sm:$0xff]  ;;  %v9380_v14 = vand.u32 4294901760, %v1972_v11  ;;  %v361_v11 = vld [vmem:[%s12186_s3 + $0x3f8] sm:$0xff] }
 0x162   : > { %13342 = vst [vmem:[#allocation310_spill] sm:$0xff] %v9229_v29  ;;  %1539 = vmatmul.f32.gmra.mxu2 %v13354_v43  ;;  %1883 = vmatpush.msra.mxu0 %v9202_v2  ;;  %v9358_v27 = vand.u32 4294901760, %v286_v30 }
 0x163   : > { %13343 = vst [vmem:[#allocation311_spill] sm:$0xff] %v9233_v45  ;;  %v373_v45 = vld [vmem:[%s12186_s3 + $0x458] sm:$0xff]  ;;  %1944 = vmatpush.msra.mxu1 %v9257_v62  ;;  %2043 = vmatpush.msra.mxu2 %v9210_v55  ;;  %v9329_v1 = vsub.f32 %v292_v56, %v9290_v31  ;;  %v367_v56 = vld [vmem:[%s12186_s3 + $0x428] sm:$0xff] }
 0x164   : > { %13344 = vst [vmem:[#allocation312_spill] sm:$0xff] %v9236_v15  ;;  %2096 = vmatpush.msra.mxu3 %v9202_v2  ;;  %1885 = vmatpush.msra.mxu0 %v9226_v46  ;;  %v9309_v55 = vand.u32 4294901760, %v373_v45  ;;  %v9376_v44 = vand.u32 4294901760, %v367_v56 }
 0x165   : > { %13346 = vst [vmem:[#allocation314_spill] sm:$0xff] %v9248_v52  ;;  %1644 = vmatmul.f32.gmra.mxu3 %v13360_v39  ;;  %1950 = vmatpush.msra.mxu1 %v9276_v7 }
 0x166   : > { %13347 = vst [vmem:[#allocation315_spill] sm:$0xff] %v9257_v62  ;;  %v1966_v62 = vsub.f32 %v9236_v15, %v9272_v17  ;;  %2046 = vmatpush.msra.mxu2 %v9236_v15  ;;  %2098 = vmatpush.msra.mxu3 %v9226_v46  ;;  %v9339_v15 = vand.u32 4294901760, %v9297_v40  ;;  %v9354_v57 = vsub.f32 %v373_v45, %v9309_v55 }
 0x167   : > { %13348 = vst [vmem:[#allocation316_spill] sm:$0xff] %v9262_v19  ;;  %1887 = vmatpush.msra.mxu0 %v9245_v42  ;;  %1956 = vmatpush.msra.mxu1 %v9294_v49  ;;  %v9371_v45 = vsub.f32 %v289_v53, %v9326_v47  ;;  %v9416_v16 = vsub.f32 %v367_v56, %v9376_v44  ;;  %v13389_v56 = vld [vmem:[#allocation124_spill] sm:$0xff] }
 0x168   : > { %13349 = vst [vmem:[#allocation317_spill] sm:$0xff] %v9264_v51  ;;  %2049 = vmatpush.msra.mxu2 %v9262_v19  ;;  %2100 = vmatpush.msra.mxu3 %v9245_v42  ;;  %v9348_v5 = vand.u32 4294901760, %v1966_v62  ;;  %v1978_v19 = vsub.f32 %v9281_v8, %v9319_v48  ;;  %v364_v62 = vld [vmem:[%s12186_s3 + $0x410] sm:$0xff]  ;;  %v9392_v53 = vand.u32 4294901760, %v9354_v57 }
 0x169   : > { %13350 = vst [vmem:[#allocation318_spill] sm:$0xff] %v9272_v17  ;;  %1889 = vmatpush.msra.mxu0 %v9264_v51  ;;  %1962 = vmatpush.msra.mxu1 %v9316_v13  ;;  %v9394_v36 = vand.u32 4294901760, %v364_v62  ;;  %v9413_v4 = vand.u32 4294901760, %v9371_v45 }
 0x16a   : > { %13351 = vst [vmem:[#allocation319_spill] sm:$0xff] %v9276_v7  ;;  %v9341_v7 = vand.u32 4294901760, %v370_v33  ;;  %2052 = vmatpush.msra.mxu2 %v9281_v8  ;;  %2102 = vmatpush.msra.mxu3 %v9264_v51  ;;  %v1984_v8 = vsub.f32 %v9297_v40, %v9339_v15  ;;  %v9401_v54 = vand.u32 4294901760, %v1978_v19 }
 0x16b   : > { %13353 = vst [vmem:[#allocation321_spill] sm:$0xff] %v9283_v10  ;;  %1817 = vmatmul.f32.vlgmr.msrb.gmra.mxu2 %v13324_v22  ;;  %1891 = vmatpush.msra.mxu0 %v9290_v31 }
 0x16c   : > { %13355 = vst [vmem:[#allocation322_spill] sm:$0xff] %v9290_v31  ;;  %v9387_v61 = vsub.f32 %v370_v33, %v9341_v7  ;;  %1968 = vmatpush.msra.mxu1 %v9348_v5  ;;  %2055 = vmatpush.msra.mxu2 %v9297_v40  ;;  %v9404_v33 = vsub.f32 %v286_v30, %v9358_v27  ;;  %v9420_v19 = vand.u32 4294901760, %v1984_v8 }
 0x16d   : > { %13356 = vst [vmem:[#allocation323_spill] sm:$0xff] %v9294_v49  ;;  %v283_v49 = vld [vmem:[%s12186_s3 + $0x188] sm:$0xff]  ;;  %2104 = vmatpush.msra.mxu3 %v9290_v31  ;;  %1698 = vmatmul.f32.vlgmr.msrb.gmra.mxu0 %v13380_v41  ;;  %v2296_v8 = vsub.f32 %v9354_v57, %v9392_v53 }
 0x16e   : > { %13357 = vst [vmem:[#allocation324_spill] sm:$0xff] %v9297_v40  ;;  %v9382_v26 = vand.u32 4294901760, %v283_v49  ;;  %v2290_v40 = vsub.f32 %v9322_v50, %v9363_v0  ;;  %1858 = vmatmul.f32.vlgmr.msrb.gmra.mxu3 %v13324_v22  ;;  %1893 = vmatpush.msra.mxu0 %v9326_v47  ;;  %v9426_v43 = vand.u32 4294901760, %v9387_v61  ;;  %v9428_v22 = vand.u32 4294901760, %v361_v11  ;;  %v355_v41 = vld [vmem:[%s12186_s3 + $0x3c8] sm:$0xff] }
 0x16f   : > { %13358 = vst [vmem:[#allocation325_spill] sm:$0xff] %v9303_v58  ;;  %1974 = vmatpush.msra.mxu1 %v9380_v14  ;;  %2058 = vmatpush.msra.mxu2 %v9329_v1  ;;  %v9476_v21 = vand.u32 4294901760, %v2296_v8 }
 0x170   : > { %13359 = vst [vmem:[#allocation326_spill] sm:$0xff] %v9309_v55  ;;  %v9423_v30 = vsub.f32 %v283_v49, %v9382_v26  ;;  %2106 = vmatpush.msra.mxu3 %v9326_v47  ;;  %1742 = vmatmul.f32.vlgmr.msrb.gmra.mxu1 %v13389_v56  ;;  %v9442_v49 = vand.u32 4294901760, %v2290_v40  ;;  %v9459_v40 = vand.u32 4294901760, %v358_v6  ;;  %v2302_v34 = vsub.f32 %v9387_v61, %v9426_v43 }
 0x171   : > { %13361 = vst [vmem:[#allocation327_spill] sm:$0xff] %v9316_v13  ;;  %v9374_v13 = vand.u32 4294901760, %v9329_v1  ;;  %1895 = vmatpush.msra.mxu0 %v9358_v27  ;;  %1980 = vmatpush.msra.mxu1 %v9401_v54 }
 0x172   : > { %13362 = vst [vmem:[#allocation328_spill] sm:$0xff] %v9319_v48  ;;  %2061 = vmatpush.msra.mxu2 %v9371_v45  ;;  %2108 = vmatpush.msra.mxu3 %v9358_v27  ;;  %v9466_v60 = vand.u32 4294901760, %v9423_v30 }
 0x173   : > { %13363 = vst [vmem:[#allocation329_spill] sm:$0xff] %v9322_v50  ;;  %1897 = vmatpush.msra.mxu0 %v9382_v26  ;;  %1986 = vmatpush.msra.mxu1 %v9420_v19 }
 0x174   : > { %13365 = vst [vmem:[#allocation331_spill] sm:$0xff] %v9329_v1  ;;  %2064 = vmatpush.msra.mxu2 %v9404_v33  ;;  %2110 = vmatpush.msra.mxu3 %v9382_v26 }
 0x175   : > { %13366 = vst [vmem:[#allocation332_spill] sm:$0xff] %v9339_v15  ;;  %2127 = vmatpush.msrb.mxu0 %v9124_v9  ;;  %1821 = vmatmul.f32.gmra.mxu2 %v13360_v39  ;;  %v9497_v9 = vsub.f32 %v358_v6, %v9459_v40 }
 0x176   : > { %13367 = vst [vmem:[#allocation333_spill] sm:$0xff] %v9341_v7  ;;  %2292 = vmatpush.msrb.mxu3 %v9442_v49  ;;  %2067 = vmatpush.msra.mxu2 %v9423_v30 }
 0x177   : > { %13368 = vst [vmem:[#allocation334_spill] sm:$0xff] %v9348_v5  ;;  %v1990_v5 = vsub.f32 %v9329_v1, %v9374_v13  ;;  %v9438_v1 = vsub.f32 %v364_v62, %v9394_v36  ;;  %v1996_v62 = vsub.f32 %v9371_v45, %v9413_v4  ;;  %2131 = vmatpush.msrb.mxu0 %v9139_v63  ;;  %v9520_v63 = vand.u32 4294901760, %v349_v59 }
 0x178   : > { %13369 = vst [vmem:[#allocation335_spill] sm:$0xff] %v9354_v57  ;;  %2239 = vmatpush.msrb.mxu2 %v9283_v10  ;;  %2298 = vmatpush.msrb.mxu3 %v9476_v21 }
 0x179   : > { %13370 = vst [vmem:[#allocation336_spill] sm:$0xff] %v9358_v27  ;;  %v9452_v56 = vand.u32 4294901760, %v1990_v5  ;;  %v9469_v5 = vsub.f32 %v361_v11, %v9428_v22  ;;  %v9492_v8 = vand.u32 4294901760, %v1996_v62  ;;  %v2008_v27 = vsub.f32 %v9423_v30, %v9466_v60  ;;  %1862 = vmatmul.f32.gmra.mxu3 %v13360_v39  ;;  %2135 = vmatpush.msrb.mxu0 %v9153_v38  ;;  %v13415_v38 = vld [vmem:[#allocation135_spill] sm:$0xff] }
 0x17a   : > { %13371 = vst [vmem:[#allocation337_spill] sm:$0xff] %v9363_v0  ;;  %2241 = vmatpush.msrb.mxu2 %v9309_v55  ;;  %1748 = vmatmul.f32.gmra.mxu1 %v13415_v38  ;;  %v9555_v39 = vsub.f32 %v349_v59, %v9520_v63 }
 0x17b   : > { %13372 = vst [vmem:[#allocation338_spill] sm:$0xff] %v9371_v45  ;;  %v352_v45 = vld [vmem:[%s12186_s3 + $0x3b0] sm:$0xff]  ;;  %1992 = vmatpush.msra.mxu1 %v9452_v56  ;;  %v9508_v62 = vand.u32 4294901760, %v9469_v5  ;;  %2139 = vmatpush.msrb.mxu0 %v9170_v23  ;;  %v337_v23 = vld [vmem:[%s12186_s3 + $0x338] sm:$0xff] }
 0x17c   : > { %13373 = vst [vmem:[#allocation339_spill] sm:$0xff] %v9374_v13  ;;  %2243 = vmatpush.msrb.mxu2 %v9341_v7 }
 0x17d   : > { %13374 = vst [vmem:[#allocation340_spill] sm:$0xff] %v9376_v44  ;;  %1998 = vmatpush.msra.mxu1 %v9492_v8  ;;  %2143 = vmatpush.msrb.mxu0 %v9194_v20 }
 0x17e   : > { %13375 = vst [vmem:[#allocation341_spill] sm:$0xff] %v9380_v14  ;;  %v9445_v14 = vand.u32 4294901760, %v9404_v33  ;;  %2245 = vmatpush.msrb.mxu2 %v9376_v44 }
 0x17f   : > { %13376 = vst [vmem:[#allocation342_spill] sm:$0xff] %v9382_v26  ;;  %2147 = vmatpush.msrb.mxu0 %v9213_v12 }
 0x180   : > { %13377 = vst [vmem:[#allocation343_spill] sm:$0xff] %v9387_v61  ;;  %v2002_v11 = vsub.f32 %v9404_v33, %v9445_v14  ;;  %2247 = vmatpush.msrb.mxu2 %v9394_v36 }
 0x181   : > { %13378 = vst [vmem:[#allocation344_spill] sm:$0xff] %v9392_v53  ;;  %2151 = vmatpush.msrb.mxu0 %v9229_v29 }
 0x182   : > { %13379 = vst [vmem:[#allocation345_spill] sm:$0xff] %v9394_v36  ;;  %2249 = vmatpush.msrb.mxu2 %v9428_v22 }
 0x183   : > { %13381 = vst [vmem:[#allocation346_spill] sm:$0xff] %v9401_v54  ;;  %v9457_v54 = vand.u32 4294901760, %v9416_v16  ;;  %2155 = vmatpush.msrb.mxu0 %v9248_v52 }
 0x184   : > { %13382 = vst [vmem:[#allocation347_spill] sm:$0xff] %v9404_v33  ;;  %v9503_v33 = vand.u32 4294901760, %v2302_v34  ;;  %2251 = vmatpush.msrb.mxu2 %v9459_v40 }
 0x185   : > { %13383 = vst [vmem:[#allocation348_spill] sm:$0xff] %v9413_v4  ;;  %v2308_v26 = vsub.f32 %v9416_v16, %v9457_v54  ;;  %2159 = vmatpush.msrb.mxu0 %v9272_v17 }
 0x186   : > { %13384 = vst [vmem:[#allocation349_spill] sm:$0xff] %v9416_v16  ;;  %v343_v16 = vld [vmem:[%s12186_s3 + $0x368] sm:$0xff]  ;;  %2304 = vmatpush.msrb.mxu3 %v9503_v33 }
 0x187   : > { %13385 = vst [vmem:[#allocation350_spill] sm:$0xff] %v9420_v19  ;;  %v9479_v19 = vand.u32 4294901760, %v9438_v1  ;;  %2163 = vmatpush.msrb.mxu0 %v9303_v58 }
 0x188   : > { %13386 = vst [vmem:[#allocation351_spill] sm:$0xff] %v9423_v30  ;;  %v13408_v30 = vld [vmem:[#allocation132_spill] sm:$0xff] }
 0x189   : > { %13387 = vst [vmem:[#allocation352_spill] sm:$0xff] %v9426_v43  ;;  %v9481_v43 = vand.u32 4294901760, %v355_v41  ;;  %v2314_v6 = vsub.f32 %v9438_v1, %v9479_v19  ;;  %1703 = vmatmul.f32.gmra.mxu0 %v13408_v30 }
 0x18a   : > { %13388 = vst [vmem:[#allocation353_spill] sm:$0xff] %v9428_v22  ;;  %2167 = vmatpush.msrb.mxu0 %v9319_v48  ;;  %v13450_v48 = vld [vmem:[#allocation146_spill] sm:$0xff] }
 0x18b   : > { %13390 = vst [vmem:[#allocation354_spill] sm:$0xff] %v9438_v1  ;;  %v9518_v34 = vsub.f32 %v355_v41, %v9481_v43  ;;  %v9534_v41 = vand.u32 4294901760, %v9497_v9  ;;  %v9557_v1 = vand.u32 4294901760, %v343_v16  ;;  %2253 = vmatpush.msrb.mxu2 %v9481_v43 }
 0x18c   : > { %13391 = vst [vmem:[#allocation355_spill] sm:$0xff] %v9442_v49  ;;  %v9499_v49 = vand.u32 4294901760, %v352_v45  ;;  %2171 = vmatpush.msrb.mxu0 %v9339_v15 }
 0x18d   : > { %13392 = vst [vmem:[#allocation356_spill] sm:$0xff] %v9445_v14  ;;  %v9591_v38 = vsub.f32 %v343_v16, %v9557_v1 }
 0x18e   : > { %13393 = vst [vmem:[#allocation357_spill] sm:$0xff] %v9452_v56  ;;  %v346_v56 = vld [vmem:[%s12186_s3 + $0x380] sm:$0xff]  ;;  %2255 = vmatpush.msrb.mxu2 %v9499_v49  ;;  %2175 = vmatpush.msrb.mxu0 %v9374_v13 }
 0x18f   : > { %13394 = vst [vmem:[#allocation358_spill] sm:$0xff] %v9457_v54  ;;  %v9524_v54 = vand.u32 4294901760, %v2002_v11  ;;  %v9539_v30 = vand.u32 4294901760, %v346_v56  ;;  %v9543_v11 = vand.u32 4294901760, %v2008_v27  ;;  %v340_v27 = vld [vmem:[%s12186_s3 + $0x350] sm:$0xff] }
 0x190   : > { %13395 = vst [vmem:[#allocation359_spill] sm:$0xff] %v9459_v40  ;;  %v9581_v20 = vand.u32 4294901760, %v340_v27  ;;  %2257 = vmatpush.msrb.mxu2 %v9520_v63  ;;  %2179 = vmatpush.msrb.mxu0 %v9413_v4 }
 0x191   : > { %13396 = vst [vmem:[#allocation360_spill] sm:$0xff] %v9466_v60  ;;  %2004 = vmatpush.msra.mxu1 %v9524_v54 }
 0x192   : > { %13397 = vst [vmem:[#allocation361_spill] sm:$0xff] %v9469_v5  ;;  %v9612_v12 = vsub.f32 %v340_v27, %v9581_v20  ;;  %2259 = vmatpush.msrb.mxu2 %v9539_v30  ;;  %2183 = vmatpush.msrb.mxu0 %v9445_v14  ;;  %v254_v14 = vld [vmem:[%s12186_s3 + $0xa0] sm:$0xff] }
 0x193   : > { %13398 = vst [vmem:[#allocation362_spill] sm:$0xff] %v9476_v21  ;;  %v9531_v21 = vand.u32 4294901760, %v2308_v26  ;;  %v9549_v26 = vand.u32 4294901760, %v2314_v6  ;;  %v2326_v6 = vsub.f32 %v9497_v9, %v9534_v41  ;;  %2010 = vmatpush.msra.mxu1 %v9543_v11 }
 0x194   : > { %13399 = vst [vmem:[#allocation363_spill] sm:$0xff] %v9479_v19  ;;  %v9537_v19 = vsub.f32 %v352_v45, %v9499_v49  ;;  %v9552_v45 = vand.u32 4294901760, %v9518_v34  ;;  %2261 = vmatpush.msrb.mxu2 %v9557_v1  ;;  %2187 = vmatpush.msrb.mxu0 %v9466_v60  ;;  %v257_v60 = vld [vmem:[%s12186_s3 + $0xb8] sm:$0xff] }
 0x195   : > { %13400 = vst [vmem:[#allocation364_spill] sm:$0xff] %v9481_v43  ;;  %2310 = vmatpush.msrb.mxu3 %v9531_v21  ;;  %2198 = vmatpush.msrb.mxu1 %v9081_v37  ;;  %v9598_v37 = vand.u32 4294901760, %v337_v23 }
 0x196   : > { %13401 = vst [vmem:[#allocation365_spill] sm:$0xff] %v9492_v8  ;;  %v2320_v8 = vsub.f32 %v9469_v5, %v9508_v62  ;;  %v9569_v59 = vand.u32 4294901760, %v9537_v19  ;;  %2263 = vmatpush.msrb.mxu2 %v9581_v20 }
 0x197   : > { %13402 = vst [vmem:[#allocation366_spill] sm:$0xff] %v9497_v9  ;;  %2316 = vmatpush.msrb.mxu3 %v9549_v26  ;;  %2200 = vmatpush.msrb.mxu1 %v9090_v28  ;;  %v13433_v28 = vld [vmem:[#allocation141_spill] sm:$0xff]  ;;  %v9631_v27 = vsub.f32 %v337_v23, %v9598_v37 }
 0x198   : > { %13403 = vst [vmem:[#allocation367_spill] sm:$0xff] %v9499_v49  ;;  %v2338_v16 = vsub.f32 %v9537_v19, %v9569_v59  ;;  %2114 = vmatmul.f32.vlgmr.msra.gmra.mxu3 %v13433_v28  ;;  %v13437_v28 = vld [vmem:[#allocation136_spill] sm:$0xff]  ;;  %2265 = vmatpush.msrb.mxu2 %v9598_v37 }
 0x199   : > { %13404 = vst [vmem:[#allocation368_spill] sm:$0xff] %v9503_v33  ;;  %v9572_v33 = vsub.f32 %v346_v56, %v9539_v30  ;;  %v2332_v56 = vsub.f32 %v9518_v34, %v9552_v45  ;;  %2202 = vmatpush.msrb.mxu1 %v9102_v24  ;;  %v9644_v24 = vand.u32 4294901760, %v9612_v12  ;;  %v9658_v52 = vand.u32 4294901760, %v9631_v27 }
 0x19a   : > { %13405 = vst [vmem:[#allocation369_spill] sm:$0xff] %v9508_v62  ;;  %2012 = vmatmul.f32.vlgmr.msra.gmra.mxu1 %v13437_v28  ;;  %v9635_v29 = vand.u32 4294901760, %v2338_v16 }
 0x19b   : > { %13406 = vst [vmem:[#allocation370_spill] sm:$0xff] %v9518_v34  ;;  %2204 = vmatpush.msrb.mxu1 %v9111_v35  ;;  %v317_v35 = vld [vmem:[%s12186_s3 + $0x298] sm:$0xff] }
 0x19c   : > { %13407 = vst [vmem:[#allocation371_spill] sm:$0xff] %v9520_v63 }
 0x19d   : > { %13409 = vst [vmem:[#allocation372_spill] sm:$0xff] %v9524_v54  ;;  %v9588_v54 = vand.u32 4294901760, %v9555_v39  ;;  %2206 = vmatpush.msrb.mxu1 %v9131_v32 }
 0x19e   : > { %13410 = vst [vmem:[#allocation373_spill] sm:$0xff] %v9531_v21  ;;  %v9579_v21 = vand.u32 4294901760, %v2320_v8  ;;  %v334_v8 = vld [vmem:[%s12186_s3 + $0x320] sm:$0xff] }
 0x19f   : > { %13411 = vst [vmem:[#allocation374_spill] sm:$0xff] %v9534_v41  ;;  %v13430_v41 = vld [vmem:[#allocation142_spill] sm:$0xff]  ;;  %2208 = vmatpush.msrb.mxu1 %v9146_v3 }
 0x1a0   : > { %13412 = vst [vmem:[#allocation375_spill] sm:$0xff] %v9537_v19  ;;  %2322 = vmatpush.msrb.mxu3 %v9579_v21  ;;  %1903 = vmatmul.f32.vlgmr.msra.gmra.mxu0 %v13430_v41  ;;  %v9626_v41 = vand.u32 4294901760, %v9591_v38 }
 0x1a1   : > { %13413 = vst [vmem:[#allocation376_spill] sm:$0xff] %v9539_v30  ;;  %2210 = vmatpush.msrb.mxu1 %v9163_v18  ;;  %2394 = vmatpush.msra.mxu0 %v9322_v50  ;;  %v13461_v50 = vld [vmem:[#allocation352_spill] sm:$0xff] }
 0x1a2   : > { %13414 = vst [vmem:[#allocation377_spill] sm:$0xff] %v9543_v11  ;;  %v13426_v11 = vld [vmem:[#allocation139_spill] sm:$0xff] }
 0x1a3   : > { %13416 = vst [vmem:[#allocation378_spill] sm:$0xff] %v9549_v26  ;;  %2070 = vmatmul.f32.vlgmr.msra.gmra.mxu2 %v13426_v11  ;;  %v9602_v26 = vand.u32 4294901760, %v2326_v6  ;;  %v9614_v11 = vand.u32 4294901760, %v334_v8  ;;  %v331_v6 = vld [vmem:[%s12186_s3 + $0x308] sm:$0xff]  ;;  %2212 = vmatpush.msrb.mxu1 %v9177_v25 }
 0x1a4   : > { %13417 = vst [vmem:[#allocation379_spill] sm:$0xff] %v9552_v45  ;;  %v9607_v45 = vand.u32 4294901760, %v9572_v33  ;;  %2397 = vmatpush.msra.mxu0 %v9354_v57  ;;  %v13463_v57 = vld [vmem:[#allocation354_spill] sm:$0xff] }
 0x1a5   : > { %13418 = vst [vmem:[#allocation380_spill] sm:$0xff] %v9555_v39  ;;  %2328 = vmatpush.msrb.mxu3 %v9602_v26  ;;  %v9647_v23 = vsub.f32 %v334_v8, %v9614_v11  ;;  %2214 = vmatpush.msrb.mxu1 %v9202_v2 }
 0x1a6   : > { %13419 = vst [vmem:[#allocation381_spill] sm:$0xff] %v9557_v1  ;;  %2267 = vmatpush.msrb.mxu2 %v9614_v11  ;;  %2400 = vmatpush.msra.mxu0 %v9387_v61  ;;  %v13464_v61 = vld [vmem:[#allocation358_spill] sm:$0xff] }
 0x1a7   : > { %13420 = vst [vmem:[#allocation382_spill] sm:$0xff] %v9569_v59  ;;  %v9621_v59 = vand.u32 4294901760, %v2332_v56  ;;  %v2350_v56 = vsub.f32 %v9572_v33, %v9607_v45  ;;  %v9672_v17 = vand.u32 4294901760, %v9647_v23  ;;  %2216 = vmatpush.msrb.mxu1 %v9226_v46 }
 0x1a8   : > { %13421 = vst [vmem:[#allocation383_spill] sm:$0xff] %v9572_v33  ;;  %1911 = vmatmul.f32.gmra.mxu0 %v13450_v48  ;;  %v305_v48 = vld [vmem:[%s12186_s3 + $0x238] sm:$0xff] }
 0x1a9   : > { %13422 = vst [vmem:[#allocation384_spill] sm:$0xff] %v9579_v21  ;;  %v2344_v21 = vsub.f32 %v9555_v39, %v9588_v54  ;;  %2334 = vmatpush.msrb.mxu3 %v9621_v59  ;;  %v9662_v8 = vand.u32 4294901760, %v2350_v56  ;;  %2218 = vmatpush.msrb.mxu1 %v9245_v42  ;;  %v13515_v42 = vld [vmem:[#allocation232_spill] sm:$0xff] }
 0x1aa   : > { %13423 = vst [vmem:[#allocation385_spill] sm:$0xff] %v9581_v20 }
 0x1ab   : > { %13424 = vst [vmem:[#allocation386_spill] sm:$0xff] %v9588_v54  ;;  %v9639_v54 = vand.u32 4294901760, %v331_v6  ;;  %v9651_v16 = vand.u32 4294901760, %v2344_v21  ;;  %2340 = vmatpush.msrb.mxu3 %v9635_v29  ;;  %v2362_v21 = vsub.f32 %v9612_v12, %v9644_v24  ;;  %2220 = vmatpush.msrb.mxu1 %v9264_v51  ;;  %v323_v51 = vld [vmem:[%s12186_s3 + $0x2c8] sm:$0xff] }
 0x1ac   : > { %13425 = vst [vmem:[#allocation387_spill] sm:$0xff] %v9591_v38 }
 0x1ad   : > { %13427 = vst [vmem:[#allocation388_spill] sm:$0xff] %v9598_v37  ;;  %2346 = vmatpush.msrb.mxu3 %v9651_v16  ;;  %2222 = vmatpush.msrb.mxu1 %v9290_v31 }
 0x1ae   : > { %13428 = vst [vmem:[#allocation389_spill] sm:$0xff] %v9602_v26  ;;  %v2356_v26 = vsub.f32 %v9591_v38, %v9626_v41  ;;  %2269 = vmatpush.msrb.mxu2 %v9639_v54 }
 0x1af   : > { %13429 = vst [vmem:[#allocation390_spill] sm:$0xff] %v9607_v45  ;;  %2352 = vmatpush.msrb.mxu3 %v9662_v8  ;;  %2224 = vmatpush.msrb.mxu1 %v9326_v47 }
 0x1b0   : > { %13431 = vst [vmem:[#allocation391_spill] sm:$0xff] %v9612_v12  ;;  %2189 = vmatmul.f32.vlgmr.msrb.gmra.mxu0 %v13437_v28  ;;  %2499 = vmatpush.msra.mxu2 %v9363_v0  ;;  %v13462_v0 = vld [vmem:[#allocation342_spill] sm:$0xff] }
 0x1b1   : > { %13432 = vst [vmem:[#allocation392_spill] sm:$0xff] %v9614_v11 }
 0x1b2   : > { %13434 = vst [vmem:[#allocation393_spill] sm:$0xff] %v9621_v59  ;;  %v9665_v59 = vsub.f32 %v331_v6, %v9639_v54  ;;  %v2368_v6 = vsub.f32 %v9631_v27, %v9658_v52  ;;  %2503 = vmatpush.msra.mxu2 %v9392_v53  ;;  %v13465_v53 = vld [vmem:[#allocation363_spill] sm:$0xff] }
 0x1b3   : > { %13435 = vst [vmem:[#allocation394_spill] sm:$0xff] %v9626_v41 }
 0x1b4   : > { %13436 = vst [vmem:[#allocation395_spill] sm:$0xff] %v9631_v27  ;;  %v9685_v56 = vand.u32 4294901760, %v9665_v59  ;;  %2507 = vmatpush.msra.mxu2 %v13461_v50  ;;  %v13466_v50 = vld [vmem:[#allocation247_spill] sm:$0xff] }
 0x1b5   : > { %13438 = vst [vmem:[#allocation396_spill] sm:$0xff] %v9635_v29  ;;  %v9676_v29 = vand.u32 4294901760, %v2356_v26  ;;  %v9689_v26 = vand.u32 4294901760, %v2362_v21 }
 0x1b6   : > { %13439 = vst [vmem:[#allocation397_spill] sm:$0xff] %v9639_v54  ;;  %v2380_v21 = vsub.f32 %v9665_v59, %v9685_v56  ;;  %2511 = vmatpush.msra.mxu2 %v13464_v61  ;;  %v13467_v61 = vld [vmem:[#allocation210_spill] sm:$0xff] }
 0x1b7   : > { %13440 = vst [vmem:[#allocation398_spill] sm:$0xff] %v9644_v24  ;;  %2358 = vmatpush.msrb.mxu3 %v9676_v29 }
 0x1b8   : > { %13441 = vst [vmem:[#allocation399_spill] sm:$0xff] %v9647_v23  ;;  %2515 = vmatpush.msra.mxu2 %v13465_v53  ;;  %v13468_v53 = vld [vmem:[#allocation374_spill] sm:$0xff] }
 0x1b9   : > { %13442 = vst [vmem:[#allocation400_spill] sm:$0xff] %v9651_v16  ;;  %v2374_v16 = vsub.f32 %v9647_v23, %v9672_v17  ;;  %2364 = vmatpush.msrb.mxu3 %v9689_v26 }
 0x1ba   : > { %13443 = vst [vmem:[#allocation401_spill] sm:$0xff] %v9658_v52  ;;  %2519 = vmatpush.msra.mxu2 %v9508_v62  ;;  %v13470_v62 = vld [vmem:[#allocation382_spill] sm:$0xff] }
 0x1bb   : > { %13444 = vst [vmem:[#allocation402_spill] sm:$0xff] %v9662_v8  ;;  %v9697_v8 = vand.u32 4294901760, %v2368_v6  ;;  %v9705_v15 = vand.u32 4294901760, %v2374_v16  ;;  %v13453_v6 = vld [vmem:[#allocation144_spill] sm:$0xff]  ;;  %v13455_v16 = vld [vmem:[#allocation145_spill] sm:$0xff] }
 0x1bc   : > { %13445 = vst [vmem:[#allocation403_spill] sm:$0xff] %v9665_v59  ;;  %2075 = vmatmul.f32.gmra.mxu2 %v13453_v6  ;;  %2120 = vmatmul.f32.gmra.mxu3 %v13455_v16 }
 0x1bd   : > { %13446 = vst [vmem:[#allocation404_spill] sm:$0xff] %v9672_v17  ;;  %2370 = vmatpush.msrb.mxu3 %v9697_v8  ;;  %2523 = vmatpush.msra.mxu2 %v13468_v53  ;;  %v281_v53 = vld [vmem:[%s12186_s3 + $0x178] sm:$0xff] }
 0x1be   : > { %13447 = vst [vmem:[#allocation405_spill] sm:$0xff] %v9676_v29  ;;  %v9713_v29 = vand.u32 4294901760, %v2380_v21  ;;  %v13457_v21 = vld [vmem:[#allocation224_spill] sm:$0xff] }
 0x1bf   : > { %13448 = vst [vmem:[#allocation406_spill] sm:$0xff] %v9685_v56  ;;  %2376 = vmatpush.msrb.mxu3 %v9705_v15 }
 0x1c0   : > { %13449 = vst [vmem:[#allocation407_spill] sm:$0xff] %v9689_v26  ;;  %v13460_v26 = vld [vmem:[#allocation349_spill] sm:$0xff] }
 0x1c1   : > { %13451 = vst [vmem:[#allocation408_spill] sm:$0xff] %v9697_v8  ;;  %2382 = vmatpush.msrb.mxu3 %v9713_v29  ;;  %v13456_v8 = vld [vmem:[#allocation143_spill] sm:$0xff]  ;;  %2403 = vmatpush.msra.mxu0 %v13460_v26 }
 0x1c2   : > { %13452 = vst [vmem:[#allocation409_spill] sm:$0xff] %v9705_v15  ;;  %2016 = vmatmul.f32.gmra.mxu1 %v13456_v8  ;;  %v13459_v15 = vld [vmem:[#allocation182_spill] sm:$0xff]  ;;  %2193 = vmatmul.f32.gmra.mxu0 %v13456_v8 }
 0x1c3   : > { %13454 = vst [vmem:[#allocation410_spill] sm:$0xff] %v9713_v29  ;;  %2570 = vmatpush.msra.mxu3 %v9283_v10  ;;  %v13458_v29 = vld [vmem:[#allocation336_spill] sm:$0xff]  ;;  %2406 = vmatpush.msra.mxu0 %v13463_v57 }
 0x1c4   : > { %2275 = vmatmul.f32.vlgmr.msrb.gmra.mxu2 %v13457_v21  ;;  %2226 = vmatpush.msrb.mxu1 %v13458_v29  ;;  %v308_v21 = vld [vmem:[%s12186_s3 + $0x250] sm:$0xff] }
 0x1c5   : > { %2572 = vmatpush.msra.mxu3 %v9309_v55  ;;  %2409 = vmatpush.msra.mxu0 %v9469_v5  ;;  %v260_v5 = vld [vmem:[%s12186_s3 + $0xd0] sm:$0xff] }
 0x1c6   : > { %2384 = vmatmul.f32.vlgmr.msrb.gmra.mxu3 %v13459_v15  ;;  %2228 = vmatpush.msrb.mxu1 %v13462_v0 }
 0x1c7   : > { %2574 = vmatpush.msra.mxu3 %v9341_v7  ;;  %2412 = vmatpush.msra.mxu0 %v9497_v9  ;;  %v13469_v9 = vld [vmem:[#allocation379_spill] sm:$0xff] }
 0x1c8   : > { %2452 = vmatpush.msra.mxu1 %v9283_v10  ;;  %2527 = vmatpush.msra.mxu2 %v13469_v9  ;;  %v13478_v9 = vld [vmem:[#allocation192_spill] sm:$0xff] }
 0x1c9   : > { %2576 = vmatpush.msra.mxu3 %v9376_v44  ;;  %2415 = vmatpush.msra.mxu0 %v9518_v34 }
 0x1ca   : > { %2230 = vmatmul.f32.vlgmr.msrb.gmra.mxu1 %v13437_v28  ;;  %2531 = vmatpush.msra.mxu2 %v13470_v62  ;;  %v278_v62 = vld [vmem:[%s12186_s3 + $0x160] sm:$0xff]  ;;  %v10162_v28 = vand.u32 4294901760, %v308_v21 }
 0x1cb   : > { %2578 = vmatpush.msra.mxu3 %v9394_v36  ;;  %2454 = vmatpush.msra.mxu1 %v9309_v55 }
 0x1cc   : > { %2283 = vmatmul.f32.gmra.mxu2 %v13466_v50  ;;  %2418 = vmatpush.msra.mxu0 %v9537_v19  ;;  %v13471_v19 = vld [vmem:[#allocation386_spill] sm:$0xff]  ;;  %13550 = vst [vmem:[#allocation485_spill] sm:$0xff] %v10162_v28 }
 0x1cd   : > { %2580 = vmatpush.msra.mxu3 %v9428_v22  ;;  %2456 = vmatpush.msra.mxu1 %v9341_v7 }
 0x1ce   : > { %2388 = vmatmul.f32.gmra.mxu3 %v13467_v61  ;;  %2421 = vmatpush.msra.mxu0 %v9555_v39 }
 0x1cf   : > { %2582 = vmatpush.msra.mxu3 %v9459_v40  ;;  %2458 = vmatpush.msra.mxu1 %v9376_v44 }
 0x1d0   : > { %2424 = vmatpush.msra.mxu0 %v9572_v33  ;;  %2535 = vmatpush.msra.mxu2 %v13471_v19  ;;  %v9785_v33 = vand.u32 4294901760, %v281_v53  ;;  %v275_v19 = vld [vmem:[%s12186_s3 + $0x148] sm:$0xff] }
 0x1d1   : > { %2584 = vmatpush.msra.mxu3 %v9481_v43  ;;  %2460 = vmatpush.msra.mxu1 %v9394_v36 }
 0x1d2   : > { %2234 = vmatmul.f32.gmra.mxu1 %v13456_v8  ;;  %2427 = vmatpush.msra.mxu0 %v9591_v38  ;;  %13472 = vst [vmem:[#allocation411_spill] sm:$0xff] %v9785_v33  ;;  %v9794_v38 = vand.u32 4294901760, %v278_v62 }
 0x1d3   : > { %2586 = vmatpush.msra.mxu3 %v9499_v49  ;;  %2462 = vmatpush.msra.mxu1 %v9428_v22 }
 0x1d4   : > { %2539 = vmatpush.msra.mxu2 %v9607_v45  ;;  %2430 = vmatpush.msra.mxu0 %v9612_v12  ;;  %13473 = vst [vmem:[#allocation412_spill] sm:$0xff] %v9794_v38  ;;  %v9801_v45 = vsub.f32 %v281_v53, %v9785_v33  ;;  %v9803_v12 = vand.u32 4294901760, %v275_v19  ;;  %v269_v53 = vld [vmem:[%s12186_s3 + $0x118] sm:$0xff] }
 0x1d5   : > { %2588 = vmatpush.msra.mxu3 %v9520_v63  ;;  %2464 = vmatpush.msra.mxu1 %v9459_v40 }
 0x1d6   : > { %2543 = vmatpush.msra.mxu2 %v9626_v41  ;;  %2433 = vmatpush.msra.mxu0 %v9631_v27  ;;  %13474 = vst [vmem:[#allocation413_spill] sm:$0xff] %v9801_v45  ;;  %v272_v41 = vld [vmem:[%s12186_s3 + $0x130] sm:$0xff] }
 0x1d7   : > { %2590 = vmatpush.msra.mxu3 %v9539_v30  ;;  %2466 = vmatpush.msra.mxu1 %v9481_v43  ;;  %v9820_v27 = vand.u32 4294901760, %v272_v41  ;;  %v248_v43 = vld [vmem:[%s12186_s3 + $0x70] sm:$0xff] }
 0x1d8   : > { %2547 = vmatpush.msra.mxu2 %v9644_v24  ;;  %2436 = vmatpush.msra.mxu0 %v9647_v23  ;;  %v9813_v24 = vsub.f32 %v278_v62, %v9794_v38  ;;  %v9828_v62 = vand.u32 4294901760, %v9801_v45  ;;  %v266_v23 = vld [vmem:[%s12186_s3 + $0x100] sm:$0xff] }
 0x1d9   : > { %2592 = vmatpush.msra.mxu3 %v9557_v1  ;;  %2468 = vmatpush.msra.mxu1 %v9499_v49  ;;  %v9848_v39 = vsub.f32 %v272_v41, %v9820_v27  ;;  %v9850_v34 = vand.u32 4294901760, %v266_v23 }
 0x1da   : > { %2551 = vmatpush.msra.mxu2 %v9658_v52  ;;  %13475 = vst [vmem:[#allocation414_spill] sm:$0xff] %v9813_v24  ;;  %2439 = vmatpush.msra.mxu0 %v9665_v59  ;;  %v9825_v52 = vsub.f32 %v275_v19, %v9803_v12  ;;  %v9835_v59 = vand.u32 4294901760, %v269_v53  ;;  %v9840_v19 = vand.u32 4294901760, %v9813_v24  ;;  %v2662_v57 = vsub.f32 %v9801_v45, %v9828_v62 }
 0x1db   : > { %2594 = vmatpush.msra.mxu3 %v9581_v20  ;;  %2470 = vmatpush.msra.mxu1 %v9520_v63  ;;  %13477 = vst [vmem:[#allocation416_spill] sm:$0xff] %v9828_v62  ;;  %v9912_v63 = vand.u32 4294901760, %v254_v14 }
 0x1dc   : > { %2555 = vmatpush.msra.mxu2 %v9672_v17  ;;  %13476 = vst [vmem:[#allocation415_spill] sm:$0xff] %v9825_v52  ;;  %2442 = vmatmul.f32.vlgmr.msra.gmra.mxu0 %v13478_v9  ;;  %v263_v17 = vld [vmem:[%s12186_s3 + $0xe8] sm:$0xff]  ;;  %v9865_v41 = vsub.f32 %v269_v53, %v9835_v59  ;;  %v9881_v53 = vsub.f32 %v266_v23, %v9850_v34 }
 0x1dd   : > { %2596 = vmatpush.msra.mxu3 %v9598_v37  ;;  %2472 = vmatpush.msra.mxu1 %v9539_v30  ;;  %13479 = vst [vmem:[#allocation417_spill] sm:$0xff] %v9840_v19  ;;  %v9867_v26 = vand.u32 4294901760, %v263_v17  ;;  %v13492_v30 = vld [vmem:[#allocation219_spill] sm:$0xff] }
 0x1de   : > { %2611 = vmatpush.msrb.mxu0 %v9785_v33  ;;  %2559 = vmatpush.msra.mxu2 %v9685_v56  ;;  %13480 = vst [vmem:[#allocation418_spill] sm:$0xff] %v9848_v39  ;;  %v9860_v56 = vand.u32 4294901760, %v9825_v52  ;;  %v9903_v4 = vand.u32 4294901760, %v9865_v41  ;;  %v9922_v49 = vand.u32 4294901760, %v9881_v53 }
 0x1df   : > { %2598 = vmatpush.msra.mxu3 %v9614_v11  ;;  %2474 = vmatpush.msra.mxu1 %v9557_v1  ;;  %13481 = vst [vmem:[#allocation419_spill] sm:$0xff] %v9850_v34  ;;  %v9900_v23 = vsub.f32 %v263_v17, %v9867_v26  ;;  %v13496_v17 = vld [vmem:[#allocation202_spill] sm:$0xff] }
 0x1e0   : > { %2613 = vmatpush.msrb.mxu0 %v9794_v38  ;;  %2766 = vmatpush.msrb.mxu2 %v9801_v45  ;;  %13482 = vst [vmem:[#allocation420_spill] sm:$0xff] %v9860_v56  ;;  %v2668_v45 = vsub.f32 %v9813_v24, %v9840_v19  ;;  %v2674_v1 = vsub.f32 %v9825_v52, %v9860_v56 }
 0x1e1   : > { %2600 = vmatpush.msra.mxu3 %v9639_v54  ;;  %2476 = vmatpush.msra.mxu1 %v9581_v20  ;;  %13483 = vst [vmem:[#allocation421_spill] sm:$0xff] %v9865_v41  ;;  %v9876_v20 = vand.u32 4294901760, %v260_v5  ;;  %v2686_v58 = vsub.f32 %v9865_v41, %v9903_v4 }
 0x1e2   : > { %2561 = vmatmul.f32.vlgmr.msra.gmra.mxu2 %v13459_v15  ;;  %13484 = vst [vmem:[#allocation422_spill] sm:$0xff] %v9867_v26  ;;  %2615 = vmatpush.msrb.mxu0 %v9803_v12 }
 0x1e3   : > { %2824 = vmatpush.msrb.mxu3 %v9785_v33  ;;  %2478 = vmatpush.msra.mxu1 %v9598_v37  ;;  %13485 = vst [vmem:[#allocation423_spill] sm:$0xff] %v9876_v20  ;;  %v9884_v37 = vand.u32 4294901760, %v9848_v39  ;;  %v9910_v13 = vsub.f32 %v260_v5, %v9876_v20  ;;  %v9926_v5 = vand.u32 4294901760, %v2674_v1  ;;  %v9975_v44 = vand.u32 4294901760, %v2686_v58 }
 0x1e4   : > { %2769 = vmatpush.msrb.mxu2 %v9813_v24  ;;  %13486 = vst [vmem:[#allocation424_spill] sm:$0xff] %v9881_v53  ;;  %2602 = vmatmul.f32.vlgmr.msra.gmra.mxu3 %v13459_v15  ;;  %v9891_v24 = vand.u32 4294901760, %v2662_v57  ;;  %v9907_v57 = vand.u32 4294901760, %v2668_v45 }
 0x1e5   : > { %2826 = vmatpush.msrb.mxu3 %v9794_v38  ;;  %2480 = vmatpush.msra.mxu1 %v9614_v11  ;;  %13487 = vst [vmem:[#allocation425_spill] sm:$0xff] %v9884_v37  ;;  %v9895_v11 = vand.u32 4294901760, %v257_v60  ;;  %v9949_v1 = vand.u32 4294901760, %v9910_v13 }
 0x1e6   : > { %2617 = vmatpush.msrb.mxu0 %v9820_v27  ;;  %13488 = vst [vmem:[#allocation426_spill] sm:$0xff] %v9891_v24  ;;  %2772 = vmatpush.msrb.mxu2 %v9825_v52  ;;  %v251_v52 = vld [vmem:[%s12186_s3 + $0x88] sm:$0xff] }
 0x1e7   : > { %2828 = vmatpush.msrb.mxu3 %v9803_v12  ;;  %13489 = vst [vmem:[#allocation427_spill] sm:$0xff] %v9895_v11  ;;  %2482 = vmatpush.msra.mxu1 %v9639_v54  ;;  %v2680_v54 = vsub.f32 %v9848_v39, %v9884_v37  ;;  %v9929_v45 = vsub.f32 %v257_v60, %v9895_v11  ;;  %v9938_v40 = vand.u32 4294901760, %v251_v52 }
 0x1e8   : > { %13490 = vst [vmem:[#allocation428_spill] sm:$0xff] %v9900_v23  ;;  %2447 = vmatmul.f32.gmra.mxu0 %v13492_v30  ;;  %2486 = vmatmul.f32.vlgmr.msra.gmra.mxu1 %v13496_v17  ;;  %v9946_v60 = vsub.f32 %v254_v14, %v9912_v63  ;;  %v245_v14 = vld [vmem:[%s12186_s3 + $0x58] sm:$0xff]  ;;  %v2704_v58 = vsub.f32 %v9910_v13, %v9949_v1 }
 0x1e9   : > { %2830 = vmatpush.msrb.mxu3 %v9820_v27  ;;  %13491 = vst [vmem:[#allocation429_spill] sm:$0xff] %v9903_v4  ;;  %2619 = vmatpush.msrb.mxu0 %v9835_v59  ;;  %v9956_v22 = vand.u32 4294901760, %v2680_v54  ;;  %v9968_v36 = vand.u32 4294901760, %v9929_v45  ;;  %v326_v54 = vld [vmem:[%s12186_s3 + $0x2e0] sm:$0xff]  ;;  %v9980_v55 = vsub.f32 %v251_v52, %v9938_v40  ;;  %v239_v52 = vld [vmem:[%s12186_s3 + $0x28] sm:$0xff] }
 0x1ea   : > { %13493 = vst [vmem:[#allocation430_spill] sm:$0xff] %v9907_v57  ;;  %2664 = vmatpush.msrb.mxu1 %v9891_v24  ;;  %2775 = vmatpush.msrb.mxu2 %v9848_v39  ;;  %v9941_v39 = vand.u32 4294901760, %v9900_v23  ;;  %v329_v24 = vld [vmem:[%s12186_s3 + $0x2f8] sm:$0xff]  ;;  %v9994_v0 = vand.u32 4294901760, %v9946_v60  ;;  %v10006_v31 = vand.u32 4294901760, %v326_v54  ;;  %v10027_v2 = vand.u32 4294901760, %v239_v52 }
 0x1eb   : > { %13494 = vst [vmem:[#allocation431_spill] sm:$0xff] %v9910_v13  ;;  %2832 = vmatpush.msrb.mxu3 %v9835_v59  ;;  %2621 = vmatpush.msrb.mxu0 %v9850_v34  ;;  %v9985_v10 = vand.u32 4294901760, %v329_v24  ;;  %v10030_v25 = vand.u32 4294901760, %v9980_v55  ;;  %v10037_v3 = vand.u32 4294901760, %v2704_v58 }
 0x1ec   : > { %13495 = vst [vmem:[#allocation432_spill] sm:$0xff] %v9912_v63  ;;  %2670 = vmatpush.msrb.mxu1 %v9907_v57  ;;  %2778 = vmatpush.msrb.mxu2 %v9865_v41  ;;  %v2692_v57 = vsub.f32 %v9881_v53, %v9922_v49  ;;  %v9960_v41 = vand.u32 4294901760, %v248_v43  ;;  %v2698_v7 = vsub.f32 %v9900_v23, %v9941_v39 }
 0x1ed   : > { %13497 = vst [vmem:[#allocation433_spill] sm:$0xff] %v9922_v49  ;;  %2834 = vmatpush.msrb.mxu3 %v9850_v34  ;;  %2565 = vmatmul.f32.gmra.mxu2 %v13467_v61  ;;  %v10033_v18 = vsub.f32 %v329_v24, %v9985_v10  ;;  %v2716_v32 = vsub.f32 %v9946_v60, %v9994_v0 }
 0x1ee   : > { %13498 = vst [vmem:[#allocation434_spill] sm:$0xff] %v9926_v5  ;;  %2623 = vmatpush.msrb.mxu0 %v9867_v26  ;;  %2676 = vmatpush.msrb.mxu1 %v9926_v5  ;;  %v242_v5 = vld [vmem:[%s12186_s3 + $0x40] sm:$0xff]  ;;  %v10001_v29 = vand.u32 4294901760, %v2692_v57  ;;  %v10004_v47 = vsub.f32 %v248_v43, %v9960_v41  ;;  %v236_v43 = vld [vmem:[%s12186_s3 + $0x10] sm:$0xff] }
 0x1ef   : > { %13499 = vst [vmem:[#allocation435_spill] sm:$0xff] %v9929_v45  ;;  %2781 = vmatpush.msrb.mxu2 %v9881_v53  ;;  %2836 = vmatpush.msrb.mxu3 %v9867_v26  ;;  %v9991_v53 = vand.u32 4294901760, %v245_v14  ;;  %v10015_v46 = vand.u32 4294901760, %v242_v5  ;;  %v320_v57 = vld [vmem:[%s12186_s3 + $0x2b0] sm:$0xff]  ;;  %v10051_v24 = vand.u32 4294901760, %v236_v43  ;;  %v10076_v30 = vand.u32 4294901760, %v10033_v18 }
 0x1f0   : > { %13500 = vst [vmem:[#allocation436_spill] sm:$0xff] %v9938_v40  ;;  %2606 = vmatmul.f32.gmra.mxu3 %v13467_v61  ;;  %2625 = vmatpush.msrb.mxu0 %v9876_v20  ;;  %v10054_v58 = vand.u32 4294901760, %v10004_v47 }
 0x1f1   : > { %13501 = vst [vmem:[#allocation437_spill] sm:$0xff] %v9941_v39  ;;  %2682 = vmatpush.msrb.mxu1 %v9956_v22  ;;  %2784 = vmatpush.msrb.mxu2 %v9900_v23  ;;  %v10025_v23 = vand.u32 4294901760, %v2698_v7  ;;  %v10042_v7 = vsub.f32 %v245_v14, %v9991_v53  ;;  %v10059_v14 = vand.u32 4294901760, %v320_v57  ;;  %v10098_v50 = vsub.f32 %v236_v43, %v10051_v24 }
 0x1f2   : > { %13502 = vst [vmem:[#allocation438_spill] sm:$0xff] %v9946_v60  ;;  %2838 = vmatpush.msrb.mxu3 %v9876_v20  ;;  %2492 = vmatmul.f32.gmra.mxu1 %v13515_v42  ;;  %v10066_v42 = vsub.f32 %v242_v5, %v10015_v46  ;;  %v10085_v5 = vand.u32 4294901760, %v2716_v32  ;;  %v2728_v15 = vsub.f32 %v10004_v47, %v10054_v58 }
 0x1f3   : > { %13503 = vst [vmem:[#allocation439_spill] sm:$0xff] %v9949_v1  ;;  %2627 = vmatpush.msrb.mxu0 %v9895_v11  ;;  %2688 = vmatpush.msrb.mxu1 %v9975_v44  ;;  %v10104_v32 = vsub.f32 %v320_v57, %v10059_v14  ;;  %v3034_v57 = vsub.f32 %v10033_v18, %v10076_v30  ;;  %v10150_v8 = vand.u32 4294901760, %v10098_v50 }
 0x1f4   : > { %13504 = vst [vmem:[#allocation440_spill] sm:$0xff] %v9956_v22  ;;  %v2710_v22 = vsub.f32 %v9929_v45, %v9968_v36  ;;  %2787 = vmatpush.msrb.mxu2 %v9910_v13  ;;  %2840 = vmatpush.msrb.mxu3 %v9895_v11  ;;  %v10057_v13 = vsub.f32 %v326_v54, %v10006_v31 }
 0x1f5   : > { %13505 = vst [vmem:[#allocation441_spill] sm:$0xff] %v9960_v41  ;;  %2629 = vmatpush.msrb.mxu0 %v9912_v63  ;;  %2694 = vmatpush.msrb.mxu1 %v10001_v29  ;;  %v10073_v54 = vsub.f32 %v239_v52, %v10027_v2 }
 0x1f6   : > { %13506 = vst [vmem:[#allocation442_spill] sm:$0xff] %v9968_v36  ;;  %2790 = vmatpush.msrb.mxu2 %v9929_v45  ;;  %2842 = vmatpush.msrb.mxu3 %v9912_v63  ;;  %v10063_v61 = vand.u32 4294901760, %v2710_v22  ;;  %v10078_v45 = vand.u32 4294901760, %v317_v35  ;;  %v314_v22 = vld [vmem:[%s12186_s3 + $0x280] sm:$0xff] }
 0x1f7   : > { %13507 = vst [vmem:[#allocation443_spill] sm:$0xff] %v9975_v44  ;;  %v10044_v44 = vand.u32 4294901760, %v323_v51  ;;  %2631 = vmatpush.msrb.mxu0 %v9938_v40  ;;  %2700 = vmatpush.msrb.mxu1 %v10025_v23  ;;  %v10114_v17 = vand.u32 4294901760, %v314_v22  ;;  %v10123_v9 = vand.u32 4294901760, %v10073_v54 }
 0x1f8   : > { %13508 = vst [vmem:[#allocation444_spill] sm:$0xff] %v9980_v55  ;;  %2793 = vmatpush.msrb.mxu2 %v9946_v60  ;;  %2844 = vmatpush.msrb.mxu3 %v9938_v40  ;;  %v10101_v60 = vand.u32 4294901760, %v10057_v13 }
 0x1f9   : > { %13509 = vst [vmem:[#allocation445_spill] sm:$0xff] %v9985_v10  ;;  %v10091_v52 = vsub.f32 %v323_v51, %v10044_v44  ;;  %2633 = vmatpush.msrb.mxu0 %v9960_v41  ;;  %2706 = vmatpush.msrb.mxu1 %v10037_v3  ;;  %v311_v51 = vld [vmem:[%s12186_s3 + $0x268] sm:$0xff] }
 0x1fa   : > { %13510 = vst [vmem:[#allocation446_spill] sm:$0xff] %v9991_v53  ;;  %2796 = vmatpush.msrb.mxu2 %v9980_v55  ;;  %2846 = vmatpush.msrb.mxu3 %v9960_v41  ;;  %v10138_v16 = vand.u32 4294901760, %v311_v51  ;;  %v3040_v6 = vsub.f32 %v10057_v13, %v10101_v60 }
 0x1fb   : > { %13511 = vst [vmem:[#allocation447_spill] sm:$0xff] %v9994_v0  ;;  %2635 = vmatpush.msrb.mxu0 %v9991_v53  ;;  %2712 = vmatpush.msrb.mxu1 %v10063_v61 }
 0x1fc   : > { %13512 = vst [vmem:[#allocation448_spill] sm:$0xff] %v10001_v29  ;;  %v2722_v29 = vsub.f32 %v9980_v55, %v10030_v25  ;;  %v10126_v55 = vsub.f32 %v317_v35, %v10078_v45  ;;  %2799 = vmatpush.msrb.mxu2 %v10004_v47  ;;  %2848 = vmatpush.msrb.mxu3 %v9991_v53  ;;  %v10142_v35 = vand.u32 4294901760, %v2728_v15  ;;  %v10189_v53 = vand.u32 4294901760, %v3040_v6 }
 0x1fd   : > { %13513 = vst [vmem:[#allocation449_spill] sm:$0xff] %v10004_v47  ;;  %2637 = vmatpush.msrb.mxu0 %v10015_v46  ;;  %2718 = vmatpush.msrb.mxu1 %v10085_v5  ;;  %v10147_v47 = vand.u32 4294901760, %v10104_v32  ;;  %v10206_v6 = vsub.f32 %v308_v21, %v10162_v28 }
 0x1fe   : > { %13514 = vst [vmem:[#allocation450_spill] sm:$0xff] %v10006_v31  ;;  %v10118_v43 = vand.u32 4294901760, %v2722_v29  ;;  %2802 = vmatpush.msrb.mxu2 %v10042_v7  ;;  %2850 = vmatpush.msrb.mxu3 %v10015_v46 }
 0x1ff   : > { %13516 = vst [vmem:[#allocation451_spill] sm:$0xff] %v10015_v46  ;;  %2639 = vmatpush.msrb.mxu0 %v10027_v2  ;;  %v302_v46 = vld [vmem:[%s12186_s3 + $0x220] sm:$0xff] }
 0x200   : > { %13517 = vst [vmem:[#allocation452_spill] sm:$0xff] %v10025_v23  ;;  %v10088_v23 = vand.u32 4294901760, %v10042_v7  ;;  %2724 = vmatpush.msrb.mxu1 %v10118_v43  ;;  %2805 = vmatpush.msrb.mxu2 %v10066_v42 }
 0x201   : > { %13518 = vst [vmem:[#allocation453_spill] sm:$0xff] %v10027_v2  ;;  %2852 = vmatpush.msrb.mxu3 %v10027_v2  ;;  %2641 = vmatpush.msrb.mxu0 %v10051_v24 }
 0x202   : > { %13519 = vst [vmem:[#allocation454_spill] sm:$0xff] %v10030_v25  ;;  %v2734_v29 = vsub.f32 %v10042_v7, %v10088_v23  ;;  %2730 = vmatpush.msrb.mxu1 %v10142_v35  ;;  %2808 = vmatpush.msrb.mxu2 %v10073_v54 }
 0x203   : > { %13520 = vst [vmem:[#allocation455_spill] sm:$0xff] %v10033_v18  ;;  %2854 = vmatpush.msrb.mxu3 %v10051_v24  ;;  %2871 = vmatpush.msra.mxu0 %v9828_v62 }
 0x204   : > { %13521 = vst [vmem:[#allocation456_spill] sm:$0xff] %v10037_v3  ;;  %v10112_v3 = vand.u32 4294901760, %v10066_v42  ;;  %2811 = vmatpush.msrb.mxu2 %v10098_v50 }
 0x205   : > { %13522 = vst [vmem:[#allocation457_spill] sm:$0xff] %v10042_v7  ;;  %v10171_v7 = vand.u32 4294901760, %v10126_v55  ;;  %2875 = vmatpush.msra.mxu0 %v9840_v19 }
 0x206   : > { %13523 = vst [vmem:[#allocation458_spill] sm:$0xff] %v10044_v44  ;;  %v2740_v15 = vsub.f32 %v10066_v42, %v10112_v3  ;;  %2983 = vmatpush.msra.mxu2 %v9985_v10 }
 0x207   : > { %13524 = vst [vmem:[#allocation459_spill] sm:$0xff] %v10051_v24  ;;  %2879 = vmatpush.msra.mxu0 %v9860_v56 }
 0x208   : > { %13525 = vst [vmem:[#allocation460_spill] sm:$0xff] %v10054_v58  ;;  %2985 = vmatpush.msra.mxu2 %v10006_v31 }
 0x209   : > { %13526 = vst [vmem:[#allocation461_spill] sm:$0xff] %v10057_v13  ;;  %v10185_v13 = vand.u32 4294901760, %v305_v48  ;;  %2883 = vmatpush.msra.mxu0 %v9884_v37 }
 0x20a   : > { %13527 = vst [vmem:[#allocation462_spill] sm:$0xff] %v10059_v14  ;;  %2987 = vmatpush.msra.mxu2 %v10044_v44 }
 0x20b   : > { %13528 = vst [vmem:[#allocation463_spill] sm:$0xff] %v10063_v61  ;;  %v10136_v61 = vand.u32 4294901760, %v10091_v52  ;;  %2887 = vmatpush.msra.mxu0 %v9903_v4 }
 0x20c   : > { %13529 = vst [vmem:[#allocation464_spill] sm:$0xff] %v10066_v42  ;;  %v3052_v42 = vsub.f32 %v10104_v32, %v10147_v47  ;;  %2989 = vmatpush.msra.mxu2 %v10059_v14 }
 0x20d   : > { %13530 = vst [vmem:[#allocation465_spill] sm:$0xff] %v10073_v54  ;;  %2891 = vmatpush.msra.mxu0 %v9922_v49 }
 0x20e   : > { %13531 = vst [vmem:[#allocation466_spill] sm:$0xff] %v10076_v30  ;;  %v2746_v30 = vsub.f32 %v10073_v54, %v10123_v9  ;;  %v3058_v54 = vsub.f32 %v10126_v55, %v10171_v7  ;;  %v10233_v62 = vand.u32 4294901760, %v3052_v42  ;;  %2991 = vmatpush.msra.mxu2 %v10078_v45 }
 0x20f   : > { %13532 = vst [vmem:[#allocation467_spill] sm:$0xff] %v10078_v45  ;;  %2895 = vmatpush.msra.mxu0 %v9941_v39 }
 0x210   : > { %13533 = vst [vmem:[#allocation468_spill] sm:$0xff] %v10085_v5  ;;  %v10160_v5 = vsub.f32 %v314_v22, %v10114_v17  ;;  %v10178_v22 = vand.u32 4294901760, %v2734_v29  ;;  %v2752_v29 = vsub.f32 %v10098_v50, %v10150_v8  ;;  %2993 = vmatpush.msra.mxu2 %v10114_v17 }
 0x211   : > { %13534 = vst [vmem:[#allocation469_spill] sm:$0xff] %v10088_v23  ;;  %2899 = vmatpush.msra.mxu0 %v9949_v1 }
 0x212   : > { %13535 = vst [vmem:[#allocation470_spill] sm:$0xff] %v10091_v52  ;;  %2736 = vmatpush.msrb.mxu1 %v10178_v22  ;;  %2995 = vmatpush.msra.mxu2 %v10138_v16 }
 0x213   : > { %13536 = vst [vmem:[#allocation471_spill] sm:$0xff] %v10098_v50  ;;  %v10245_v50 = vand.u32 4294901760, %v10206_v6  ;;  %2903 = vmatpush.msra.mxu0 %v9968_v36  ;;  %v13611_v36 = vld [vmem:[#allocation135_spill] sm:$0xff] }
 0x214   : > { %13537 = vst [vmem:[#allocation472_spill] sm:$0xff] %v10101_v60  ;;  %v10166_v60 = vand.u32 4294901760, %v3034_v57  ;;  %v3046_v57 = vsub.f32 %v10091_v52, %v10136_v61  ;;  %2997 = vmatpush.msra.mxu2 %v10162_v28 }
 0x215   : > { %13538 = vst [vmem:[#allocation473_spill] sm:$0xff] %v10104_v32  ;;  %v10212_v32 = vand.u32 4294901760, %v2746_v30  ;;  %2907 = vmatpush.msra.mxu0 %v9994_v0  ;;  %v13602_v0 = vld [vmem:[#allocation124_spill] sm:$0xff] }
 0x216   : > { %13539 = vst [vmem:[#allocation474_spill] sm:$0xff] %v10112_v3  ;;  %3036 = vmatpush.msra.mxu3 %v10166_v60  ;;  %v10221_v21 = vand.u32 4294901760, %v3046_v57  ;;  %v293_v57 = vld [vmem:[%s12186_s3 + $0x1d8] sm:$0xff]  ;;  %2999 = vmatpush.msra.mxu2 %v10185_v13 }
 0x217   : > { %13540 = vst [vmem:[#allocation475_spill] sm:$0xff] %v10114_v17  ;;  %2911 = vmatpush.msra.mxu0 %v10030_v25  ;;  %v13599_v25 = vld [vmem:[#allocation116_spill] sm:$0xff]  ;;  %2858 = vmatmul.f32.vlgmr.msrb.gmra.mxu3 %v13602_v0 }
 0x218   : > { %13541 = vst [vmem:[#allocation476_spill] sm:$0xff] %v10118_v43  ;;  %v10183_v43 = vsub.f32 %v311_v51, %v10138_v16  ;;  %v10200_v51 = vand.u32 4294901760, %v2740_v15  ;;  %v296_v15 = vld [vmem:[%s12186_s3 + $0x1f0] sm:$0xff]  ;;  %3042 = vmatpush.msra.mxu3 %v10189_v53  ;;  %2814 = vmatmul.f32.vlgmr.msrb.gmra.mxu2 %v13599_v25 }
 0x219   : > { %13542 = vst [vmem:[#allocation477_spill] sm:$0xff] %v10123_v9  ;;  %v10250_v42 = vand.u32 4294901760, %v296_v15  ;;  %2915 = vmatpush.msra.mxu0 %v10054_v58 }
 0x21a   : > { %13543 = vst [vmem:[#allocation478_spill] sm:$0xff] %v10126_v55  ;;  %v10224_v24 = vand.u32 4294901760, %v10183_v43  ;;  %2742 = vmatpush.msrb.mxu1 %v10200_v51  ;;  %3048 = vmatpush.msra.mxu3 %v10221_v21 }
 0x21b   : > { %13544 = vst [vmem:[#allocation479_spill] sm:$0xff] %v10136_v61  ;;  %v299_v61 = vld [vmem:[%s12186_s3 + $0x208] sm:$0xff]  ;;  %2919 = vmatpush.msra.mxu0 %v10088_v23  ;;  %v10401_v23 = vpop.f32.mrf.mxu2 }
 0x21c   : > { %13545 = vst [vmem:[#allocation480_spill] sm:$0xff] %v10138_v16  ;;  %v10229_v30 = vand.u32 4294901760, %v299_v61  ;;  %2748 = vmatpush.msrb.mxu1 %v10212_v32  ;;  %3054 = vmatpush.msra.mxu3 %v10233_v62 }
 0x21d   : > { %13546 = vst [vmem:[#allocation481_spill] sm:$0xff] %v10142_v35  ;;  %v10203_v35 = vand.u32 4294901760, %v10160_v5  ;;  %2923 = vmatpush.msra.mxu0 %v10112_v3  ;;  %v10413_v3 = vpop.f32.mrf.mxu3 }
 0x21e   : > { %13547 = vst [vmem:[#allocation482_spill] sm:$0xff] %v10147_v47  ;;  %v10208_v47 = vand.u32 4294901760, %v302_v46 }
 0x21f   : > { %13548 = vst [vmem:[#allocation483_spill] sm:$0xff] %v10150_v8  ;;  %2927 = vmatpush.msra.mxu0 %v10123_v9  ;;  %v13608_v9 = vld [vmem:[#allocation466_spill] sm:$0xff]  ;;  %2864 = vmatmul.f32.gmra.mxu3 %v13611_v36 }
 0x220   : > { %13549 = vst [vmem:[#allocation484_spill] sm:$0xff] %v10160_v5  ;;  %v10248_v19 = vsub.f32 %v302_v46, %v10208_v47  ;;  %v10264_v46 = vsub.f32 %v299_v61, %v10229_v30  ;;  %v3076_v61 = vsub.f32 %v10206_v6, %v10245_v50  ;;  %3001 = vmatpush.msra.mxu2 %v10208_v47 }
 0x221   : > { %13551 = vst [vmem:[#allocation486_spill] sm:$0xff] %v10166_v60  ;;  %v10227_v60 = vsub.f32 %v305_v48, %v10185_v13  ;;  %v3064_v48 = vsub.f32 %v10160_v5, %v10203_v35  ;;  %2931 = vmatpush.msra.mxu0 %v10150_v8 }
 0x222   : > { %13552 = vst [vmem:[#allocation487_spill] sm:$0xff] %v10171_v7  ;;  %v10235_v7 = vand.u32 4294901760, %v2752_v29  ;;  %v10254_v29 = vand.u32 4294901760, %v3058_v54  ;;  %v290_v54 = vld [vmem:[%s12186_s3 + $0x1c0] sm:$0xff]  ;;  %v10280_v56 = vand.u32 4294901760, %v10248_v19  ;;  %3003 = vmatpush.msra.mxu2 %v10229_v30 }
 0x223   : > { %13553 = vst [vmem:[#allocation488_spill] sm:$0xff] %v10178_v22  ;;  %v10266_v22 = vand.u32 4294901760, %v293_v57  ;;  %v10287_v37 = vand.u32 4294901760, %v290_v54  ;;  %v10433_v8 = vpop.f32.mrf.mxu2 }
 0x224   : > { %13554 = vst [vmem:[#allocation489_spill] sm:$0xff] %v10183_v43  ;;  %2754 = vmatpush.msrb.mxu1 %v10235_v7  ;;  %3060 = vmatpush.msra.mxu3 %v10254_v29 }
 0x225   : > { %13555 = vst [vmem:[#allocation490_spill] sm:$0xff] %v10185_v13  ;;  %v10302_v4 = vsub.f32 %v293_v57, %v10266_v22  ;;  %v10323_v49 = vsub.f32 %v290_v54, %v10287_v37  ;;  %3005 = vmatpush.msra.mxu2 %v10250_v42 }
 0x226   : > { %13556 = vst [vmem:[#allocation491_spill] sm:$0xff] %v10189_v53  ;;  %v3070_v53 = vsub.f32 %v10183_v43, %v10224_v24  ;;  %2942 = vmatpush.msra.mxu1 %v9785_v33  ;;  %v284_v33 = vld [vmem:[%s12186_s3 + $0x190] sm:$0xff] }
 0x227   : > { %13557 = vst [vmem:[#allocation492_spill] sm:$0xff] %v10200_v51  ;;  %v10261_v51 = vand.u32 4294901760, %v10227_v60  ;;  %v10350_v1 = vand.u32 4294901760, %v10323_v49  ;;  %3007 = vmatpush.msra.mxu2 %v10266_v22 }
 0x228   : > { %13558 = vst [vmem:[#allocation493_spill] sm:$0xff] %v10203_v35  ;;  %2944 = vmatpush.msra.mxu1 %v9794_v38  ;;  %v10332_v38 = vand.u32 4294901760, %v10302_v4 }
 0x229   : > { %13559 = vst [vmem:[#allocation494_spill] sm:$0xff] %v10206_v6  ;;  %3009 = vmatpush.msra.mxu2 %v10287_v37 }
 0x22a   : > { %13560 = vst [vmem:[#allocation495_spill] sm:$0xff] %v10208_v47  ;;  %2946 = vmatpush.msra.mxu1 %v9803_v12 }
 0x22b   : > { %13561 = vst [vmem:[#allocation496_spill] sm:$0xff] %v10212_v32  ;;  %v10283_v32 = vsub.f32 %v296_v15, %v10250_v42  ;;  %v3082_v15 = vsub.f32 %v10227_v60, %v10261_v51 }
 0x22c   : > { %13562 = vst [vmem:[#allocation497_spill] sm:$0xff] %v10221_v21  ;;  %v10275_v21 = vand.u32 4294901760, %v3064_v48  ;;  %v287_v48 = vld [vmem:[%s12186_s3 + $0x1a8] sm:$0xff]  ;;  %2948 = vmatpush.msra.mxu1 %v9820_v27 }
 0x22d   : > { %13563 = vst [vmem:[#allocation498_spill] sm:$0xff] %v10224_v24  ;;  %v10316_v57 = vand.u32 4294901760, %v10283_v32 }
 0x22e   : > { %13564 = vst [vmem:[#allocation499_spill] sm:$0xff] %v10227_v60  ;;  %3066 = vmatpush.msra.mxu3 %v10275_v21  ;;  %2950 = vmatpush.msra.mxu1 %v9835_v59 }
 0x22f   : > { %13565 = vst [vmem:[#allocation500_spill] sm:$0xff] %v10229_v30 }
 0x230   : > { %13566 = vst [vmem:[#allocation501_spill] sm:$0xff] %v10233_v62  ;;  %v10294_v62 = vand.u32 4294901760, %v3070_v53  ;;  %v10311_v53 = vand.u32 4294901760, %v3076_v61  ;;  %v10327_v61 = vand.u32 4294901760, %v3082_v15  ;;  %v3100_v15 = vsub.f32 %v10283_v32, %v10316_v57  ;;  %2952 = vmatpush.msra.mxu1 %v9850_v34 }
 0x231   : > { %13567 = vst [vmem:[#allocation502_spill] sm:$0xff] %v10235_v7  ;;  %v10299_v7 = vand.u32 4294901760, %v10264_v46 }
 0x232   : > { %13568 = vst [vmem:[#allocation503_spill] sm:$0xff] %v10245_v50  ;;  %3072 = vmatpush.msra.mxu3 %v10294_v62  ;;  %2954 = vmatpush.msra.mxu1 %v9867_v26 }
 0x233   : > { %13569 = vst [vmem:[#allocation504_spill] sm:$0xff] %v10248_v19 }
 0x234   : > { %13570 = vst [vmem:[#allocation505_spill] sm:$0xff] %v10250_v42  ;;  %3078 = vmatpush.msra.mxu3 %v10311_v53  ;;  %2956 = vmatpush.msra.mxu1 %v9876_v20 }
 0x235   : > { %13571 = vst [vmem:[#allocation506_spill] sm:$0xff] %v10254_v29  ;;  %v3088_v29 = vsub.f32 %v10248_v19, %v10280_v56 }
 0x236   : > { %13572 = vst [vmem:[#allocation507_spill] sm:$0xff] %v10261_v51  ;;  %v10318_v51 = vand.u32 4294901760, %v287_v48  ;;  %3084 = vmatpush.msra.mxu3 %v10327_v61  ;;  %2958 = vmatpush.msra.mxu1 %v9895_v11 }
 0x237   : > { %13573 = vst [vmem:[#allocation508_spill] sm:$0xff] %v10264_v46  ;;  %v10340_v54 = vand.u32 4294901760, %v3088_v29  ;;  %v3106_v29 = vsub.f32 %v10302_v4, %v10332_v38 }
 0x238   : > { %13574 = vst [vmem:[#allocation509_spill] sm:$0xff] %v10266_v22  ;;  %2960 = vmatpush.msra.mxu1 %v9912_v63  ;;  %3011 = vmatpush.msra.mxu2 %v10318_v51 }
 0x239   : > { %13575 = vst [vmem:[#allocation510_spill] sm:$0xff] %v10275_v21  ;;  %v3094_v21 = vsub.f32 %v10264_v46, %v10299_v7  ;;  %3090 = vmatpush.msra.mxu3 %v10340_v54 }
 0x23a   : > { %13576 = vst [vmem:[#allocation511_spill] sm:$0xff] %v10280_v56  ;;  %v10334_v56 = vand.u32 4294901760, %v284_v33  ;;  %2962 = vmatpush.msra.mxu1 %v9938_v40 }
 0x23b   : > { %13577 = vst [vmem:[#allocation512_spill] sm:$0xff] %v10283_v32 }
 0x23c   : > { %13578 = vst [vmem:[#allocation513_spill] sm:$0xff] %v10287_v37  ;;  %v10359_v39 = vsub.f32 %v284_v33, %v10334_v56  ;;  %v3112_v33 = vsub.f32 %v10323_v49, %v10350_v1  ;;  %2964 = vmatpush.msra.mxu1 %v9960_v41  ;;  %3013 = vmatpush.msra.mxu2 %v10334_v56  ;;  %v13615_v41 = vld [vmem:[#allocation479_spill] sm:$0xff] }
 0x23d   : > { %13579 = vst [vmem:[#allocation514_spill] sm:$0xff] %v10294_v62  ;;  %v10345_v62 = vsub.f32 %v287_v48, %v10318_v51  ;;  %v10365_v48 = vand.u32 4294901760, %v3100_v15 }
 0x23e   : > { %13580 = vst [vmem:[#allocation515_spill] sm:$0xff] %v10299_v7  ;;  %3243 = vmatpush.msrb.mxu2 %v13608_v9  ;;  %v13614_v9 = vld [vmem:[#allocation127_spill] sm:$0xff] }
 0x23f   : > { %13581 = vst [vmem:[#allocation516_spill] sm:$0xff] %v10302_v4 }
 0x240   : > { %13582 = vst [vmem:[#allocation517_spill] sm:$0xff] %v10311_v53  ;;  %v10354_v53 = vand.u32 4294901760, %v3094_v21  ;;  %v10376_v21 = vand.u32 4294901760, %v3106_v29  ;;  %v10389_v29 = vand.u32 4294901760, %v3112_v33 }
 0x241   : > { %13583 = vst [vmem:[#allocation518_spill] sm:$0xff] %v10316_v57 }
 0x242   : > { %13584 = vst [vmem:[#allocation519_spill] sm:$0xff] %v10318_v51  ;;  %3096 = vmatpush.msra.mxu3 %v10354_v53 }
 0x243   : > { %13585 = vst [vmem:[#allocation520_spill] sm:$0xff] %v10323_v49 }
 0x244   : > { %13586 = vst [vmem:[#allocation521_spill] sm:$0xff] %v10327_v61  ;;  %v10368_v61 = vand.u32 4294901760, %v10345_v62  ;;  %3102 = vmatpush.msra.mxu3 %v10365_v48 }
 0x245   : > { %13587 = vst [vmem:[#allocation522_spill] sm:$0xff] %v10332_v38 }
 0x246   : > { %13588 = vst [vmem:[#allocation523_spill] sm:$0xff] %v10334_v56  ;;  %v3118_v15 = vsub.f32 %v10345_v62, %v10368_v61  ;;  %3108 = vmatpush.msra.mxu3 %v10376_v21 }
 0x247   : > { %13589 = vst [vmem:[#allocation524_spill] sm:$0xff] %v10340_v54  ;;  %v10379_v54 = vand.u32 4294901760, %v10359_v39 }
 0x248   : > { %13590 = vst [vmem:[#allocation525_spill] sm:$0xff] %v10345_v62  ;;  %v10405_v33 = vand.u32 4294901760, %v3118_v15  ;;  %3114 = vmatpush.msra.mxu3 %v10389_v29  ;;  %v13604_v15 = vld [vmem:[#allocation108_spill] sm:$0xff] }
 0x249   : > { %13591 = vst [vmem:[#allocation526_spill] sm:$0xff] %v10350_v1  ;;  %v3124_v58 = vsub.f32 %v10359_v39, %v10379_v54  ;;  %2756 = vmatmul.f32.vlgmr.msrb.gmra.mxu1 %v13604_v15 }
 0x24a   : > { %13592 = vst [vmem:[#allocation527_spill] sm:$0xff] %v10354_v53  ;;  %v10391_v53 = vpop.f32.mrf.mxu1  ;;  %3120 = vmatpush.msra.mxu3 %v10405_v33 }
 0x24b   : > { %13593 = vst [vmem:[#allocation528_spill] sm:$0xff] %v10359_v39  ;;  %v10411_v25 = vand.u32 4294901760, %v3124_v58  ;;  %v13605_v58 = vld [vmem:[#allocation446_spill] sm:$0xff] }
 0x24c   : > { %13594 = vst [vmem:[#allocation529_spill] sm:$0xff] %v10365_v48  ;;  %v10399_v48 = vpop.f32.mrf.mxu0  ;;  %2966 = vmatpush.msra.mxu1 %v13605_v58  ;;  %v10441_v58 = vpop.f32.mrf.mxu3 }
 0x24d   : > { %13595 = vst [vmem:[#allocation530_spill] sm:$0xff] %v10368_v61  ;;  %3126 = vmatpush.msra.mxu3 %v10411_v25 }
 0x24e   : > { %13596 = vst [vmem:[#allocation531_spill] sm:$0xff] %v10376_v21  ;;  %v13601_v21 = vld [vmem:[#allocation134_spill] sm:$0xff] }
 0x24f   : > { %13597 = vst [vmem:[#allocation532_spill] sm:$0xff] %v10379_v54  ;;  %2647 = vmatmul.f32.vlgmr.msrb.gmra.mxu0 %v13601_v21  ;;  %3314 = vmatpush.msrb.mxu3 %v9985_v10  ;;  %v13606_v21 = vld [vmem:[#allocation132_spill] sm:$0xff] }
 0x250   : > { %13598 = vst [vmem:[#allocation533_spill] sm:$0xff] %v10389_v29  ;;  %3138 = vmatpush.msrb.mxu0 %v10033_v18  ;;  %2819 = vmatmul.f32.gmra.mxu2 %v13606_v21  ;;  %v13610_v18 = vld [vmem:[#allocation140_spill] sm:$0xff] }
 0x251   : > { %13600 = vst [vmem:[#allocation116_spill] sm:$0xff] %v10405_v33  ;;  %v13607_v33 = vld [vmem:[#allocation461_spill] sm:$0xff]  ;;  %3316 = vmatpush.msrb.mxu3 %v10006_v31  ;;  %v13612_v21 = vld [vmem:[#allocation472_spill] sm:$0xff]  ;;  %2760 = vmatmul.f32.gmra.mxu1 %v13614_v9 }
 0x252   : > { %13603 = vst [vmem:[#allocation134_spill] sm:$0xff] %v10411_v25  ;;  %v10425_v0 = vpop.f32.mrf.mxu1  ;;  %3141 = vmatpush.msrb.mxu0 %v13607_v33  ;;  %v13609_v25 = vld [vmem:[#allocation451_spill] sm:$0xff]  ;;  %3247 = vmatpush.msrb.mxu2 %v13612_v21  ;;  %v13613_v33 = vld [vmem:[#allocation473_spill] sm:$0xff]  ;;  %v13617_v21 = vld [vmem:[#allocation482_spill] sm:$0xff] }
 0x253   : > { %2968 = vmatpush.msra.mxu1 %v13609_v25  ;;  %3318 = vmatpush.msrb.mxu3 %v10044_v44 }
 0x254   : > { %v10431_v29 = vpop.f32.mrf.mxu0  ;;  %3144 = vmatpush.msrb.mxu0 %v10091_v52  ;;  %3251 = vmatpush.msrb.mxu2 %v13615_v41  ;;  %v13618_v52 = vld [vmem:[#allocation142_spill] sm:$0xff]  ;;  %v10461_v41 = vpop.f32.mrf.mxu2 }
 0x255   : > { %2970 = vmatpush.msra.mxu1 %v10027_v2  ;;  %3320 = vmatpush.msrb.mxu3 %v10059_v14  ;;  %v13658_v2 = vld [vmem:[#allocation144_spill] sm:$0xff] }
 0x256   : > { %3147 = vmatpush.msrb.mxu0 %v13613_v33  ;;  %3255 = vmatpush.msrb.mxu2 %v13617_v21  ;;  %v10469_v21 = vpop.f32.mrf.mxu3 }
 0x257   : > { %2655 = vmatmul.f32.gmra.mxu0 %v13610_v18  ;;  %v13616_v18 = vld [vmem:[#allocation459_spill] sm:$0xff]  ;;  %3322 = vmatpush.msrb.mxu3 %v10078_v45 }
 0x258   : > { %2972 = vmatpush.msra.mxu1 %v13616_v18  ;;  %3150 = vmatpush.msrb.mxu0 %v10126_v55  ;;  %v13619_v18 = vld [vmem:[#allocation487_spill] sm:$0xff]  ;;  %v13620_v55 = vld [vmem:[#allocation136_spill] sm:$0xff] }
 0x259   : > { %3019 = vmatmul.f32.vlgmr.msra.gmra.mxu2 %v13618_v52  ;;  %3324 = vmatpush.msrb.mxu3 %v10114_v17 }
 0x25a   : > { %3196 = vmatpush.msrb.mxu1 %v9985_v10  ;;  %v10453_v36 = vpop.f32.mrf.mxu1  ;;  %3153 = vmatpush.msrb.mxu0 %v10160_v5 }
 0x25b   : > { %3259 = vmatpush.msrb.mxu2 %v13619_v18  ;;  %3128 = vmatmul.f32.vlgmr.msra.gmra.mxu3 %v13620_v55 }
 0x25c   : > { %v10459_v33 = vpop.f32.mrf.mxu0  ;;  %3198 = vmatpush.msrb.mxu1 %v10006_v31  ;;  %3156 = vmatpush.msrb.mxu0 %v10183_v43  ;;  %v368_v43 = vld [vmem:[%s12186_s3 + $0x430] sm:$0xff] }
 0x25d   : > { %3263 = vmatpush.msrb.mxu2 %v10203_v35  ;;  %3326 = vmatpush.msrb.mxu3 %v10138_v16  ;;  %v10485_v35 = vpop.f32.mrf.mxu2  ;;  %v10554_v5 = vand.u32 4294901760, %v368_v43 }
 0x25e   : > { %3200 = vmatpush.msrb.mxu1 %v10044_v44  ;;  %3159 = vmatpush.msrb.mxu0 %v10206_v6 }
 0x25f   : > { %2933 = vmatmul.f32.vlgmr.msra.gmra.mxu0 %v13604_v15  ;;  %2974 = vmatmul.f32.vlgmr.msra.gmra.mxu1 %v13604_v15  ;;  %v13621_v15 = vld [vmem:[#allocation507_spill] sm:$0xff]  ;;  %13630 = vst [vmem:[#allocation127_spill] sm:$0xff] %v10554_v5 }
 0x260   : > { %3202 = vmatpush.msrb.mxu1 %v10059_v14  ;;  %3267 = vmatpush.msrb.mxu2 %v10224_v24  ;;  %v10493_v24 = vpop.f32.mrf.mxu3  ;;  %v13649_v14 = vld [vmem:[#allocation141_spill] sm:$0xff] }
 0x261   : > { %3328 = vmatpush.msrb.mxu3 %v10162_v28  ;;  %3162 = vmatpush.msrb.mxu0 %v10227_v60  ;;  %v13622_v60 = vld [vmem:[#allocation511_spill] sm:$0xff] }
 0x262   : > { %v10477_v52 = vpop.f32.mrf.mxu1  ;;  %3204 = vmatpush.msrb.mxu1 %v10078_v45  ;;  %3271 = vmatpush.msrb.mxu2 %v10245_v50  ;;  %v526_v50 = vadd.f32 %v10391_v53, %v10399_v48  ;;  %v347_v45 = vld [vmem:[%s12186_s3 + $0x388] sm:$0xff] }
 0x263   : > { %3330 = vmatpush.msrb.mxu3 %v10185_v13  ;;  %3165 = vmatpush.msrb.mxu0 %v10248_v19 }
 0x264   : > { %v10483_v18 = vpop.f32.mrf.mxu0  ;;  %3206 = vmatpush.msrb.mxu1 %v10114_v17  ;;  %3275 = vmatpush.msrb.mxu2 %v13621_v15  ;;  %v377_v15 = vld [vmem:[%s12186_s3 + $0x478] sm:$0xff] }
 0x265   : > { %3332 = vmatpush.msrb.mxu3 %v10208_v47  ;;  %3168 = vmatpush.msrb.mxu0 %v10264_v46  ;;  %v10526_v6 = vpop.f32.mrf.mxu2 }
 0x266   : > { %3208 = vmatpush.msrb.mxu1 %v10138_v16  ;;  %3279 = vmatpush.msrb.mxu2 %v13622_v60  ;;  %v374_v60 = vld [vmem:[%s12186_s3 + $0x460] sm:$0xff] }
 0x267   : > { %3334 = vmatpush.msrb.mxu3 %v10229_v30  ;;  %3171 = vmatpush.msrb.mxu0 %v10283_v32  ;;  %v10515_v32 = vand.u32 4294901760, %v377_v15 }
 0x268   : > { %3210 = vmatpush.msrb.mxu1 %v10162_v28  ;;  %3283 = vmatpush.msrb.mxu2 %v10299_v7  ;;  %v371_v7 = vld [vmem:[%s12186_s3 + $0x448] sm:$0xff] }
 0x269   : > { %3336 = vmatpush.msrb.mxu3 %v10250_v42  ;;  %2937 = vmatmul.f32.gmra.mxu0 %v13614_v9  ;;  %13623 = vst [vmem:[#allocation124_spill] sm:$0xff] %v10515_v32  ;;  %v10540_v53 = vsub.f32 %v377_v15, %v10515_v32  ;;  %v10542_v48 = vand.u32 4294901760, %v371_v7  ;;  %v365_v15 = vld [vmem:[%s12186_s3 + $0x418] sm:$0xff] }
 0x26a   : > { %3212 = vmatpush.msrb.mxu1 %v10185_v13  ;;  %v10511_v46 = vpop.f32.mrf.mxu1  ;;  %3174 = vmatpush.msrb.mxu0 %v10302_v4  ;;  %v13625_v4 = vld [vmem:[#allocation146_spill] sm:$0xff] }
 0x26b   : > { %3287 = vmatpush.msrb.mxu2 %v10316_v57  ;;  %3338 = vmatpush.msrb.mxu3 %v10266_v22  ;;  %v10530_v57 = vand.u32 4294901760, %v374_v60  ;;  %13626 = vst [vmem:[#allocation132_spill] sm:$0xff] %v10540_v53 }
 0x26c   : > { %3214 = vmatpush.msrb.mxu1 %v10208_v47  ;;  %v10524_v19 = vpop.f32.mrf.mxu0  ;;  %3177 = vmatpush.msrb.mxu0 %v10323_v49  ;;  %13627 = vst [vmem:[#allocation140_spill] sm:$0xff] %v10542_v48  ;;  %v13628_v49 = vld [vmem:[#allocation143_spill] sm:$0xff] }
 0x26d   : > { %3291 = vmatpush.msrb.mxu2 %v10332_v38  ;;  %13624 = vst [vmem:[#allocation108_spill] sm:$0xff] %v10530_v57  ;;  %3340 = vmatpush.msrb.mxu3 %v10287_v37  ;;  %v10544_v38 = vpop.f32.mrf.mxu3 }
 0x26e   : > { %3027 = vmatmul.f32.gmra.mxu2 %v13625_v4  ;;  %3180 = vmatpush.msrb.mxu0 %v10345_v62  ;;  %v584_v4 = vadd.f32 %v10401_v23, %v526_v50  ;;  %v10552_v62 = vsub.f32 %v374_v60, %v10530_v57  ;;  %v530_v50 = vadd.f32 %v10425_v0, %v10431_v29  ;;  %v10569_v60 = vand.u32 4294901760, %v10540_v53 }
 0x26f   : > { %3216 = vmatpush.msrb.mxu1 %v10229_v30  ;;  %3295 = vmatpush.msrb.mxu2 %v10350_v1  ;;  %v10566_v23 = vsub.f32 %v371_v7, %v10542_v48  ;;  %v362_v1 = vld [vmem:[%s12186_s3 + $0x400] sm:$0xff]  ;;  %v10586_v7 = vsub.f32 %v368_v43, %v10554_v5  ;;  %v10599_v30 = vpop.f32.mrf.mxu2 }
 0x270   : > { %3342 = vmatpush.msrb.mxu3 %v10318_v51  ;;  %3183 = vmatpush.msrb.mxu0 %v10359_v39  ;;  %13629 = vst [vmem:[#allocation135_spill] sm:$0xff] %v10552_v62  ;;  %v13633_v39 = vld [vmem:[#allocation139_spill] sm:$0xff]  ;;  %v628_v29 = vadd.f32 %v10413_v3, %v584_v4  ;;  %v10596_v3 = vand.u32 4294901760, %v362_v1  ;;  %v589_v4 = vadd.f32 %v10433_v8, %v530_v50 }
 0x271   : > { %3132 = vmatmul.f32.gmra.mxu3 %v13628_v49  ;;  %3218 = vmatpush.msrb.mxu1 %v10250_v42  ;;  %13631 = vst [vmem:[#allocation142_spill] sm:$0xff] %v10566_v23  ;;  %v10589_v42 = vand.u32 4294901760, %v10552_v62  ;;  %v3406_v43 = vsub.f32 %v10540_v53, %v10569_v60  ;;  %v10624_v13 = vand.u32 4294901760, %v10586_v7 }
 0x272   : > { %3299 = vmatpush.msrb.mxu2 %v10368_v61  ;;  %3344 = vmatpush.msrb.mxu3 %v10334_v56  ;;  %13632 = vst [vmem:[#allocation136_spill] sm:$0xff] %v10569_v60  ;;  %v10576_v61 = vand.u32 4294901760, %v365_v15  ;;  %v703_v47 = vadd.f32 %v10459_v33, %v628_v29  ;;  %v10634_v33 = vsub.f32 %v362_v1, %v10596_v3 }
 0x273   : > { %2978 = vmatmul.f32.gmra.mxu1 %v13614_v9  ;;  %3186 = vmatmul.f32.vlgmr.msrb.gmra.mxu0 %v13633_v39  ;;  %v10581_v9 = vpop.f32.mrf.mxu1  ;;  %13635 = vst [vmem:[#allocation143_spill] sm:$0xff] %v10586_v7  ;;  %v359_v39 = vld [vmem:[%s12186_s3 + $0x3e8] sm:$0xff]  ;;  %v10641_v28 = vand.u32 4294901760, %v3406_v43 }
 0x274   : > { %3568 = vmatpush.msra.mxu3 %v10515_v32  ;;  %13634 = vst [vmem:[#allocation146_spill] sm:$0xff] %v10576_v61  ;;  %v10579_v0 = vpop.f32.mrf.mxu0  ;;  %3355 = vmatpush.msra.mxu0 %v10515_v32  ;;  %v10614_v8 = vsub.f32 %v365_v15, %v10576_v61  ;;  %v10616_v50 = vand.u32 4294901760, %v359_v39 }
 0x275   : > { %3220 = vmatpush.msrb.mxu1 %v10266_v22  ;;  %13636 = vst [vmem:[#allocation139_spill] sm:$0xff] %v10589_v42  ;;  %3303 = vmatpush.msrb.mxu2 %v10379_v54  ;;  %v10606_v22 = vand.u32 4294901760, %v10566_v23  ;;  %v356_v54 = vld [vmem:[%s12186_s3 + $0x3d0] sm:$0xff]  ;;  %v10629_v15 = vpop.f32.mrf.mxu3 }
 0x276   : > { %3570 = vmatpush.msra.mxu3 %v10530_v57  ;;  %13637 = vst [vmem:[#allocation534_spill] sm:$0xff] %v10596_v3  ;;  %3357 = vmatpush.msra.mxu0 %v10530_v57  ;;  %v10636_v29 = vand.u32 4294901760, %v356_v54  ;;  %v10651_v1 = vsub.f32 %v359_v39, %v10616_v50  ;;  %v3424_v39 = vsub.f32 %v10586_v7, %v10624_v13 }
 0x277   : > { %3510 = vmatpush.msra.mxu2 %v10540_v53  ;;  %13638 = vst [vmem:[#allocation535_spill] sm:$0xff] %v10606_v22  ;;  %3222 = vmatpush.msrb.mxu1 %v10287_v37  ;;  %v3412_v53 = vsub.f32 %v10552_v62, %v10589_v42  ;;  %v353_v37 = vld [vmem:[%s12186_s3 + $0x3b8] sm:$0xff]  ;;  %v3418_v16 = vsub.f32 %v10566_v23, %v10606_v22  ;;  %v10683_v44 = vpop.f32.mrf.mxu2 }
 0x278   : > { %3305 = vmatmul.f32.vlgmr.msrb.gmra.mxu2 %v13620_v55  ;;  %13639 = vst [vmem:[#allocation536_spill] sm:$0xff] %v10614_v8  ;;  %3359 = vmatpush.msra.mxu0 %v10542_v48 }
 0x279   : > { %13640 = vst [vmem:[#allocation537_spill] sm:$0xff] %v10616_v50  ;;  %3513 = vmatpush.msra.mxu2 %v10552_v62  ;;  %3572 = vmatpush.msra.mxu3 %v10542_v48  ;;  %v634_v62 = vadd.f32 %v10441_v58, %v589_v4  ;;  %v10653_v58 = vand.u32 4294901760, %v353_v37  ;;  %v744_v4 = vadd.f32 %v10453_v36, %v703_v47  ;;  %v10687_v31 = vand.u32 4294901760, %v3418_v16 }
 0x27a   : > { %13641 = vst [vmem:[#allocation538_spill] sm:$0xff] %v10624_v13  ;;  %3224 = vmatpush.msrb.mxu1 %v10318_v51  ;;  %3346 = vmatmul.f32.vlgmr.msrb.gmra.mxu3 %v13620_v55  ;;  %v350_v51 = vld [vmem:[%s12186_s3 + $0x3a0] sm:$0xff]  ;;  %v10656_v55 = vand.u32 4294901760, %v10614_v8  ;;  %v10675_v47 = vsub.f32 %v356_v54, %v10636_v29 }
 0x27b   : > { %13642 = vst [vmem:[#allocation539_spill] sm:$0xff] %v10634_v33  ;;  %3361 = vmatpush.msra.mxu0 %v10554_v5  ;;  %3516 = vmatpush.msra.mxu2 %v10566_v23  ;;  %v10661_v17 = vpop.f32.mrf.mxu1  ;;  %v10665_v23 = vand.u32 4294901760, %v3412_v53  ;;  %v10677_v36 = vand.u32 4294901760, %v350_v51  ;;  %v707_v53 = vadd.f32 %v10483_v18, %v634_v62  ;;  %v10697_v62 = vsub.f32 %v353_v37, %v10653_v58 }
 0x27c   : > { %13643 = vst [vmem:[#allocation540_spill] sm:$0xff] %v10636_v29  ;;  %3574 = vmatpush.msra.mxu3 %v10554_v5  ;;  %v10659_v43 = vpop.f32.mrf.mxu0  ;;  %3226 = vmatpush.msrb.mxu1 %v10334_v56  ;;  %v10680_v56 = vand.u32 4294901760, %v10634_v33  ;;  %v3430_v54 = vsub.f32 %v10614_v8, %v10656_v55  ;;  %v10699_v18 = vand.u32 4294901760, %v347_v45  ;;  %v789_v16 = vadd.f32 %v10461_v41, %v744_v4  ;;  %v341_v4 = vld [vmem:[%s12186_s3 + $0x358] sm:$0xff] }
 0x27d   : > { %13644 = vst [vmem:[#allocation541_spill] sm:$0xff] %v10641_v28  ;;  %3363 = vmatpush.msra.mxu0 %v10576_v61  ;;  %3230 = vmatmul.f32.vlgmr.msrb.gmra.mxu1 %v13649_v14  ;;  %v344_v14 = vld [vmem:[%s12186_s3 + $0x370] sm:$0xff]  ;;  %v10709_v10 = vpop.f32.mrf.mxu3  ;;  %v10721_v41 = vand.u32 4294901760, %v10675_v47  ;;  %v10739_v40 = vand.u32 4294901760, %v10697_v62 }
 0x27e   : > { %13645 = vst [vmem:[#allocation542_spill] sm:$0xff] %v10651_v1  ;;  %3519 = vmatpush.msra.mxu2 %v10586_v7  ;;  %3408 = vmatpush.msra.mxu1 %v10641_v28  ;;  %v10702_v7 = vand.u32 4294901760, %v10651_v1  ;;  %v10707_v28 = vand.u32 4294901760, %v3424_v39  ;;  %v3436_v37 = vsub.f32 %v10634_v33, %v10680_v56  ;;  %v10718_v25 = vand.u32 4294901760, %v344_v14 }
 0x27f   : > { %13646 = vst [vmem:[#allocation543_spill] sm:$0xff] %v10653_v58  ;;  %3576 = vmatpush.msra.mxu3 %v10576_v61  ;;  %3365 = vmatpush.msra.mxu0 %v10596_v3  ;;  %v748_v39 = vadd.f32 %v10477_v52, %v707_v53  ;;  %v898_v52 = vadd.f32 %v10469_v21, %v789_v16  ;;  %v10744_v53 = vand.u32 4294901760, %v341_v4 }
 0x280   : > { %13647 = vst [vmem:[#allocation544_spill] sm:$0xff] %v10656_v55  ;;  %3522 = vmatpush.msra.mxu2 %v10614_v8  ;;  %3414 = vmatpush.msra.mxu1 %v10665_v23  ;;  %v10716_v8 = vsub.f32 %v350_v51, %v10677_v36  ;;  %v3442_v51 = vsub.f32 %v10651_v1, %v10702_v7 }
 0x281   : > { %13648 = vst [vmem:[#allocation545_spill] sm:$0xff] %v10665_v23  ;;  %3578 = vmatpush.msra.mxu3 %v10596_v3  ;;  %3191 = vmatmul.f32.gmra.mxu0 %v13658_v2  ;;  %v10731_v2 = vand.u32 4294901760, %v3430_v54  ;;  %v10736_v23 = vsub.f32 %v347_v45, %v10699_v18  ;;  %v338_v54 = vld [vmem:[%s12186_s3 + $0x340] sm:$0xff]  ;;  %v10751_v45 = vand.u32 4294901760, %v3436_v37  ;;  %v10756_v21 = vsub.f32 %v344_v14, %v10718_v25  ;;  %v13669_v37 = vld [vmem:[#allocation145_spill] sm:$0xff]  ;;  %v335_v14 = vld [vmem:[%s12186_s3 + $0x328] sm:$0xff] }
 0x282   : > { %13650 = vst [vmem:[#allocation141_spill] sm:$0xff] %v10675_v47  ;;  %3309 = vmatmul.f32.gmra.mxu2 %v13628_v49  ;;  %3367 = vmatpush.msra.mxu0 %v10616_v50  ;;  %v956_v16 = vadd.f32 %v10524_v19, %v898_v52  ;;  %v3454_v19 = vsub.f32 %v10697_v62, %v10739_v40  ;;  %v10797_v20 = vand.u32 4294901760, %v335_v14 }
 0x283   : > { %13651 = vst [vmem:[#allocation546_spill] sm:$0xff] %v10677_v36  ;;  %3420 = vmatpush.msra.mxu1 %v10687_v31  ;;  %3525 = vmatpush.msra.mxu2 %v10634_v33  ;;  %v3448_v33 = vsub.f32 %v10675_v47, %v10721_v41 }
 0x284   : > { %13652 = vst [vmem:[#allocation547_spill] sm:$0xff] %v10680_v56  ;;  %3580 = vmatpush.msra.mxu3 %v10616_v50  ;;  %3369 = vmatpush.msra.mxu0 %v10636_v29  ;;  %v10763_v63 = vpop.f32.mrf.mxu0  ;;  %v1000_v52 = vadd.f32 %v10511_v46, %v956_v16  ;;  %v332_v46 = vld [vmem:[%s12186_s3 + $0x310] sm:$0xff]  ;;  %v10803_v16 = vand.u32 4294901760, %v10756_v21 }
 0x285   : > { %13653 = vst [vmem:[#allocation548_spill] sm:$0xff] %v10687_v31  ;;  %3350 = vmatmul.f32.gmra.mxu3 %v13628_v49  ;;  %3426 = vmatpush.msra.mxu1 %v10707_v28  ;;  %v10759_v49 = vand.u32 4294901760, %v10716_v8  ;;  %v797_v31 = vadd.f32 %v10485_v35, %v748_v39  ;;  %v10778_v35 = vand.u32 4294901760, %v338_v54  ;;  %v10781_v39 = vand.u32 4294901760, %v10736_v23 }
 0x286   : > { %13654 = vst [vmem:[#allocation549_spill] sm:$0xff] %v10697_v62  ;;  %3528 = vmatpush.msra.mxu2 %v10651_v1  ;;  %3582 = vmatpush.msra.mxu3 %v10636_v29  ;;  %v10774_v1 = vand.u32 4294901760, %v3442_v51  ;;  %v10793_v51 = vand.u32 4294901760, %v3448_v33  ;;  %v10808_v33 = vpop.f32.mrf.mxu3 }
 0x287   : > { %13655 = vst [vmem:[#allocation550_spill] sm:$0xff] %v10699_v18  ;;  %3236 = vmatmul.f32.gmra.mxu1 %v13669_v37  ;;  %3371 = vmatpush.msra.mxu0 %v10653_v58  ;;  %v10784_v37 = vpop.f32.mrf.mxu2  ;;  %v3460_v11 = vsub.f32 %v10716_v8, %v10759_v49  ;;  %v10817_v26 = vsub.f32 %v338_v54, %v10778_v35 }
 0x288   : > { %13656 = vst [vmem:[#allocation551_spill] sm:$0xff] %v10702_v7  ;;  %3432 = vmatpush.msra.mxu1 %v10731_v2  ;;  %3531 = vmatpush.msra.mxu2 %v10675_v47  ;;  %v10812_v47 = vand.u32 4294901760, %v3454_v19  ;;  %v3472_v54 = vsub.f32 %v10756_v21, %v10803_v16 }
 0x289   : > { %13657 = vst [vmem:[#allocation552_spill] sm:$0xff] %v10707_v28  ;;  %v10765_v28 = vpop.f32.mrf.mxu1  ;;  %3584 = vmatpush.msra.mxu3 %v10653_v58  ;;  %3373 = vmatpush.msra.mxu0 %v10677_v36  ;;  %v10829_v19 = vand.u32 4294901760, %v3460_v11 }
 0x28a   : > { %13659 = vst [vmem:[#allocation144_spill] sm:$0xff] %v10716_v8  ;;  %3438 = vmatpush.msra.mxu1 %v10751_v45  ;;  %3534 = vmatpush.msra.mxu2 %v10697_v62  ;;  %v1075_v62 = vadd.f32 %v10526_v6, %v1000_v52  ;;  %v10834_v6 = vsub.f32 %v335_v14, %v10797_v20 }
 0x28b   : > { %13660 = vst [vmem:[#allocation553_spill] sm:$0xff] %v10718_v25  ;;  %3586 = vmatpush.msra.mxu3 %v10677_v36  ;;  %3375 = vmatpush.msra.mxu0 %v10699_v18 }
 0x28c   : > { %13661 = vst [vmem:[#allocation554_spill] sm:$0xff] %v10721_v41  ;;  %3444 = vmatpush.msra.mxu1 %v10774_v1  ;;  %3537 = vmatpush.msra.mxu2 %v10716_v8  ;;  %v10836_v52 = vpop.f32.mrf.mxu0  ;;  %v1116_v14 = vadd.f32 %v10544_v38, %v1075_v62  ;;  %v10865_v38 = vand.u32 4294901760, %v10834_v6 }
 0x28d   : > { %13662 = vst [vmem:[#allocation555_spill] sm:$0xff] %v10731_v2  ;;  %v10789_v2 = vsub.f32 %v341_v4, %v10744_v53  ;;  %v902_v4 = vadd.f32 %v10493_v24, %v797_v31  ;;  %3588 = vmatpush.msra.mxu3 %v10699_v18  ;;  %v10822_v31 = vand.u32 4294901760, %v332_v46  ;;  %3377 = vmatpush.msra.mxu0 %v10718_v25 }
 0x28e   : > { %13663 = vst [vmem:[#allocation556_spill] sm:$0xff] %v10736_v23  ;;  %3450 = vmatpush.msra.mxu1 %v10793_v51  ;;  %3540 = vmatpush.msra.mxu2 %v10736_v23 }
 0x28f   : > { %13664 = vst [vmem:[#allocation557_spill] sm:$0xff] %v10739_v40  ;;  %v10825_v24 = vand.u32 4294901760, %v10789_v2  ;;  %3590 = vmatpush.msra.mxu3 %v10718_v25  ;;  %3379 = vmatpush.msra.mxu0 %v10744_v53  ;;  %v10851_v34 = vpop.f32.mrf.mxu2 }
 0x290   : > { %13665 = vst [vmem:[#allocation558_spill] sm:$0xff] %v10744_v53  ;;  %3456 = vmatpush.msra.mxu1 %v10812_v47  ;;  %3543 = vmatpush.msra.mxu2 %v10756_v21 }
 0x291   : > { %13666 = vst [vmem:[#allocation559_spill] sm:$0xff] %v10751_v45  ;;  %v3466_v45 = vsub.f32 %v10736_v23, %v10781_v39  ;;  %v10838_v8 = vpop.f32.mrf.mxu1  ;;  %3592 = vmatpush.msra.mxu3 %v10744_v53  ;;  %3381 = vmatpush.msra.mxu0 %v10778_v35  ;;  %v10871_v23 = vpop.f32.mrf.mxu3 }
 0x292   : > { %13667 = vst [vmem:[#allocation560_spill] sm:$0xff] %v10756_v21  ;;  %3462 = vmatpush.msra.mxu1 %v10829_v19  ;;  %v1161_v21 = vadd.f32 %v10659_v43, %v1116_v14  ;;  %3546 = vmatpush.msra.mxu2 %v10789_v2  ;;  %v3490_v43 = vsub.f32 %v10834_v6, %v10865_v38 }
 0x293   : > { %13668 = vst [vmem:[#allocation561_spill] sm:$0xff] %v10759_v49  ;;  %v10845_v11 = vand.u32 4294901760, %v3466_v45  ;;  %v10862_v45 = vand.u32 4294901760, %v3472_v54  ;;  %3594 = vmatpush.msra.mxu3 %v10778_v35  ;;  %3383 = vmatpush.msra.mxu0 %v10797_v20 }
 0x294   : > { %13670 = vst [vmem:[#allocation145_spill] sm:$0xff] %v10774_v1  ;;  %v961_v1 = vadd.f32 %v10579_v0, %v902_v4  ;;  %v3478_v0 = vsub.f32 %v10789_v2, %v10825_v24  ;;  %v10858_v4 = vsub.f32 %v332_v46, %v10822_v31  ;;  %v1270_v54 = vadd.f32 %v10661_v17, %v1161_v21  ;;  %v13690_v17 = vld [vmem:[#allocation224_spill] sm:$0xff]  ;;  %v13691_v21 = vld [vmem:[#allocation26_spill] sm:$0xff] }
 0x295   : > { %13671 = vst [vmem:[#allocation562_spill] sm:$0xff] %v10778_v35  ;;  %3468 = vmatpush.msra.mxu1 %v10845_v11  ;;  %3549 = vmatpush.msra.mxu2 %v10817_v26 }
 0x296   : > { %13672 = vst [vmem:[#allocation563_spill] sm:$0xff] %v10781_v39  ;;  %v1006_v62 = vadd.f32 %v10581_v9, %v961_v1  ;;  %3596 = vmatpush.msra.mxu3 %v10797_v20  ;;  %v10880_v9 = vand.u32 4294901760, %v3478_v0  ;;  %v10883_v1 = vand.u32 4294901760, %v10858_v4  ;;  %3385 = vmatpush.msra.mxu0 %v10822_v31 }
 0x297   : > { %13673 = vst [vmem:[#allocation564_spill] sm:$0xff] %v10789_v2  ;;  %3474 = vmatpush.msra.mxu1 %v10862_v45  ;;  %3552 = vmatpush.msra.mxu2 %v10834_v6  ;;  %v1450_v2 = vpop.f32.mrf.mxu0 }
 0x298   : > { %13674 = vst [vmem:[#allocation565_spill] sm:$0xff] %v10793_v51  ;;  %v10848_v51 = vand.u32 4294901760, %v10817_v26  ;;  %v1079_v14 = vadd.f32 %v10599_v30, %v1006_v62  ;;  %3598 = vmatpush.msra.mxu3 %v10822_v31  ;;  %3391 = vmatmul.f32.vlgmr.msra.gmra.mxu0 %v13690_v17  ;;  %v3496_v30 = vsub.f32 %v10858_v4, %v10883_v1  ;;  %v13693_v62 = vld [vmem:[#allocation27_spill] sm:$0xff]  ;;  %v10903_v17 = vand.u32 4294901760, %v3490_v43  ;;  %v13697_v43 = vld [vmem:[#allocation4_spill] sm:$0xff] }
 0x299   : > { %13675 = vst [vmem:[#allocation566_spill] sm:$0xff] %v10797_v20  ;;  %3615 = vmatpush.msrb.mxu0 %v10569_v60  ;;  %3480 = vmatpush.msra.mxu1 %v10880_v9  ;;  %v13700_v60 = vld [vmem:[#allocation202_spill] sm:$0xff] }
 0x29a   : > { %13676 = vst [vmem:[#allocation567_spill] sm:$0xff] %v10803_v16  ;;  %v3484_v46 = vsub.f32 %v10817_v26, %v10848_v51  ;;  %3792 = vmatpush.msrb.mxu3 %v13691_v21  ;;  %3555 = vmatpush.msra.mxu2 %v10858_v4  ;;  %v10906_v21 = vpop.f32.mrf.mxu2 }
 0x29b   : > { %13677 = vst [vmem:[#allocation568_spill] sm:$0xff] %v10812_v47  ;;  %3619 = vmatpush.msrb.mxu0 %v10589_v42  ;;  %3602 = vmatmul.f32.vlgmr.msra.gmra.mxu3 %v13700_v60  ;;  %v14050_v47 = vld [vmem:[#allocation396_spill] sm:$0xff] }
 0x29c   : > { %13678 = vst [vmem:[#allocation569_spill] sm:$0xff] %v10817_v26  ;;  %v10894_v0 = vand.u32 4294901760, %v3484_v46  ;;  %v1328_v26 = vadd.f32 %v10683_v44, %v1270_v54  ;;  %3798 = vmatpush.msrb.mxu3 %v13693_v62  ;;  %v1120_v46 = vadd.f32 %v10629_v15, %v1079_v14  ;;  %v13695_v44 = vld [vmem:[#allocation3_spill] sm:$0xff]  ;;  %v13696_v54 = vld [vmem:[#allocation192_spill] sm:$0xff]  ;;  %v10916_v62 = vand.u32 4294901760, %v3496_v30  ;;  %v10918_v15 = vpop.f32.mrf.mxu3  ;;  %v13699_v14 = vld [vmem:[#allocation30_spill] sm:$0xff] }
 0x29d   : > { %13679 = vst [vmem:[#allocation570_spill] sm:$0xff] %v10822_v31  ;;  %3739 = vmatpush.msrb.mxu2 %v13695_v44  ;;  %3623 = vmatpush.msrb.mxu0 %v10606_v22  ;;  %v13715_v22 = vld [vmem:[#allocation210_spill] sm:$0xff] }
 0x29e   : > { %13680 = vst [vmem:[#allocation571_spill] sm:$0xff] %v10825_v24  ;;  %3486 = vmatpush.msra.mxu1 %v10894_v0  ;;  %3558 = vmatmul.f32.vlgmr.msra.gmra.mxu2 %v13696_v54 }
 0x29f   : > { %13681 = vst [vmem:[#allocation572_spill] sm:$0xff] %v10829_v19  ;;  %3741 = vmatpush.msrb.mxu2 %v13697_v43  ;;  %3804 = vmatpush.msrb.mxu3 %v13699_v14  ;;  %v1699_v30 = vpop.f32.mrf.mxu0  ;;  %v13703_v14 = vld [vmem:[#allocation247_spill] sm:$0xff]  ;;  %v13833_v19 = vld [vmem:[#allocation93_spill] sm:$0xff] }
 0x2a0   : > { %13682 = vst [vmem:[#allocation573_spill] sm:$0xff] %v10834_v6  ;;  %v1169_v6 = vadd.f32 %v10763_v63, %v1120_v46  ;;  %3492 = vmatpush.msra.mxu1 %v10903_v17  ;;  %3627 = vmatpush.msrb.mxu0 %v10624_v13  ;;  %v13702_v63 = vld [vmem:[#allocation35_spill] sm:$0xff]  ;;  %v13712_v13 = vld [vmem:[#allocation232_spill] sm:$0xff] }
 0x2a1   : > { %13683 = vst [vmem:[#allocation574_spill] sm:$0xff] %v10845_v11  ;;  %v1491_v11 = vpop.f32.mrf.mxu1  ;;  %3810 = vmatpush.msrb.mxu3 %v13702_v63  ;;  %3399 = vmatmul.f32.gmra.mxu0 %v13703_v14  ;;  %v13707_v63 = vld [vmem:[#allocation7_spill] sm:$0xff]  ;;  %v13708_v14 = vld [vmem:[#allocation42_spill] sm:$0xff] }
 0x2a2   : > { %13684 = vst [vmem:[#allocation575_spill] sm:$0xff] %v10848_v51  ;;  %v1274_v42 = vadd.f32 %v10765_v28, %v1169_v6  ;;  %3498 = vmatpush.msra.mxu1 %v10916_v62  ;;  %v13704_v28 = vld [vmem:[#allocation182_spill] sm:$0xff]  ;;  %3631 = vmatpush.msrb.mxu0 %v10656_v55 }
 0x2a3   : > { %13685 = vst [vmem:[#allocation576_spill] sm:$0xff] %v10858_v4  ;;  %v1372_v4 = vadd.f32 %v10709_v10, %v1328_v26  ;;  %v13701_v10 = vld [vmem:[#allocation5_spill] sm:$0xff]  ;;  %3500 = vmatmul.f32.vlgmr.msra.gmra.mxu1 %v13704_v28  ;;  %v13705_v6 = vld [vmem:[#allocation6_spill] sm:$0xff]  ;;  %3608 = vmatmul.f32.gmra.mxu3 %v13712_v13  ;;  %v13716_v13 = vld [vmem:[#allocation15_spill] sm:$0xff] }
 0x2a4   : > { %13686 = vst [vmem:[#allocation577_spill] sm:$0xff] %v10862_v45  ;;  %3743 = vmatpush.msrb.mxu2 %v13701_v10  ;;  %v1333_v60 = vadd.f32 %v10784_v37, %v1274_v42  ;;  %3686 = vmatpush.msrb.mxu1 %v10515_v32  ;;  %v13709_v42 = vld [vmem:[#allocation219_spill] sm:$0xff]  ;;  %v13824_v45 = vld [vmem:[#allocation173_spill] sm:$0xff] }
 0x2a5   : > { %13687 = vst [vmem:[#allocation578_spill] sm:$0xff] %v10865_v38  ;;  %v1447_v54 = vadd.f32 %v10836_v52, %v1372_v4  ;;  %v13706_v52 = vld [vmem:[#allocation38_spill] sm:$0xff]  ;;  %3635 = vmatpush.msrb.mxu0 %v10680_v56  ;;  %v14058_v32 = vld [vmem:[#allocation397_spill] sm:$0xff] }
 0x2a6   : > { %13688 = vst [vmem:[#allocation579_spill] sm:$0xff] %v10880_v9  ;;  %3745 = vmatpush.msrb.mxu2 %v13705_v6  ;;  %3816 = vmatpush.msrb.mxu3 %v13706_v52  ;;  %v1378_v37 = vadd.f32 %v10808_v33, %v1333_v60  ;;  %v10952_v52 = vpop.f32.mrf.mxu3  ;;  %v13713_v33 = vld [vmem:[#allocation12_spill] sm:$0xff] }
 0x2a7   : > { %13689 = vst [vmem:[#allocation580_spill] sm:$0xff] %v10883_v1  ;;  %v1488_v26 = vadd.f32 %v10838_v8, %v1447_v54  ;;  %v7479_v8 = vld [vmem:[%s8072_s28] sm:$0xff]  ;;  %v10943_v54 = vpop.f32.mrf.mxu2  ;;  %3688 = vmatpush.msrb.mxu1 %v10530_v57  ;;  %3563 = vmatmul.f32.gmra.mxu2 %v13709_v42  ;;  %v13728_v9 = vld [vmem:[#allocation44_spill] sm:$0xff]  ;;  %v14056_v57 = vld [vmem:[#allocation402_spill] sm:$0xff] }
 0x2a8   : > { %13692 = vst [vmem:[#allocation224_spill] sm:$0xff] %v10894_v0  ;;  %3747 = vmatpush.msrb.mxu2 %v13707_v63  ;;  %3822 = vmatpush.msrb.mxu3 %v13708_v14  ;;  %v1451_v56 = vadd.f32 %v1450_v2, %v1378_v37  ;;  %v1704_v14 = vpop.f32.mrf.mxu0  ;;  %v13717_v37 = vld [vmem:[#allocation58_spill] sm:$0xff] }
 0x2a9   : > { %13694 = vst [vmem:[#allocation26_spill] sm:$0xff] %v10903_v17  ;;  %v10929_v46 = vpop.f32.mrf.mxu1  ;;  %v10941_v4 = vsub.f32 %v7479_v8, %v1488_v26  ;;  %3639 = vmatpush.msrb.mxu0 %v10702_v7  ;;  %3690 = vmatpush.msrb.mxu1 %v10542_v48  ;;  %v13710_v26 = vld [vmem:[#allocation8_spill] sm:$0xff]  ;;  %v13711_v8 = vld [vmem:[#allocation47_spill] sm:$0xff] }
 0x2aa   : > { %13698 = vst [vmem:[#allocation27_spill] sm:$0xff] %v10916_v62  ;;  %3749 = vmatpush.msrb.mxu2 %v13710_v26  ;;  %3828 = vmatpush.msrb.mxu3 %v13711_v8  ;;  %v1492_v60 = vadd.f32 %v1491_v11, %v1451_v56  ;;  %v13714_v7 = vld [vmem:[#allocation51_spill] sm:$0xff]  ;;  %v1642_v8 = vadd.f32 %v10871_v23, %v10851_v34  ;;  %v7480_v56 = vld [vmem:[%s8072_s28 + $0x18] sm:$0xff]  ;;  %v13720_v34 = vld [vmem:[#allocation25_spill] sm:$0xff] }
 0x2ab   : > { %v3732_v55 = vmul.f32 %v10941_v4, %v10941_v4  ;;  %3643 = vmatpush.msrb.mxu0 %v10721_v41  ;;  %3692 = vmatpush.msrb.mxu1 %v10554_v5  ;;  %v13719_v41 = vld [vmem:[#allocation63_spill] sm:$0xff]  ;;  %v14053_v5 = vld [vmem:[#allocation400_spill] sm:$0xff] }
 0x2ac   : > { %3751 = vmatpush.msrb.mxu2 %v13713_v33  ;;  %3834 = vmatpush.msrb.mxu3 %v13714_v7  ;;  %v10975_v7 = vsub.f32 %v7480_v56, %v1492_v60  ;;  %v13721_v23 = vld [vmem:[#allocation71_spill] sm:$0xff]  ;;  %v13723_v56 = vld [vmem:[#allocation76_spill] sm:$0xff] }
 0x2ad   : > { %3504 = vmatmul.f32.gmra.mxu1 %v13715_v22  ;;  %3647 = vmatpush.msrb.mxu0 %v10739_v40  ;;  %v10966_v2 = vand.u32 4294901760, %v3732_v55  ;;  %v13718_v40 = vld [vmem:[#allocation22_spill] sm:$0xff]  ;;  %v13722_v60 = vld [vmem:[#allocation31_spill] sm:$0xff]  ;;  %v14055_v48 = vld [vmem:[#allocation392_spill] sm:$0xff] }
 0x2ae   : > { %3694 = vmatpush.msrb.mxu1 %v10576_v61  ;;  %3753 = vmatpush.msrb.mxu2 %v13716_v13  ;;  %v1863_v62 = vpop.f32.mrf.mxu3 }
 0x2af   : > { %3840 = vmatpush.msrb.mxu3 %v13717_v37  ;;  %3651 = vmatpush.msrb.mxu0 %v10759_v49  ;;  %v1822_v11 = vpop.f32.mrf.mxu2  ;;  %v10982_v37 = vsub.f32 %v3732_v55, %v10966_v2  ;;  %v1700_v49 = vadd.f32 %v1699_v30, %v1642_v8  ;;  %v1646_v55 = vadd.f32 %v10918_v15, %v10906_v21  ;;  %v13726_v15 = vld [vmem:[#allocation40_spill] sm:$0xff] }
 0x2b0   : > { %3696 = vmatpush.msrb.mxu1 %v10596_v3  ;;  %3755 = vmatpush.msrb.mxu2 %v13718_v40  ;;  %v1904_v8 = vpop.f32.mrf.mxu0 }
 0x2b1   : > { %v1749_v42 = vpop.f32.mrf.mxu1  ;;  %3846 = vmatpush.msrb.mxu3 %v13719_v41  ;;  %3655 = vmatpush.msrb.mxu0 %v10781_v39  ;;  %v3735_v41 = vmul.f32 %v10975_v7, %v10975_v7  ;;  %v10997_v30 = vand.u32 4294901760, %v10982_v37  ;;  %v13725_v39 = vld [vmem:[#allocation83_spill] sm:$0xff]  ;;  %v1744_v17 = vadd.f32 %v10929_v46, %v1700_v49 }
 0x2b2   : > { %3698 = vmatpush.msrb.mxu1 %v10616_v50  ;;  %3757 = vmatpush.msrb.mxu2 %v13720_v34 }
 0x2b3   : > { %3852 = vmatpush.msrb.mxu3 %v13721_v23  ;;  %3659 = vmatpush.msrb.mxu0 %v10803_v16  ;;  %v13724_v16 = vld [vmem:[#allocation36_spill] sm:$0xff]  ;;  %v11004_v21 = vand.u32 4294901760, %v3735_v41  ;;  %v3773_v49 = vsub.f32 %v10982_v37, %v10997_v30  ;;  %v1819_v46 = vadd.f32 %v10943_v54, %v1744_v17  ;;  %v13732_v17 = vld [vmem:[#allocation9_spill] sm:$0xff] }
 0x2b4   : > { %3700 = vmatpush.msrb.mxu1 %v10636_v29  ;;  %3759 = vmatpush.msrb.mxu2 %v13722_v60  ;;  %v13826_v29 = vld [vmem:[#allocation148_spill] sm:$0xff] }
 0x2b5   : > { %3858 = vmatpush.msrb.mxu3 %v13723_v56  ;;  %3663 = vmatpush.msrb.mxu0 %v10825_v24  ;;  %v13727_v56 = vld [vmem:[#allocation86_spill] sm:$0xff]  ;;  %v1705_v24 = vadd.f32 %v1704_v14, %v1646_v55  ;;  %v11018_v14 = vsub.f32 %v3735_v41, %v11004_v21  ;;  %v13730_v55 = vld [vmem:[#allocation48_spill] sm:$0xff]  ;;  %v11026_v54 = vand.u32 4294901760, %v3773_v49  ;;  %v1860_v41 = vadd.f32 %v10952_v52, %v1819_v46  ;;  %v13736_v52 = vld [vmem:[#allocation11_spill] sm:$0xff] }
 0x2b6   : > { %3702 = vmatpush.msrb.mxu1 %v10653_v58  ;;  %3761 = vmatpush.msrb.mxu2 %v13724_v16 }
 0x2b7   : > { %3864 = vmatpush.msrb.mxu3 %v13725_v39  ;;  %3667 = vmatpush.msrb.mxu0 %v10848_v51  ;;  %v2071_v0 = vpop.f32.mrf.mxu2  ;;  %v13729_v39 = vld [vmem:[#allocation91_spill] sm:$0xff]  ;;  %v2115_v51 = vpop.f32.mrf.mxu3  ;;  %v1905_v46 = vadd.f32 %v1904_v8, %v1860_v41 }
 0x2b8   : > { %3704 = vmatpush.msrb.mxu1 %v10677_v36  ;;  %3763 = vmatpush.msrb.mxu2 %v13726_v15 }
 0x2b9   : > { %v2013_v23 = vpop.f32.mrf.mxu1  ;;  %3870 = vmatpush.msrb.mxu3 %v13727_v56  ;;  %3671 = vmatpush.msrb.mxu0 %v10865_v38  ;;  %v13731_v56 = vld [vmem:[#allocation97_spill] sm:$0xff]  ;;  %v1750_v38 = vadd.f32 %v1749_v42, %v1705_v24  ;;  %v13734_v24 = vld [vmem:[#allocation10_spill] sm:$0xff]  ;;  %v11034_v42 = vand.u32 4294901760, %v11018_v14 }
 0x2ba   : > { %3706 = vmatpush.msrb.mxu1 %v10699_v18  ;;  %3765 = vmatpush.msrb.mxu2 %v13728_v9  ;;  %v2014_v8 = vadd.f32 %v2013_v23, %v1905_v46  ;;  %v13742_v23 = vld [vmem:[#allocation19_spill] sm:$0xff] }
 0x2bb   : > { %3876 = vmatpush.msrb.mxu3 %v13729_v39  ;;  %3675 = vmatpush.msrb.mxu0 %v10883_v1  ;;  %v1912_v39 = vpop.f32.mrf.mxu0  ;;  %v13733_v1 = vld [vmem:[#allocation55_spill] sm:$0xff] }
 0x2bc   : > { %3708 = vmatpush.msrb.mxu1 %v10718_v25  ;;  %3767 = vmatpush.msrb.mxu2 %v13730_v55  ;;  %v13735_v25 = vld [vmem:[#allocation16_spill] sm:$0xff]  ;;  %v13743_v46 = vld [vmem:[#allocation23_spill] sm:$0xff] }
 0x2bd   : > { %3882 = vmatpush.msrb.mxu3 %v13731_v56  ;;  %3677 = vmatmul.f32.vlgmr.msrb.gmra.mxu0 %v13704_v28  ;;  %v1823_v56 = vadd.f32 %v1822_v11, %v1750_v38  ;;  %v3781_v38 = vsub.f32 %v11018_v14, %v11034_v42  ;;  %v13739_v11 = vld [vmem:[#allocation18_spill] sm:$0xff] }
 0x2be   : > { %3884 = vmatmul.f32.vlgmr.msrb.gmra.mxu3 %v10966_v2  ;;  %3894 = vmatpush.msra.mxu0 %v13732_v17  ;;  %v13737_v17 = vld [vmem:[#allocation17_spill] sm:$0xff] }
 0x2bf   : > { %4070 = vmatpush.msra.mxu3 %v13695_v44  ;;  %3710 = vmatpush.msrb.mxu1 %v10744_v53  ;;  %v2076_v49 = vpop.f32.mrf.mxu2  ;;  %v13821_v53 = vld [vmem:[#allocation74_spill] sm:$0xff] }
 0x2c0   : > { %3769 = vmatpush.msrb.mxu2 %v13733_v1  ;;  %3897 = vmatpush.msra.mxu0 %v13734_v24  ;;  %v13738_v24 = vld [vmem:[#allocation13_spill] sm:$0xff] }
 0x2c1   : > { %v2017_v18 = vpop.f32.mrf.mxu1  ;;  %3775 = vmatmul.f32.vlgmr.msrb.gmra.mxu2 %v11026_v54  ;;  %4072 = vmatpush.msra.mxu3 %v13697_v43 }
 0x2c2   : > { %3999 = vmatpush.msra.mxu2 %v13735_v25  ;;  %3712 = vmatpush.msrb.mxu1 %v10778_v35  ;;  %v1864_v25 = vadd.f32 %v1863_v62, %v1823_v56  ;;  %v2121_v35 = vpop.f32.mrf.mxu3  ;;  %v11054_v62 = vand.u32 4294901760, %v3781_v38 }
 0x2c3   : > { %3900 = vmatpush.msra.mxu0 %v13736_v52  ;;  %4074 = vmatpush.msra.mxu3 %v13701_v10  ;;  %v2190_v41 = vpop.f32.mrf.mxu0 }
 0x2c4   : > { %4003 = vmatpush.msra.mxu2 %v13737_v17  ;;  %3714 = vmatpush.msrb.mxu1 %v10797_v20  ;;  %v13740_v17 = vld [vmem:[#allocation14_spill] sm:$0xff]  ;;  %v1913_v56 = vadd.f32 %v1912_v39, %v1864_v25  ;;  %v13745_v39 = vld [vmem:[#allocation28_spill] sm:$0xff]  ;;  %v13820_v20 = vld [vmem:[#allocation169_spill] sm:$0xff] }
 0x2c5   : > { %3903 = vmatpush.msra.mxu0 %v13738_v24  ;;  %4076 = vmatpush.msra.mxu3 %v13705_v6  ;;  %v13741_v24 = vld [vmem:[#allocation20_spill] sm:$0xff] }
 0x2c6   : > { %4007 = vmatpush.msra.mxu2 %v13739_v11  ;;  %3716 = vmatpush.msrb.mxu1 %v10822_v31  ;;  %v2018_v38 = vadd.f32 %v2017_v18, %v1913_v56  ;;  %v13746_v25 = vld [vmem:[#allocation24_spill] sm:$0xff]  ;;  %v13819_v31 = vld [vmem:[#allocation133_spill] sm:$0xff] }
 0x2c7   : > { %3681 = vmatmul.f32.gmra.mxu0 %v13715_v22  ;;  %3718 = vmatmul.f32.vlgmr.msrb.gmra.mxu1 %v13704_v28  ;;  %v2072_v28 = vadd.f32 %v2071_v0, %v2014_v8  ;;  %v2276_v11 = vpop.f32.mrf.mxu2  ;;  %v13747_v0 = vld [vmem:[#allocation32_spill] sm:$0xff] }
 0x2c8   : > { %3888 = vmatmul.f32.gmra.mxu3 %v11004_v21  ;;  %3906 = vmatpush.msra.mxu0 %v13740_v17  ;;  %v2077_v56 = vadd.f32 %v2076_v49, %v2018_v38  ;;  %v13752_v49 = vld [vmem:[#allocation39_spill] sm:$0xff]  ;;  %v13756_v38 = vld [vmem:[#allocation52_spill] sm:$0xff] }
 0x2c9   : > { %v2231_v52 = vpop.f32.mrf.mxu1  ;;  %3952 = vmatpush.msra.mxu1 %v13695_v44  ;;  %4011 = vmatpush.msra.mxu2 %v13741_v24  ;;  %v13744_v44 = vld [vmem:[#allocation21_spill] sm:$0xff]  ;;  %v2116_v17 = vadd.f32 %v2115_v51, %v2072_v28 }
 0x2ca   : > { %4078 = vmatpush.msra.mxu3 %v13707_v63  ;;  %3783 = vmatmul.f32.gmra.mxu2 %v11054_v62  ;;  %v2385_v8 = vpop.f32.mrf.mxu3  ;;  %v13751_v28 = vld [vmem:[#allocation37_spill] sm:$0xff] }
 0x2cb   : > { %3909 = vmatpush.msra.mxu0 %v13742_v23  ;;  %3954 = vmatpush.msra.mxu1 %v13697_v43  ;;  %v2194_v43 = vpop.f32.mrf.mxu0  ;;  %v2191_v18 = vadd.f32 %v2190_v41, %v2116_v17  ;;  %v13749_v23 = vld [vmem:[#allocation34_spill] sm:$0xff]  ;;  %v13753_v41 = vld [vmem:[#allocation41_spill] sm:$0xff] }
 0x2cc   : > { %4015 = vmatpush.msra.mxu2 %v13743_v46  ;;  %4080 = vmatpush.msra.mxu3 %v13710_v26 }
 0x2cd   : > { %3912 = vmatpush.msra.mxu0 %v13744_v44  ;;  %3956 = vmatpush.msra.mxu1 %v13701_v10  ;;  %v13748_v10 = vld [vmem:[#allocation29_spill] sm:$0xff]  ;;  %v2232_v51 = vadd.f32 %v2231_v52, %v2191_v18  ;;  %v13754_v52 = vld [vmem:[#allocation43_spill] sm:$0xff]  ;;  %v13760_v18 = vld [vmem:[#allocation60_spill] sm:$0xff] }
 0x2ce   : > { %4019 = vmatpush.msra.mxu2 %v13745_v39  ;;  %4082 = vmatpush.msra.mxu3 %v13713_v33  ;;  %v13755_v44 = vld [vmem:[#allocation49_spill] sm:$0xff] }
 0x2cf   : > { %3915 = vmatpush.msra.mxu0 %v13746_v25  ;;  %3958 = vmatpush.msra.mxu1 %v13705_v6  ;;  %v13750_v6 = vld [vmem:[#allocation33_spill] sm:$0xff]  ;;  %v2277_v46 = vadd.f32 %v2276_v11, %v2232_v51  ;;  %v13757_v25 = vld [vmem:[#allocation56_spill] sm:$0xff] }
 0x2d0   : > { %4023 = vmatpush.msra.mxu2 %v13747_v0  ;;  %4084 = vmatpush.msra.mxu3 %v13716_v13  ;;  %v13758_v0 = vld [vmem:[#allocation54_spill] sm:$0xff]  ;;  %v13764_v51 = vld [vmem:[#allocation45_spill] sm:$0xff] }
 0x2d1   : > { %3722 = vmatmul.f32.gmra.mxu1 %v13715_v22  ;;  %3918 = vmatpush.msra.mxu0 %v13748_v10  ;;  %v2235_v24 = vpop.f32.mrf.mxu1  ;;  %v2122_v22 = vadd.f32 %v2121_v35, %v2077_v56  ;;  %v2386_v11 = vadd.f32 %v2385_v8, %v2277_v46  ;;  %v13761_v56 = vld [vmem:[#allocation67_spill] sm:$0xff]  ;;  %v13768_v46 = vld [vmem:[#allocation53_spill] sm:$0xff] }
 0x2d2   : > { %3960 = vmatpush.msra.mxu1 %v13707_v63  ;;  %4027 = vmatpush.msra.mxu2 %v13749_v23  ;;  %v2284_v63 = vpop.f32.mrf.mxu2 }
 0x2d3   : > { %4086 = vmatpush.msra.mxu3 %v13718_v40  ;;  %3921 = vmatpush.msra.mxu0 %v13750_v6  ;;  %v2195_v35 = vadd.f32 %v2194_v43, %v2122_v22  ;;  %v13765_v22 = vld [vmem:[#allocation78_spill] sm:$0xff] }
 0x2d4   : > { %3962 = vmatpush.msra.mxu1 %v13710_v26  ;;  %4031 = vmatpush.msra.mxu2 %v13751_v28  ;;  %v2443_v26 = vpop.f32.mrf.mxu0 }
 0x2d5   : > { %4088 = vmatpush.msra.mxu3 %v13720_v34  ;;  %3924 = vmatpush.msra.mxu0 %v13752_v49  ;;  %v2236_v17 = vadd.f32 %v2235_v24, %v2195_v35  ;;  %v2444_v43 = vadd.f32 %v2443_v26, %v2386_v11  ;;  %v13762_v24 = vld [vmem:[#allocation66_spill] sm:$0xff]  ;;  %v13770_v35 = vld [vmem:[#allocation57_spill] sm:$0xff] }
 0x2d6   : > { %3964 = vmatpush.msra.mxu1 %v13713_v33  ;;  %4035 = vmatpush.msra.mxu2 %v13753_v41  ;;  %v2389_v33 = vpop.f32.mrf.mxu3  ;;  %v13766_v49 = vld [vmem:[#allocation46_spill] sm:$0xff]  ;;  %v13774_v11 = vld [vmem:[#allocation81_spill] sm:$0xff] }
 0x2d7   : > { %4090 = vmatpush.msra.mxu3 %v13722_v60  ;;  %3927 = vmatpush.msra.mxu0 %v13754_v52  ;;  %v2285_v8 = vadd.f32 %v2284_v63, %v2236_v17  ;;  %v13767_v41 = vld [vmem:[#allocation50_spill] sm:$0xff]  ;;  %v13775_v17 = vld [vmem:[#allocation68_spill] sm:$0xff] }
 0x2d8   : > { %3966 = vmatpush.msra.mxu1 %v13716_v13  ;;  %4039 = vmatpush.msra.mxu2 %v13755_v44  ;;  %v13759_v13 = vld [vmem:[#allocation64_spill] sm:$0xff] }
 0x2d9   : > { %4092 = vmatpush.msra.mxu3 %v13724_v16  ;;  %3930 = vmatpush.msra.mxu0 %v13756_v38  ;;  %v2487_v39 = vpop.f32.mrf.mxu1  ;;  %v2390_v6 = vadd.f32 %v2389_v33, %v2285_v8  ;;  %v13771_v38 = vld [vmem:[#allocation65_spill] sm:$0xff]  ;;  %v13781_v8 = vld [vmem:[#allocation79_spill] sm:$0xff] }
 0x2da   : > { %3968 = vmatpush.msra.mxu1 %v13718_v40  ;;  %4043 = vmatpush.msra.mxu2 %v13757_v25  ;;  %v2562_v40 = vpop.f32.mrf.mxu2  ;;  %v2488_v10 = vadd.f32 %v2487_v39, %v2444_v43  ;;  %v13777_v43 = vld [vmem:[#allocation87_spill] sm:$0xff] }
 0x2db   : > { %4094 = vmatpush.msra.mxu3 %v13726_v15  ;;  %3933 = vmatpush.msra.mxu0 %v13758_v0 }
 0x2dc   : > { %3970 = vmatpush.msra.mxu1 %v13720_v34  ;;  %4047 = vmatpush.msra.mxu2 %v13759_v13  ;;  %v13763_v34 = vld [vmem:[#allocation72_spill] sm:$0xff]  ;;  %v2563_v28 = vadd.f32 %v2562_v40, %v2488_v10  ;;  %v13779_v40 = vld [vmem:[#allocation75_spill] sm:$0xff] }
 0x2dd   : > { %4096 = vmatpush.msra.mxu3 %v13728_v9  ;;  %3936 = vmatpush.msra.mxu0 %v13760_v18  ;;  %v13778_v18 = vld [vmem:[#allocation73_spill] sm:$0xff]  ;;  %v13782_v10 = vld [vmem:[#allocation80_spill] sm:$0xff] }
 0x2de   : > { %3972 = vmatpush.msra.mxu1 %v13722_v60  ;;  %4051 = vmatpush.msra.mxu2 %v13761_v56  ;;  %v2448_v60 = vpop.f32.mrf.mxu0  ;;  %v2603_v23 = vpop.f32.mrf.mxu3  ;;  %v13780_v56 = vld [vmem:[#allocation92_spill] sm:$0xff] }
 0x2df   : > { %4098 = vmatpush.msra.mxu3 %v13730_v55  ;;  %3939 = vmatpush.msra.mxu0 %v13762_v24  ;;  %v2449_v63 = vadd.f32 %v2448_v60, %v2390_v6  ;;  %v2604_v52 = vadd.f32 %v2603_v23, %v2563_v28  ;;  %v13784_v23 = vld [vmem:[#allocation96_spill] sm:$0xff]  ;;  %v13786_v28 = vld [vmem:[#allocation85_spill] sm:$0xff] }
 0x2e0   : > { %3974 = vmatpush.msra.mxu1 %v13724_v16  ;;  %4055 = vmatpush.msra.mxu2 %v13763_v34  ;;  %v7482_v34 = vld [vmem:[%s8072_s28 + $0x20] sm:$0xff]  ;;  %v13785_v6 = vld [vmem:[#allocation84_spill] sm:$0xff] }
 0x2e1   : > { %4100 = vmatpush.msra.mxu3 %v13733_v1  ;;  %3942 = vmatmul.f32.vlgmr.msra.gmra.mxu0 %v10982_v37  ;;  %v2493_v16 = vpop.f32.mrf.mxu1 }
 0x2e2   : > { %4102 = vmatmul.f32.vlgmr.msra.gmra.mxu3 %v10966_v2  ;;  %4111 = vmatpush.msrb.mxu0 %v13764_v51  ;;  %v2494_v26 = vadd.f32 %v2493_v16, %v2449_v63  ;;  %v2566_v44 = vpop.f32.mrf.mxu2  ;;  %v13788_v16 = vld [vmem:[#allocation89_spill] sm:$0xff] }
 0x2e3   : > { %4324 = vmatpush.msrb.mxu3 %v13764_v51  ;;  %3976 = vmatpush.msra.mxu1 %v13726_v15  ;;  %v13769_v15 = vld [vmem:[#allocation59_spill] sm:$0xff] }
 0x2e4   : > { %4059 = vmatpush.msra.mxu2 %v13765_v22  ;;  %4113 = vmatpush.msrb.mxu0 %v13766_v49  ;;  %v2567_v39 = vadd.f32 %v2566_v44, %v2494_v26  ;;  %v13787_v22 = vld [vmem:[#allocation101_spill] sm:$0xff]  ;;  %v13790_v26 = vld [vmem:[#allocation90_spill] sm:$0xff] }
 0x2e5   : > { %4061 = vmatmul.f32.vlgmr.msra.gmra.mxu2 %v10966_v2  ;;  %4326 = vmatpush.msrb.mxu3 %v13766_v49  ;;  %v13792_v44 = vld [vmem:[#allocation94_spill] sm:$0xff] }
 0x2e6   : > { %4266 = vmatpush.msrb.mxu2 %v13767_v41  ;;  %3978 = vmatpush.msra.mxu1 %v13728_v9  ;;  %v7481_v9 = vld [vmem:[%s8072_s28 + $0x8] sm:$0xff]  ;;  %v2607_v25 = vpop.f32.mrf.mxu3 }
 0x2e7   : > { %4115 = vmatpush.msrb.mxu0 %v13768_v46  ;;  %4328 = vmatpush.msrb.mxu3 %v13768_v46  ;;  %v11125_v33 = vsub.f32 %v7481_v9, %v2604_v52  ;;  %v2608_v13 = vadd.f32 %v2607_v25, %v2567_v39  ;;  %v11163_v52 = vpop.f32.mrf.mxu0  ;;  %v13794_v9 = vld [vmem:[#allocation110_spill] sm:$0xff]  ;;  %v13795_v25 = vld [vmem:[#allocation99_spill] sm:$0xff] }
 0x2e8   : > { %4269 = vmatpush.msrb.mxu2 %v13769_v15  ;;  %3980 = vmatpush.msra.mxu1 %v13730_v55  ;;  %v13773_v55 = vld [vmem:[#allocation62_spill] sm:$0xff]  ;;  %v13791_v15 = vld [vmem:[#allocation105_spill] sm:$0xff] }
 0x2e9   : > { %4117 = vmatpush.msrb.mxu0 %v13770_v35  ;;  %4330 = vmatpush.msrb.mxu3 %v13770_v35  ;;  %13772 = vst [vmem:[#allocation3_spill] sm:$0xff] %v11125_v33  ;;  %v3733_v0 = vmul.f32 %v11125_v33, %v11125_v33  ;;  %v11148_v60 = vsub.f32 %v7482_v34, %v2608_v13  ;;  %v11171_v39 = vpop.f32.mrf.mxu1  ;;  %v13798_v13 = vld [vmem:[#allocation113_spill] sm:$0xff] }
 0x2ea   : > { %4272 = vmatpush.msrb.mxu2 %v13771_v38  ;;  %3982 = vmatpush.msra.mxu1 %v13733_v1  ;;  %v13776_v1 = vld [vmem:[#allocation70_spill] sm:$0xff]  ;;  %v13793_v38 = vld [vmem:[#allocation95_spill] sm:$0xff]  ;;  %v13817_v33 = vld [vmem:[#allocation165_spill] sm:$0xff] }
 0x2eb   : > { %3947 = vmatmul.f32.gmra.mxu0 %v11018_v14  ;;  %3986 = vmatmul.f32.vlgmr.msra.gmra.mxu1 %v10997_v30  ;;  %v11145_v24 = vand.u32 4294901760, %v3733_v0  ;;  %13783 = vst [vmem:[#allocation192_spill] sm:$0xff] %v11148_v60  ;;  %v3736_v41 = vmul.f32 %v11148_v60, %v11148_v60 }
 0x2ec   : > { %4106 = vmatmul.f32.gmra.mxu3 %v11004_v21  ;;  %4119 = vmatpush.msrb.mxu0 %v13773_v55 }
 0x2ed   : > { %4164 = vmatpush.msrb.mxu1 %v13774_v11  ;;  %4275 = vmatpush.msrb.mxu2 %v13775_v17  ;;  %v11159_v63 = vsub.f32 %v3733_v0, %v11145_v24  ;;  %v11178_v17 = vand.u32 4294901760, %v3736_v41  ;;  %v13797_v0 = vld [vmem:[#allocation100_spill] sm:$0xff] }
 0x2ee   : > { %4332 = vmatpush.msrb.mxu3 %v13773_v55  ;;  %4065 = vmatmul.f32.gmra.mxu2 %v11004_v21  ;;  %v2859_v60 = vpop.f32.mrf.mxu3 }
 0x2ef   : > { %4121 = vmatpush.msrb.mxu0 %v13776_v1  ;;  %4170 = vmatpush.msrb.mxu1 %v13777_v43  ;;  %13789 = vst [vmem:[#allocation4_spill] sm:$0xff] %v11159_v63  ;;  %v11176_v11 = vand.u32 4294901760, %v11159_v63  ;;  %v13799_v43 = vld [vmem:[#allocation103_spill] sm:$0xff]  ;;  %v11189_v34 = vsub.f32 %v3736_v41, %v11178_v17  ;;  %v13810_v41 = vld [vmem:[#allocation120_spill] sm:$0xff] }
 0x2f0   : > { %4278 = vmatpush.msrb.mxu2 %v13778_v18  ;;  %4334 = vmatpush.msrb.mxu3 %v13776_v1  ;;  %v13800_v18 = vld [vmem:[#allocation104_spill] sm:$0xff] }
 0x2f1   : > { %4123 = vmatpush.msrb.mxu0 %v13779_v40  ;;  %4176 = vmatpush.msrb.mxu1 %v13780_v56  ;;  %13796 = vst [vmem:[#allocation30_spill] sm:$0xff] %v11176_v11  ;;  %v13801_v56 = vld [vmem:[#allocation118_spill] sm:$0xff] }
 0x2f2   : > { %4281 = vmatpush.msrb.mxu2 %v13781_v8  ;;  %4336 = vmatpush.msrb.mxu3 %v13779_v40  ;;  %v13802_v8 = vld [vmem:[#allocation107_spill] sm:$0xff]  ;;  %13803 = vst [vmem:[#allocation202_spill] sm:$0xff] %v11189_v34 }
 0x2f3   : > { %4125 = vmatpush.msrb.mxu0 %v13782_v10  ;;  %4182 = vmatpush.msrb.mxu1 %v13784_v23  ;;  %v13804_v23 = vld [vmem:[#allocation109_spill] sm:$0xff] }
 0x2f4   : > { %4284 = vmatpush.msrb.mxu2 %v13785_v6  ;;  %4338 = vmatpush.msrb.mxu3 %v13782_v10  ;;  %v13805_v6 = vld [vmem:[#allocation121_spill] sm:$0xff] }
 0x2f5   : > { %3992 = vmatmul.f32.gmra.mxu1 %v11034_v42  ;;  %4127 = vmatpush.msrb.mxu0 %v13786_v28 }
 0x2f6   : > { %4188 = vmatpush.msrb.mxu1 %v13787_v22  ;;  %4287 = vmatpush.msrb.mxu2 %v13788_v16  ;;  %v4145_v22 = vsub.f32 %v11159_v63, %v11176_v11  ;;  %v13806_v16 = vld [vmem:[#allocation112_spill] sm:$0xff] }
 0x2f7   : > { %4340 = vmatpush.msrb.mxu3 %v13786_v28  ;;  %4129 = vmatpush.msrb.mxu0 %v13790_v26 }
 0x2f8   : > { %4194 = vmatpush.msrb.mxu1 %v13791_v15  ;;  %4290 = vmatpush.msrb.mxu2 %v13792_v44  ;;  %v2815_v15 = vpop.f32.mrf.mxu2  ;;  %v2656_v44 = vpop.f32.mrf.mxu0 }
 0x2f9   : > { %4342 = vmatpush.msrb.mxu3 %v13790_v26  ;;  %4131 = vmatpush.msrb.mxu0 %v13793_v38 }
 0x2fa   : > { %4200 = vmatpush.msrb.mxu1 %v13794_v9  ;;  %4293 = vmatpush.msrb.mxu2 %v13795_v25  ;;  %v13807_v9 = vld [vmem:[#allocation115_spill] sm:$0xff]  ;;  %v13808_v25 = vld [vmem:[#allocation125_spill] sm:$0xff] }
 0x2fb   : > { %4344 = vmatpush.msrb.mxu3 %v13793_v38  ;;  %4133 = vmatpush.msrb.mxu0 %v13797_v0 }
 0x2fc   : > { %4206 = vmatpush.msrb.mxu1 %v13798_v13  ;;  %4296 = vmatpush.msrb.mxu2 %v13799_v43  ;;  %v13809_v13 = vld [vmem:[#allocation117_spill] sm:$0xff]  ;;  %v13811_v43 = vld [vmem:[#allocation128_spill] sm:$0xff] }
 0x2fd   : > { %4346 = vmatpush.msrb.mxu3 %v13797_v0  ;;  %4135 = vmatpush.msrb.mxu0 %v13800_v18 }
 0x2fe   : > { %4212 = vmatpush.msrb.mxu1 %v13801_v56  ;;  %4299 = vmatpush.msrb.mxu2 %v13802_v8  ;;  %v11203_v56 = vand.u32 4294901760, %v4145_v22  ;;  %v11206_v8 = vand.u32 4294901760, %v11189_v34 }
 0x2ff   : > { %4348 = vmatpush.msrb.mxu3 %v13800_v18  ;;  %4137 = vmatpush.msrb.mxu0 %v13804_v23 }
 0x300   : > { %4218 = vmatpush.msrb.mxu1 %v13805_v6  ;;  %4302 = vmatpush.msrb.mxu2 %v13806_v16  ;;  %13812 = vst [vmem:[#allocation5_spill] sm:$0xff] %v11206_v8  ;;  %v2761_v6 = vpop.f32.mrf.mxu1  ;;  %v13813_v16 = vld [vmem:[#allocation122_spill] sm:$0xff]  ;;  %v4153_v22 = vsub.f32 %v11189_v34, %v11206_v8  ;;  %v2934_v36 = vpop.f32.mrf.mxu0 }
 0x301   : > { %4350 = vmatpush.msrb.mxu3 %v13804_v23  ;;  %4139 = vmatpush.msrb.mxu0 %v13807_v9 }
 0x302   : > { %4224 = vmatpush.msrb.mxu1 %v13808_v25  ;;  %4305 = vmatpush.msrb.mxu2 %v13809_v13  ;;  %v13814_v25 = vld [vmem:[#allocation61_spill] sm:$0xff]  ;;  %v13815_v13 = vld [vmem:[#allocation130_spill] sm:$0xff]  ;;  %v11225_v58 = vand.u32 4294901760, %v4153_v22  ;;  %v2758_v22 = vadd.f32 %v11171_v39, %v11163_v52 }
 0x303   : > { %4352 = vmatpush.msrb.mxu3 %v13807_v9  ;;  %4141 = vmatpush.msrb.mxu0 %v13810_v41  ;;  %v13836_v52 = vld [vmem:[#allocation98_spill] sm:$0xff] }
 0x304   : > { %4230 = vmatpush.msrb.mxu1 %v13811_v43  ;;  %4308 = vmatpush.msrb.mxu2 %v13813_v16  ;;  %v13816_v43 = vld [vmem:[#allocation126_spill] sm:$0xff]  ;;  %v13818_v16 = vld [vmem:[#allocation69_spill] sm:$0xff] }
 0x305   : > { %4354 = vmatpush.msrb.mxu3 %v13810_v41  ;;  %4147 = vmatmul.f32.vlgmr.msrb.gmra.mxu0 %v11203_v56  ;;  %v13837_v39 = vld [vmem:[#allocation194_spill] sm:$0xff] }
 0x306   : > { %4358 = vmatmul.f32.vlgmr.msrb.gmra.mxu3 %v11176_v11  ;;  %4371 = vmatpush.msra.mxu0 %v13814_v25  ;;  %v13822_v25 = vld [vmem:[#allocation147_spill] sm:$0xff] }
 0x307   : > { %4236 = vmatpush.msrb.mxu1 %v13815_v13  ;;  %4311 = vmatpush.msrb.mxu2 %v13816_v43  ;;  %v2820_v13 = vpop.f32.mrf.mxu2  ;;  %v13823_v43 = vld [vmem:[#allocation137_spill] sm:$0xff] }
 0x308   : > { %4536 = vmatpush.msra.mxu3 %v13817_v33  ;;  %4314 = vmatmul.f32.vlgmr.msrb.gmra.mxu2 %v11159_v63  ;;  %v13825_v33 = vld [vmem:[#allocation77_spill] sm:$0xff]  ;;  %v2938_v50 = vpop.f32.mrf.mxu0 }
 0x309   : > { %4375 = vmatpush.msra.mxu0 %v13818_v16  ;;  %4242 = vmatpush.msrb.mxu1 %v13819_v31  ;;  %v13827_v16 = vld [vmem:[#allocation138_spill] sm:$0xff] }
 0x30a   : > { %4542 = vmatpush.msra.mxu3 %v13820_v20  ;;  %4483 = vmatpush.msra.mxu2 %v13822_v25  ;;  %v2975_v20 = vpop.f32.mrf.mxu1  ;;  %v13828_v31 = vld [vmem:[#allocation82_spill] sm:$0xff] }
 0x30b   : > { %4379 = vmatpush.msra.mxu0 %v13821_v53  ;;  %4248 = vmatpush.msrb.mxu1 %v13823_v43  ;;  %v2865_v53 = vpop.f32.mrf.mxu3  ;;  %v13830_v43 = vld [vmem:[#allocation88_spill] sm:$0xff] }
 0x30c   : > { %4548 = vmatpush.msra.mxu3 %v13824_v45  ;;  %4485 = vmatpush.msra.mxu2 %v13826_v29  ;;  %v13829_v45 = vld [vmem:[#allocation178_spill] sm:$0xff] }
 0x30d   : > { %4383 = vmatpush.msra.mxu0 %v13825_v33  ;;  %4254 = vmatpush.msrb.mxu1 %v13827_v16  ;;  %v13831_v33 = vld [vmem:[#allocation184_spill] sm:$0xff]  ;;  %v13832_v16 = vld [vmem:[#allocation150_spill] sm:$0xff] }
 0x30e   : > { %4155 = vmatmul.f32.gmra.mxu0 %v11225_v58  ;;  %4256 = vmatmul.f32.vlgmr.msrb.gmra.mxu1 %v11145_v24 }
 0x30f   : > { %4364 = vmatmul.f32.gmra.mxu3 %v11206_v8  ;;  %4387 = vmatpush.msra.mxu0 %v13828_v31  ;;  %v13835_v31 = vld [vmem:[#allocation152_spill] sm:$0xff]  ;;  %v3020_v3 = vpop.f32.mrf.mxu2 }
 0x310   : > { %4442 = vmatpush.msra.mxu1 %v13764_v51  ;;  %4319 = vmatmul.f32.gmra.mxu2 %v11189_v34  ;;  %v13834_v51 = vld [vmem:[#allocation188_spill] sm:$0xff] }
 0x311   : > { %4554 = vmatpush.msra.mxu3 %v13829_v45  ;;  %4391 = vmatpush.msra.mxu0 %v13830_v43  ;;  %v2816_v45 = vadd.f32 %v2815_v15, %v2758_v22  ;;  %v13838_v43 = vld [vmem:[#allocation102_spill] sm:$0xff] }
 0x312   : > { %4444 = vmatpush.msra.mxu1 %v13766_v49  ;;  %4487 = vmatpush.msra.mxu2 %v13832_v16  ;;  %v2979_v49 = vpop.f32.mrf.mxu1 }
 0x313   : > { %4560 = vmatpush.msra.mxu3 %v13831_v33  ;;  %4395 = vmatpush.msra.mxu0 %v13833_v19  ;;  %v2762_v19 = vadd.f32 %v2761_v6, %v2656_v44  ;;  %v13840_v33 = vld [vmem:[#allocation155_spill] sm:$0xff]  ;;  %v2860_v15 = vadd.f32 %v2859_v60, %v2816_v45  ;;  %v3129_v22 = vpop.f32.mrf.mxu3  ;;  %v13846_v6 = vld [vmem:[#allocation161_spill] sm:$0xff]  ;;  %v3187_v60 = vpop.f32.mrf.mxu0 }
 0x314   : > { %4446 = vmatpush.msra.mxu1 %v13768_v46  ;;  %4489 = vmatpush.msra.mxu2 %v13835_v31  ;;  %v13839_v46 = vld [vmem:[#allocation197_spill] sm:$0xff]  ;;  %v13845_v44 = vld [vmem:[#allocation211_spill] sm:$0xff] }
 0x315   : > { %4566 = vmatpush.msra.mxu3 %v13834_v51  ;;  %4399 = vmatpush.msra.mxu0 %v13836_v52  ;;  %v13841_v51 = vld [vmem:[#allocation106_spill] sm:$0xff] }
 0x316   : > { %4448 = vmatpush.msra.mxu1 %v13770_v35  ;;  %4491 = vmatpush.msra.mxu2 %v13840_v33  ;;  %v13842_v35 = vld [vmem:[#allocation204_spill] sm:$0xff]  ;;  %v13843_v52 = vld [vmem:[#allocation158_spill] sm:$0xff] }
 0x317   : > { %4260 = vmatmul.f32.gmra.mxu1 %v11178_v17  ;;  %4572 = vmatpush.msra.mxu3 %v13837_v39  ;;  %v13844_v39 = vld [vmem:[#allocation111_spill] sm:$0xff]  ;;  %v3028_v45 = vpop.f32.mrf.mxu2 }
 0x318   : > { %4403 = vmatpush.msra.mxu0 %v13838_v43  ;;  %4450 = vmatpush.msra.mxu1 %v13773_v55  ;;  %v2821_v55 = vadd.f32 %v2820_v13, %v2762_v19  ;;  %v2935_v43 = vadd.f32 %v2934_v36, %v2860_v15  ;;  %v13851_v19 = vld [vmem:[#allocation220_spill] sm:$0xff] }
 0x319   : > { %4578 = vmatpush.msra.mxu3 %v13839_v46  ;;  %4493 = vmatpush.msra.mxu2 %v13843_v52  ;;  %v13847_v46 = vld [vmem:[#allocation114_spill] sm:$0xff] }
 0x31a   : > { %4407 = vmatpush.msra.mxu0 %v13841_v51  ;;  %4452 = vmatpush.msra.mxu1 %v13776_v1  ;;  %v13848_v1 = vld [vmem:[#allocation214_spill] sm:$0xff]  ;;  %v3231_v13 = vpop.f32.mrf.mxu1  ;;  %v2976_v36 = vadd.f32 %v2975_v20, %v2935_v43  ;;  %v13859_v43 = vld [vmem:[#allocation131_spill] sm:$0xff] }
 0x31b   : > { %4584 = vmatpush.msra.mxu3 %v13842_v35  ;;  %4495 = vmatpush.msra.mxu2 %v13846_v6  ;;  %v13849_v51 = vld [vmem:[#allocation162_spill] sm:$0xff]  ;;  %v13850_v35 = vld [vmem:[#allocation119_spill] sm:$0xff]  ;;  %v3133_v15 = vpop.f32.mrf.mxu3  ;;  %v3192_v20 = vpop.f32.mrf.mxu0 }
 0x31c   : > { %4411 = vmatpush.msra.mxu0 %v13844_v39  ;;  %4454 = vmatpush.msra.mxu1 %v13779_v40  ;;  %v2866_v40 = vadd.f32 %v2865_v53, %v2821_v55  ;;  %v13852_v39 = vld [vmem:[#allocation167_spill] sm:$0xff]  ;;  %v13858_v55 = vld [vmem:[#allocation174_spill] sm:$0xff] }
 0x31d   : > { %4590 = vmatpush.msra.mxu3 %v13845_v44  ;;  %4497 = vmatpush.msra.mxu2 %v13849_v51  ;;  %v13853_v44 = vld [vmem:[#allocation123_spill] sm:$0xff] }
 0x31e   : > { %4415 = vmatpush.msra.mxu0 %v13847_v46  ;;  %4456 = vmatpush.msra.mxu1 %v13782_v10  ;;  %v13854_v10 = vld [vmem:[#allocation229_spill] sm:$0xff]  ;;  %v13855_v46 = vld [vmem:[#allocation171_spill] sm:$0xff] }
 0x31f   : > { %4596 = vmatpush.msra.mxu3 %v13848_v1  ;;  %4499 = vmatpush.msra.mxu2 %v13852_v39  ;;  %v13856_v1 = vld [vmem:[#allocation129_spill] sm:$0xff]  ;;  %v13857_v53 = vld [vmem:[#allocation235_spill] sm:$0xff] }
 0x320   : > { %4419 = vmatpush.msra.mxu0 %v13850_v35  ;;  %4458 = vmatpush.msra.mxu1 %v13786_v28  ;;  %v2939_v28 = vadd.f32 %v2938_v50, %v2866_v40  ;;  %v3021_v35 = vadd.f32 %v3020_v3, %v2976_v36  ;;  %v13863_v40 = vld [vmem:[#allocation246_spill] sm:$0xff]  ;;  %v13864_v36 = vld [vmem:[#allocation151_spill] sm:$0xff] }
 0x321   : > { %4602 = vmatpush.msra.mxu3 %v13851_v19  ;;  %4501 = vmatpush.msra.mxu2 %v13855_v46  ;;  %v3306_v19 = vpop.f32.mrf.mxu2 }
 0x322   : > { %4423 = vmatpush.msra.mxu0 %v13853_v44  ;;  %4460 = vmatpush.msra.mxu1 %v13790_v26  ;;  %v13860_v26 = vld [vmem:[#allocation240_spill] sm:$0xff]  ;;  %v13861_v44 = vld [vmem:[#allocation149_spill] sm:$0xff]  ;;  %v2980_v50 = vadd.f32 %v2979_v49, %v2939_v28  ;;  %v3130_v3 = vadd.f32 %v3129_v22, %v3021_v35  ;;  %v13867_v49 = vld [vmem:[#allocation195_spill] sm:$0xff] }
 0x323   : > { %4608 = vmatpush.msra.mxu3 %v13854_v10  ;;  %4503 = vmatpush.msra.mxu2 %v13858_v55  ;;  %v13865_v10 = vld [vmem:[#allocation185_spill] sm:$0xff]  ;;  %v3392_v28 = vpop.f32.mrf.mxu0 }
 0x324   : > { %4427 = vmatpush.msra.mxu0 %v13856_v1  ;;  %4462 = vmatpush.msra.mxu1 %v13793_v38  ;;  %v13862_v38 = vld [vmem:[#allocation180_spill] sm:$0xff]  ;;  %v3188_v1 = vadd.f32 %v3187_v60, %v3130_v3  ;;  %v13868_v35 = vld [vmem:[#allocation157_spill] sm:$0xff]  ;;  %v13870_v60 = vld [vmem:[#allocation199_spill] sm:$0xff] }
 0x325   : > { %4614 = vmatpush.msra.mxu3 %v13857_v53  ;;  %4505 = vmatpush.msra.mxu2 %v13862_v38  ;;  %v3347_v53 = vpop.f32.mrf.mxu3  ;;  %v13875_v3 = vld [vmem:[#allocation170_spill] sm:$0xff] }
 0x326   : > { %4431 = vmatpush.msra.mxu0 %v13859_v43  ;;  %4464 = vmatpush.msra.mxu1 %v13797_v0  ;;  %v3237_v0 = vpop.f32.mrf.mxu1  ;;  %v13866_v43 = vld [vmem:[#allocation153_spill] sm:$0xff]  ;;  %v3232_v22 = vadd.f32 %v3231_v13, %v3188_v1 }
 0x327   : > { %4433 = vmatmul.f32.vlgmr.msra.gmra.mxu0 %v11145_v24  ;;  %4620 = vmatpush.msra.mxu3 %v13860_v26  ;;  %v13871_v26 = vld [vmem:[#allocation163_spill] sm:$0xff] }
 0x328   : > { %4638 = vmatpush.msrb.mxu0 %v13861_v44  ;;  %4466 = vmatpush.msra.mxu1 %v13800_v18  ;;  %v3029_v18 = vadd.f32 %v3028_v45, %v2980_v50  ;;  %v3307_v45 = vadd.f32 %v3306_v19, %v3232_v22  ;;  %v13872_v44 = vld [vmem:[#allocation208_spill] sm:$0xff]  ;;  %v13873_v50 = vld [vmem:[#allocation166_spill] sm:$0xff]  ;;  %v13879_v22 = vld [vmem:[#allocation179_spill] sm:$0xff] }
 0x329   : > { %4626 = vmatpush.msra.mxu3 %v13863_v40  ;;  %4507 = vmatpush.msra.mxu2 %v13865_v10  ;;  %v3310_v13 = vpop.f32.mrf.mxu2 }
 0x32a   : > { %4641 = vmatpush.msrb.mxu0 %v13864_v36  ;;  %4468 = vmatpush.msra.mxu1 %v13804_v23  ;;  %v13869_v23 = vld [vmem:[#allocation160_spill] sm:$0xff]  ;;  %v3348_v19 = vadd.f32 %v3347_v53, %v3307_v45  ;;  %v13883_v45 = vld [vmem:[#allocation189_spill] sm:$0xff] }
 0x32b   : > { %4814 = vmatpush.msrb.mxu3 %v13822_v25  ;;  %4509 = vmatpush.msra.mxu2 %v13867_v49  ;;  %v13876_v36 = vld [vmem:[#allocation156_spill] sm:$0xff] }
 0x32c   : > { %4644 = vmatpush.msrb.mxu0 %v13866_v43  ;;  %4470 = vmatpush.msra.mxu1 %v13807_v9  ;;  %v3134_v9 = vadd.f32 %v3133_v15, %v3029_v18  ;;  %v13874_v15 = vld [vmem:[#allocation154_spill] sm:$0xff]  ;;  %v3393_v1 = vadd.f32 %v3392_v28, %v3348_v19  ;;  %v3400_v43 = vpop.f32.mrf.mxu0  ;;  %v13877_v18 = vld [vmem:[#allocation175_spill] sm:$0xff]  ;;  %v13881_v28 = vld [vmem:[#allocation181_spill] sm:$0xff] }
 0x32d   : > { %4816 = vmatpush.msrb.mxu3 %v13826_v29  ;;  %4511 = vmatpush.msra.mxu2 %v13870_v60  ;;  %v3351_v40 = vpop.f32.mrf.mxu3  ;;  %v13888_v19 = vld [vmem:[#allocation177_spill] sm:$0xff] }
 0x32e   : > { %4647 = vmatpush.msrb.mxu0 %v13868_v35  ;;  %4472 = vmatpush.msra.mxu1 %v13810_v41  ;;  %v3501_v41 = vpop.f32.mrf.mxu1  ;;  %v13882_v35 = vld [vmem:[#allocation168_spill] sm:$0xff] }
 0x32f   : > { %4437 = vmatmul.f32.gmra.mxu0 %v11178_v17  ;;  %4474 = vmatmul.f32.vlgmr.msra.gmra.mxu1 %v11145_v24 }
 0x330   : > { %4650 = vmatpush.msrb.mxu0 %v13869_v23  ;;  %4696 = vmatpush.msrb.mxu1 %v13822_v25  ;;  %v3193_v25 = vadd.f32 %v3192_v20, %v3134_v9  ;;  %v3502_v20 = vadd.f32 %v3501_v41, %v3393_v1  ;;  %v13891_v1 = vld [vmem:[#allocation218_spill] sm:$0xff] }
 0x331   : > { %4818 = vmatpush.msrb.mxu3 %v13832_v16  ;;  %4513 = vmatpush.msra.mxu2 %v13872_v44  ;;  %v3559_v53 = vpop.f32.mrf.mxu2 }
 0x332   : > { %4653 = vmatpush.msrb.mxu0 %v13871_v26  ;;  %4698 = vmatpush.msrb.mxu1 %v13826_v29  ;;  %v3238_v29 = vadd.f32 %v3237_v0, %v3193_v25  ;;  %v13880_v0 = vld [vmem:[#allocation164_spill] sm:$0xff]  ;;  %v3560_v23 = vadd.f32 %v3559_v53, %v3502_v20  ;;  %v13894_v53 = vld [vmem:[#allocation190_spill] sm:$0xff] }
 0x333   : > { %4820 = vmatpush.msrb.mxu3 %v13835_v31  ;;  %4743 = vmatpush.msrb.mxu2 %v13874_v15  ;;  %v13885_v26 = vld [vmem:[#allocation196_spill] sm:$0xff]  ;;  %v13887_v15 = vld [vmem:[#allocation205_spill] sm:$0xff] }
 0x334   : > { %4656 = vmatpush.msrb.mxu0 %v13873_v50  ;;  %4700 = vmatpush.msrb.mxu1 %v13832_v16  ;;  %v13878_v16 = vld [vmem:[#allocation159_spill] sm:$0xff]  ;;  %v13886_v50 = vld [vmem:[#allocation176_spill] sm:$0xff] }
 0x335   : > { %4822 = vmatpush.msrb.mxu3 %v13840_v33  ;;  %4747 = vmatpush.msrb.mxu2 %v13876_v36  ;;  %v3603_v9 = vpop.f32.mrf.mxu3  ;;  %v13890_v36 = vld [vmem:[#allocation186_spill] sm:$0xff] }
 0x336   : > { %4659 = vmatpush.msrb.mxu0 %v13875_v3  ;;  %4702 = vmatpush.msrb.mxu1 %v13835_v31  ;;  %v3311_v31 = vadd.f32 %v3310_v13, %v3238_v29  ;;  %v13884_v13 = vld [vmem:[#allocation172_spill] sm:$0xff]  ;;  %v3604_v25 = vadd.f32 %v3603_v9, %v3560_v23  ;;  %v13899_v23 = vld [vmem:[#allocation207_spill] sm:$0xff] }
 0x337   : > { %4478 = vmatmul.f32.gmra.mxu1 %v11178_v17  ;;  %4824 = vmatpush.msrb.mxu3 %v13843_v52  ;;  %v13889_v3 = vld [vmem:[#allocation212_spill] sm:$0xff] }
 0x338   : > { %4662 = vmatpush.msrb.mxu0 %v13877_v18  ;;  %4704 = vmatpush.msrb.mxu1 %v13840_v33  ;;  %v3505_v33 = vpop.f32.mrf.mxu1  ;;  %v13892_v18 = vld [vmem:[#allocation183_spill] sm:$0xff] }
 0x339   : > { %4751 = vmatpush.msrb.mxu2 %v13878_v16  ;;  %4826 = vmatpush.msrb.mxu3 %v13846_v6 }
 0x33a   : > { %4665 = vmatpush.msrb.mxu0 %v13879_v22  ;;  %4706 = vmatpush.msrb.mxu1 %v13843_v52  ;;  %v3352_v52 = vadd.f32 %v3351_v40, %v3311_v31  ;;  %v3564_v40 = vpop.f32.mrf.mxu2  ;;  %v13895_v22 = vld [vmem:[#allocation187_spill] sm:$0xff] }
 0x33b   : > { %4755 = vmatpush.msrb.mxu2 %v13880_v0  ;;  %4828 = vmatpush.msrb.mxu3 %v13849_v51  ;;  %v13896_v0 = vld [vmem:[#allocation191_spill] sm:$0xff] }
 0x33c   : > { %4668 = vmatpush.msrb.mxu0 %v13881_v28  ;;  %4708 = vmatpush.msrb.mxu1 %v13846_v6  ;;  %v3678_v6 = vpop.f32.mrf.mxu0  ;;  %v3401_v41 = vadd.f32 %v3400_v43, %v3352_v52  ;;  %v13900_v52 = vld [vmem:[#allocation217_spill] sm:$0xff] }
 0x33d   : > { %4759 = vmatpush.msrb.mxu2 %v13882_v35  ;;  %4830 = vmatpush.msrb.mxu3 %v13852_v39  ;;  %v3609_v16 = vpop.f32.mrf.mxu3  ;;  %v13898_v35 = vld [vmem:[#allocation200_spill] sm:$0xff] }
 0x33e   : > { %4671 = vmatpush.msrb.mxu0 %v13883_v45  ;;  %4710 = vmatpush.msrb.mxu1 %v13849_v51  ;;  %v3506_v51 = vadd.f32 %v3505_v33, %v3401_v41  ;;  %v13897_v33 = vld [vmem:[#allocation201_spill] sm:$0xff]  ;;  %v13903_v41 = vld [vmem:[#allocation223_spill] sm:$0xff] }
 0x33f   : > { %4763 = vmatpush.msrb.mxu2 %v13884_v13  ;;  %4832 = vmatpush.msrb.mxu3 %v13855_v46 }
 0x340   : > { %4674 = vmatpush.msrb.mxu0 %v13885_v26  ;;  %4712 = vmatpush.msrb.mxu1 %v13852_v39  ;;  %v3679_v39 = vadd.f32 %v3678_v6, %v3604_v25  ;;  %v3565_v43 = vadd.f32 %v3564_v40, %v3506_v51  ;;  %v13902_v26 = vld [vmem:[#allocation206_spill] sm:$0xff]  ;;  %v13906_v51 = vld [vmem:[#allocation228_spill] sm:$0xff] }
 0x341   : > { %4767 = vmatpush.msrb.mxu2 %v13886_v50  ;;  %4834 = vmatpush.msrb.mxu3 %v13858_v55  ;;  %v7484_v50 = vld [vmem:[%s8072_s28 + $0x28] sm:$0xff] }
 0x342   : > { %4677 = vmatpush.msrb.mxu0 %v13887_v15  ;;  %4714 = vmatpush.msrb.mxu1 %v13855_v46  ;;  %v3610_v28 = vadd.f32 %v3609_v16, %v3565_v43  ;;  %v13913_v43 = vld [vmem:[#allocation238_spill] sm:$0xff]  ;;  %v13914_v16 = vld [vmem:[#allocation253_spill] sm:$0xff] }
 0x343   : > { %4771 = vmatpush.msrb.mxu2 %v13888_v19  ;;  %4836 = vmatpush.msrb.mxu3 %v13862_v38  ;;  %v13907_v19 = vld [vmem:[#allocation239_spill] sm:$0xff] }
 0x344   : > { %4680 = vmatpush.msrb.mxu0 %v13889_v3  ;;  %4716 = vmatpush.msrb.mxu1 %v13858_v55  ;;  %v3719_v29 = vpop.f32.mrf.mxu1  ;;  %v7483_v55 = vld [vmem:[%s8072_s28 + $0x10] sm:$0xff]  ;;  %v13908_v3 = vld [vmem:[#allocation215_spill] sm:$0xff] }
 0x345   : > { %4775 = vmatpush.msrb.mxu2 %v13890_v36  ;;  %v3720_v46 = vadd.f32 %v3719_v29, %v3679_v39  ;;  %4838 = vmatpush.msrb.mxu3 %v13865_v10  ;;  %v13909_v39 = vld [vmem:[#allocation234_spill] sm:$0xff]  ;;  %v13910_v29 = vld [vmem:[#allocation244_spill] sm:$0xff] }
 0x346   : > { %4683 = vmatpush.msrb.mxu0 %v13891_v1  ;;  %4718 = vmatpush.msrb.mxu1 %v13862_v38  ;;  %v3682_v38 = vpop.f32.mrf.mxu0  ;;  %v13911_v1 = vld [vmem:[#allocation222_spill] sm:$0xff] }
 0x347   : > { %v11350_v20 = vsub.f32 %v7483_v55, %v3720_v46  ;;  %4779 = vmatpush.msrb.mxu2 %v13894_v53  ;;  %4840 = vmatpush.msrb.mxu3 %v13867_v49  ;;  %v13915_v53 = vld [vmem:[#allocation231_spill] sm:$0xff] }
 0x348   : > { %4855 = vmatpush.msra.mxu0 %v13892_v18  ;;  %4720 = vmatpush.msrb.mxu1 %v13865_v10 }
 0x349   : > { %13893 = vst [vmem:[#allocation35_spill] sm:$0xff] %v11350_v20  ;;  %v3734_v31 = vmul.f32 %v11350_v20, %v11350_v20  ;;  %4783 = vmatpush.msrb.mxu2 %v13896_v0  ;;  %4842 = vmatpush.msrb.mxu3 %v13870_v60  ;;  %v14047_v20 = vld [vmem:[#allocation393_spill] sm:$0xff] }
 0x34a   : > { %4857 = vmatpush.msra.mxu0 %v13895_v22  ;;  %4722 = vmatpush.msrb.mxu1 %v13867_v49  ;;  %v3683_v49 = vadd.f32 %v3682_v38, %v3610_v28  ;;  %v13916_v38 = vld [vmem:[#allocation243_spill] sm:$0xff]  ;;  %v13918_v28 = vld [vmem:[#allocation249_spill] sm:$0xff] }
 0x34b   : > { %v11362_v10 = vand.u32 4294901760, %v3734_v31  ;;  %4787 = vmatpush.msrb.mxu2 %v13898_v35  ;;  %4844 = vmatpush.msrb.mxu3 %v13872_v44  ;;  %v13919_v35 = vld [vmem:[#allocation261_spill] sm:$0xff] }
 0x34c   : > { %4859 = vmatpush.msra.mxu0 %v13897_v33  ;;  %4724 = vmatpush.msrb.mxu1 %v13870_v60  ;;  %v13901_v60 = vld [vmem:[#allocation225_spill] sm:$0xff] }
 0x34d   : > { %v11369_v9 = vsub.f32 %v3734_v31, %v11362_v10  ;;  %4628 = vmatmul.f32.vlgmr.msra.gmra.mxu3 %v11362_v10  ;;  %4791 = vmatpush.msrb.mxu2 %v13902_v26  ;;  %v13917_v31 = vld [vmem:[#allocation257_spill] sm:$0xff] }
 0x34e   : > { %4861 = vmatpush.msra.mxu0 %v13899_v23  ;;  %4726 = vmatpush.msrb.mxu1 %v13872_v44  ;;  %v3723_v45 = vpop.f32.mrf.mxu1  ;;  %v13904_v44 = vld [vmem:[#allocation230_spill] sm:$0xff] }
 0x34f   : > { %v3724_v13 = vadd.f32 %v3723_v45, %v3683_v49  ;;  %5068 = vmatpush.msra.mxu3 %v13892_v18  ;;  %v11377_v6 = vand.u32 4294901760, %v11369_v9  ;;  %4686 = vmatmul.f32.vlgmr.msrb.gmra.mxu0 %v11369_v9  ;;  %v13920_v49 = vld [vmem:[#allocation193_spill] sm:$0xff]  ;;  %v13921_v45 = vld [vmem:[#allocation252_spill] sm:$0xff] }
 0x350   : > { %4863 = vmatpush.msra.mxu0 %v13900_v52  ;;  %4908 = vmatpush.msra.mxu1 %v13901_v60  ;;  %v13922_v60 = vld [vmem:[#allocation265_spill] sm:$0xff] }
 0x351   : > { %v11382_v25 = vsub.f32 %v7484_v50, %v3724_v13  ;;  %5070 = vmatpush.msra.mxu3 %v13895_v22  ;;  %v4517_v15 = vsub.f32 %v11369_v9, %v11377_v6  ;;  %4795 = vmatpush.msrb.mxu2 %v13908_v3  ;;  %v13923_v13 = vld [vmem:[#allocation198_spill] sm:$0xff]  ;;  %v13925_v50 = vld [vmem:[#allocation269_spill] sm:$0xff] }
 0x352   : > { %4865 = vmatpush.msra.mxu0 %v13903_v41  ;;  %4914 = vmatpush.msra.mxu1 %v13904_v44  ;;  %v13924_v44 = vld [vmem:[#allocation256_spill] sm:$0xff] }
 0x353   : > { %13905 = vst [vmem:[#allocation247_spill] sm:$0xff] %v11382_v25  ;;  %v3737_v40 = vmul.f32 %v11382_v25, %v11382_v25  ;;  %4730 = vmatmul.f32.vlgmr.msrb.gmra.mxu1 %v11377_v6  ;;  %5072 = vmatpush.msra.mxu3 %v13897_v33  ;;  %v11400_v46 = vand.u32 4294901760, %v4517_v15  ;;  %v13926_v15 = vld [vmem:[#allocation260_spill] sm:$0xff]  ;;  %v14046_v25 = vld [vmem:[#allocation381_spill] sm:$0xff] }
 0x354   : > { %4867 = vmatpush.msra.mxu0 %v13906_v51  ;;  %4920 = vmatpush.msra.mxu1 %v13907_v19  ;;  %v13927_v19 = vld [vmem:[#allocation272_spill] sm:$0xff] }
 0x355   : > { %v11396_v36 = vand.u32 4294901760, %v3737_v40  ;;  %4799 = vmatpush.msrb.mxu2 %v13911_v1  ;;  %13912 = vst [vmem:[#allocation182_spill] sm:$0xff] %v11400_v46  ;;  %5074 = vmatpush.msra.mxu3 %v13899_v23  ;;  %v13930_v1 = vld [vmem:[#allocation275_spill] sm:$0xff] }
 0x356   : > { %4869 = vmatpush.msra.mxu0 %v13909_v39  ;;  %4926 = vmatpush.msra.mxu1 %v13910_v29  ;;  %v13929_v29 = vld [vmem:[#allocation264_spill] sm:$0xff] }
 0x357   : > { %v11405_v55 = vsub.f32 %v3737_v40, %v11396_v36  ;;  %4803 = vmatpush.msrb.mxu2 %v13915_v53  ;;  %4632 = vmatmul.f32.gmra.mxu3 %v11396_v36  ;;  %v13928_v40 = vld [vmem:[#allocation213_spill] sm:$0xff]  ;;  %v13932_v53 = vld [vmem:[#allocation268_spill] sm:$0xff] }
 0x358   : > { %4871 = vmatpush.msra.mxu0 %v13913_v43  ;;  %4932 = vmatpush.msra.mxu1 %v13914_v16  ;;  %v13931_v16 = vld [vmem:[#allocation216_spill] sm:$0xff] }
 0x359   : > { %4519 = vmatmul.f32.vlgmr.msra.gmra.mxu2 %v11400_v46  ;;  %v11414_v0 = vand.u32 4294901760, %v11405_v55  ;;  %5076 = vmatpush.msra.mxu3 %v13900_v52 }
 0x35a   : > { %4873 = vmatpush.msra.mxu0 %v13916_v38  ;;  %4938 = vmatpush.msra.mxu1 %v13917_v31  ;;  %v13933_v31 = vld [vmem:[#allocation277_spill] sm:$0xff] }
 0x35b   : > { %5010 = vmatpush.msra.mxu2 %v13920_v49  ;;  %4691 = vmatmul.f32.gmra.mxu0 %v11405_v55  ;;  %v4525_v26 = vsub.f32 %v11405_v55, %v11414_v0  ;;  %v13935_v49 = vld [vmem:[#allocation279_spill] sm:$0xff] }
 0x35c   : > { %4875 = vmatpush.msra.mxu0 %v13918_v28  ;;  %4944 = vmatpush.msra.mxu1 %v13919_v35  ;;  %v13934_v35 = vld [vmem:[#allocation203_spill] sm:$0xff] }
 0x35d   : > { %5013 = vmatpush.msra.mxu2 %v13923_v13  ;;  %5078 = vmatpush.msra.mxu3 %v13903_v41  ;;  %v11434_v3 = vand.u32 4294901760, %v4525_v26  ;;  %v13937_v13 = vld [vmem:[#allocation227_spill] sm:$0xff]  ;;  %v13938_v26 = vld [vmem:[#allocation280_spill] sm:$0xff] }
 0x35e   : > { %4877 = vmatpush.msra.mxu0 %v13921_v45  ;;  %4950 = vmatpush.msra.mxu1 %v13922_v60  ;;  %v13936_v60 = vld [vmem:[#allocation209_spill] sm:$0xff] }
 0x35f   : > { %4736 = vmatmul.f32.gmra.mxu1 %v11414_v0  ;;  %5016 = vmatpush.msra.mxu2 %v13928_v40  ;;  %v13941_v40 = vld [vmem:[#allocation281_spill] sm:$0xff] }
 0x360   : > { %4879 = vmatpush.msra.mxu0 %v13924_v44  ;;  %4956 = vmatpush.msra.mxu1 %v13925_v50  ;;  %v13939_v50 = vld [vmem:[#allocation221_spill] sm:$0xff] }
 0x361   : > { %5080 = vmatpush.msra.mxu3 %v13906_v51  ;;  %5019 = vmatpush.msra.mxu2 %v13931_v16  ;;  %v13943_v16 = vld [vmem:[#allocation282_spill] sm:$0xff] }
 0x362   : > { %4881 = vmatpush.msra.mxu0 %v13926_v15  ;;  %4962 = vmatpush.msra.mxu1 %v13927_v19  ;;  %v13940_v19 = vld [vmem:[#allocation233_spill] sm:$0xff] }
 0x363   : > { %5082 = vmatpush.msra.mxu3 %v13909_v39  ;;  %4527 = vmatmul.f32.gmra.mxu2 %v11434_v3 }
 0x364   : > { %4883 = vmatpush.msra.mxu0 %v13929_v29  ;;  %4968 = vmatpush.msra.mxu1 %v13930_v1  ;;  %v13942_v1 = vld [vmem:[#allocation226_spill] sm:$0xff] }
 0x365   : > { %4846 = vmatmul.f32.vlgmr.msrb.gmra.mxu3 %v11362_v10  ;;  %5022 = vmatpush.msra.mxu2 %v13937_v13  ;;  %v13948_v13 = vld [vmem:[#allocation248_spill] sm:$0xff] }
 0x366   : > { %4885 = vmatpush.msra.mxu0 %v13932_v53  ;;  %4974 = vmatpush.msra.mxu1 %v13933_v31  ;;  %v13944_v31 = vld [vmem:[#allocation237_spill] sm:$0xff] }
 0x367   : > { %5084 = vmatpush.msra.mxu3 %v13913_v43  ;;  %5025 = vmatpush.msra.mxu2 %v13940_v19  ;;  %v13953_v19 = vld [vmem:[#allocation254_spill] sm:$0xff] }
 0x368   : > { %5115 = vmatpush.msrb.mxu0 %v13934_v35  ;;  %4980 = vmatpush.msra.mxu1 %v13935_v49  ;;  %v13945_v35 = vld [vmem:[#allocation236_spill] sm:$0xff]  ;;  %v13946_v49 = vld [vmem:[#allocation242_spill] sm:$0xff] }
 0x369   : > { %4891 = vmatmul.f32.vlgmr.msra.gmra.mxu0 %v11026_v54  ;;  %5086 = vmatpush.msra.mxu3 %v13916_v38 }
 0x36a   : > { %5119 = vmatpush.msrb.mxu0 %v13936_v60  ;;  %4986 = vmatpush.msra.mxu1 %v13938_v26  ;;  %v13947_v60 = vld [vmem:[#allocation241_spill] sm:$0xff] }
 0x36b   : > { %5028 = vmatpush.msra.mxu2 %v13944_v31  ;;  %5088 = vmatpush.msra.mxu3 %v13918_v28  ;;  %v13949_v26 = vld [vmem:[#allocation245_spill] sm:$0xff]  ;;  %v13960_v31 = vld [vmem:[#allocation267_spill] sm:$0xff] }
 0x36c   : > { %5123 = vmatpush.msrb.mxu0 %v13939_v50  ;;  %4992 = vmatpush.msra.mxu1 %v13941_v40  ;;  %v13951_v50 = vld [vmem:[#allocation250_spill] sm:$0xff] }
 0x36d   : > { %5031 = vmatpush.msra.mxu2 %v13946_v49  ;;  %5090 = vmatpush.msra.mxu3 %v13921_v45  ;;  %v13955_v40 = vld [vmem:[#allocation258_spill] sm:$0xff]  ;;  %v13963_v49 = vld [vmem:[#allocation271_spill] sm:$0xff] }
 0x36e   : > { %5127 = vmatpush.msrb.mxu0 %v13942_v1  ;;  %4998 = vmatpush.msra.mxu1 %v13943_v16  ;;  %v13956_v1 = vld [vmem:[#allocation301_spill] sm:$0xff]  ;;  %v13958_v16 = vld [vmem:[#allocation262_spill] sm:$0xff] }
 0x36f   : > { %5000 = vmatmul.f32.vlgmr.msra.gmra.mxu1 %v10966_v2  ;;  %4805 = vmatmul.f32.vlgmr.msrb.gmra.mxu2 %v11362_v10 }
 0x370   : > { %5131 = vmatpush.msrb.mxu0 %v13945_v35  ;;  %5186 = vmatpush.msrb.mxu1 %v13892_v18  ;;  %v13950_v18 = vld [vmem:[#allocation251_spill] sm:$0xff]  ;;  %v13961_v35 = vld [vmem:[#allocation266_spill] sm:$0xff] }
 0x371   : > { %4850 = vmatmul.f32.gmra.mxu3 %v11396_v36  ;;  %5034 = vmatpush.msra.mxu2 %v13948_v13  ;;  %v13965_v13 = vld [vmem:[#allocation311_spill] sm:$0xff] }
 0x372   : > { %5135 = vmatpush.msrb.mxu0 %v13947_v60  ;;  %5188 = vmatpush.msrb.mxu1 %v13895_v22  ;;  %v13952_v22 = vld [vmem:[#allocation255_spill] sm:$0xff]  ;;  %v13964_v60 = vld [vmem:[#allocation270_spill] sm:$0xff] }
 0x373   : > { %5092 = vmatpush.msra.mxu3 %v13924_v44  ;;  %4899 = vmatmul.f32.gmra.mxu0 %v11054_v62 }
 0x374   : > { %5139 = vmatpush.msrb.mxu0 %v13949_v26  ;;  %5190 = vmatpush.msrb.mxu1 %v13897_v33  ;;  %v13954_v33 = vld [vmem:[#allocation259_spill] sm:$0xff]  ;;  %v13966_v26 = vld [vmem:[#allocation274_spill] sm:$0xff] }
 0x375   : > { %5037 = vmatpush.msra.mxu2 %v13950_v18  ;;  %5094 = vmatpush.msra.mxu3 %v13926_v15  ;;  %v13968_v18 = vld [vmem:[#allocation283_spill] sm:$0xff] }
 0x376   : > { %5143 = vmatpush.msrb.mxu0 %v13951_v50  ;;  %5192 = vmatpush.msrb.mxu1 %v13899_v23  ;;  %v13957_v23 = vld [vmem:[#allocation263_spill] sm:$0xff] }
 0x377   : > { %5040 = vmatpush.msra.mxu2 %v13952_v22  ;;  %5096 = vmatpush.msra.mxu3 %v13929_v29  ;;  %v13969_v50 = vld [vmem:[#allocation315_spill] sm:$0xff] }
 0x378   : > { %5004 = vmatmul.f32.gmra.mxu1 %v11004_v21  ;;  %5147 = vmatpush.msrb.mxu0 %v13953_v19  ;;  %v13972_v22 = vld [vmem:[#allocation319_spill] sm:$0xff]  ;;  %v13973_v19 = vld [vmem:[#allocation278_spill] sm:$0xff] }
 0x379   : > { %5194 = vmatpush.msrb.mxu1 %v13900_v52  ;;  %5043 = vmatpush.msra.mxu2 %v13954_v33  ;;  %v13959_v52 = vld [vmem:[#allocation304_spill] sm:$0xff]  ;;  %v13975_v33 = vld [vmem:[#allocation323_spill] sm:$0xff] }
 0x37a   : > { %5098 = vmatpush.msra.mxu3 %v13932_v53  ;;  %5151 = vmatpush.msrb.mxu0 %v13955_v40  ;;  %v13976_v40 = vld [vmem:[#allocation285_spill] sm:$0xff] }
 0x37b   : > { %5196 = vmatpush.msrb.mxu1 %v13903_v41  ;;  %4809 = vmatmul.f32.gmra.mxu2 %v11396_v36  ;;  %v13962_v41 = vld [vmem:[#allocation308_spill] sm:$0xff] }
 0x37c   : > { %5280 = vmatpush.msrb.mxu3 %v13956_v1  ;;  %5046 = vmatpush.msra.mxu2 %v13957_v23  ;;  %v13977_v1 = vld [vmem:[#allocation288_spill] sm:$0xff]  ;;  %v13979_v23 = vld [vmem:[#allocation287_spill] sm:$0xff] }
 0x37d   : > { %5102 = vmatmul.f32.vlgmr.msra.gmra.mxu3 %v10997_v30  ;;  %5155 = vmatpush.msrb.mxu0 %v13958_v16  ;;  %v13980_v16 = vld [vmem:[#allocation291_spill] sm:$0xff] }
 0x37e   : > { %5198 = vmatpush.msrb.mxu1 %v13906_v51  ;;  %5286 = vmatpush.msrb.mxu3 %v13959_v52  ;;  %v13967_v51 = vld [vmem:[#allocation273_spill] sm:$0xff] }
 0x37f   : > { %5049 = vmatpush.msra.mxu2 %v13960_v31  ;;  %5159 = vmatpush.msrb.mxu0 %v13961_v35  ;;  %v13982_v52 = vld [vmem:[#allocation289_spill] sm:$0xff]  ;;  %v13985_v35 = vld [vmem:[#allocation292_spill] sm:$0xff] }
 0x380   : > { %5200 = vmatpush.msrb.mxu1 %v13909_v39  ;;  %5292 = vmatpush.msrb.mxu3 %v13962_v41  ;;  %v13970_v39 = vld [vmem:[#allocation276_spill] sm:$0xff]  ;;  %v13984_v31 = vld [vmem:[#allocation341_spill] sm:$0xff]  ;;  %v13987_v41 = vld [vmem:[#allocation346_spill] sm:$0xff] }
 0x381   : > { %5052 = vmatpush.msra.mxu2 %v13963_v49  ;;  %5163 = vmatpush.msrb.mxu0 %v13964_v60  ;;  %v13988_v49 = vld [vmem:[#allocation296_spill] sm:$0xff]  ;;  %v13990_v60 = vld [vmem:[#allocation350_spill] sm:$0xff] }
 0x382   : > { %5202 = vmatpush.msrb.mxu1 %v13913_v43  ;;  %5298 = vmatpush.msrb.mxu3 %v13965_v13  ;;  %v13971_v43 = vld [vmem:[#allocation284_spill] sm:$0xff]  ;;  %v13991_v13 = vld [vmem:[#allocation299_spill] sm:$0xff] }
 0x383   : > { %5055 = vmatpush.msra.mxu2 %v13966_v26  ;;  %5167 = vmatpush.msrb.mxu0 %v13967_v51  ;;  %v13993_v26 = vld [vmem:[#allocation357_spill] sm:$0xff]  ;;  %v13994_v51 = vld [vmem:[#allocation302_spill] sm:$0xff] }
 0x384   : > { %5204 = vmatpush.msrb.mxu1 %v13916_v38  ;;  %5304 = vmatpush.msrb.mxu3 %v13969_v50  ;;  %v13974_v38 = vld [vmem:[#allocation286_spill] sm:$0xff]  ;;  %v13995_v50 = vld [vmem:[#allocation309_spill] sm:$0xff] }
 0x385   : > { %5227 = vmatpush.msrb.mxu2 %v13968_v18  ;;  %5108 = vmatmul.f32.gmra.mxu3 %v11034_v42 }
 0x386   : > { %5058 = vmatmul.f32.vlgmr.msra.gmra.mxu2 %v10982_v37  ;;  %5171 = vmatpush.msrb.mxu0 %v13970_v39  ;;  %v13996_v39 = vld [vmem:[#allocation365_spill] sm:$0xff] }
 0x387   : > { %5206 = vmatpush.msrb.mxu1 %v13918_v28  ;;  %5229 = vmatpush.msrb.mxu2 %v13971_v43  ;;  %v13978_v28 = vld [vmem:[#allocation327_spill] sm:$0xff] }
 0x388   : > { %5310 = vmatpush.msrb.mxu3 %v13972_v22  ;;  %5175 = vmatpush.msrb.mxu0 %v13973_v19  ;;  %v13997_v22 = vld [vmem:[#allocation306_spill] sm:$0xff]  ;;  %v13998_v19 = vld [vmem:[#allocation313_spill] sm:$0xff] }
 0x389   : > { %5208 = vmatpush.msrb.mxu1 %v13921_v45  ;;  %5231 = vmatpush.msrb.mxu2 %v13974_v38  ;;  %v13981_v45 = vld [vmem:[#allocation334_spill] sm:$0xff] }
 0x38a   : > { %5316 = vmatpush.msrb.mxu3 %v13975_v33  ;;  %5177 = vmatmul.f32.vlgmr.msrb.gmra.mxu0 %v10966_v2  ;;  %v13999_v33 = vld [vmem:[#allocation372_spill] sm:$0xff] }
 0x38b   : > { %5210 = vmatpush.msrb.mxu1 %v13924_v44  ;;  %5382 = vmatpush.msra.mxu0 %v13976_v40  ;;  %v13983_v44 = vld [vmem:[#allocation294_spill] sm:$0xff]  ;;  %v14000_v40 = vld [vmem:[#allocation312_spill] sm:$0xff] }
 0x38c   : > { %5233 = vmatpush.msrb.mxu2 %v13977_v1  ;;  %5322 = vmatpush.msrb.mxu3 %v13978_v28  ;;  %v14001_v28 = vld [vmem:[#allocation317_spill] sm:$0xff] }
 0x38d   : > { %5212 = vmatpush.msrb.mxu1 %v13926_v15  ;;  %5385 = vmatpush.msra.mxu0 %v13979_v23  ;;  %v13986_v15 = vld [vmem:[#allocation297_spill] sm:$0xff] }
 0x38e   : > { %5235 = vmatpush.msrb.mxu2 %v13980_v16  ;;  %5328 = vmatpush.msrb.mxu3 %v13981_v45  ;;  %v14002_v23 = vld [vmem:[#allocation377_spill] sm:$0xff]  ;;  %v14003_v45 = vld [vmem:[#allocation316_spill] sm:$0xff] }
 0x38f   : > { %5063 = vmatmul.f32.gmra.mxu2 %v11018_v14  ;;  %5388 = vmatpush.msra.mxu0 %v13982_v52  ;;  %v14004_v52 = vld [vmem:[#allocation322_spill] sm:$0xff] }
 0x390   : > { %5214 = vmatpush.msrb.mxu1 %v13929_v29  ;;  %5237 = vmatpush.msrb.mxu2 %v13983_v44  ;;  %v13989_v29 = vld [vmem:[#allocation300_spill] sm:$0xff] }
 0x391   : > { %5334 = vmatpush.msrb.mxu3 %v13984_v31  ;;  %5391 = vmatpush.msra.mxu0 %v13985_v35  ;;  %v14005_v31 = vld [vmem:[#allocation320_spill] sm:$0xff]  ;;  %v14006_v35 = vld [vmem:[#allocation330_spill] sm:$0xff] }
 0x392   : > { %5216 = vmatpush.msrb.mxu1 %v13932_v53  ;;  %5239 = vmatpush.msrb.mxu2 %v13986_v15  ;;  %v13992_v53 = vld [vmem:[#allocation305_spill] sm:$0xff] }
 0x393   : > { %5340 = vmatpush.msrb.mxu3 %v13987_v41  ;;  %5181 = vmatmul.f32.gmra.mxu0 %v11004_v21  ;;  %v14007_v41 = vld [vmem:[#allocation324_spill] sm:$0xff] }
 0x394   : > { %5218 = vmatmul.f32.vlgmr.msrb.gmra.mxu1 %v10966_v2  ;;  %5394 = vmatpush.msra.mxu0 %v13988_v49  ;;  %v14008_v49 = vld [vmem:[#allocation336_spill] sm:$0xff] }
 0x395   : > { %5440 = vmatpush.msra.mxu1 %v13968_v18  ;;  %5241 = vmatpush.msrb.mxu2 %v13989_v29 }
 0x396   : > { %5346 = vmatpush.msrb.mxu3 %v13990_v60  ;;  %5397 = vmatpush.msra.mxu0 %v13991_v13  ;;  %v14009_v60 = vld [vmem:[#allocation331_spill] sm:$0xff]  ;;  %v14012_v13 = vld [vmem:[#allocation290_spill] sm:$0xff] }
 0x397   : > { %5442 = vmatpush.msra.mxu1 %v13971_v43  ;;  %5243 = vmatpush.msrb.mxu2 %v13992_v53 }
 0x398   : > { %5352 = vmatpush.msrb.mxu3 %v13993_v26  ;;  %5400 = vmatpush.msra.mxu0 %v13994_v51  ;;  %v14013_v26 = vld [vmem:[#allocation347_spill] sm:$0xff]  ;;  %v11584_v51 = vpop.f32.mrf.mxu3 }
 0x399   : > { %5444 = vmatpush.msra.mxu1 %v13974_v38  ;;  %5245 = vmatpush.msrb.mxu2 %v13995_v50 }
 0x39a   : > { %5358 = vmatpush.msrb.mxu3 %v13996_v39  ;;  %5403 = vmatpush.msra.mxu0 %v13997_v22  ;;  %v14015_v39 = vld [vmem:[#allocation351_spill] sm:$0xff] }
 0x39b   : > { %5446 = vmatpush.msra.mxu1 %v13977_v1  ;;  %5247 = vmatpush.msrb.mxu2 %v13998_v19  ;;  %v14016_v22 = vld [vmem:[#allocation295_spill] sm:$0xff] }
 0x39c   : > { %5364 = vmatpush.msrb.mxu3 %v13999_v33  ;;  %5222 = vmatmul.f32.gmra.mxu1 %v11004_v21  ;;  %v14018_v33 = vld [vmem:[#allocation298_spill] sm:$0xff] }
 0x39d   : > { %5406 = vmatpush.msra.mxu0 %v14000_v40  ;;  %5448 = vmatpush.msra.mxu1 %v13980_v16  ;;  %v14020_v40 = vld [vmem:[#allocation303_spill] sm:$0xff] }
 0x39e   : > { %5249 = vmatpush.msrb.mxu2 %v14001_v28  ;;  %5370 = vmatpush.msrb.mxu3 %v14002_v23 }
 0x39f   : > { %5409 = vmatpush.msra.mxu0 %v14003_v45  ;;  %5372 = vmatmul.f32.vlgmr.msrb.gmra.mxu3 %v11145_v24  ;;  %v14022_v45 = vld [vmem:[#allocation307_spill] sm:$0xff] }
 0x3a0   : > { %5450 = vmatpush.msra.mxu1 %v13983_v44  ;;  %5558 = vmatpush.msra.mxu3 %v13968_v18  ;;  %v14010_v18 = vld [vmem:[#allocation342_spill] sm:$0xff] }
 0x3a1   : > { %5251 = vmatpush.msrb.mxu2 %v14004_v52  ;;  %5412 = vmatpush.msra.mxu0 %v14005_v31  ;;  %v11608_v31 = vpop.f32.mrf.mxu3 }
 0x3a2   : > { %5452 = vmatpush.msra.mxu1 %v13986_v15  ;;  %5560 = vmatpush.msra.mxu3 %v13971_v43  ;;  %v14011_v43 = vld [vmem:[#allocation338_spill] sm:$0xff] }
 0x3a3   : > { %5253 = vmatpush.msrb.mxu2 %v14006_v35  ;;  %5415 = vmatpush.msra.mxu0 %v14007_v41  ;;  %v14024_v41 = vld [vmem:[#allocation310_spill] sm:$0xff] }
 0x3a4   : > { %5454 = vmatpush.msra.mxu1 %v13989_v29  ;;  %5562 = vmatpush.msra.mxu3 %v13974_v38  ;;  %v3776_v38 = vpop.f32.mrf.mxu2 }
 0x3a5   : > { %5255 = vmatpush.msrb.mxu2 %v14008_v49  ;;  %5418 = vmatpush.msra.mxu0 %v14009_v60  ;;  %v14025_v60 = vld [vmem:[#allocation345_spill] sm:$0xff] }
 0x3a6   : > { %5456 = vmatpush.msra.mxu1 %v13992_v53  ;;  %5564 = vmatpush.msra.mxu3 %v13977_v1  ;;  %v14014_v1 = vld [vmem:[#allocation293_spill] sm:$0xff] }
 0x3a7   : > { %5257 = vmatpush.msrb.mxu2 %v14010_v18  ;;  %5376 = vmatmul.f32.gmra.mxu3 %v11178_v17 }
 0x3a8   : > { %5263 = vmatmul.f32.vlgmr.msrb.gmra.mxu2 %v11203_v56  ;;  %5421 = vmatpush.msra.mxu0 %v14011_v43  ;;  %v14026_v43 = vld [vmem:[#allocation355_spill] sm:$0xff] }
 0x3a9   : > { %5458 = vmatpush.msra.mxu1 %v13995_v50  ;;  %5487 = vmatpush.msra.mxu2 %v14012_v13  ;;  %v14028_v13 = vld [vmem:[#allocation353_spill] sm:$0xff] }
 0x3aa   : > { %5566 = vmatpush.msra.mxu3 %v13980_v16  ;;  %5424 = vmatpush.msra.mxu0 %v14013_v26  ;;  %v14017_v16 = vld [vmem:[#allocation321_spill] sm:$0xff]  ;;  %v14029_v26 = vld [vmem:[#allocation362_spill] sm:$0xff] }
 0x3ab   : > { %5460 = vmatpush.msra.mxu1 %v13998_v19  ;;  %5491 = vmatpush.msra.mxu2 %v14014_v1  ;;  %v14030_v1 = vld [vmem:[#allocation318_spill] sm:$0xff] }
 0x3ac   : > { %5568 = vmatpush.msra.mxu3 %v13983_v44  ;;  %5427 = vmatpush.msra.mxu0 %v14015_v39  ;;  %v14019_v44 = vld [vmem:[#allocation326_spill] sm:$0xff]  ;;  %v11602_v23 = vpop.f32.mrf.mxu2 }
 0x3ad   : > { %5462 = vmatpush.msra.mxu1 %v14001_v28  ;;  %5495 = vmatpush.msra.mxu2 %v14016_v22  ;;  %v14031_v22 = vld [vmem:[#allocation359_spill] sm:$0xff] }
 0x3ae   : > { %5570 = vmatpush.msra.mxu3 %v13986_v15  ;;  %5430 = vmatmul.f32.vlgmr.msra.gmra.mxu0 %v11159_v63  ;;  %v14021_v15 = vld [vmem:[#allocation333_spill] sm:$0xff] }
 0x3af   : > { %5464 = vmatpush.msra.mxu1 %v14004_v52  ;;  %5599 = vmatpush.msrb.mxu0 %v14017_v16 }
 0x3b0   : > { %5499 = vmatpush.msra.mxu2 %v14018_v33  ;;  %5572 = vmatpush.msra.mxu3 %v13989_v29  ;;  %v14023_v29 = vld [vmem:[#allocation340_spill] sm:$0xff] }
 0x3b1   : > { %5271 = vmatmul.f32.gmra.mxu2 %v11225_v58  ;;  %5601 = vmatpush.msrb.mxu0 %v14019_v44  ;;  %v14032_v33 = vld [vmem:[#allocation368_spill] sm:$0xff] }
 0x3b2   : > { %5466 = vmatpush.msra.mxu1 %v14006_v35  ;;  %5503 = vmatpush.msra.mxu2 %v14020_v40  ;;  %v14033_v40 = vld [vmem:[#allocation325_spill] sm:$0xff] }
 0x3b3   : > { %5574 = vmatpush.msra.mxu3 %v13992_v53  ;;  %5603 = vmatpush.msrb.mxu0 %v14021_v15  ;;  %v3943_v53 = vpop.f32.mrf.mxu0 }
 0x3b4   : > { %5468 = vmatpush.msra.mxu1 %v14008_v49  ;;  %5507 = vmatpush.msra.mxu2 %v14022_v45  ;;  %v4062_v39 = vpop.f32.mrf.mxu2  ;;  %v11626_v45 = vpop.f32.mrf.mxu3 }
 0x3b5   : > { %5576 = vmatpush.msra.mxu3 %v13995_v50  ;;  %5605 = vmatpush.msrb.mxu0 %v14023_v29  ;;  %v14027_v50 = vld [vmem:[#allocation314_spill] sm:$0xff] }
 0x3b6   : > { %5470 = vmatpush.msra.mxu1 %v14010_v18  ;;  %5511 = vmatpush.msra.mxu2 %v14024_v41  ;;  %v14035_v41 = vld [vmem:[#allocation373_spill] sm:$0xff] }
 0x3b7   : > { %5578 = vmatpush.msra.mxu3 %v13998_v19  ;;  %5435 = vmatmul.f32.gmra.mxu0 %v11189_v34  ;;  %v3987_v19 = vpop.f32.mrf.mxu1 }
 0x3b8   : > { %5474 = vmatmul.f32.vlgmr.msra.gmra.mxu1 %v11176_v11  ;;  %5607 = vmatpush.msrb.mxu0 %v14025_v60  ;;  %v14069_v11 = vld [vmem:[#allocation361_spill] sm:$0xff] }
 0x3b9   : > { %5652 = vmatpush.msrb.mxu1 %v14026_v43  ;;  %5515 = vmatpush.msra.mxu2 %v14027_v50  ;;  %v14036_v43 = vld [vmem:[#allocation328_spill] sm:$0xff]  ;;  %v14038_v50 = vld [vmem:[#allocation378_spill] sm:$0xff] }
 0x3ba   : > { %5580 = vmatpush.msra.mxu3 %v14001_v28  ;;  %5609 = vmatpush.msrb.mxu0 %v14028_v13  ;;  %v14034_v28 = vld [vmem:[#allocation364_spill] sm:$0xff] }
 0x3bb   : > { %5658 = vmatpush.msrb.mxu1 %v14029_v26  ;;  %5519 = vmatpush.msra.mxu2 %v14030_v1  ;;  %v14039_v26 = vld [vmem:[#allocation332_spill] sm:$0xff]  ;;  %v3948_v1 = vpop.f32.mrf.mxu0 }
 0x3bc   : > { %5582 = vmatpush.msra.mxu3 %v14004_v52  ;;  %5611 = vmatpush.msrb.mxu0 %v14031_v22  ;;  %v14037_v52 = vld [vmem:[#allocation367_spill] sm:$0xff] }
 0x3bd   : > { %5664 = vmatpush.msrb.mxu1 %v14032_v33  ;;  %5523 = vmatpush.msra.mxu2 %v14033_v40  ;;  %v14041_v33 = vld [vmem:[#allocation384_spill] sm:$0xff]  ;;  %v3777_v40 = vadd.f32 1e-05, %v3776_v38 }
 0x3be   : > { %5584 = vmatpush.msra.mxu3 %v14006_v35  ;;  %5613 = vmatpush.msrb.mxu0 %v14034_v28  ;;  %v14040_v35 = vld [vmem:[#allocation371_spill] sm:$0xff]  ;;  %v14048_v38 = vld [vmem:[#allocation356_spill] sm:$0xff] }
 0x3bf   : > { %5670 = vmatpush.msrb.mxu1 %v14035_v41  ;;  %5527 = vmatpush.msra.mxu2 %v14036_v43  ;;  %v14043_v41 = vld [vmem:[#allocation376_spill] sm:$0xff]  ;;  %v14044_v43 = vld [vmem:[#allocation389_spill] sm:$0xff] }
 0x3c0   : > { %5586 = vmatpush.msra.mxu3 %v14008_v49  ;;  %5480 = vmatmul.f32.gmra.mxu1 %v11206_v8  ;;  %v14042_v49 = vld [vmem:[#allocation339_spill] sm:$0xff] }
 0x3c1   : > { %5615 = vmatpush.msrb.mxu0 %v14037_v52  ;;  %5676 = vmatpush.msrb.mxu1 %v14038_v50  ;;  %v3993_v50 = vpop.f32.mrf.mxu1 }
 0x3c2   : > { %5531 = vmatpush.msra.mxu2 %v14039_v26  ;;  %5588 = vmatpush.msra.mxu3 %v14010_v18  ;;  %v11644_v26 = vpop.f32.mrf.mxu2  ;;  %v14045_v18 = vld [vmem:[#allocation348_spill] sm:$0xff] }
 0x3c3   : > { %5617 = vmatpush.msrb.mxu0 %v14040_v35  ;;  %5590 = vmatmul.f32.vlgmr.msra.gmra.mxu3 %v11145_v24  ;;  %v4148_v61 = vpop.f32.mrf.mxu0 }
 0x3c4   : > { %5682 = vmatpush.msrb.mxu1 %v14041_v33  ;;  %5812 = vmatpush.msrb.mxu3 %v14017_v16  ;;  %v11650_v33 = vpop.f32.mrf.mxu3 }
 0x3c5   : > { %5535 = vmatpush.msra.mxu2 %v14042_v49  ;;  %5619 = vmatpush.msrb.mxu0 %v14043_v41  ;;  %v3886_v49 = vadd.f32 %v11584_v51, %v3777_v40  ;;  %v14054_v51 = vld [vmem:[#allocation329_spill] sm:$0xff] }
 0x3c6   : > { %5688 = vmatpush.msrb.mxu1 %v14044_v43  ;;  %5814 = vmatpush.msrb.mxu3 %v14019_v44  ;;  %v14049_v43 = vld [vmem:[#allocation385_spill] sm:$0xff] }
 0x3c7   : > { %5539 = vmatpush.msra.mxu2 %v14045_v18  ;;  %5621 = vmatpush.msrb.mxu0 %v14046_v25  ;;  %v14051_v18 = vld [vmem:[#allocation360_spill] sm:$0xff]  ;;  %v3944_v34 = vadd.f32 %v3943_v53, %v3886_v49  ;;  %v3785_v53 = vadd.f32 1e-05, %v11602_v23  ;;  %v14057_v49 = vld [vmem:[#allocation335_spill] sm:$0xff]  ;;  %v14062_v23 = vld [vmem:[#allocation337_spill] sm:$0xff] }
 0x3c8   : > { %5694 = vmatpush.msrb.mxu1 %v14047_v20  ;;  %5816 = vmatpush.msrb.mxu3 %v14021_v15  ;;  %v14052_v20 = vld [vmem:[#allocation388_spill] sm:$0xff] }
 0x3c9   : > { %5543 = vmatpush.msra.mxu2 %v14048_v38  ;;  %5623 = vmatpush.msrb.mxu0 %v14049_v43  ;;  %v3988_v38 = vadd.f32 %v3987_v19, %v3944_v34  ;;  %v14060_v19 = vld [vmem:[#allocation343_spill] sm:$0xff] }
 0x3ca   : > { %5700 = vmatpush.msrb.mxu1 %v14050_v47  ;;  %5818 = vmatpush.msrb.mxu3 %v14023_v29  ;;  %v4257_v47 = vpop.f32.mrf.mxu1  ;;  %v4315_v40 = vpop.f32.mrf.mxu2 }
 0x3cb   : > { %5547 = vmatpush.msra.mxu2 %v14051_v18  ;;  %5594 = vmatmul.f32.gmra.mxu3 %v11178_v17  ;;  %v4063_v34 = vadd.f32 %v4062_v39, %v3988_v38  ;;  %v4156_v8 = vpop.f32.mrf.mxu0 }
 0x3cc   : > { %5549 = vmatmul.f32.vlgmr.msra.gmra.mxu2 %v11145_v24  ;;  %5625 = vmatpush.msrb.mxu0 %v14052_v20  ;;  %v4359_v18 = vpop.f32.mrf.mxu3 }
 0x3cd   : > { %5706 = vmatpush.msrb.mxu1 %v14053_v5  ;;  %5754 = vmatpush.msrb.mxu2 %v14054_v51  ;;  %v14059_v5 = vld [vmem:[#allocation405_spill] sm:$0xff]  ;;  %v14061_v51 = vld [vmem:[#allocation407_spill] sm:$0xff]  ;;  %v4104_v38 = vadd.f32 %v11626_v45, %v4063_v34  ;;  %v14071_v34 = vld [vmem:[#allocation410_spill] sm:$0xff] }
 0x3ce   : > { %5820 = vmatpush.msrb.mxu3 %v14025_v60  ;;  %5627 = vmatpush.msrb.mxu0 %v14055_v48 }
 0x3cf   : > { %5712 = vmatpush.msrb.mxu1 %v14056_v57  ;;  %5757 = vmatpush.msrb.mxu2 %v14057_v49  ;;  %v3890_v57 = vadd.f32 %v11608_v31, %v3785_v53  ;;  %v14063_v49 = vld [vmem:[#allocation349_spill] sm:$0xff]  ;;  %v4149_v53 = vadd.f32 %v4148_v61, %v4104_v38 }
 0x3d0   : > { %5822 = vmatpush.msrb.mxu3 %v14028_v13  ;;  %5629 = vmatpush.msrb.mxu0 %v14058_v32  ;;  %v14075_v38 = vld [vmem:[#allocation369_spill] sm:$0xff] }
 0x3d1   : > { %5718 = vmatpush.msrb.mxu1 %v14059_v5  ;;  %5760 = vmatpush.msrb.mxu2 %v14060_v19  ;;  %v3949_v39 = vadd.f32 %v3948_v1, %v3890_v57  ;;  %v14064_v5 = vld [vmem:[#allocation344_spill] sm:$0xff]  ;;  %v4258_v45 = vadd.f32 %v4257_v47, %v4149_v53  ;;  %v14070_v1 = vld [vmem:[#allocation358_spill] sm:$0xff] }
 0x3d2   : > { %5824 = vmatpush.msrb.mxu3 %v14031_v22  ;;  %5635 = vmatmul.f32.vlgmr.msrb.gmra.mxu0 %v11400_v46  ;;  %v14065_v19 = vld [vmem:[#allocation408_spill] sm:$0xff]  ;;  %v14066_v46 = vld [vmem:[#allocation354_spill] sm:$0xff]  ;;  %v4320_v63 = vpop.f32.mrf.mxu2 }
 0x3d3   : > { %5724 = vmatpush.msrb.mxu1 %v14061_v51  ;;  %5859 = vmatpush.msra.mxu0 %v14062_v23  ;;  %v3994_v31 = vadd.f32 %v3993_v50, %v3949_v39  ;;  %v14067_v51 = vld [vmem:[#allocation352_spill] sm:$0xff]  ;;  %v14068_v23 = vld [vmem:[#allocation409_spill] sm:$0xff]  ;;  %v14072_v57 = vld [vmem:[#allocation366_spill] sm:$0xff]  ;;  %v4434_v50 = vpop.f32.mrf.mxu0  ;;  %v4316_v47 = vadd.f32 %v4315_v40, %v4258_v45 }
 0x3d4   : > { %5763 = vmatpush.msrb.mxu2 %v14063_v49  ;;  %5826 = vmatpush.msrb.mxu3 %v14034_v28  ;;  %v4261_v49 = vpop.f32.mrf.mxu1  ;;  %v14074_v39 = vld [vmem:[#allocation370_spill] sm:$0xff] }
 0x3d5   : > { %5553 = vmatmul.f32.gmra.mxu2 %v11178_v17  ;;  %5863 = vmatpush.msra.mxu0 %v14064_v5  ;;  %v4067_v61 = vadd.f32 %v11644_v26, %v3994_v31  ;;  %v14076_v5 = vld [vmem:[#allocation375_spill] sm:$0xff]  ;;  %v14077_v31 = vld [vmem:[#allocation374_spill] sm:$0xff]  ;;  %v4360_v53 = vadd.f32 %v4359_v18, %v4316_v47 }
 0x3d6   : > { %5730 = vmatpush.msrb.mxu1 %v14065_v19  ;;  %5766 = vmatpush.msrb.mxu2 %v14066_v46  ;;  %v4365_v46 = vpop.f32.mrf.mxu3  ;;  %v14082_v18 = vld [vmem:[#allocation387_spill] sm:$0xff]  ;;  %v14087_v47 = vld [vmem:[#allocation430_spill] sm:$0xff] }
 0x3d7   : > { %5828 = vmatpush.msrb.mxu3 %v14037_v52  ;;  %5867 = vmatpush.msra.mxu0 %v14067_v51  ;;  %v4108_v26 = vadd.f32 %v11650_v33, %v4067_v61  ;;  %v14078_v51 = vld [vmem:[#allocation380_spill] sm:$0xff]  ;;  %v4435_v45 = vadd.f32 %v4434_v50, %v4360_v53  ;;  %v14084_v61 = vld [vmem:[#allocation426_spill] sm:$0xff]  ;;  %v14085_v50 = vld [vmem:[#allocation391_spill] sm:$0xff] }
 0x3d8   : > { %5736 = vmatpush.msrb.mxu1 %v14068_v23  ;;  %5769 = vmatpush.msrb.mxu2 %v14069_v11  ;;  %v14073_v11 = vld [vmem:[#allocation363_spill] sm:$0xff]  ;;  %v14093_v53 = vld [vmem:[#allocation440_spill] sm:$0xff] }
 0x3d9   : > { %5830 = vmatpush.msrb.mxu3 %v14040_v35  ;;  %5871 = vmatpush.msra.mxu0 %v14070_v1  ;;  %v4157_v40 = vadd.f32 %v4156_v8, %v4108_v26  ;;  %v14079_v23 = vld [vmem:[#allocation379_spill] sm:$0xff]  ;;  %v14089_v26 = vld [vmem:[#allocation394_spill] sm:$0xff] }
 0x3da   : > { %5742 = vmatpush.msrb.mxu1 %v14071_v34  ;;  %5772 = vmatpush.msrb.mxu2 %v14072_v57  ;;  %v14080_v1 = vld [vmem:[#allocation383_spill] sm:$0xff] }
 0x3db   : > { %5832 = vmatpush.msrb.mxu3 %v14043_v41  ;;  %5643 = vmatmul.f32.gmra.mxu0 %v11434_v3  ;;  %v4262_v33 = vadd.f32 %v4261_v49, %v4157_v40  ;;  %v4438_v34 = vpop.f32.mrf.mxu0  ;;  %v14092_v40 = vld [vmem:[#allocation398_spill] sm:$0xff] }
 0x3dc   : > { %5744 = vmatmul.f32.vlgmr.msrb.gmra.mxu1 %v11362_v10  ;;  %5875 = vmatpush.msra.mxu0 %v14073_v11  ;;  %v4475_v19 = vpop.f32.mrf.mxu1  ;;  %v14086_v11 = vld [vmem:[#allocation390_spill] sm:$0xff] }
 0x3dd   : > { %5930 = vmatpush.msra.mxu1 %v14017_v16  ;;  %5775 = vmatpush.msrb.mxu2 %v14074_v39  ;;  %v4520_v16 = vpop.f32.mrf.mxu2  ;;  %v4476_v8 = vadd.f32 %v4475_v19, %v4435_v45  ;;  %v4321_v49 = vadd.f32 %v4320_v63, %v4262_v33  ;;  %v14088_v39 = vld [vmem:[#allocation395_spill] sm:$0xff] }
 0x3de   : > { %5834 = vmatpush.msrb.mxu3 %v14046_v25  ;;  %5879 = vmatpush.msra.mxu0 %v14075_v38  ;;  %v14091_v19 = vld [vmem:[#allocation399_spill] sm:$0xff] }
 0x3df   : > { %5932 = vmatpush.msra.mxu1 %v14019_v44  ;;  %5778 = vmatpush.msrb.mxu2 %v14076_v5  ;;  %v4629_v44 = vpop.f32.mrf.mxu3  ;;  %v4521_v57 = vadd.f32 %v4520_v16, %v4476_v8  ;;  %v4366_v63 = vadd.f32 %v4365_v46, %v4321_v49  ;;  %v14090_v5 = vld [vmem:[#allocation434_spill] sm:$0xff]  ;;  %v14097_v33 = vld [vmem:[#allocation443_spill] sm:$0xff]  ;;  %v14100_v8 = vld [vmem:[#allocation448_spill] sm:$0xff] }
 0x3e0   : > { %5836 = vmatpush.msrb.mxu3 %v14049_v43  ;;  %5883 = vmatpush.msra.mxu0 %v14077_v31 }
 0x3e1   : > { %5934 = vmatpush.msra.mxu1 %v14021_v15  ;;  %5781 = vmatpush.msrb.mxu2 %v14078_v51  ;;  %v14081_v15 = vld [vmem:[#allocation382_spill] sm:$0xff]  ;;  %v4439_v16 = vadd.f32 %v4438_v34, %v4366_v63  ;;  %v14094_v51 = vld [vmem:[#allocation403_spill] sm:$0xff] }
 0x3e2   : > { %5838 = vmatpush.msrb.mxu3 %v14052_v20  ;;  %5887 = vmatpush.msra.mxu0 %v14079_v23  ;;  %v14095_v23 = vld [vmem:[#allocation401_spill] sm:$0xff]  ;;  %v14101_v34 = vld [vmem:[#allocation406_spill] sm:$0xff]  ;;  %v14108_v63 = vld [vmem:[#allocation419_spill] sm:$0xff] }
 0x3e3   : > { %5936 = vmatpush.msra.mxu1 %v14023_v29  ;;  %5784 = vmatpush.msrb.mxu2 %v14080_v1  ;;  %v14083_v29 = vld [vmem:[#allocation386_spill] sm:$0xff]  ;;  %v14098_v1 = vld [vmem:[#allocation404_spill] sm:$0xff] }
 0x3e4   : > { %5840 = vmatpush.msrb.mxu3 %v14055_v48  ;;  %5748 = vmatmul.f32.gmra.mxu1 %v11396_v36 }
 0x3e5   : > { %5891 = vmatpush.msra.mxu0 %v14081_v15  ;;  %5938 = vmatpush.msra.mxu1 %v14025_v60  ;;  %v4479_v60 = vpop.f32.mrf.mxu1  ;;  %v14099_v15 = vld [vmem:[#allocation412_spill] sm:$0xff] }
 0x3e6   : > { %5787 = vmatpush.msrb.mxu2 %v14082_v18  ;;  %5842 = vmatpush.msrb.mxu3 %v14058_v32  ;;  %v4528_v38 = vpop.f32.mrf.mxu2  ;;  %v4480_v46 = vadd.f32 %v4479_v60, %v4439_v16  ;;  %v14104_v60 = vld [vmem:[#allocation456_spill] sm:$0xff] }
 0x3e7   : > { %5895 = vmatpush.msra.mxu0 %v14083_v29  ;;  %5846 = vmatmul.f32.vlgmr.msrb.gmra.mxu3 %v11377_v6  ;;  %v4633_v31 = vpop.f32.mrf.mxu3  ;;  %v14102_v29 = vld [vmem:[#allocation452_spill] sm:$0xff] }
 0x3e8   : > { %5940 = vmatpush.msra.mxu1 %v14028_v13  ;;  %6024 = vmatpush.msra.mxu3 %v14084_v61  ;;  %v4630_v13 = vadd.f32 %v4629_v44, %v4521_v57  ;;  %v14096_v44 = vld [vmem:[#allocation411_spill] sm:$0xff]  ;;  %v14103_v61 = vld [vmem:[#allocation413_spill] sm:$0xff] }
 0x3e9   : > { %5790 = vmatpush.msrb.mxu2 %v14085_v50  ;;  %5899 = vmatpush.msra.mxu0 %v14086_v11 }
 0x3ea   : > { %5942 = vmatpush.msra.mxu1 %v14031_v22  ;;  %6030 = vmatpush.msra.mxu3 %v14087_v47  ;;  %v4687_v22 = vpop.f32.mrf.mxu0 }
 0x3eb   : > { %5793 = vmatpush.msrb.mxu2 %v14088_v39  ;;  %5903 = vmatpush.msra.mxu0 %v14089_v26  ;;  %v14107_v39 = vld [vmem:[#allocation415_spill] sm:$0xff]  ;;  %v14109_v26 = vld [vmem:[#allocation468_spill] sm:$0xff] }
 0x3ec   : > { %5944 = vmatpush.msra.mxu1 %v14034_v28  ;;  %6036 = vmatpush.msra.mxu3 %v14090_v5  ;;  %v4688_v28 = vadd.f32 %v4687_v22, %v4630_v13  ;;  %v14110_v13 = vld [vmem:[#allocation418_spill] sm:$0xff] }
 0x3ed   : > { %5796 = vmatpush.msrb.mxu2 %v14091_v19  ;;  %5907 = vmatpush.msra.mxu0 %v14092_v40  ;;  %v4731_v45 = vpop.f32.mrf.mxu1  ;;  %v14111_v5 = vld [vmem:[#allocation422_spill] sm:$0xff]  ;;  %v14112_v19 = vld [vmem:[#allocation476_spill] sm:$0xff]  ;;  %v14113_v40 = vld [vmem:[#allocation421_spill] sm:$0xff] }
 0x3ee   : > { %5946 = vmatpush.msra.mxu1 %v14037_v52  ;;  %6042 = vmatpush.msra.mxu3 %v14093_v53  ;;  %v4529_v52 = vadd.f32 %v4528_v38, %v4480_v46  ;;  %v4732_v18 = vadd.f32 %v4731_v45, %v4688_v28  ;;  %v14116_v28 = vld [vmem:[#allocation424_spill] sm:$0xff] }
 0x3ef   : > { %5799 = vmatpush.msrb.mxu2 %v14094_v51  ;;  %5852 = vmatmul.f32.gmra.mxu3 %v11414_v0  ;;  %v14114_v51 = vld [vmem:[#allocation423_spill] sm:$0xff]  ;;  %v14119_v45 = vld [vmem:[#allocation428_spill] sm:$0xff] }
 0x3f0   : > { %5802 = vmatmul.f32.vlgmr.msrb.gmra.mxu2 %v11369_v9  ;;  %5911 = vmatpush.msra.mxu0 %v14095_v23  ;;  %v4634_v49 = vadd.f32 %v4633_v31, %v4529_v52  ;;  %v14118_v52 = vld [vmem:[#allocation488_spill] sm:$0xff] }
 0x3f1   : > { %5948 = vmatpush.msra.mxu1 %v14040_v35  ;;  %5971 = vmatpush.msra.mxu2 %v14096_v44 }
 0x3f2   : > { %6048 = vmatpush.msra.mxu3 %v14097_v33  ;;  %5915 = vmatpush.msra.mxu0 %v14098_v1  ;;  %v4806_v35 = vpop.f32.mrf.mxu2  ;;  %v4692_v11 = vpop.f32.mrf.mxu0  ;;  %v14117_v33 = vld [vmem:[#allocation427_spill] sm:$0xff] }
 0x3f3   : > { %5950 = vmatpush.msra.mxu1 %v14043_v41  ;;  %5973 = vmatpush.msra.mxu2 %v14099_v15  ;;  %v4807_v57 = vadd.f32 %v4806_v35, %v4732_v18  ;;  %v4847_v41 = vpop.f32.mrf.mxu3  ;;  %v4693_v47 = vadd.f32 %v4692_v11, %v4634_v49  ;;  %v14121_v18 = vld [vmem:[#allocation492_spill] sm:$0xff]  ;;  %v11800_v11 = vld [vmem:[%s12185_s2] sm:$0x7] }
 0x3f4   : > { %6054 = vmatpush.msra.mxu3 %v14100_v8  ;;  %5919 = vmatpush.msra.mxu0 %v14101_v34  ;;  %v14120_v8 = vld [vmem:[#allocation432_spill] sm:$0xff]  ;;  %v14122_v34 = vld [vmem:[#allocation431_spill] sm:$0xff] }
 0x3f5   : > { %5952 = vmatpush.msra.mxu1 %v14046_v25  ;;  %5975 = vmatpush.msra.mxu2 %v9803_v12  ;;  %v4848_v50 = vadd.f32 %v4847_v41, %v4807_v57  ;;  %v14105_v25 = vld [vmem:[#allocation414_spill] sm:$0xff]  ;;  %v4737_v38 = vpop.f32.mrf.mxu1  ;;  %v14123_v49 = vld [vmem:[#allocation436_spill] sm:$0xff]  ;;  %v14125_v41 = vld [vmem:[#allocation435_spill] sm:$0xff] }
 0x3f6   : > { %6060 = vmatpush.msra.mxu3 %v14102_v29  ;;  %5921 = vmatmul.f32.vlgmr.msra.gmra.mxu0 %v11362_v10  ;;  %v11790_v29 = vld [vmem:[%s12184_s1] sm:$0x7]  ;;  %v14124_v57 = vld [vmem:[#allocation496_spill] sm:$0xff] }
 0x3f7   : > { %5954 = vmatpush.msra.mxu1 %v14049_v43  ;;  %6126 = vmatpush.msrb.mxu0 %v14103_v61  ;;  %7467 = vrsqrt.f32 %v4848_v50  ;;  %v14106_v43 = vld [vmem:[#allocation463_spill] sm:$0xff]  ;;  %vm7092_vm1 = vweird.f32 %v4848_v50 }
 0x3f8   : > { %5977 = vmatpush.msra.mxu2 %v9820_v27  ;;  %6066 = vmatpush.msra.mxu3 %v14104_v60 }
 0x3f9   : > { %5807 = vmatmul.f32.gmra.mxu2 %v11405_v55  ;;  %6129 = vmatpush.msrb.mxu0 %v14105_v25  ;;  %v14126_v25 = vld [vmem:[#allocation441_spill] sm:$0xff] }
 0x3fa   : > { %5956 = vmatpush.msra.mxu1 %v14052_v20  ;;  %5979 = vmatpush.msra.mxu2 %v9835_v59  ;;  %v4738_v20 = vadd.f32 %v4737_v38, %v4693_v47  ;;  %v7154_v47 = vperm.slane %v11790_v29, 0  ;;  %v14128_v38 = vld [vmem:[#allocation438_spill] sm:$0xff] }
 0x3fb   : > { %6072 = vmatpush.msra.mxu3 %v14106_v43  ;;  %6132 = vmatpush.msrb.mxu0 %v14107_v39  ;;  %v4851_v53 = vpop.f32.mrf.mxu3  ;;  %v14127_v43 = vld [vmem:[#allocation502_spill] sm:$0xff] }
 0x3fc   : > { %5958 = vmatpush.msra.mxu1 %v14055_v48  ;;  %5981 = vmatpush.msra.mxu2 %v14108_v63 }
 0x3fd   : > { %6078 = vmatpush.msra.mxu3 %v14109_v26  ;;  %6135 = vmatpush.msrb.mxu0 %v14110_v13  ;;  %v7468_v16 = vpop.eup %7467  ;;  %v7168_v13 = vperm.slane %v11800_v11, 0 }
 0x3fe   : > { %5960 = vmatpush.msra.mxu1 %v14058_v32  ;;  %5983 = vmatpush.msra.mxu2 %v14111_v5  ;;  %v4810_v31 = vpop.f32.mrf.mxu2  ;;  %v7087_v22 = vmul.f32 %v7468_v16, %v4848_v50  ;;  %v14115_v32 = vld [vmem:[#allocation481_spill] sm:$0xff]  ;;  %vm7093_vm0 = vweird.f32 %v7468_v16 }
 0x3ff   : > { %6084 = vmatpush.msra.mxu3 %v14112_v19  ;;  %5925 = vmatmul.f32.gmra.mxu0 %v11396_v36  ;;  %v4811_v48 = vadd.f32 %v4810_v31, %v4738_v20  ;;  %vm7094_vm2 = vmor %vm7092_vm1, %vm7093_vm0  ;;  %v14129_v20 = vld [vmem:[#allocation446_spill] sm:$0xff] }
 0x400   : > { %5962 = vmatmul.f32.vlgmr.msra.gmra.mxu1 %v11362_v10  ;;  %6138 = vmatpush.msrb.mxu0 %v14113_v40  ;;  %v7088_v23 = vmul.f32 %v7468_v16, %v7087_v22  ;;  %v14132_v22 = vld [vmem:[#allocation449_spill] sm:$0xff] }
 0x401   : > { %6184 = vmatpush.msrb.mxu1 %v14096_v44  ;;  %5985 = vmatpush.msra.mxu2 %v14114_v51  ;;  %v11774_v46 = vadd.f32 %v4851_v53, %v4811_v48  ;;  %v14130_v48 = vld [vmem:[#allocation444_spill] sm:$0xff] }
 0x402   : > { %6090 = vmatpush.msra.mxu3 %v14115_v32  ;;  %6141 = vmatpush.msrb.mxu0 %v14116_v28  ;;  %v7089_v1 = vmul.f32 0.5, %v7088_v23  ;;  %v14134_v32 = vld [vmem:[#allocation457_spill] sm:$0xff]  ;;  %v14136_v23 = vld [vmem:[#allocation464_spill] sm:$0xff] }
 0x403   : > { %6186 = vmatpush.msrb.mxu1 %v14099_v15  ;;  %5987 = vmatpush.msra.mxu2 %v14117_v33  ;;  %7469 = vrsqrt.f32 %v11774_v46  ;;  %vm7122_vm4 = vweird.f32 %v11774_v46 }
 0x404   : > { %6096 = vmatpush.msra.mxu3 %v14118_v52  ;;  %6144 = vmatpush.msrb.mxu0 %v14119_v45  ;;  %v7090_v35 = vsub.f32 1.5, %v7089_v1  ;;  %v14137_v45 = vld [vmem:[#allocation416_spill] sm:$0xff]  ;;  %v14140_v1 = vld [vmem:[#allocation471_spill] sm:$0xff] }
 0x405   : > { %6188 = vmatpush.msrb.mxu1 %v9803_v12  ;;  %5989 = vmatpush.msra.mxu2 %v14120_v8 }
 0x406   : > { %6102 = vmatpush.msra.mxu3 %v14121_v18  ;;  %6147 = vmatpush.msrb.mxu0 %v14122_v34  ;;  %v7091_v61 = vmul.f32 %v7468_v16, %v7090_v35  ;;  %v14141_v34 = vld [vmem:[#allocation420_spill] sm:$0xff]  ;;  %v14145_v35 = vld [vmem:[#allocation429_spill] sm:$0xff] }
 0x407   : > { %6190 = vmatpush.msrb.mxu1 %v9820_v27  ;;  %5991 = vmatpush.msra.mxu2 %v14123_v49 }
 0x408   : > { %6108 = vmatpush.msra.mxu3 %v14124_v57  ;;  %5966 = vmatmul.f32.gmra.mxu1 %v11396_v36  ;;  %v7095_v39 = vsel %vm7094_vm2, %v7468_v16, %v7091_v61  ;;  %v14131_v16 = vld [vmem:[#allocation451_spill] sm:$0xff]  ;;  %v14148_v57 = vld [vmem:[#allocation462_spill] sm:$0xff] }
 0x409   : > { %6150 = vmatpush.msrb.mxu0 %v14125_v41  ;;  %v7470_v60 = vpop.eup %7469  ;;  %6192 = vmatpush.msrb.mxu1 %v9835_v59  ;;  %v7146_v26 = vmul.f32 %v7095_v39, %v10941_v4  ;;  %v14152_v41 = vld [vmem:[#allocation439_spill] sm:$0xff]  ;;  %v14162_v39 = vld [vmem:[#allocation490_spill] sm:$0xff] }
 0x40a   : > { %5993 = vmatpush.msra.mxu2 %v14126_v25  ;;  %6114 = vmatpush.msra.mxu3 %v14127_v43  ;;  %v7117_v50 = vmul.f32 %v7470_v60, %v11774_v46  ;;  %vm7123_vm3 = vweird.f32 %v7470_v60  ;;  %v14154_v61 = vld [vmem:[#allocation491_spill] sm:$0xff]  ;;  %v14160_v43 = vld [vmem:[#allocation501_spill] sm:$0xff] }
 0x40b   : > { %6153 = vmatpush.msrb.mxu0 %v14128_v38  ;;  %6116 = vmatmul.f32.vlgmr.msra.gmra.mxu3 %v10966_v2  ;;  %v7160_v31 = vmul.f32 %v7154_v47, %v7146_v26  ;;  %vm7124_vm5 = vmor %vm7122_vm4, %vm7123_vm3  ;;  %v14163_v38 = vld [vmem:[#allocation506_spill] sm:$0xff]  ;;  %v14165_v26 = vld [vmem:[#allocation495_spill] sm:$0xff] }
 0x40c   : > { %6194 = vmatpush.msrb.mxu1 %v14108_v63  ;;  %6302 = vmatpush.msrb.mxu3 %v14096_v44  ;;  %v7118_v19 = vmul.f32 %v7470_v60, %v7117_v50  ;;  %v14133_v44 = vld [vmem:[#allocation453_spill] sm:$0xff]  ;;  %v14164_v50 = vld [vmem:[#allocation460_spill] sm:$0xff] }
 0x40d   : > { %5995 = vmatpush.msra.mxu2 %v14129_v20  ;;  %6156 = vmatpush.msrb.mxu0 %v14130_v48  ;;  %v7174_v40 = vadd.f32 %v7168_v13, %v7160_v31  ;;  %v14169_v31 = vld [vmem:[#allocation514_spill] sm:$0xff] }
 0x40e   : > { %6196 = vmatpush.msrb.mxu1 %v14111_v5  ;;  %6304 = vmatpush.msrb.mxu3 %v14099_v15  ;;  %v7119_v4 = vmul.f32 0.5, %v7118_v19  ;;  %v14135_v15 = vld [vmem:[#allocation459_spill] sm:$0xff]  ;;  %v14167_v19 = vld [vmem:[#allocation469_spill] sm:$0xff]  ;;  %v14170_v48 = vld [vmem:[#allocation474_spill] sm:$0xff] }
 0x40f   : > { %5997 = vmatpush.msra.mxu2 %v14131_v16  ;;  %6159 = vmatpush.msrb.mxu0 %v14132_v22  ;;  %7180 = vst [vmem:[%s11822_s29] sm:$0xff] %v7174_v40  ;;  %v5001_v40 = vpop.f32.mrf.mxu1  ;;  %v14173_v22 = vld [vmem:[#allocation477_spill] sm:$0xff] }
 0x410   : > { %6198 = vmatpush.msrb.mxu1 %v14114_v51  ;;  %6306 = vmatpush.msrb.mxu3 %v9803_v12  ;;  %v7120_v53 = vsub.f32 1.5, %v7119_v4  ;;  %v14172_v4 = vld [vmem:[#allocation517_spill] sm:$0xff] }
 0x411   : > { %5999 = vmatpush.msra.mxu2 %v14133_v44  ;;  %6162 = vmatpush.msrb.mxu0 %v14134_v32  ;;  %v14176_v32 = vld [vmem:[#allocation483_spill] sm:$0xff] }
 0x412   : > { %6200 = vmatpush.msrb.mxu1 %v14117_v33  ;;  %6308 = vmatpush.msrb.mxu3 %v9820_v27  ;;  %v7121_v28 = vmul.f32 %v7470_v60, %v7120_v53  ;;  %v14138_v27 = vld [vmem:[#allocation465_spill] sm:$0xff] }
 0x413   : > { %6001 = vmatpush.msra.mxu2 %v14135_v15  ;;  %6120 = vmatmul.f32.gmra.mxu3 %v11004_v21  ;;  %v14175_v53 = vld [vmem:[#allocation521_spill] sm:$0xff] }
 0x414   : > { %6007 = vmatmul.f32.vlgmr.msra.gmra.mxu2 %v11026_v54  ;;  %v7125_v12 = vsel %vm7124_vm5, %v7470_v60, %v7121_v28  ;;  %6165 = vmatpush.msrb.mxu0 %v14136_v23  ;;  %v14139_v54 = vld [vmem:[#allocation417_spill] sm:$0xff]  ;;  %v14155_v60 = vld [vmem:[#allocation442_spill] sm:$0xff]  ;;  %v14178_v28 = vld [vmem:[#allocation524_spill] sm:$0xff] }
 0x415   : > { %6202 = vmatpush.msrb.mxu1 %v14120_v8  ;;  %v7149_v52 = vmul.f32 %v7125_v12, %v10975_v7  ;;  %6231 = vmatpush.msrb.mxu2 %v14137_v45  ;;  %v14143_v7 = vld [vmem:[#allocation425_spill] sm:$0xff]  ;;  %v14179_v23 = vld [vmem:[#allocation455_spill] sm:$0xff] }
 0x416   : > { %6310 = vmatpush.msrb.mxu3 %v9835_v59  ;;  %6168 = vmatpush.msrb.mxu0 %v14138_v27  ;;  %v14142_v59 = vld [vmem:[#allocation445_spill] sm:$0xff]  ;;  %v14181_v45 = vld [vmem:[#allocation527_spill] sm:$0xff] }
 0x417   : > { %6204 = vmatpush.msrb.mxu1 %v14123_v49  ;;  %v7163_v46 = vmul.f32 %v7154_v47, %v7149_v52  ;;  %6235 = vmatpush.msrb.mxu2 %v14139_v54  ;;  %v14159_v47 = vld [vmem:[#allocation485_spill] sm:$0xff]  ;;  %v14180_v52 = vld [vmem:[#allocation519_spill] sm:$0xff] }
 0x418   : > { %6312 = vmatpush.msrb.mxu3 %v14108_v63  ;;  %6171 = vmatpush.msrb.mxu0 %v14140_v1  ;;  %v14144_v63 = vld [vmem:[#allocation450_spill] sm:$0xff]  ;;  %v14182_v27 = vld [vmem:[#allocation461_spill] sm:$0xff]  ;;  %v5103_v1 = vpop.f32.mrf.mxu3 }
 0x419   : > { %6206 = vmatpush.msrb.mxu1 %v14126_v25  ;;  %v7177_v18 = vadd.f32 %v7168_v13, %v7163_v46  ;;  %6239 = vmatpush.msrb.mxu2 %v14141_v34  ;;  %v4892_v13 = vpop.f32.mrf.mxu0  ;;  %v14183_v46 = vld [vmem:[#allocation523_spill] sm:$0xff]  ;;  %v14184_v54 = vld [vmem:[#allocation529_spill] sm:$0xff]  ;;  %v5005_v34 = vpop.f32.mrf.mxu1 }
 0x41a   : > { %6314 = vmatpush.msrb.mxu3 %v14111_v5  ;;  %6174 = vmatmul.f32.vlgmr.msrb.gmra.mxu0 %v10982_v37  ;;  %v14146_v37 = vld [vmem:[#allocation458_spill] sm:$0xff]  ;;  %v14147_v5 = vld [vmem:[#allocation433_spill] sm:$0xff] }
 0x41b   : > { %6208 = vmatpush.msrb.mxu1 %v14129_v20  ;;  %7183 = vst [vmem:[%s11822_s29 + $0x18] sm:$0xff] %v7177_v18  ;;  %6343 = vmatpush.msra.mxu0 %v14142_v59  ;;  %v14185_v18 = vld [vmem:[#allocation470_spill] sm:$0xff] }
 0x41c   : > { %6243 = vmatpush.msrb.mxu2 %v14143_v7  ;;  %6316 = vmatpush.msrb.mxu3 %v14114_v51  ;;  %v14150_v51 = vld [vmem:[#allocation467_spill] sm:$0xff] }
 0x41d   : > { %6015 = vmatmul.f32.gmra.mxu2 %v11054_v62  ;;  %6345 = vmatpush.msra.mxu0 %v14144_v63  ;;  %v14149_v62 = vld [vmem:[#allocation437_spill] sm:$0xff]  ;;  %v14186_v7 = vld [vmem:[#allocation531_spill] sm:$0xff] }
 0x41e   : > { %6210 = vmatpush.msrb.mxu1 %v14131_v16  ;;  %6247 = vmatpush.msrb.mxu2 %v14145_v35  ;;  %v14187_v35 = vld [vmem:[#allocation466_spill] sm:$0xff] }
 0x41f   : > { %6318 = vmatpush.msrb.mxu3 %v14117_v33  ;;  %6347 = vmatpush.msra.mxu0 %v14146_v37  ;;  %v14151_v33 = vld [vmem:[#allocation486_spill] sm:$0xff] }
 0x420   : > { %6212 = vmatpush.msrb.mxu1 %v14133_v44  ;;  %6251 = vmatpush.msrb.mxu2 %v14147_v5  ;;  %v14188_v5 = vld [vmem:[#allocation473_spill] sm:$0xff] }
 0x421   : > { %6320 = vmatpush.msrb.mxu3 %v14120_v8  ;;  %6349 = vmatpush.msra.mxu0 %v14148_v57  ;;  %v14153_v8 = vld [vmem:[#allocation475_spill] sm:$0xff]  ;;  %v4900_v12 = vpop.f32.mrf.mxu0 }
 0x422   : > { %6214 = vmatpush.msrb.mxu1 %v14135_v15  ;;  %6255 = vmatpush.msrb.mxu2 %v14149_v62 }
 0x423   : > { %6322 = vmatpush.msrb.mxu3 %v14123_v49  ;;  %6179 = vmatmul.f32.gmra.mxu0 %v11018_v14  ;;  %v14156_v49 = vld [vmem:[#allocation480_spill] sm:$0xff]  ;;  %v14157_v14 = vld [vmem:[#allocation497_spill] sm:$0xff] }
 0x424   : > { %6218 = vmatmul.f32.vlgmr.msrb.gmra.mxu1 %v10997_v30  ;;  %6351 = vmatpush.msra.mxu0 %v14150_v51  ;;  %v14158_v30 = vld [vmem:[#allocation447_spill] sm:$0xff] }
 0x425   : > { %6396 = vmatpush.msra.mxu1 %v14151_v33  ;;  %6259 = vmatpush.msrb.mxu2 %v14152_v41  ;;  %v14189_v33 = vld [vmem:[#allocation472_spill] sm:$0xff]  ;;  %v14190_v41 = vld [vmem:[#allocation533_spill] sm:$0xff] }
 0x426   : > { %6324 = vmatpush.msrb.mxu3 %v14126_v25  ;;  %6353 = vmatpush.msra.mxu0 %v14153_v8  ;;  %v14161_v25 = vld [vmem:[#allocation454_spill] sm:$0xff] }
 0x427   : > { %6402 = vmatpush.msra.mxu1 %v14154_v61  ;;  %6263 = vmatpush.msrb.mxu2 %v14155_v60  ;;  %v14191_v61 = vld [vmem:[#allocation478_spill] sm:$0xff]  ;;  %v14192_v60 = vld [vmem:[#allocation479_spill] sm:$0xff] }
 0x428   : > { %6326 = vmatpush.msrb.mxu3 %v14129_v20  ;;  %6355 = vmatpush.msra.mxu0 %v14156_v49  ;;  %v14166_v20 = vld [vmem:[#allocation510_spill] sm:$0xff] }
 0x429   : > { %6408 = vmatpush.msra.mxu1 %v14157_v14  ;;  %6267 = vmatpush.msrb.mxu2 %v14158_v30  ;;  %v5178_v62 = vpop.f32.mrf.mxu0  ;;  %v14193_v14 = vld [vmem:[#allocation116_spill] sm:$0xff] }
 0x42a   : > { %6328 = vmatpush.msrb.mxu3 %v14131_v16  ;;  %6357 = vmatpush.msra.mxu0 %v14159_v47  ;;  %v14171_v16 = vld [vmem:[#allocation505_spill] sm:$0xff]  ;;  %v14194_v30 = vld [vmem:[#allocation484_spill] sm:$0xff] }
 0x42b   : > { %6414 = vmatpush.msra.mxu1 %v14160_v43  ;;  %6271 = vmatpush.msrb.mxu2 %v14161_v25  ;;  %v14195_v43 = vld [vmem:[#allocation482_spill] sm:$0xff]  ;;  %v5219_v25 = vpop.f32.mrf.mxu1 }
 0x42c   : > { %6330 = vmatpush.msrb.mxu3 %v14133_v44  ;;  %6224 = vmatmul.f32.gmra.mxu1 %v11034_v42  ;;  %v14168_v42 = vld [vmem:[#allocation500_spill] sm:$0xff]  ;;  %v14174_v44 = vld [vmem:[#allocation509_spill] sm:$0xff] }
 0x42d   : > { %6359 = vmatpush.msra.mxu0 %v14162_v39  ;;  %6420 = vmatpush.msra.mxu1 %v14163_v38 }
 0x42e   : > { %6275 = vmatpush.msrb.mxu2 %v14164_v50  ;;  %6332 = vmatpush.msrb.mxu3 %v14135_v15  ;;  %v14177_v15 = vld [vmem:[#allocation513_spill] sm:$0xff] }
 0x42f   : > { %6361 = vmatpush.msra.mxu0 %v14165_v26  ;;  %6334 = vmatmul.f32.vlgmr.msrb.gmra.mxu3 %v10966_v2  ;;  %v14197_v50 = vld [vmem:[#allocation489_spill] sm:$0xff] }
 0x430   : > { %6426 = vmatpush.msra.mxu1 %v14166_v20  ;;  %6556 = vmatpush.msra.mxu3 %v14142_v59 }
 0x431   : > { %6279 = vmatpush.msrb.mxu2 %v14167_v19  ;;  %6363 = vmatpush.msra.mxu0 %v14168_v42  ;;  %v14198_v19 = vld [vmem:[#allocation487_spill] sm:$0xff] }
 0x432   : > { %6432 = vmatpush.msra.mxu1 %v14169_v31  ;;  %6558 = vmatpush.msra.mxu3 %v14144_v63 }
 0x433   : > { %6283 = vmatpush.msrb.mxu2 %v14170_v48  ;;  %6365 = vmatpush.msra.mxu0 %v14171_v16  ;;  %v14199_v48 = vld [vmem:[#allocation494_spill] sm:$0xff] }
 0x434   : > { %6438 = vmatpush.msra.mxu1 %v14172_v4  ;;  %6560 = vmatpush.msra.mxu3 %v14146_v37  ;;  %v14200_v4 = vld [vmem:[#allocation493_spill] sm:$0xff] }
 0x435   : > { %6287 = vmatpush.msrb.mxu2 %v14173_v22  ;;  %6367 = vmatpush.msra.mxu0 %v14174_v44  ;;  %v5182_v22 = vpop.f32.mrf.mxu0 }
 0x436   : > { %6444 = vmatpush.msra.mxu1 %v14175_v53  ;;  %6562 = vmatpush.msra.mxu3 %v14148_v57  ;;  %v14202_v53 = vld [vmem:[#allocation498_spill] sm:$0xff] }
 0x437   : > { %6291 = vmatpush.msrb.mxu2 %v14176_v32  ;;  %6338 = vmatmul.f32.gmra.mxu3 %v11004_v21  ;;  %v14203_v32 = vld [vmem:[#allocation504_spill] sm:$0xff] }
 0x438   : > { %6293 = vmatmul.f32.vlgmr.msrb.gmra.mxu2 %v10966_v2  ;;  %6369 = vmatpush.msra.mxu0 %v14177_v15  ;;  %v5059_v2 = vpop.f32.mrf.mxu2 }
 0x439   : > { %6450 = vmatpush.msra.mxu1 %v14178_v28  ;;  %6498 = vmatpush.msra.mxu2 %v14179_v23  ;;  %v14204_v23 = vld [vmem:[#allocation503_spill] sm:$0xff] }
 0x43a   : > { %6564 = vmatpush.msra.mxu3 %v14150_v51  ;;  %6371 = vmatpush.msra.mxu0 %v14180_v52 }
 0x43b   : > { %6456 = vmatpush.msra.mxu1 %v14181_v45  ;;  %6501 = vmatpush.msra.mxu2 %v14182_v27  ;;  %v14205_v45 = vld [vmem:[#allocation508_spill] sm:$0xff]  ;;  %v5223_v27 = vpop.f32.mrf.mxu1 }
 0x43c   : > { %6566 = vmatpush.msra.mxu3 %v14153_v8  ;;  %6373 = vmatpush.msra.mxu0 %v14183_v46 }
 0x43d   : > { %6462 = vmatpush.msra.mxu1 %v14184_v54  ;;  %6504 = vmatpush.msra.mxu2 %v14185_v18  ;;  %v14207_v54 = vld [vmem:[#allocation512_spill] sm:$0xff]  ;;  %v5431_v18 = vpop.f32.mrf.mxu0 }
 0x43e   : > { %6568 = vmatpush.msra.mxu3 %v14156_v49  ;;  %6379 = vmatmul.f32.vlgmr.msra.gmra.mxu0 %v11203_v56  ;;  %v4893_v56 = vadd.f32 1e-05, %v4892_v13  ;;  %v5109_v13 = vpop.f32.mrf.mxu3 }
 0x43f   : > { %6468 = vmatpush.msra.mxu1 %v14186_v7  ;;  %6603 = vmatpush.msrb.mxu0 %v14187_v35  ;;  %v14209_v7 = vld [vmem:[#allocation30_spill] sm:$0xff]  ;;  %v14211_v35 = vld [vmem:[#allocation516_spill] sm:$0xff] }
 0x440   : > { %6507 = vmatpush.msra.mxu2 %v14188_v5  ;;  %6570 = vmatpush.msra.mxu3 %v14159_v47  ;;  %v5064_v38 = vpop.f32.mrf.mxu2  ;;  %v5002_v20 = vadd.f32 %v5001_v40, %v4893_v56  ;;  %v14201_v40 = vld [vmem:[#allocation499_spill] sm:$0xff]  ;;  %v14215_v56 = vld [vmem:[#allocation518_spill] sm:$0xff] }
 0x441   : > { %6297 = vmatmul.f32.gmra.mxu2 %v11004_v21  ;;  %6607 = vmatpush.msrb.mxu0 %v14189_v33  ;;  %v14196_v21 = vld [vmem:[#allocation134_spill] sm:$0xff]  ;;  %v14213_v33 = vld [vmem:[#allocation545_spill] sm:$0xff] }
 0x442   : > { %6474 = vmatpush.msra.mxu1 %v14190_v41  ;;  %6510 = vmatpush.msra.mxu2 %v14191_v61  ;;  %v5060_v31 = vadd.f32 %v5059_v2, %v5002_v20  ;;  %v14214_v41 = vld [vmem:[#allocation520_spill] sm:$0xff] }
 0x443   : > { %6572 = vmatpush.msra.mxu3 %v14162_v39  ;;  %6611 = vmatpush.msrb.mxu0 %v14192_v60  ;;  %v14221_v20 = vld [vmem:[#allocation4_spill] sm:$0xff] }
 0x444   : > { %6480 = vmatpush.msra.mxu1 %v14193_v14  ;;  %6513 = vmatpush.msra.mxu2 %v14194_v30  ;;  %v14216_v14 = vld [vmem:[#allocation548_spill] sm:$0xff]  ;;  %v14217_v30 = vld [vmem:[#allocation525_spill] sm:$0xff] }
 0x445   : > { %6574 = vmatpush.msra.mxu3 %v14165_v26  ;;  %6615 = vmatpush.msrb.mxu0 %v14195_v43 }
 0x446   : > { %6486 = vmatpush.msra.mxu1 %v14196_v21  ;;  %6516 = vmatpush.msra.mxu2 %v14197_v50  ;;  %v14218_v21 = vld [vmem:[#allocation522_spill] sm:$0xff] }
 0x447   : > { %6576 = vmatpush.msra.mxu3 %v14168_v42  ;;  %6387 = vmatmul.f32.gmra.mxu0 %v11225_v58  ;;  %v4901_v58 = vadd.f32 1e-05, %v4900_v12 }
 0x448   : > { %6488 = vmatmul.f32.vlgmr.msra.gmra.mxu1 %v11145_v24  ;;  %6619 = vmatpush.msrb.mxu0 %v14198_v19  ;;  %v5264_v28 = vpop.f32.mrf.mxu2  ;;  %v5436_v19 = vpop.f32.mrf.mxu0 }
 0x449   : > { %6674 = vmatpush.msrb.mxu1 %v14142_v59  ;;  %6519 = vmatpush.msra.mxu2 %v14199_v48  ;;  %v5104_v59 = vadd.f32 %v5103_v1, %v5060_v31  ;;  %v5006_v12 = vadd.f32 %v5005_v34, %v4901_v58  ;;  %v14210_v34 = vld [vmem:[#allocation541_spill] sm:$0xff]  ;;  %v14224_v31 = vld [vmem:[#allocation124_spill] sm:$0xff]  ;;  %v14225_v48 = vld [vmem:[#allocation555_spill] sm:$0xff] }
 0x44a   : > { %6578 = vmatpush.msra.mxu3 %v14171_v16  ;;  %6623 = vmatpush.msrb.mxu0 %v14200_v4  ;;  %v14226_v4 = vld [vmem:[#allocation530_spill] sm:$0xff]  ;;  %v14228_v58 = vld [vmem:[#allocation559_spill] sm:$0xff] }
 0x44b   : > { %6676 = vmatpush.msrb.mxu1 %v14144_v63  ;;  %6522 = vmatpush.msra.mxu2 %v14201_v40  ;;  %v5373_v63 = vpop.f32.mrf.mxu3  ;;  %v5179_v2 = vadd.f32 %v5178_v62, %v5104_v59  ;;  %v5065_v1 = vadd.f32 %v5064_v38, %v5006_v12  ;;  %v14212_v62 = vld [vmem:[#allocation515_spill] sm:$0xff]  ;;  %v14220_v38 = vld [vmem:[#allocation528_spill] sm:$0xff] }
 0x44c   : > { %6580 = vmatpush.msra.mxu3 %v14174_v44  ;;  %6627 = vmatpush.msrb.mxu0 %v14202_v53  ;;  %v14227_v40 = vld [vmem:[#allocation108_spill] sm:$0xff]  ;;  %v14233_v12 = vld [vmem:[#allocation127_spill] sm:$0xff] }
 0x44d   : > { %6678 = vmatpush.msrb.mxu1 %v14146_v37  ;;  %6525 = vmatpush.msra.mxu2 %v14203_v32  ;;  %v14206_v37 = vld [vmem:[#allocation507_spill] sm:$0xff]  ;;  %v5220_v5 = vadd.f32 %v5219_v25, %v5179_v2  ;;  %v14219_v25 = vld [vmem:[#allocation552_spill] sm:$0xff] }
 0x44e   : > { %6582 = vmatpush.msra.mxu3 %v14177_v15  ;;  %6631 = vmatpush.msrb.mxu0 %v14204_v23  ;;  %v14229_v59 = vld [vmem:[#allocation532_spill] sm:$0xff]  ;;  %v14231_v23 = vld [vmem:[#allocation145_spill] sm:$0xff] }
 0x44f   : > { %6680 = vmatpush.msrb.mxu1 %v14148_v57  ;;  %6528 = vmatpush.msra.mxu2 %v14205_v45  ;;  %v14208_v57 = vld [vmem:[#allocation511_spill] sm:$0xff]  ;;  %v5265_v61 = vadd.f32 %v5264_v28, %v5220_v5  ;;  %v14230_v28 = vld [vmem:[#allocation140_spill] sm:$0xff] }
 0x450   : > { %6584 = vmatpush.msra.mxu3 %v14180_v52  ;;  %6492 = vmatmul.f32.gmra.mxu1 %v11178_v17  ;;  %v5272_v60 = vpop.f32.mrf.mxu2  ;;  %v14232_v45 = vld [vmem:[#allocation132_spill] sm:$0xff]  ;;  %v5636_v2 = vpop.f32.mrf.mxu0 }
 0x451   : > { %6635 = vmatpush.msrb.mxu0 %v14206_v37  ;;  %6682 = vmatpush.msrb.mxu1 %v14150_v51  ;;  %v5110_v51 = vadd.f32 %v5109_v13, %v5065_v1  ;;  %v5374_v50 = vadd.f32 %v5373_v63, %v5265_v61  ;;  %v14223_v13 = vld [vmem:[#allocation526_spill] sm:$0xff]  ;;  %v14234_v37 = vld [vmem:[#allocation565_spill] sm:$0xff]  ;;  %v14236_v1 = vld [vmem:[#allocation135_spill] sm:$0xff] }
 0x452   : > { %6531 = vmatpush.msra.mxu2 %v14207_v54  ;;  %6586 = vmatpush.msra.mxu3 %v14183_v46 }
 0x453   : > { %6639 = vmatpush.msrb.mxu0 %v14208_v57  ;;  %6590 = vmatmul.f32.vlgmr.msra.gmra.mxu3 %v14209_v7  ;;  %v5377_v43 = vpop.f32.mrf.mxu3  ;;  %v14237_v57 = vld [vmem:[#allocation146_spill] sm:$0xff] }
 0x454   : > { %6684 = vmatpush.msrb.mxu1 %v14153_v8  ;;  %6768 = vmatpush.msrb.mxu3 %v14210_v34  ;;  %v5475_v8 = vpop.f32.mrf.mxu1  ;;  %v14240_v34 = vld [vmem:[#allocation534_spill] sm:$0xff] }
 0x455   : > { %6534 = vmatpush.msra.mxu2 %v14211_v35  ;;  %6643 = vmatpush.msrb.mxu0 %v14212_v62  ;;  %v14241_v35 = vld [vmem:[#allocation572_spill] sm:$0xff]  ;;  %v14242_v62 = vld [vmem:[#allocation143_spill] sm:$0xff] }
 0x456   : > { %6686 = vmatpush.msrb.mxu1 %v14156_v49  ;;  %6774 = vmatpush.msrb.mxu3 %v14213_v33  ;;  %v5183_v49 = vadd.f32 %v5182_v22, %v5110_v51  ;;  %v5432_v22 = vadd.f32 %v5431_v18, %v5374_v50  ;;  %v14238_v18 = vld [vmem:[#allocation568_spill] sm:$0xff]  ;;  %v14243_v51 = vld [vmem:[#allocation537_spill] sm:$0xff] }
 0x457   : > { %6537 = vmatpush.msra.mxu2 %v14214_v41  ;;  %6647 = vmatpush.msrb.mxu0 %v14215_v56  ;;  %v14245_v56 = vld [vmem:[#allocation536_spill] sm:$0xff] }
 0x458   : > { %6688 = vmatpush.msrb.mxu1 %v14159_v47  ;;  %6780 = vmatpush.msrb.mxu3 %v14216_v14  ;;  %v14222_v47 = vld [vmem:[#allocation5_spill] sm:$0xff]  ;;  %v14253_v50 = vld [vmem:[#allocation224_spill] sm:$0xff] }
 0x459   : > { %6540 = vmatpush.msra.mxu2 %v14217_v30  ;;  %6651 = vmatpush.msrb.mxu0 %v14218_v21  ;;  %v14248_v30 = vld [vmem:[#allocation539_spill] sm:$0xff] }
 0x45a   : > { %6690 = vmatpush.msrb.mxu1 %v14162_v39  ;;  %6786 = vmatpush.msrb.mxu3 %v14219_v25  ;;  %v5224_v39 = vadd.f32 %v5223_v27, %v5183_v49  ;;  %v14249_v21 = vld [vmem:[#allocation543_spill] sm:$0xff] }
 0x45b   : > { %6543 = vmatpush.msra.mxu2 %v14220_v38  ;;  %6596 = vmatmul.f32.gmra.mxu3 %v14222_v47  ;;  %v5591_v32 = vpop.f32.mrf.mxu3  ;;  %v14250_v49 = vld [vmem:[#allocation579_spill] sm:$0xff]  ;;  %v14252_v38 = vld [vmem:[#allocation546_spill] sm:$0xff]  ;;  %v14254_v47 = vld [vmem:[#allocation141_spill] sm:$0xff] }
 0x45c   : > { %6546 = vmatmul.f32.vlgmr.msra.gmra.mxu2 %v14221_v20  ;;  %6655 = vmatpush.msrb.mxu0 %v14223_v13  ;;  %v5273_v53 = vadd.f32 %v5272_v60, %v5224_v39  ;;  %v5481_v63 = vpop.f32.mrf.mxu1  ;;  %v14246_v60 = vld [vmem:[#allocation540_spill] sm:$0xff] }
 0x45d   : > { %6692 = vmatpush.msrb.mxu1 %v14165_v26  ;;  %6715 = vmatpush.msrb.mxu2 %v14224_v31  ;;  %v5550_v26 = vpop.f32.mrf.mxu2 }
 0x45e   : > { %6792 = vmatpush.msrb.mxu3 %v14225_v48  ;;  %6659 = vmatpush.msrb.mxu0 %v14226_v4  ;;  %v5378_v27 = vadd.f32 %v5377_v43, %v5273_v53  ;;  %v5644_v43 = vpop.f32.mrf.mxu0  ;;  %v14256_v48 = vld [vmem:[#allocation26_spill] sm:$0xff]  ;;  %v14258_v53 = vld [vmem:[#allocation553_spill] sm:$0xff] }
 0x45f   : > { %6694 = vmatpush.msrb.mxu1 %v14168_v42  ;;  %6717 = vmatpush.msrb.mxu2 %v14227_v40  ;;  %v5476_v42 = vadd.f32 %v5475_v8, %v5432_v22  ;;  %v14257_v22 = vld [vmem:[#allocation549_spill] sm:$0xff] }
 0x460   : > { %6798 = vmatpush.msrb.mxu3 %v14228_v58  ;;  %6663 = vmatpush.msrb.mxu0 %v14229_v59  ;;  %v5437_v7 = vadd.f32 %v5436_v19, %v5378_v27  ;;  %v14255_v19 = vld [vmem:[#allocation550_spill] sm:$0xff] }
 0x461   : > { %6696 = vmatpush.msrb.mxu1 %v14171_v16  ;;  %6719 = vmatpush.msrb.mxu2 %v14230_v28  ;;  %v14235_v16 = vld [vmem:[#allocation202_spill] sm:$0xff]  ;;  %v5551_v54 = vadd.f32 %v5550_v26, %v5476_v42  ;;  %v14262_v42 = vld [vmem:[#allocation556_spill] sm:$0xff] }
 0x462   : > { %6804 = vmatpush.msrb.mxu3 %v14231_v23  ;;  %6665 = vmatmul.f32.vlgmr.msrb.gmra.mxu0 %v11145_v24  ;;  %v14260_v23 = vld [vmem:[#allocation144_spill] sm:$0xff] }
 0x463   : > { %6698 = vmatpush.msrb.mxu1 %v14174_v44  ;;  %6870 = vmatpush.msra.mxu0 %v14232_v45  ;;  %v14239_v44 = vld [vmem:[#allocation142_spill] sm:$0xff]  ;;  %v5592_v5 = vadd.f32 %v5591_v32, %v5551_v54  ;;  %v5595_v61 = vpop.f32.mrf.mxu3  ;;  %v14259_v32 = vld [vmem:[#allocation27_spill] sm:$0xff] }
 0x464   : > { %6721 = vmatpush.msrb.mxu2 %v14233_v12  ;;  %6810 = vmatpush.msrb.mxu3 %v14234_v37  ;;  %v5745_v33 = vpop.f32.mrf.mxu1  ;;  %v14263_v37 = vld [vmem:[#allocation562_spill] sm:$0xff] }
 0x465   : > { %6551 = vmatmul.f32.gmra.mxu2 %v14235_v16  ;;  %6873 = vmatpush.msra.mxu0 %v14236_v1  ;;  %v5554_v41 = vpop.f32.mrf.mxu2  ;;  %v5637_v8 = vadd.f32 %v5636_v2, %v5592_v5  ;;  %v14264_v16 = vld [vmem:[#allocation560_spill] sm:$0xff]  ;;  %v14268_v5 = vld [vmem:[#allocation182_spill] sm:$0xff] }
 0x466   : > { %6700 = vmatpush.msrb.mxu1 %v14177_v15  ;;  %6723 = vmatpush.msrb.mxu2 %v14237_v57  ;;  %v14244_v15 = vld [vmem:[#allocation574_spill] sm:$0xff] }
 0x467   : > { %6816 = vmatpush.msrb.mxu3 %v14238_v18  ;;  %6876 = vmatpush.msra.mxu0 %v14239_v44  ;;  %v5746_v25 = vadd.f32 %v5745_v33, %v5637_v8  ;;  %v14266_v18 = vld [vmem:[#allocation564_spill] sm:$0xff]  ;;  %v14271_v33 = vld [vmem:[#allocation573_spill] sm:$0xff] }
 0x468   : > { %6702 = vmatpush.msrb.mxu1 %v14180_v52  ;;  %6725 = vmatpush.msrb.mxu2 %v14240_v34  ;;  %v5482_v52 = vadd.f32 %v5481_v63, %v5437_v7 }
 0x469   : > { %6822 = vmatpush.msrb.mxu3 %v14241_v35  ;;  %6879 = vmatpush.msra.mxu0 %v14242_v62  ;;  %v14270_v62 = vld [vmem:[#allocation136_spill] sm:$0xff] }
 0x46a   : > { %6704 = vmatpush.msrb.mxu1 %v14183_v46  ;;  %6727 = vmatpush.msrb.mxu2 %v14243_v51  ;;  %v14247_v46 = vld [vmem:[#allocation577_spill] sm:$0xff]  ;;  %v5555_v14 = vadd.f32 %v5554_v41, %v5482_v52  ;;  %v14272_v41 = vld [vmem:[#allocation139_spill] sm:$0xff] }
 0x46b   : > { %6828 = vmatpush.msrb.mxu3 %v14244_v15  ;;  %6669 = vmatmul.f32.gmra.mxu0 %v11178_v17  ;;  %v5847_v39 = vpop.f32.mrf.mxu3 }
 0x46c   : > { %6706 = vmatmul.f32.vlgmr.msrb.gmra.mxu1 %v11145_v24  ;;  %6882 = vmatpush.msra.mxu0 %v14245_v56  ;;  %v14251_v24 = vld [vmem:[#allocation542_spill] sm:$0xff]  ;;  %v5596_v20 = vadd.f32 %v5595_v61, %v5555_v14  ;;  %v5749_v58 = vpop.f32.mrf.mxu1  ;;  %v14273_v61 = vld [vmem:[#allocation576_spill] sm:$0xff]  ;;  %v14274_v56 = vld [vmem:[#allocation535_spill] sm:$0xff] }
 0x46d   : > { %6928 = vmatpush.msra.mxu1 %v14224_v31  ;;  %6729 = vmatpush.msrb.mxu2 %v14246_v60  ;;  %v14275_v14 = vld [vmem:[#allocation538_spill] sm:$0xff] }
 0x46e   : > { %6834 = vmatpush.msrb.mxu3 %v14247_v46  ;;  %6885 = vmatpush.msra.mxu0 %v14248_v30  ;;  %v5645_v26 = vadd.f32 %v5644_v43, %v5596_v20  ;;  %v14276_v30 = vld [vmem:[#allocation544_spill] sm:$0xff] }
 0x46f   : > { %6930 = vmatpush.msra.mxu1 %v14227_v40  ;;  %6731 = vmatpush.msrb.mxu2 %v14249_v21 }
 0x470   : > { %6840 = vmatpush.msrb.mxu3 %v14250_v49  ;;  %6888 = vmatpush.msra.mxu0 %v14251_v24  ;;  %v5750_v27 = vadd.f32 %v5749_v58, %v5645_v26  ;;  %v7155_v49 = vperm.slane %v11790_v29, 1  ;;  %v14279_v24 = vld [vmem:[#allocation554_spill] sm:$0xff]  ;;  %v14285_v26 = vld [vmem:[#allocation571_spill] sm:$0xff] }
 0x471   : > { %6932 = vmatpush.msra.mxu1 %v14230_v28  ;;  %6733 = vmatpush.msrb.mxu2 %v14252_v38 }
 0x472   : > { %6846 = vmatpush.msrb.mxu3 %v14253_v50  ;;  %6891 = vmatpush.msra.mxu0 %v14254_v47  ;;  %v14280_v50 = vld [vmem:[#allocation3_spill] sm:$0xff]  ;;  %v7169_v47 = vperm.slane %v11800_v11, 1 }
 0x473   : > { %6934 = vmatpush.msra.mxu1 %v14233_v12  ;;  %v5803_v13 = vpop.f32.mrf.mxu2  ;;  %6735 = vmatpush.msrb.mxu2 %v14255_v19  ;;  %v5922_v63 = vpop.f32.mrf.mxu0 }
 0x474   : > { %6852 = vmatpush.msrb.mxu3 %v14256_v48  ;;  %v5804_v4 = vadd.f32 %v5803_v13, %v5746_v25  ;;  %6710 = vmatmul.f32.gmra.mxu1 %v11178_v17  ;;  %v14261_v17 = vld [vmem:[#allocation558_spill] sm:$0xff]  ;;  %v5853_v44 = vpop.f32.mrf.mxu3  ;;  %v14281_v13 = vld [vmem:[#allocation557_spill] sm:$0xff] }
 0x475   : > { %6894 = vmatpush.msra.mxu0 %v14257_v22  ;;  %6936 = vmatpush.msra.mxu1 %v14237_v57 }
 0x476   : > { %6737 = vmatpush.msrb.mxu2 %v14258_v53  ;;  %v5848_v59 = vadd.f32 %v5847_v39, %v5804_v4  ;;  %6858 = vmatpush.msrb.mxu3 %v14259_v32  ;;  %v14283_v4 = vld [vmem:[#allocation563_spill] sm:$0xff]  ;;  %v14286_v32 = vld [vmem:[#allocation192_spill] sm:$0xff] }
 0x477   : > { %6897 = vmatpush.msra.mxu0 %v14260_v23  ;;  %6860 = vmatmul.f32.vlgmr.msrb.gmra.mxu3 %v11362_v10 }
 0x478   : > { %6938 = vmatpush.msra.mxu1 %v14240_v34  ;;  %7046 = vmatpush.msra.mxu3 %v14224_v31  ;;  %v5923_v45 = vadd.f32 %v5922_v63, %v5848_v59  ;;  %v14265_v31 = vld [vmem:[#allocation566_spill] sm:$0xff]  ;;  %v14287_v63 = vld [vmem:[#allocation575_spill] sm:$0xff] }
 0x479   : > { %6739 = vmatpush.msrb.mxu2 %v14261_v17  ;;  %6900 = vmatpush.msra.mxu0 %v14262_v42 }
 0x47a   : > { %6940 = vmatpush.msra.mxu1 %v14243_v51  ;;  %7048 = vmatpush.msra.mxu3 %v14227_v40  ;;  %v14267_v40 = vld [vmem:[#allocation570_spill] sm:$0xff] }
 0x47b   : > { %6741 = vmatpush.msrb.mxu2 %v14263_v37  ;;  %6903 = vmatpush.msra.mxu0 %v14264_v16 }
 0x47c   : > { %6942 = vmatpush.msra.mxu1 %v14246_v60  ;;  %v5808_v2 = vpop.f32.mrf.mxu2  ;;  %7050 = vmatpush.msra.mxu3 %v14230_v28  ;;  %v14269_v28 = vld [vmem:[#allocation569_spill] sm:$0xff]  ;;  %v5926_v15 = vpop.f32.mrf.mxu0 }
 0x47d   : > { %6743 = vmatpush.msrb.mxu2 %v14265_v31  ;;  %v5963_v54 = vpop.f32.mrf.mxu1  ;;  %v5809_v1 = vadd.f32 %v5808_v2, %v5750_v27  ;;  %6906 = vmatpush.msra.mxu0 %v14266_v18 }
 0x47e   : > { %6944 = vmatpush.msra.mxu1 %v14249_v21  ;;  %v5964_v7 = vadd.f32 %v5963_v54, %v5923_v45  ;;  %7052 = vmatpush.msra.mxu3 %v14233_v12  ;;  %v14289_v45 = vld [vmem:[#allocation580_spill] sm:$0xff] }
 0x47f   : > { %6745 = vmatpush.msrb.mxu2 %v14267_v40  ;;  %v5854_v35 = vadd.f32 %v5853_v44, %v5809_v1  ;;  %6864 = vmatmul.f32.gmra.mxu3 %v11396_v36 }
 0x480   : > { %6751 = vmatmul.f32.vlgmr.msrb.gmra.mxu2 %v14268_v5  ;;  %7471 = vrsqrt.f32 %v5964_v7  ;;  %6909 = vmatpush.msra.mxu0 %v14269_v28  ;;  %vm7102_vm7 = vweird.f32 %v5964_v7 }
 0x481   : > { %6946 = vmatpush.msra.mxu1 %v14252_v38  ;;  %6975 = vmatpush.msra.mxu2 %v14270_v62  ;;  %v5927_v12 = vadd.f32 %v5926_v15, %v5854_v35 }
 0x482   : > { %7054 = vmatpush.msra.mxu3 %v14237_v57  ;;  %6912 = vmatpush.msra.mxu0 %v14271_v33 }
 0x483   : > { %6948 = vmatpush.msra.mxu1 %v14255_v19  ;;  %6979 = vmatpush.msra.mxu2 %v14272_v41 }
 0x484   : > { %7056 = vmatpush.msra.mxu3 %v14240_v34  ;;  %6915 = vmatpush.msra.mxu0 %v14273_v61 }
 0x485   : > { %6950 = vmatpush.msra.mxu1 %v14258_v53  ;;  %6983 = vmatpush.msra.mxu2 %v14274_v56  ;;  %v5967_v57 = vpop.f32.mrf.mxu1 }
 0x486   : > { %v7472_v52 = vpop.eup %7471  ;;  %7058 = vmatpush.msra.mxu3 %v14243_v51  ;;  %6918 = vmatmul.f32.vlgmr.msra.gmra.mxu0 %v11369_v9  ;;  %v5968_v46 = vadd.f32 %v5967_v57, %v5927_v12  ;;  %v14277_v51 = vld [vmem:[#allocation547_spill] sm:$0xff] }
 0x487   : > { %6952 = vmatpush.msra.mxu1 %v14261_v17  ;;  %v7097_v8 = vmul.f32 %v7472_v52, %v5964_v7  ;;  %6987 = vmatpush.msra.mxu2 %v14275_v14  ;;  %vm7103_vm6 = vweird.f32 %v7472_v52 }
 0x488   : > { %7060 = vmatpush.msra.mxu3 %v14246_v60  ;;  %6759 = vmatmul.f32.gmra.mxu2 %v11434_v3  ;;  %7473 = vrsqrt.f32 %v5968_v46  ;;  %v14278_v3 = vld [vmem:[#allocation551_spill] sm:$0xff]  ;;  %vm7104_vm8 = vmor %vm7102_vm7, %vm7103_vm6  ;;  %vm7132_vm10 = vweird.f32 %v5968_v46 }
 0x489   : > { %6954 = vmatpush.msra.mxu1 %v14263_v37  ;;  %v7098_v34 = vmul.f32 %v7472_v52, %v7097_v8  ;;  %6991 = vmatpush.msra.mxu2 %v14276_v30 }
 0x48a   : > { %7062 = vmatpush.msra.mxu3 %v14249_v21 }
 0x48b   : > { %6956 = vmatpush.msra.mxu1 %v14265_v31  ;;  %v7099_v9 = vmul.f32 0.5, %v7098_v34  ;;  %6995 = vmatpush.msra.mxu2 %v14277_v51 }
 0x48c   : > { %7064 = vmatpush.msra.mxu3 %v14252_v38 }
 0x48d   : > { %6958 = vmatpush.msra.mxu1 %v14267_v40  ;;  %v7100_v60 = vsub.f32 1.5, %v7099_v9  ;;  %6999 = vmatpush.msra.mxu2 %v14278_v3 }
 0x48e   : > { %7066 = vmatpush.msra.mxu3 %v14255_v19  ;;  %v7474_v43 = vpop.eup %7473  ;;  %6923 = vmatmul.f32.gmra.mxu0 %v11405_v55  ;;  %v14282_v19 = vld [vmem:[#allocation561_spill] sm:$0xff]  ;;  %v6117_v27 = vpop.f32.mrf.mxu3 }
 0x48f   : > { %6962 = vmatmul.f32.vlgmr.msra.gmra.mxu1 %v11377_v6  ;;  %v7101_v21 = vmul.f32 %v7472_v52, %v7100_v60  ;;  %7003 = vmatpush.msra.mxu2 %v14279_v24  ;;  %v7127_v25 = vmul.f32 %v7474_v43, %v5968_v46  ;;  %vm7133_vm9 = vweird.f32 %v7474_v43 }
 0x490   : > { %7068 = vmatpush.msra.mxu3 %v14258_v53  ;;  %v14284_v53 = vld [vmem:[#allocation567_spill] sm:$0xff]  ;;  %vm7134_vm11 = vmor %vm7132_vm10, %vm7133_vm9 }
 0x491   : > { %v7105_v38 = vsel %vm7104_vm8, %v7472_v52, %v7101_v21  ;;  %7007 = vmatpush.msra.mxu2 %v14281_v13  ;;  %v7128_v6 = vmul.f32 %v7474_v43, %v7127_v25 }
 0x492   : > { %v7147_v20 = vmul.f32 %v7105_v38, %v14280_v50  ;;  %7070 = vmatpush.msra.mxu3 %v14261_v17 }
 0x493   : > { %7011 = vmatpush.msra.mxu2 %v14282_v19  ;;  %v7129_v48 = vmul.f32 0.5, %v7128_v6 }
 0x494   : > { %v7161_v55 = vmul.f32 %v7155_v49, %v7147_v20  ;;  %7072 = vmatpush.msra.mxu3 %v14263_v37 }
 0x495   : > { %7015 = vmatpush.msra.mxu2 %v14283_v4  ;;  %v7130_v22 = vsub.f32 1.5, %v7129_v48 }
 0x496   : > { %v7175_v39 = vadd.f32 %v7169_v47, %v7161_v55  ;;  %7074 = vmatpush.msra.mxu3 %v14265_v31  ;;  %v6121_v16 = vpop.f32.mrf.mxu3 }
 0x497   : > { %6968 = vmatmul.f32.gmra.mxu1 %v11414_v0  ;;  %v7131_v58 = vmul.f32 %v7474_v43, %v7130_v22  ;;  %7019 = vmatpush.msra.mxu2 %v14284_v53  ;;  %v14288_v0 = vld [vmem:[#allocation578_spill] sm:$0xff]  ;;  %v6008_v37 = vpop.f32.mrf.mxu2  ;;  %v6175_v2 = vpop.f32.mrf.mxu0 }
 0x498   : > { %7181 = vst [vmem:[%s11822_s29 + $0x8] sm:$0xff] %v7175_v39  ;;  %7076 = vmatpush.msra.mxu3 %v14267_v40  ;;  %v6009_v1 = vadd.f32 1e-05, %v6008_v37 }
 0x499   : > { %7078 = vmatmul.f32.vlgmr.msra.gmra.mxu3 %v11362_v10  ;;  %v7135_v59 = vsel %vm7134_vm11, %v7474_v43, %v7131_v58  ;;  %7023 = vmatpush.msra.mxu2 %v14285_v26 }
 0x49a   : > { %v7150_v23 = vmul.f32 %v7135_v59, %v14286_v32  ;;  %v6118_v40 = vadd.f32 %v6117_v27, %v6009_v1 }
 0x49b   : > { %7027 = vmatpush.msra.mxu2 %v14287_v63 }
 0x49c   : > { %v7164_v17 = vmul.f32 %v7155_v49, %v7150_v23  ;;  %v6176_v5 = vadd.f32 %v6175_v2, %v6118_v40 }
 0x49d   : > { %7031 = vmatpush.msra.mxu2 %v14288_v0 }
 0x49e   : > { %v7178_v42 = vadd.f32 %v7169_v47, %v7164_v17 }
 0x49f   : > { %7035 = vmatpush.msra.mxu2 %v14289_v45 }
 0x4a0   : > { %7184 = vst [vmem:[%s11822_s29 + $0x20] sm:$0xff] %v7178_v42  ;;  %7037 = vmatmul.f32.vlgmr.msra.gmra.mxu2 %v11362_v10  ;;  %v6016_v31 = vpop.f32.mrf.mxu2  ;;  %v6180_v7 = vpop.f32.mrf.mxu0 }
 0x4a1   : > { %7082 = vmatmul.f32.gmra.mxu3 %v11396_v36  ;;  %v6219_v54 = vpop.f32.mrf.mxu1  ;;  %v6017_v28 = vadd.f32 1e-05, %v6016_v31 }
 0x4a2   : > { %v6220_v33 = vadd.f32 %v6219_v54, %v6176_v5 }
 0x4a3   : > { %v6122_v12 = vadd.f32 %v6121_v16, %v6017_v28 }
 0x4a5   : > { %v6181_v61 = vadd.f32 %v6180_v7, %v6122_v12  ;;  %v7156_v12 = vperm.slane %v11790_v29, 2 }
 0x4a8   : > { %7041 = vmatmul.f32.gmra.mxu2 %v11396_v36 }
 0x4a9   : > { %v6225_v35 = vpop.f32.mrf.mxu1 }
 0x4aa   : > { %v6226_v8 = vadd.f32 %v6225_v35, %v6181_v61  ;;  %v14290_v61 = vld [vmem:[#allocation35_spill] sm:$0xff] }
 0x4b2   : > { %v6335_v18 = vpop.f32.mrf.mxu3 }
 0x4ba   : > { %v6339_v62 = vpop.f32.mrf.mxu3 }
 0x4bb   : > { %v6294_v44 = vpop.f32.mrf.mxu2  ;;  %v6380_v10 = vpop.f32.mrf.mxu0 }
 0x4bc   : > { %v6295_v41 = vadd.f32 %v6294_v44, %v6220_v33 }
 0x4be   : > { %v6336_v52 = vadd.f32 %v6335_v18, %v6295_v41 }
 0x4c0   : > { %v6381_v14 = vadd.f32 %v6380_v10, %v6336_v52 }
 0x4c4   : > { %v6298_v15 = vpop.f32.mrf.mxu2  ;;  %v6388_v46 = vpop.f32.mrf.mxu0 }
 0x4c5   : > { %v6489_v36 = vpop.f32.mrf.mxu1  ;;  %v6299_v34 = vadd.f32 %v6298_v15, %v6226_v8 }
 0x4c6   : > { %v6490_v9 = vadd.f32 %v6489_v36, %v6381_v14 }
 0x4c7   : > { %v6340_v51 = vadd.f32 %v6339_v62, %v6299_v34 }
 0x4c9   : > { %v6389_v49 = vadd.f32 %v6388_v46, %v6340_v51 }
 0x4cd   : > { %v6493_v30 = vpop.f32.mrf.mxu1 }
 0x4ce   : > { %v6494_v38 = vadd.f32 %v6493_v30, %v6389_v49 }
 0x4d6   : > { %v6591_v56 = vpop.f32.mrf.mxu3 }
 0x4de   : > { %v6597_v3 = vpop.f32.mrf.mxu3 }
 0x4df   : > { %v6547_v57 = vpop.f32.mrf.mxu2  ;;  %v6666_v43 = vpop.f32.mrf.mxu0 }
 0x4e0   : > { %v6548_v60 = vadd.f32 %v6547_v57, %v6490_v9  ;;  %v14291_v9 = vld [vmem:[#allocation247_spill] sm:$0xff] }
 0x4e2   : > { %v6592_v25 = vadd.f32 %v6591_v56, %v6548_v60  ;;  %v7170_v56 = vperm.slane %v11800_v11, 2 }
 0x4e4   : > { %v6667_v50 = vadd.f32 %v6666_v43, %v6592_v25 }
 0x4e8   : > { %v6552_v21 = vpop.f32.mrf.mxu2  ;;  %v6670_v6 = vpop.f32.mrf.mxu0 }
 0x4e9   : > { %v6707_v24 = vpop.f32.mrf.mxu1  ;;  %v6553_v20 = vadd.f32 %v6552_v21, %v6494_v38 }
 0x4ea   : > { %v6708_v55 = vadd.f32 %v6707_v24, %v6667_v50 }
 0x4eb   : > { %v6598_v19 = vadd.f32 %v6597_v3, %v6553_v20 }
 0x4ed   : > { %v6671_v4 = vadd.f32 %v6670_v6, %v6598_v19 }
 0x4f1   : > { %v6711_v48 = vpop.f32.mrf.mxu1 }
 0x4f2   : > { %v6712_v26 = vadd.f32 %v6711_v48, %v6671_v4 }
 0x4fa   : > { %v6861_v47 = vpop.f32.mrf.mxu3 }
 0x502   : > { %v6865_v58 = vpop.f32.mrf.mxu3 }
 0x503   : > { %v6752_v13 = vpop.f32.mrf.mxu2  ;;  %v6919_v53 = vpop.f32.mrf.mxu0 }
 0x504   : > { %v6753_v39 = vadd.f32 %v6752_v13, %v6708_v55 }
 0x506   : > { %v6862_v22 = vadd.f32 %v6861_v47, %v6753_v39 }
 0x508   : > { %v6920_v23 = vadd.f32 %v6919_v53, %v6862_v22 }
 0x50b   : > { %v6760_v59 = vpop.f32.mrf.mxu2  ;;  %v6924_v37 = vpop.f32.mrf.mxu0 }
 0x50c   : > { %v6963_v32 = vpop.f32.mrf.mxu1  ;;  %v6761_v63 = vadd.f32 %v6760_v59, %v6712_v26 }
 0x50d   : > { %v6964_v17 = vadd.f32 %v6963_v32, %v6920_v23 }
 0x50e   : > { %v6866_v0 = vadd.f32 %v6865_v58, %v6761_v63 }
 0x510   : > { %v6925_v16 = vadd.f32 %v6924_v37, %v6866_v0 }
 0x514   : > { %v6969_v31 = vpop.f32.mrf.mxu1 }
 0x515   : > { %v6970_v54 = vadd.f32 %v6969_v31, %v6925_v16 }
 0x51c   : > { %v7079_v42 = vpop.f32.mrf.mxu3 }
 0x523   : > { %v7038_v45 = vpop.f32.mrf.mxu2 }
 0x524   : > { %v7039_v27 = vadd.f32 %v7038_v45, %v6964_v17  ;;  %v7083_v44 = vpop.f32.mrf.mxu3 }
 0x526   : > { %v7080_v2 = vadd.f32 %v7079_v42, %v7039_v27 }
 0x528   : > { %7475 = vrsqrt.f32 %v7080_v2  ;;  %vm7112_vm13 = vweird.f32 %v7080_v2 }
 0x52b   : > { %v7042_v1 = vpop.f32.mrf.mxu2 }
 0x52c   : > { %v7043_v18 = vadd.f32 %v7042_v1, %v6970_v54 }
 0x52e   : > { %v7476_v7 = vpop.eup %7475  ;;  %v7084_v40 = vadd.f32 %v7083_v44, %v7043_v18 }
 0x52f   : > { %v7107_v35 = vmul.f32 %v7476_v7, %v7080_v2  ;;  %vm7113_vm12 = vweird.f32 %v7476_v7 }
 0x530   : > { %7477 = vrsqrt.f32 %v7084_v40  ;;  %vm7114_vm14 = vmor %vm7112_vm13, %vm7113_vm12  ;;  %vm7142_vm0 = vweird.f32 %v7084_v40 }
 0x531   : > { %v7108_v5 = vmul.f32 %v7476_v7, %v7107_v35 }
 0x533   : > { %v7109_v28 = vmul.f32 0.5, %v7108_v5 }
 0x535   : > { %v7110_v62 = vsub.f32 1.5, %v7109_v28 }
 0x536   : > { %v7478_v10 = vpop.eup %7477 }
 0x537   : > { %v7111_v15 = vmul.f32 %v7476_v7, %v7110_v62  ;;  %v7137_v33 = vmul.f32 %v7478_v10, %v7084_v40  ;;  %vm7143_vm15 = vweird.f32 %v7478_v10 }
 0x538   : > { %vm7144_vm1 = vmor %vm7142_vm0, %vm7143_vm15 }
 0x539   : > { %v7115_v36 = vsel %vm7114_vm14, %v7476_v7, %v7111_v15  ;;  %v7138_v41 = vmul.f32 %v7478_v10, %v7137_v33 }
 0x53a   : > { %v7148_v52 = vmul.f32 %v7115_v36, %v14290_v61 }
 0x53b   : > { %v7139_v57 = vmul.f32 0.5, %v7138_v41 }
 0x53c   : > { %v7162_v8 = vmul.f32 %v7156_v12, %v7148_v52 }
 0x53d   : > { %v7140_v46 = vsub.f32 1.5, %v7139_v57 }
 0x53e   : > { %v7176_v14 = vadd.f32 %v7170_v56, %v7162_v8 }
 0x53f   : > { %v7141_v34 = vmul.f32 %v7478_v10, %v7140_v46 }
 0x540   : > { %7182 = vst [vmem:[%s11822_s29 + $0x10] sm:$0xff] %v7176_v14 }
 0x541   : > { %v7145_v30 = vsel %vm7144_vm1, %v7478_v10, %v7141_v34 }
 0x542   : > { %v7151_v51 = vmul.f32 %v7145_v30, %v14291_v9 }
 0x544   : > { %v7165_v29 = vmul.f32 %v7156_v12, %v7151_v51  ;;  %7192 = sbr.rel (!%p7623_p4) target bundleno = 1392 (0x570), region = 40 }
 0x546   : > { %v7179_v60 = vadd.f32 %v7170_v56, %v7165_v29 }
 0x548   : > { %7185 = vst [vmem:[%s11822_s29 + $0x28] sm:$0xff] %v7179_v60 }
 0x549   : > { %s14300_s30 = smov (!%p7195_p8, %s7194_s30), 2 }
 0x54a   : > { %s7364_s9 = smul.u32 24, %s14300_s30 }
 0x54c   : > { %p7368_p9 = scmp.eq.s32.totalorder %s7364_s9, 0 }
 0x54d   : > { %s12122_s10 = sshrl.u32 (!%p7368_p9), %s14300_s30, 1 }
 0x54e   : > { %7205 = sbr.rel (%p7368_p9) target bundleno = 1392 (0x570), region = 44  ;;  %p7369_p10 = scmp.le.s32.totalorder (!%p7368_p9), %s12122_s10, 0 }
 0x553   : > { %7312 = sbr.rel (%p7369_p10) target bundleno = 1376 (0x560), region = 92  ;;  %s14292_s18 = smov (!%p7369_p10), %s12116_s8 }
 0x554   : > { %s14293_s23 = smov (!%p7369_p10), %s11822_s29  ;;  %s12131_s26 = smov (!%p7369_p10), 0  }
 0x555   : > { %s12133_s11 = smov (!%p7369_p10), 0  }
 0x558 LB: >> { %v7218_v11 = vld [vmem:[%s7547_s23] sm:$0xff]  ;;  %v7220_v3 = vld [vmem:[%s7547_s23 + $0x18] sm:$0xff]  ;;  %v7222_v43 = vld [vmem:[%s7547_s23 + $0x8] sm:$0xff]  ;;  %s7230_s12 = sadd.s32 1, %s7551_s26  ;;  %s7212_s11 = sadd.s32 1, %s7555_s11   ;;  %s7555_s11 = sphi %s12133_s11, %s7212_s11   ;;  %s7551_s26 = sphi %s12131_s26, %s14294_s26   ;;  %s7547_s23 = sphi %s14293_s23, %s7235_s23   ;;  %s7543_s18 = sphi %s14292_s18, %s7236_s18  }
 0x559   : >> { %7219 = vst [vmem:[%s7543_s18] sm:$0xff] %v7218_v11  ;;  %v7224_v21 = vld [vmem:[%s7547_s23 + $0x20] sm:$0xff]  ;;  %p7231_p11 = scmp.ge.s32.totalorder %s7230_s12, %s12122_s10  ;;  %v7226_v49 = vld [vmem:[%s7547_s23 + $0x10] sm:$0xff]  ;;  %v7228_v24 = vld [vmem:[%s7547_s23 + $0x28] sm:$0xff]  ;;  %p7211_p12 = scmp.ge.s32.totalorder %s7212_s11, %s12122_s10 }
 0x55a   : >> { %7221 = vst [vmem:[%s7543_s18 + $0x18] sm:$0xff] %v7220_v3 }
 0x55b   : >> { %7223 = vst [vmem:[%s7543_s18 + $0x8] sm:$0xff] %v7222_v43  ;;  %s14302_s12 = smov (%p7231_p11, %s7230_s12), 0  ;;  %7214 = sbr.rel (!%p7211_p12) target bundleno = 1368 (0x558), region = 98 }
 0x55c   : >> { %7225 = vst [vmem:[%s7543_s18 + $0x20] sm:$0xff] %v7224_v21  ;;  %s7233_s13 = smul.u32 48, %s14302_s12  ;;  %s14294_s26 = smov %s14302_s12 }
 0x55d   : >> { %7227 = vst [vmem:[%s7543_s18 + $0x10] sm:$0xff] %v7226_v49 }
 0x55e   : >> { %7229 = vst [vmem:[%s7543_s18 + $0x28] sm:$0xff] %v7228_v24  ;;  %s7235_s23 = scalar_lea.vmem %s11822_s29, %s7233_s13 [#allocation2]   ;;  %s7236_s18 = scalar_lea.vmem %s12116_s8, %s7233_s13  }
 0x560 PF: > { %s12152_s14 = sand.u32 1, %s14300_s30   ;;  %s7371_s17 = smul.u32 48, %s12122_s10 }
 0x561   : > { %p7373_p13 = scmp.le.s32.totalorder %s12152_s14, 0 }
 0x562   : > { %s12156_s20 = scalar_lea.vmem %s11822_s29, %s7371_s17 [#allocation2]   ;;  %s12159_s28 = scalar_lea.vmem %s12116_s8, %s7371_s17  }
 0x563   : > { %7326 = sbr.rel (%p7373_p13) target bundleno = 1392 (0x570), region = 103  ;;  %s14295_s21 = smov (!%p7373_p13), %s12159_s28 }
 0x564   : > { %s7561_s24 = smov (!%p7373_p13), %s12156_s20   ;;  %s7565_s25 = smov (!%p7373_p13), 0  }
 0x565   : > { %s7569_s27 = smov (!%p7373_p13), 0  }
 0x568 LB: >> { %v7253_v25 = vld [vmem:[%s7563_s24] sm:$0xff]  ;;  %v7255_v38 = vld [vmem:[%s7563_s24 + $0x8] sm:$0xff]  ;;  %v7257_v50 = vld [vmem:[%s7563_s24 + $0x10] sm:$0xff]  ;;  %s7259_s15 = sadd.s32 1, %s7567_s25  ;;  %s7247_s27 = sadd.s32 1, %s7571_s27   ;;  %s7571_s27 = sphi %s7569_s27, %s7247_s27   ;;  %s7567_s25 = sphi %s7565_s25, %s7566_s25   ;;  %s7563_s24 = sphi %s7561_s24, %s7264_s24   ;;  %s7559_s21 = sphi %s14295_s21, %s7265_s21  }
 0x569   : >> { %7254 = vst [vmem:[%s7559_s21] sm:$0xff] %v7253_v25  ;;  %p7260_p0 = scmp.ge.s32.totalorder %s7259_s15, %s12152_s14  ;;  %p7246_p1 = scmp.ge.s32.totalorder %s7247_s27, %s12152_s14 }
 0x56a   : >> { %7256 = vst [vmem:[%s7559_s21 + $0x8] sm:$0xff] %v7255_v38 }
 0x56b   : >> { %7258 = vst [vmem:[%s7559_s21 + $0x10] sm:$0xff] %v7257_v50  ;;  %s14304_s15 = smov (%p7260_p0, %s7259_s15), 0  ;;  %7249 = sbr.rel (!%p7246_p1) target bundleno = 1384 (0x568), region = 109 }
 0x56c   : >> { %s7262_s29 = smul.u32 24, %s14304_s15  ;;  %s7566_s25 = smov %s14304_s15  }
 0x56e   : >> { %s7264_s24 = scalar_lea.vmem %s12156_s20, %s7262_s29 [#allocation2]   ;;  %s7265_s21 = scalar_lea.vmem %s12159_s28, %s7262_s29  }
 0x570 PF: > { %p11_p2 = scmp.ge.s32.totalorder %s7613_s19, 4   ;;  %s14296_s15 = smov %s7535_s16 }
 0x571   : > { %s14297_s16 = smov %s7621_s22  ;;  %s14298_s17 = smov %s7613_s19 }
 0x572   :  { %13 = sbr.rel (!%p11_p2) target bundleno = 2 (0x2), region = 120 }

</bundles_post_ra>
